<compile_context>
chip_gen: v7x
topology: tpu7x:2x2x1
jax: 0.10.0
libtpu: 0.0.40
codegen_flags: <defaults>
</compile_context>

<pallas_src>
import functools

import jax
import jax.numpy as jnp
from jax import lax
from jax.experimental import pallas as pl
from jax.experimental.pallas import tpu as pltpu

_VMEM_LIMIT = 32 * 1024 * 1024  # safe scoped-VMEM request on v5e / v6e / v7x


def _round_up(x, m):
    return (x + m - 1) // m * m


def _pick_row_tile(m, cap=256):
    """Split the (multiple-of-8 padded) row count into the fewest tiles <= cap."""
    mp = _round_up(m, 8)
    if mp <= cap:
        return mp, mp
    nblk = -(-mp // cap)
    tm = _round_up(-(-mp // nblk), 8)
    return tm, tm * nblk


# --------------------- Pallas kernel: matmul + bias + ReLU (full-K tiles) -----------
def _matmul_bias_relu_kernel(a_ref, b_ref, bias_ref, o_ref):
    acc = jnp.dot(a_ref[...], b_ref[...], preferred_element_type=jnp.float32)
    o_ref[...] = jnp.maximum(acc + bias_ref[...], 0.0).astype(o_ref.dtype)


def matmul_bias_relu(a, b_packed, bias_row, row_cap=256):
    """ReLU(a @ b + bias).  a: (M, K); b_packed: (Kp, Np) bf16 pre-padded weights;
    bias_row: (1, Np) f32.  Full-K / 128-wide-N tiles -> 1-2 grid steps per conv."""
    M, K = a.shape
    Kp, Np = b_packed.shape
    a = a.astype(jnp.bfloat16)

    tm, Mp = _pick_row_tile(M, cap=row_cap)
    tn = Np if Np <= 128 else 128  # >= 2 parallel N blocks when Np >= 256 (v7x: both TCs)
    if (Mp, Kp) != (M, K):
        a = jnp.pad(a, ((0, Mp - M), (0, Kp - K)))

    # Full-K blocks: double-buffered working set must stay well under the VMEM limit.
    assert 2 * 2 * (tm * Kp + Kp * tn) + 4 * tm * tn < _VMEM_LIMIT, "K tile too large"

    grid = (Mp // tm, Np // tn)
    out = pl.pallas_call(
        _matmul_bias_relu_kernel,
        out_shape=jax.ShapeDtypeStruct((Mp, Np), jnp.bfloat16),
        grid=grid,
        in_specs=[
            pl.BlockSpec((tm, Kp), lambda i, j: (i, 0)),
            pl.BlockSpec((Kp, tn), lambda i, j: (0, j)),
            pl.BlockSpec((1, tn), lambda i, j: (0, j)),
        ],
        out_specs=pl.BlockSpec((tm, tn), lambda i, j: (i, j)),
        compiler_params=pltpu.CompilerParams(
            dimension_semantics=("parallel", "parallel"),
            vmem_limit_bytes=_VMEM_LIMIT,
        ),
    )(a, b_packed, bias_row)
    return out[:M] if Mp != M else out


# ------------- Pallas kernel: conv3 (3x3) + ReLU + conv4 (1x1) + ReLU fused ---------
def _double_matmul_relu_kernel(a_ref, b3_ref, c3_ref, b4_ref, c4_ref, o_ref):
    h = jnp.dot(a_ref[...], b3_ref[...], preferred_element_type=jnp.float32)
    h = jnp.maximum(h + c3_ref[...], 0.0).astype(jnp.bfloat16)
    o = jnp.dot(h, b4_ref[...], preferred_element_type=jnp.float32)
    o_ref[...] = jnp.maximum(o + c4_ref[...], 0.0).astype(o_ref.dtype)


def conv3x3_then_1x1(x, b3, c3, b4, c4):
    """conv3 (3x3, pad 1, stride 1) + ReLU + conv4 (1x1) + ReLU in ONE pallas_call.
    B4 stays resident in VMEM; the 1x1 conv is applied in the epilogue before the store."""
    N, H, W, C = x.shape
    patches = lax.conv_general_dilated_patches(
        x, (3, 3), (1, 1), ((1, 1), (1, 1)),
        dimension_numbers=("NHWC", "HWIO", "NHWC"))
    _, Ho, Wo, K = patches.shape
    M = N * Ho * Wo
    a = patches.reshape(M, K).astype(jnp.bfloat16)
    Kp, N3 = b3.shape
    _, N4 = b4.shape
    assert Kp == K, (Kp, K)
    Mp = _round_up(M, 8)
    if Mp != M:
        a = jnp.pad(a, ((0, Mp - M), (0, 0)))

    out = pl.pallas_call(
        _double_matmul_relu_kernel,
        out_shape=jax.ShapeDtypeStruct((Mp, N4), jnp.bfloat16),
        grid=(1,),
        in_specs=[
            pl.BlockSpec((Mp, Kp), lambda i: (0, 0)),
            pl.BlockSpec((Kp, N3), lambda i: (0, 0)),
            pl.BlockSpec((1, N3), lambda i: (0, 0)),
            pl.BlockSpec((N3, N4), lambda i: (0, 0)),
            pl.BlockSpec((1, N4), lambda i: (0, 0)),
        ],
        out_specs=pl.BlockSpec((Mp, N4), lambda i: (0, 0)),
        compiler_params=pltpu.CompilerParams(
            dimension_semantics=("arbitrary",),
            vmem_limit_bytes=_VMEM_LIMIT,
        ),
    )(a, b3, c3, b4, c4)
    out = out[:M] if Mp != M else out
    return out.reshape(N, Ho, Wo, N4)


# --------------- Pallas kernel: MaxPool2d(3, 2) + CrossMapLRN2d fused ---------------
def _maxpool_lrn_kernel(ee_ref, eo_ref, oe_ref, oo_ref, o_ref, *, alpha, beta, k, size):
    # 3x3 / stride-2 max pool from the 4 even/odd phase blocks (max is exact in bf16).
    oo = oo_ref[...]
    ee = ee_ref[...]
    eo = eo_ref[...]
    oe = oe_ref[...]
    ho, wo = oo.shape[1], oo.shape[2]
    m = oo
    m = jnp.maximum(m, ee[:, :ho, :wo, :])
    m = jnp.maximum(m, ee[:, :ho, 1:wo + 1, :])
    m = jnp.maximum(m, ee[:, 1:ho + 1, :wo, :])
    m = jnp.maximum(m, ee[:, 1:ho + 1, 1:wo + 1, :])
    m = jnp.maximum(m, eo[:, :ho, :, :])
    m = jnp.maximum(m, eo[:, 1:ho + 1, :, :])
    m = jnp.maximum(m, oe[:, :, :wo, :])
    m = jnp.maximum(m, oe[:, :, 1:wo + 1, :])

    # CrossMapLRN2d over the channel (lane) axis: lane rolls + masked adds (XLU only,
    # no MXU).  Zero-padded channels stay exactly zero (x * scale^-beta with x == 0).
    x = m.astype(jnp.float32)
    xsq = x * x
    C = x.shape[-1]
    lane = lax.broadcasted_iota(jnp.int32, x.shape, 3)
    half = (size - 1) // 2
    s = xsq
    for d in range(1, half + 1):
        s = s + jnp.where(lane >= d, pltpu.roll(xsq, d, 3), 0.0)              # c-d neighbor
        s = s + jnp.where(lane <= C - 1 - d, pltpu.roll(xsq, C - d, 3), 0.0)  # c+d neighbor
    scale = k + (alpha / size) * s
    o_ref[...] = (x * jnp.exp(-beta * jnp.log(scale))).astype(o_ref.dtype)


def maxpool_lrn(x, size=5, alpha=1e-4, beta=0.75, k=1.0):
    """Fused MaxPool2d(3, 2) + CrossMapLRN2d on NHWC: whole batch, one grid step.
    The 4 even/odd phase views keep total input bytes == |x| (no 9x window blowup)."""
    N, H, W, C = x.shape
    Ho = (H - 3) // 2 + 1
    Wo = (W - 3) // 2 + 1
    # TODO(synk): take these strided phase slices in-kernel (or in the conv epilogue) so
    # the conv output never round-trips HBM.
    ee = x[:, 0::2, 0::2, :][:, :Ho + 1, :Wo + 1, :]
    eo = x[:, 0::2, 1::2, :][:, :Ho + 1, :Wo, :]
    oe = x[:, 1::2, 0::2, :][:, :Ho, :Wo + 1, :]
    oo = x[:, 1::2, 1::2, :][:, :Ho, :Wo, :]

    kern = functools.partial(_maxpool_lrn_kernel, alpha=alpha, beta=beta, k=k, size=size)
    return pl.pallas_call(
        kern,
        out_shape=jax.ShapeDtypeStruct((N, Ho, Wo, C), x.dtype),
        grid=(1,),
        in_specs=[
            pl.BlockSpec(ee.shape, lambda i: (0, 0, 0, 0)),
            pl.BlockSpec(eo.shape, lambda i: (0, 0, 0, 0)),
            pl.BlockSpec(oe.shape, lambda i: (0, 0, 0, 0)),
            pl.BlockSpec(oo.shape, lambda i: (0, 0, 0, 0)),
        ],
        out_specs=pl.BlockSpec((N, Ho, Wo, C), lambda i: (0, 0, 0, 0)),
        compiler_params=pltpu.CompilerParams(
            dimension_semantics=("arbitrary",),
            vmem_limit_bytes=_VMEM_LIMIT,
        ),
    )(ee, eo, oe, oo)


# ------------------------------- Conv2d = patches + matmul ---------------------------
def conv2d_relu(x, b_packed, bias_row, kh, kw, stride, pad, row_cap=256):
    """Conv2d + ReLU: patch extraction via lax.conv_general_dilated_patches (single XLA
    op, channel-major feature order), contraction + bias + ReLU in the Pallas kernel."""
    N, H, W, C = x.shape
    if kh == 1 and kw == 1 and stride == 1 and pad == 0:
        Ho, Wo = H, W
        a = x.reshape(N * H * W, C)
    else:
        # TODO(synk): in-kernel im2col (walk the kh*kw window inside the kernel) so the
        # patch matrix never round-trips HBM.
        patches = lax.conv_general_dilated_patches(
            x, (kh, kw), (stride, stride), ((pad, pad), (pad, pad)),
            dimension_numbers=("NHWC", "HWIO", "NHWC"))
        _, Ho, Wo, K = patches.shape       # feature index = c*kh*kw + i*kw + j
        a = patches.reshape(N * Ho * Wo, K)
    out = matmul_bias_relu(a, b_packed, bias_row, row_cap=row_cap)
    return out.reshape(N, Ho, Wo, out.shape[-1])


# ------------------------------ one-time weight packing ------------------------------
def _pack_dense(w_oihw, bias):
    """(Cout, Cin, kh, kw) -> bf16 (Kp, Np) matrix in the dilated-patches channel-major
    order, plus an f32 (1, Np) bias row (K, N padded to multiples of 128)."""
    Cout, Cin, kh, kw = w_oihw.shape
    K = Cin * kh * kw
    Kp, Np = _round_up(K, 128), _round_up(Cout, 128)
    b = jnp.zeros((Kp, Np), jnp.float32)
    b = b.at[:K, :Cout].set(jnp.transpose(w_oihw, (1, 2, 3, 0)).reshape(K, Cout))
    bias_row = jnp.zeros((1, Np), jnp.float32).at[0, :Cout].set(bias)
    return b.astype(jnp.bfloat16), bias_row


def _pack_grouped(w_oihw, bias, cin_full, groups):
    """Grouped conv packed as a block-diagonal dense matrix -> one pallas_call; each
    128-wide N block only touches its own group's K rows (zero elsewhere)."""
    Cout, Cin_g, kh, kw = w_oihw.shape
    Cout_g = Cout // groups
    K = cin_full * kh * kw
    Kp, Np = _round_up(K, 128), _round_up(Cout, 128)
    b = jnp.zeros((Kp, Np), jnp.float32)
    for g in range(groups):
        blk = jnp.transpose(w_oihw[g * Cout_g:(g + 1) * Cout_g],
                            (1, 2, 3, 0)).reshape(Cin_g * kh * kw, Cout_g)
        k0 = g * Cin_g * kh * kw
        b = b.at[k0:k0 + Cin_g * kh * kw, g * Cout_g:(g + 1) * Cout_g].set(blk)
    bias_row = jnp.zeros((1, Np), jnp.float32).at[0, :Cout].set(bias)
    return b.astype(jnp.bfloat16), bias_row


def prepare_params(params):
    """Reorder / pad / cast weights once (outside the per-step jit)."""
    B1, c1 = _pack_dense(params["w1"], params["b1"])                            # 768 x 128
    B2, c2 = _pack_grouped(params["w2"], params["b2"], cin_full=128, groups=2)  # 3200 x 256
    B3, c3 = _pack_dense(params["w3"], params["b3"])                            # 2304 x 384
    B4, c4 = _pack_dense(params["w4"], params["b4"])                            # 384 x 128
    return {"B1": B1, "c1": c1, "B2": B2, "c2": c2,
            "B3": B3, "c3": c3, "B4": B4, "c4": c4}


# ----------------------------- ItrackerImageModel forward ---------------------------
def itracker_image_forward(x_nchw, pp):
    # NCHW -> NHWC, bf16, channels kept lane-dense (multiples of 128) throughout.
    x = jnp.transpose(x_nchw, (0, 2, 3, 1)).astype(jnp.bfloat16)

    x = conv2d_relu(x, pp["B1"], pp["c1"], 11, 11, 4, 0)       # (N, 14, 14, 128): 96 real
    x = maxpool_lrn(x)                                         # (N, 6, 6, 128)  fused pool+LRN
    x = conv2d_relu(x, pp["B2"], pp["c2"], 5, 5, 1, 2)         # (N, 6, 6, 256)  grouped conv
    x = maxpool_lrn(x)                                         # (N, 2, 2, 256)
    x = conv3x3_then_1x1(x, pp["B3"], pp["c3"], pp["B4"], pp["c4"])  # (N, 2, 2, 128): 64 real

    x = x[..., :64]                                            # drop lane padding
    x = jnp.transpose(x, (0, 3, 1, 2))                         # NCHW so flatten matches view(N,-1)
    return x.reshape(x.shape[0], -1).astype(jnp.float32)


# ----------------------------- pure-XLA f32 reference --------------------------------
def reference_forward(x_nchw, params):
    def conv(x, w, b, stride, pad, groups=1):
        y = lax.conv_general_dilated(
            x, w, (stride, stride), ((pad, pad), (pad, pad)),
            dimension_numbers=("NCHW", "OIHW", "NCHW"),
            feature_group_count=groups)
        return jnp.maximum(y + b[None, :, None, None], 0.0)

    def maxpool(x):
        return lax.reduce_window(x, -jnp.inf, lax.max, (1, 1, 3, 3), (1, 1, 2, 2), "VALID")

    def lrn(x, size=5, alpha=1e-4, beta=0.75, k=1.0):
        h = (size - 1) // 2
        s = lax.reduce_window(x * x, 0.0, lax.add, (1, size, 1, 1), (1, 1, 1, 1),
                              [(0, 0), (h, h), (0, 0), (0, 0)])
        return x / (k + (alpha / size) * s) ** beta

    x = conv(x_nchw, params["w1"], params["b1"], 4, 0)
    x = lrn(maxpool(x))
    x = conv(x, params["w2"], params["b2"], 1, 2, groups=2)
    x = lrn(maxpool(x))
    x = conv(x, params["w3"], params["b3"], 1, 1)
    x = conv(x, params["w4"], params["b4"], 1, 0)
    return x.reshape(x.shape[0], -1)


def init_params(key):
    ks = jax.random.split(key, 8)
    return {
        "w1": jax.random.normal(ks[0], (96, 6, 11, 11), jnp.float32) * 0.05,
        "b1": jax.random.normal(ks[1], (96,), jnp.float32) * 0.01,
        "w2": jax.random.normal(ks[2], (256, 48, 5, 5), jnp.float32) * 0.05,
        "b2": jax.random.normal(ks[3], (256,), jnp.float32) * 0.01,
        "w3": jax.random.normal(ks[4], (384, 256, 3, 3), jnp.float32) * 0.05,
        "b3": jax.random.normal(ks[5], (384,), jnp.float32) * 0.01,
        "w4": jax.random.normal(ks[6], (64, 384, 1, 1), jnp.float32) * 0.05,
        "b4": jax.random.normal(ks[7], (64,), jnp.float32) * 0.01,
    }


if __name__ == "__main__":
    key = jax.random.PRNGKey(0)
    k_x, k_p = jax.random.split(key)

    # Small input consistent with the module: batch=2, 6 channels, 63x63 spatial
    # (63 -> conv11/s4 -> 14 -> pool -> 6 -> conv5/p2 -> 6 -> pool -> 2 -> 2 -> 2)
    x = jax.random.normal(k_x, (2, 6, 63, 63), jnp.float32)
    params = init_params(k_p)
    packed = prepare_params(params)          # one-time weight packing / padding / bf16 cast

    fwd = jax.jit(itracker_image_forward)
    out = jax.block_until_ready(fwd(x, packed))

    assert out.shape == (2, 64 * 2 * 2), out.shape
    assert bool(jnp.all(jnp.isfinite(out))) and bool(jnp.all(out >= 0.0))

    # Cross-check against the pure-XLA f32 reference (guards patch-ordering / packing).
    ref = jax.block_until_ready(jax.jit(reference_forward)(x, params))
    rel_err = float(jnp.linalg.norm(out - ref) / (jnp.linalg.norm(ref) + 1e-6))
    assert rel_err < 0.1, f"relative error vs reference too large: {rel_err}"

    print("KERNEL_OK")
</pallas_src>

<mosaic_0001>
module attributes {stable_mosaic.version = 11 : i64} {
  func.func @_matmul_bias_relu_kernel(%arg0: i32, %arg1: i32, %arg2: memref<200x768xbf16, #tpu.memory_space<vmem>>, %arg3: memref<768x128xbf16, #tpu.memory_space<vmem>>, %arg4: memref<1x128xf32, #tpu.memory_space<vmem>>, %arg5: memref<200x128xbf16, #tpu.memory_space<vmem>>) attributes {dimension_semantics = [#tpu.dimension_semantics<parallel>, #tpu.dimension_semantics<parallel>], iteration_bounds = array<i64: 2, 1>, scalar_prefetch = 0 : i64, scratch_operands = 0 : i64, tpu.core_type = #tpu.core_type<tc>, window_params = [{transform_indices = @transform_0, window_bounds = array<i64: 200, 768>}, {transform_indices = @transform_1, window_bounds = array<i64: 768, 128>}, {transform_indices = @transform_2, window_bounds = array<i64: 1, 128>}, {transform_indices = @transform_3, window_bounds = array<i64: 200, 128>}]} {
    %c0 = arith.constant 0 : index
    %c0_0 = arith.constant 0 : index
    %0 = vector.load %arg2[%c0, %c0_0] : memref<200x768xbf16, #tpu.memory_space<vmem>>, vector<200x768xbf16>
    %c0_1 = arith.constant 0 : index
    %c0_2 = arith.constant 0 : index
    %1 = vector.load %arg3[%c0_1, %c0_2] : memref<768x128xbf16, #tpu.memory_space<vmem>>, vector<768x128xbf16>
    %cst = arith.constant dense<0.000000e+00> : vector<200x128xf32>
    %2 = tpu.matmul %0, %1, %cst {dimension_numbers = #tpu.dot_dimension_numbers<[1], [0], [0], [1], [0, 0, 1, 1], [], []>} : vector<200x768xbf16>, vector<768x128xbf16>, vector<200x128xf32> -> vector<200x128xf32>
    %c0_3 = arith.constant 0 : index
    %c0_4 = arith.constant 0 : index
    %3 = vector.load %arg4[%c0_3, %c0_4] : memref<1x128xf32, #tpu.memory_space<vmem>>, vector<1x128xf32>
    %4 = vector.broadcast %3 : vector<1x128xf32> to vector<200x128xf32>
    %5 = arith.addf %2, %4 : vector<200x128xf32>
    %cst_5 = arith.constant 0.000000e+00 : f32
    %6 = vector.broadcast %cst_5 : f32 to vector<200x128xf32>
    %7 = arith.maximumf %5, %6 : vector<200x128xf32>
    %8 = arith.truncf %7 : vector<200x128xf32> to vector<200x128xbf16>
    %c0_6 = arith.constant 0 : index
    %c0_7 = arith.constant 0 : index
    %9 = vector.load %arg5[%c0_6, %c0_7] : memref<200x128xbf16, #tpu.memory_space<vmem>>, vector<200x128xbf16>
    tpu.vector_store %arg5[%c0_6, %c0_7], %8 {strides = array<i32>} : memref<200x128xbf16, #tpu.memory_space<vmem>>, vector<200x128xbf16>,
    return
  }
  func.func @transform_0(%arg0: i32, %arg1: i32) -> (i32, i32) {
    %c0_i32 = arith.constant 0 : i32
    %c0_i32_0 = arith.constant 0 : i32
    return %arg0, %c0_i32 : i32, i32
  }
  func.func @transform_1(%arg0: i32, %arg1: i32) -> (i32, i32) {
    %c0_i32 = arith.constant 0 : i32
    %c0_i32_0 = arith.constant 0 : i32
    return %c0_i32, %arg1 : i32, i32
  }
  func.func @transform_2(%arg0: i32, %arg1: i32) -> (i32, i32) {
    %c0_i32 = arith.constant 0 : i32
    %c0_i32_0 = arith.constant 0 : i32
    return %c0_i32, %arg1 : i32, i32
  }
  func.func @transform_3(%arg0: i32, %arg1: i32) -> (i32, i32) {
    %c0_i32 = arith.constant 0 : i32
    return %arg0, %arg1 : i32, i32
  }
}

module attributes {stable_mosaic.version = 11 : i64} {
  func.func @_maxpool_lrn_kernel(%arg0: i32, %arg1: memref<2x7x7x128xbf16, #tpu.memory_space<vmem>>, %arg2: memref<2x7x6x128xbf16, #tpu.memory_space<vmem>>, %arg3: memref<2x6x7x128xbf16, #tpu.memory_space<vmem>>, %arg4: memref<2x6x6x128xbf16, #tpu.memory_space<vmem>>, %arg5: memref<2x6x6x128xbf16, #tpu.memory_space<vmem>>) attributes {dimension_semantics = [#tpu.dimension_semantics<arbitrary>], iteration_bounds = array<i64: 1>, scalar_prefetch = 0 : i64, scratch_operands = 0 : i64, tpu.core_type = #tpu.core_type<tc>, window_params = [{pipeline_mode = #tpu.pipeline_mode<synchronous>, transform_indices = @transform_0, window_bounds = array<i64: 2, 7, 7, 128>}, {pipeline_mode = #tpu.pipeline_mode<synchronous>, transform_indices = @transform_1, window_bounds = array<i64: 2, 7, 6, 128>}, {pipeline_mode = #tpu.pipeline_mode<synchronous>, transform_indices = @transform_2, window_bounds = array<i64: 2, 6, 7, 128>}, {pipeline_mode = #tpu.pipeline_mode<synchronous>, transform_indices = @transform_3, window_bounds = array<i64: 2, 6, 6, 128>}, {pipeline_mode = #tpu.pipeline_mode<synchronous>, transform_indices = @transform_4, window_bounds = array<i64: 2, 6, 6, 128>}]} {
    %c0 = arith.constant 0 : index
    %c0_0 = arith.constant 0 : index
    %c0_1 = arith.constant 0 : index
    %c0_2 = arith.constant 0 : index
    %0 = vector.load %arg4[%c0, %c0_0, %c0_1, %c0_2] : memref<2x6x6x128xbf16, #tpu.memory_space<vmem>>, vector<2x6x6x128xbf16>
    %c0_3 = arith.constant 0 : index
    %c0_4 = arith.constant 0 : index
    %c0_5 = arith.constant 0 : index
    %c0_6 = arith.constant 0 : index
    %1 = vector.load %arg1[%c0_3, %c0_4, %c0_5, %c0_6] : memref<2x7x7x128xbf16, #tpu.memory_space<vmem>>, vector<2x7x7x128xbf16>
    %c0_7 = arith.constant 0 : index
    %c0_8 = arith.constant 0 : index
    %c0_9 = arith.constant 0 : index
    %c0_10 = arith.constant 0 : index
    %2 = vector.load %arg2[%c0_7, %c0_8, %c0_9, %c0_10] : memref<2x7x6x128xbf16, #tpu.memory_space<vmem>>, vector<2x7x6x128xbf16>
    %c0_11 = arith.constant 0 : index
    %c0_12 = arith.constant 0 : index
    %c0_13 = arith.constant 0 : index
    %c0_14 = arith.constant 0 : index
    %3 = vector.load %arg3[%c0_11, %c0_12, %c0_13, %c0_14] : memref<2x6x7x128xbf16, #tpu.memory_space<vmem>>, vector<2x6x7x128xbf16>
    %4 = vector.extract_strided_slice %1 {offsets = [0, 0, 0, 0], sizes = [2, 6, 6, 128], strides = [1, 1, 1, 1]} : vector<2x7x7x128xbf16> to vector<2x6x6x128xbf16>
    %5 = arith.maximumf %0, %4 : vector<2x6x6x128xbf16>
    %6 = vector.extract_strided_slice %1 {offsets = [0, 0, 1, 0], sizes = [2, 6, 6, 128], strides = [1, 1, 1, 1]} : vector<2x7x7x128xbf16> to vector<2x6x6x128xbf16>
    %7 = arith.maximumf %5, %6 : vector<2x6x6x128xbf16>
    %8 = vector.extract_strided_slice %1 {offsets = [0, 1, 0, 0], sizes = [2, 6, 6, 128], strides = [1, 1, 1, 1]} : vector<2x7x7x128xbf16> to vector<2x6x6x128xbf16>
    %9 = arith.maximumf %7, %8 : vector<2x6x6x128xbf16>
    %10 = vector.extract_strided_slice %1 {offsets = [0, 1, 1, 0], sizes = [2, 6, 6, 128], strides = [1, 1, 1, 1]} : vector<2x7x7x128xbf16> to vector<2x6x6x128xbf16>
    %11 = arith.maximumf %9, %10 : vector<2x6x6x128xbf16>
    %12 = vector.extract_strided_slice %2 {offsets = [0, 0, 0, 0], sizes = [2, 6, 6, 128], strides = [1, 1, 1, 1]} : vector<2x7x6x128xbf16> to vector<2x6x6x128xbf16>
    %13 = arith.maximumf %11, %12 : vector<2x6x6x128xbf16>
    %14 = vector.extract_strided_slice %2 {offsets = [0, 1, 0, 0], sizes = [2, 6, 6, 128], strides = [1, 1, 1, 1]} : vector<2x7x6x128xbf16> to vector<2x6x6x128xbf16>
    %15 = arith.maximumf %13, %14 : vector<2x6x6x128xbf16>
    %16 = vector.extract_strided_slice %3 {offsets = [0, 0, 0, 0], sizes = [2, 6, 6, 128], strides = [1, 1, 1, 1]} : vector<2x6x7x128xbf16> to vector<2x6x6x128xbf16>
    %17 = arith.maximumf %15, %16 : vector<2x6x6x128xbf16>
    %18 = vector.extract_strided_slice %3 {offsets = [0, 0, 1, 0], sizes = [2, 6, 6, 128], strides = [1, 1, 1, 1]} : vector<2x6x7x128xbf16> to vector<2x6x6x128xbf16>
    %19 = arith.maximumf %17, %18 : vector<2x6x6x128xbf16>
    %20 = arith.extf %19 : vector<2x6x6x128xbf16> to vector<2x6x6x128xf32>
    %21 = arith.mulf %20, %20 : vector<2x6x6x128xf32>
    %22 = tpu.iota {dimensions = array<i32: 3>} : vector<2x6x6x128xi32>
    %c1_i32 = arith.constant 1 : i32
    %23 = vector.broadcast %c1_i32 : i32 to vector<2x6x6x128xi32>
    %24 = arith.cmpi sge, %22, %23 : vector<2x6x6x128xi32>
    %c1_i32_15 = arith.constant 1 : i32
    %25 = tpu.dynamic_rotate %21 by %c1_i32_15 dim 3 : vector<2x6x6x128xf32>, i32 -> vector<2x6x6x128xf32>
    %cst = arith.constant 0.000000e+00 : f32
    %26 = vector.broadcast %cst : f32 to vector<2x6x6x128xf32>
    %27 = arith.select %24, %25, %26 : vector<2x6x6x128xi1>, vector<2x6x6x128xf32>
    %28 = arith.addf %21, %27 : vector<2x6x6x128xf32>
    %c126_i32 = arith.constant 126 : i32
    %29 = vector.broadcast %c126_i32 : i32 to vector<2x6x6x128xi32>
    %30 = arith.cmpi sle, %22, %29 : vector<2x6x6x128xi32>
    %c127_i32 = arith.constant 127 : i32
    %31 = tpu.dynamic_rotate %21 by %c127_i32 dim 3 : vector<2x6x6x128xf32>, i32 -> vector<2x6x6x128xf32>
    %cst_16 = arith.constant 0.000000e+00 : f32
    %32 = vector.broadcast %cst_16 : f32 to vector<2x6x6x128xf32>
    %33 = arith.select %30, %31, %32 : vector<2x6x6x128xi1>, vector<2x6x6x128xf32>
    %34 = arith.addf %28, %33 : vector<2x6x6x128xf32>
    %c2_i32 = arith.constant 2 : i32
    %35 = vector.broadcast %c2_i32 : i32 to vector<2x6x6x128xi32>
    %36 = arith.cmpi sge, %22, %35 : vector<2x6x6x128xi32>
    %c2_i32_17 = arith.constant 2 : i32
    %37 = tpu.dynamic_rotate %21 by %c2_i32_17 dim 3 : vector<2x6x6x128xf32>, i32 -> vector<2x6x6x128xf32>
    %cst_18 = arith.constant 0.000000e+00 : f32
    %38 = vector.broadcast %cst_18 : f32 to vector<2x6x6x128xf32>
    %39 = arith.select %36, %37, %38 : vector<2x6x6x128xi1>, vector<2x6x6x128xf32>
    %40 = arith.addf %34, %39 : vector<2x6x6x128xf32>
    %c125_i32 = arith.constant 125 : i32
    %41 = vector.broadcast %c125_i32 : i32 to vector<2x6x6x128xi32>
    %42 = arith.cmpi sle, %22, %41 : vector<2x6x6x128xi32>
    %c126_i32_19 = arith.constant 126 : i32
    %43 = tpu.dynamic_rotate %21 by %c126_i32_19 dim 3 : vector<2x6x6x128xf32>, i32 -> vector<2x6x6x128xf32>
    %cst_20 = arith.constant 0.000000e+00 : f32
    %44 = vector.broadcast %cst_20 : f32 to vector<2x6x6x128xf32>
    %45 = arith.select %42, %43, %44 : vector<2x6x6x128xi1>, vector<2x6x6x128xf32>
    %46 = arith.addf %40, %45 : vector<2x6x6x128xf32>
    %cst_21 = arith.constant 2.000000e-05 : f32
    %47 = vector.broadcast %cst_21 : f32 to vector<2x6x6x128xf32>
    %48 = arith.mulf %47, %46 : vector<2x6x6x128xf32>
    %cst_22 = arith.constant 1.000000e+00 : f32
    %49 = vector.broadcast %cst_22 : f32 to vector<2x6x6x128xf32>
    %50 = arith.addf %49, %48 : vector<2x6x6x128xf32>
    %51 = math.log %50 : vector<2x6x6x128xf32>
    %cst_23 = arith.constant -7.500000e-01 : f32
    %52 = vector.broadcast %cst_23 : f32 to vector<2x6x6x128xf32>
    %53 = arith.mulf %52, %51 : vector<2x6x6x128xf32>
    %54 = math.exp %53 : vector<2x6x6x128xf32>
    %55 = arith.mulf %20, %54 : vector<2x6x6x128xf32>
    %56 = arith.truncf %55 : vector<2x6x6x128xf32> to vector<2x6x6x128xbf16>
    %c0_24 = arith.constant 0 : index
    %c0_25 = arith.constant 0 : index
    %c0_26 = arith.constant 0 : index
    %c0_27 = arith.constant 0 : index
    %57 = vector.load %arg5[%c0_24, %c0_25, %c0_26, %c0_27] : memref<2x6x6x128xbf16, #tpu.memory_space<vmem>>, vector<2x6x6x128xbf16>
    tpu.vector_store %arg5[%c0_24, %c0_25, %c0_26, %c0_27], %56 {strides = array<i32>} : memref<2x6x6x128xbf16, #tpu.memory_space<vmem>>, vector<2x6x6x128xbf16>,
    return
  }
  func.func @transform_0(%arg0: i32) -> (i32, i32, i32, i32) {
    %c0_i32 = arith.constant 0 : i32
    %c0_i32_0 = arith.constant 0 : i32
    %c0_i32_1 = arith.constant 0 : i32
    %c0_i32_2 = arith.constant 0 : i32
    %c0_i32_3 = arith.constant 0 : i32
    return %c0_i32, %c0_i32_0, %c0_i32_1, %c0_i32_2 : i32, i32, i32, i32
  }
  func.func @transform_1(%arg0: i32) -> (i32, i32, i32, i32) {
    %c0_i32 = arith.constant 0 : i32
    %c0_i32_0 = arith.constant 0 : i32
    %c0_i32_1 = arith.constant 0 : i32
    %c0_i32_2 = arith.constant 0 : i32
    %c0_i32_3 = arith.constant 0 : i32
    return %c0_i32, %c0_i32_0, %c0_i32_1, %c0_i32_2 : i32, i32, i32, i32
  }
  func.func @transform_2(%arg0: i32) -> (i32, i32, i32, i32) {
    %c0_i32 = arith.constant 0 : i32
    %c0_i32_0 = arith.constant 0 : i32
    %c0_i32_1 = arith.constant 0 : i32
    %c0_i32_2 = arith.constant 0 : i32
    %c0_i32_3 = arith.constant 0 : i32
    return %c0_i32, %c0_i32_0, %c0_i32_1, %c0_i32_2 : i32, i32, i32, i32
  }
  func.func @transform_3(%arg0: i32) -> (i32, i32, i32, i32) {
    %c0_i32 = arith.constant 0 : i32
    %c0_i32_0 = arith.constant 0 : i32
    %c0_i32_1 = arith.constant 0 : i32
    %c0_i32_2 = arith.constant 0 : i32
    %c0_i32_3 = arith.constant 0 : i32
    return %c0_i32, %c0_i32_0, %c0_i32_1, %c0_i32_2 : i32, i32, i32, i32
  }
  func.func @transform_4(%arg0: i32) -> (i32, i32, i32, i32) {
    %c0_i32 = arith.constant 0 : i32
    %c0_i32_0 = arith.constant 0 : i32
    %c0_i32_1 = arith.constant 0 : i32
    %c0_i32_2 = arith.constant 0 : i32
    %c0_i32_3 = arith.constant 0 : i32
    return %c0_i32, %c0_i32_0, %c0_i32_1, %c0_i32_2 : i32, i32, i32, i32
  }
}

module attributes {stable_mosaic.version = 11 : i64} {
  func.func @_matmul_bias_relu_kernel(%arg0: i32, %arg1: i32, %arg2: memref<72x3200xbf16, #tpu.memory_space<vmem>>, %arg3: memref<3200x128xbf16, #tpu.memory_space<vmem>>, %arg4: memref<1x128xf32, #tpu.memory_space<vmem>>, %arg5: memref<72x128xbf16, #tpu.memory_space<vmem>>) attributes {dimension_semantics = [#tpu.dimension_semantics<parallel>, #tpu.dimension_semantics<parallel>], iteration_bounds = array<i64: 1, 2>, scalar_prefetch = 0 : i64, scratch_operands = 0 : i64, tpu.core_type = #tpu.core_type<tc>, window_params = [{transform_indices = @transform_0, window_bounds = array<i64: 72, 3200>}, {transform_indices = @transform_1, window_bounds = array<i64: 3200, 128>}, {transform_indices = @transform_2, window_bounds = array<i64: 1, 128>}, {transform_indices = @transform_3, window_bounds = array<i64: 72, 128>}]} {
    %c0 = arith.constant 0 : index
    %c0_0 = arith.constant 0 : index
    %0 = vector.load %arg2[%c0, %c0_0] : memref<72x3200xbf16, #tpu.memory_space<vmem>>, vector<72x3200xbf16>
    %c0_1 = arith.constant 0 : index
    %c0_2 = arith.constant 0 : index
    %1 = vector.load %arg3[%c0_1, %c0_2] : memref<3200x128xbf16, #tpu.memory_space<vmem>>, vector<3200x128xbf16>
    %cst = arith.constant dense<0.000000e+00> : vector<72x128xf32>
    %2 = tpu.matmul %0, %1, %cst {dimension_numbers = #tpu.dot_dimension_numbers<[1], [0], [0], [1], [0, 0, 1, 1], [], []>} : vector<72x3200xbf16>, vector<3200x128xbf16>, vector<72x128xf32> -> vector<72x128xf32>
    %c0_3 = arith.constant 0 : index
    %c0_4 = arith.constant 0 : index
    %3 = vector.load %arg4[%c0_3, %c0_4] : memref<1x128xf32, #tpu.memory_space<vmem>>, vector<1x128xf32>
    %4 = vector.broadcast %3 : vector<1x128xf32> to vector<72x128xf32>
    %5 = arith.addf %2, %4 : vector<72x128xf32>
    %cst_5 = arith.constant 0.000000e+00 : f32
    %6 = vector.broadcast %cst_5 : f32 to vector<72x128xf32>
    %7 = arith.maximumf %5, %6 : vector<72x128xf32>
    %8 = arith.truncf %7 : vector<72x128xf32> to vector<72x128xbf16>
    %c0_6 = arith.constant 0 : index
    %c0_7 = arith.constant 0 : index
    %9 = vector.load %arg5[%c0_6, %c0_7] : memref<72x128xbf16, #tpu.memory_space<vmem>>, vector<72x128xbf16>
    tpu.vector_store %arg5[%c0_6, %c0_7], %8 {strides = array<i32>} : memref<72x128xbf16, #tpu.memory_space<vmem>>, vector<72x128xbf16>,
    return
  }
  func.func @transform_0(%arg0: i32, %arg1: i32) -> (i32, i32) {
    %c0_i32 = arith.constant 0 : i32
    %c0_i32_0 = arith.constant 0 : i32
    return %arg0, %c0_i32 : i32, i32
  }
  func.func @transform_1(%arg0: i32, %arg1: i32) -> (i32, i32) {
    %c0_i32 = arith.constant 0 : i32
    %c0_i32_0 = arith.constant 0 : i32
    return %c0_i32, %arg1 : i32, i32
  }
  func.func @transform_2(%arg0: i32, %arg1: i32) -> (i32, i32) {
    %c0_i32 = arith.constant 0 : i32
    %c0_i32_0 = arith.constant 0 : i32
    return %c0_i32, %arg1 : i32, i32
  }
  func.func @transform_3(%arg0: i32, %arg1: i32) -> (i32, i32) {
    %c0_i32 = arith.constant 0 : i32
    return %arg0, %arg1 : i32, i32
  }
}

module attributes {stable_mosaic.version = 11 : i64} {
  func.func @_maxpool_lrn_kernel(%arg0: i32, %arg1: memref<2x3x3x256xbf16, #tpu.memory_space<vmem>>, %arg2: memref<2x3x2x256xbf16, #tpu.memory_space<vmem>>, %arg3: memref<2x2x3x256xbf16, #tpu.memory_space<vmem>>, %arg4: memref<2x2x2x256xbf16, #tpu.memory_space<vmem>>, %arg5: memref<2x2x2x256xbf16, #tpu.memory_space<vmem>>) attributes {dimension_semantics = [#tpu.dimension_semantics<arbitrary>], iteration_bounds = array<i64: 1>, scalar_prefetch = 0 : i64, scratch_operands = 0 : i64, tpu.core_type = #tpu.core_type<tc>, window_params = [{pipeline_mode = #tpu.pipeline_mode<synchronous>, transform_indices = @transform_0, window_bounds = array<i64: 2, 3, 3, 256>}, {pipeline_mode = #tpu.pipeline_mode<synchronous>, transform_indices = @transform_1, window_bounds = array<i64: 2, 3, 2, 256>}, {pipeline_mode = #tpu.pipeline_mode<synchronous>, transform_indices = @transform_2, window_bounds = array<i64: 2, 2, 3, 256>}, {pipeline_mode = #tpu.pipeline_mode<synchronous>, transform_indices = @transform_3, window_bounds = array<i64: 2, 2, 2, 256>}, {pipeline_mode = #tpu.pipeline_mode<synchronous>, transform_indices = @transform_4, window_bounds = array<i64: 2, 2, 2, 256>}]} {
    %c0 = arith.constant 0 : index
    %c0_0 = arith.constant 0 : index
    %c0_1 = arith.constant 0 : index
    %c0_2 = arith.constant 0 : index
    %0 = vector.load %arg4[%c0, %c0_0, %c0_1, %c0_2] : memref<2x2x2x256xbf16, #tpu.memory_space<vmem>>, vector<2x2x2x256xbf16>
    %c0_3 = arith.constant 0 : index
    %c0_4 = arith.constant 0 : index
    %c0_5 = arith.constant 0 : index
    %c0_6 = arith.constant 0 : index
    %1 = vector.load %arg1[%c0_3, %c0_4, %c0_5, %c0_6] : memref<2x3x3x256xbf16, #tpu.memory_space<vmem>>, vector<2x3x3x256xbf16>
    %c0_7 = arith.constant 0 : index
    %c0_8 = arith.constant 0 : index
    %c0_9 = arith.constant 0 : index
    %c0_10 = arith.constant 0 : index
    %2 = vector.load %arg2[%c0_7, %c0_8, %c0_9, %c0_10] : memref<2x3x2x256xbf16, #tpu.memory_space<vmem>>, vector<2x3x2x256xbf16>
    %c0_11 = arith.constant 0 : index
    %c0_12 = arith.constant 0 : index
    %c0_13 = arith.constant 0 : index
    %c0_14 = arith.constant 0 : index
    %3 = vector.load %arg3[%c0_11, %c0_12, %c0_13, %c0_14] : memref<2x2x3x256xbf16, #tpu.memory_space<vmem>>, vector<2x2x3x256xbf16>
    %4 = vector.extract_strided_slice %1 {offsets = [0, 0, 0, 0], sizes = [2, 2, 2, 256], strides = [1, 1, 1, 1]} : vector<2x3x3x256xbf16> to vector<2x2x2x256xbf16>
    %5 = arith.maximumf %0, %4 : vector<2x2x2x256xbf16>
    %6 = vector.extract_strided_slice %1 {offsets = [0, 0, 1, 0], sizes = [2, 2, 2, 256], strides = [1, 1, 1, 1]} : vector<2x3x3x256xbf16> to vector<2x2x2x256xbf16>
    %7 = arith.maximumf %5, %6 : vector<2x2x2x256xbf16>
    %8 = vector.extract_strided_slice %1 {offsets = [0, 1, 0, 0], sizes = [2, 2, 2, 256], strides = [1, 1, 1, 1]} : vector<2x3x3x256xbf16> to vector<2x2x2x256xbf16>
    %9 = arith.maximumf %7, %8 : vector<2x2x2x256xbf16>
    %10 = vector.extract_strided_slice %1 {offsets = [0, 1, 1, 0], sizes = [2, 2, 2, 256], strides = [1, 1, 1, 1]} : vector<2x3x3x256xbf16> to vector<2x2x2x256xbf16>
    %11 = arith.maximumf %9, %10 : vector<2x2x2x256xbf16>
    %12 = vector.extract_strided_slice %2 {offsets = [0, 0, 0, 0], sizes = [2, 2, 2, 256], strides = [1, 1, 1, 1]} : vector<2x3x2x256xbf16> to vector<2x2x2x256xbf16>
    %13 = arith.maximumf %11, %12 : vector<2x2x2x256xbf16>
    %14 = vector.extract_strided_slice %2 {offsets = [0, 1, 0, 0], sizes = [2, 2, 2, 256], strides = [1, 1, 1, 1]} : vector<2x3x2x256xbf16> to vector<2x2x2x256xbf16>
    %15 = arith.maximumf %13, %14 : vector<2x2x2x256xbf16>
    %16 = vector.extract_strided_slice %3 {offsets = [0, 0, 0, 0], sizes = [2, 2, 2, 256], strides = [1, 1, 1, 1]} : vector<2x2x3x256xbf16> to vector<2x2x2x256xbf16>
    %17 = arith.maximumf %15, %16 : vector<2x2x2x256xbf16>
    %18 = vector.extract_strided_slice %3 {offsets = [0, 0, 1, 0], sizes = [2, 2, 2, 256], strides = [1, 1, 1, 1]} : vector<2x2x3x256xbf16> to vector<2x2x2x256xbf16>
    %19 = arith.maximumf %17, %18 : vector<2x2x2x256xbf16>
    %20 = arith.extf %19 : vector<2x2x2x256xbf16> to vector<2x2x2x256xf32>
    %21 = arith.mulf %20, %20 : vector<2x2x2x256xf32>
    %22 = tpu.iota {dimensions = array<i32: 3>} : vector<2x2x2x256xi32>
    %c1_i32 = arith.constant 1 : i32
    %23 = vector.broadcast %c1_i32 : i32 to vector<2x2x2x256xi32>
    %24 = arith.cmpi sge, %22, %23 : vector<2x2x2x256xi32>
    %c1_i32_15 = arith.constant 1 : i32
    %25 = tpu.dynamic_rotate %21 by %c1_i32_15 dim 3 : vector<2x2x2x256xf32>, i32 -> vector<2x2x2x256xf32>
    %cst = arith.constant 0.000000e+00 : f32
    %26 = vector.broadcast %cst : f32 to vector<2x2x2x256xf32>
    %27 = arith.select %24, %25, %26 : vector<2x2x2x256xi1>, vector<2x2x2x256xf32>
    %28 = arith.addf %21, %27 : vector<2x2x2x256xf32>
    %c254_i32 = arith.constant 254 : i32
    %29 = vector.broadcast %c254_i32 : i32 to vector<2x2x2x256xi32>
    %30 = arith.cmpi sle, %22, %29 : vector<2x2x2x256xi32>
    %c255_i32 = arith.constant 255 : i32
    %31 = tpu.dynamic_rotate %21 by %c255_i32 dim 3 : vector<2x2x2x256xf32>, i32 -> vector<2x2x2x256xf32>
    %cst_16 = arith.constant 0.000000e+00 : f32
    %32 = vector.broadcast %cst_16 : f32 to vector<2x2x2x256xf32>
    %33 = arith.select %30, %31, %32 : vector<2x2x2x256xi1>, vector<2x2x2x256xf32>
    %34 = arith.addf %28, %33 : vector<2x2x2x256xf32>
    %c2_i32 = arith.constant 2 : i32
    %35 = vector.broadcast %c2_i32 : i32 to vector<2x2x2x256xi32>
    %36 = arith.cmpi sge, %22, %35 : vector<2x2x2x256xi32>
    %c2_i32_17 = arith.constant 2 : i32
    %37 = tpu.dynamic_rotate %21 by %c2_i32_17 dim 3 : vector<2x2x2x256xf32>, i32 -> vector<2x2x2x256xf32>
    %cst_18 = arith.constant 0.000000e+00 : f32
    %38 = vector.broadcast %cst_18 : f32 to vector<2x2x2x256xf32>
    %39 = arith.select %36, %37, %38 : vector<2x2x2x256xi1>, vector<2x2x2x256xf32>
    %40 = arith.addf %34, %39 : vector<2x2x2x256xf32>
    %c253_i32 = arith.constant 253 : i32
    %41 = vector.broadcast %c253_i32 : i32 to vector<2x2x2x256xi32>
    %42 = arith.cmpi sle, %22, %41 : vector<2x2x2x256xi32>
    %c254_i32_19 = arith.constant 254 : i32
    %43 = tpu.dynamic_rotate %21 by %c254_i32_19 dim 3 : vector<2x2x2x256xf32>, i32 -> vector<2x2x2x256xf32>
    %cst_20 = arith.constant 0.000000e+00 : f32
    %44 = vector.broadcast %cst_20 : f32 to vector<2x2x2x256xf32>
    %45 = arith.select %42, %43, %44 : vector<2x2x2x256xi1>, vector<2x2x2x256xf32>
    %46 = arith.addf %40, %45 : vector<2x2x2x256xf32>
    %cst_21 = arith.constant 2.000000e-05 : f32
    %47 = vector.broadcast %cst_21 : f32 to vector<2x2x2x256xf32>
    %48 = arith.mulf %47, %46 : vector<2x2x2x256xf32>
    %cst_22 = arith.constant 1.000000e+00 : f32
    %49 = vector.broadcast %cst_22 : f32 to vector<2x2x2x256xf32>
    %50 = arith.addf %49, %48 : vector<2x2x2x256xf32>
    %51 = math.log %50 : vector<2x2x2x256xf32>
    %cst_23 = arith.constant -7.500000e-01 : f32
    %52 = vector.broadcast %cst_23 : f32 to vector<2x2x2x256xf32>
    %53 = arith.mulf %52, %51 : vector<2x2x2x256xf32>
    %54 = math.exp %53 : vector<2x2x2x256xf32>
    %55 = arith.mulf %20, %54 : vector<2x2x2x256xf32>
    %56 = arith.truncf %55 : vector<2x2x2x256xf32> to vector<2x2x2x256xbf16>
    %c0_24 = arith.constant 0 : index
    %c0_25 = arith.constant 0 : index
    %c0_26 = arith.constant 0 : index
    %c0_27 = arith.constant 0 : index
    %57 = vector.load %arg5[%c0_24, %c0_25, %c0_26, %c0_27] : memref<2x2x2x256xbf16, #tpu.memory_space<vmem>>, vector<2x2x2x256xbf16>
    tpu.vector_store %arg5[%c0_24, %c0_25, %c0_26, %c0_27], %56 {strides = array<i32>} : memref<2x2x2x256xbf16, #tpu.memory_space<vmem>>, vector<2x2x2x256xbf16>,
    return
  }
  func.func @transform_0(%arg0: i32) -> (i32, i32, i32, i32) {
    %c0_i32 = arith.constant 0 : i32
    %c0_i32_0 = arith.constant 0 : i32
    %c0_i32_1 = arith.constant 0 : i32
    %c0_i32_2 = arith.constant 0 : i32
    %c0_i32_3 = arith.constant 0 : i32
    return %c0_i32, %c0_i32_0, %c0_i32_1, %c0_i32_2 : i32, i32, i32, i32
  }
  func.func @transform_1(%arg0: i32) -> (i32, i32, i32, i32) {
    %c0_i32 = arith.constant 0 : i32
    %c0_i32_0 = arith.constant 0 : i32
    %c0_i32_1 = arith.constant 0 : i32
    %c0_i32_2 = arith.constant 0 : i32
    %c0_i32_3 = arith.constant 0 : i32
    return %c0_i32, %c0_i32_0, %c0_i32_1, %c0_i32_2 : i32, i32, i32, i32
  }
  func.func @transform_2(%arg0: i32) -> (i32, i32, i32, i32) {
    %c0_i32 = arith.constant 0 : i32
    %c0_i32_0 = arith.constant 0 : i32
    %c0_i32_1 = arith.constant 0 : i32
    %c0_i32_2 = arith.constant 0 : i32
    %c0_i32_3 = arith.constant 0 : i32
    return %c0_i32, %c0_i32_0, %c0_i32_1, %c0_i32_2 : i32, i32, i32, i32
  }
  func.func @transform_3(%arg0: i32) -> (i32, i32, i32, i32) {
    %c0_i32 = arith.constant 0 : i32
    %c0_i32_0 = arith.constant 0 : i32
    %c0_i32_1 = arith.constant 0 : i32
    %c0_i32_2 = arith.constant 0 : i32
    %c0_i32_3 = arith.constant 0 : i32
    return %c0_i32, %c0_i32_0, %c0_i32_1, %c0_i32_2 : i32, i32, i32, i32
  }
  func.func @transform_4(%arg0: i32) -> (i32, i32, i32, i32) {
    %c0_i32 = arith.constant 0 : i32
    %c0_i32_0 = arith.constant 0 : i32
    %c0_i32_1 = arith.constant 0 : i32
    %c0_i32_2 = arith.constant 0 : i32
    %c0_i32_3 = arith.constant 0 : i32
    return %c0_i32, %c0_i32_0, %c0_i32_1, %c0_i32_2 : i32, i32, i32, i32
  }
}

module attributes {stable_mosaic.version = 11 : i64} {
  func.func @_double_matmul_relu_kernel(%arg0: i32, %arg1: memref<8x2304xbf16, #tpu.memory_space<vmem>>, %arg2: memref<2304x384xbf16, #tpu.memory_space<vmem>>, %arg3: memref<1x384xf32, #tpu.memory_space<vmem>>, %arg4: memref<384x128xbf16, #tpu.memory_space<vmem>>, %arg5: memref<1x128xf32, #tpu.memory_space<vmem>>, %arg6: memref<8x128xbf16, #tpu.memory_space<vmem>>) attributes {dimension_semantics = [#tpu.dimension_semantics<arbitrary>], iteration_bounds = array<i64: 1>, scalar_prefetch = 0 : i64, scratch_operands = 0 : i64, tpu.core_type = #tpu.core_type<tc>, window_params = [{pipeline_mode = #tpu.pipeline_mode<synchronous>, transform_indices = @transform_0, window_bounds = array<i64: 8, 2304>}, {pipeline_mode = #tpu.pipeline_mode<synchronous>, transform_indices = @transform_1, window_bounds = array<i64: 2304, 384>}, {pipeline_mode = #tpu.pipeline_mode<synchronous>, transform_indices = @transform_2, window_bounds = array<i64: 1, 384>}, {pipeline_mode = #tpu.pipeline_mode<synchronous>, transform_indices = @transform_3, window_bounds = array<i64: 384, 128>}, {pipeline_mode = #tpu.pipeline_mode<synchronous>, transform_indices = @transform_4, window_bounds = array<i64: 1, 128>}, {pipeline_mode = #tpu.pipeline_mode<synchronous>, transform_indices = @transform_5, window_bounds = array<i64: 8, 128>}]} {
    %c0 = arith.constant 0 : index
    %c0_0 = arith.constant 0 : index
    %0 = vector.load %arg1[%c0, %c0_0] : memref<8x2304xbf16, #tpu.memory_space<vmem>>, vector<8x2304xbf16>
    %c0_1 = arith.constant 0 : index
    %c0_2 = arith.constant 0 : index
    %1 = vector.load %arg2[%c0_1, %c0_2] : memref<2304x384xbf16, #tpu.memory_space<vmem>>, vector<2304x384xbf16>
    %cst = arith.constant dense<0.000000e+00> : vector<8x384xf32>
    %2 = tpu.matmul %0, %1, %cst {dimension_numbers = #tpu.dot_dimension_numbers<[1], [0], [0], [1], [0, 0, 1, 1], [], []>} : vector<8x2304xbf16>, vector<2304x384xbf16>, vector<8x384xf32> -> vector<8x384xf32>
    %c0_3 = arith.constant 0 : index
    %c0_4 = arith.constant 0 : index
    %3 = vector.load %arg3[%c0_3, %c0_4] : memref<1x384xf32, #tpu.memory_space<vmem>>, vector<1x384xf32>
    %4 = vector.broadcast %3 : vector<1x384xf32> to vector<8x384xf32>
    %5 = arith.addf %2, %4 : vector<8x384xf32>
    %cst_5 = arith.constant 0.000000e+00 : f32
    %6 = vector.broadcast %cst_5 : f32 to vector<8x384xf32>
    %7 = arith.maximumf %5, %6 : vector<8x384xf32>
    %8 = arith.truncf %7 : vector<8x384xf32> to vector<8x384xbf16>
    %c0_6 = arith.constant 0 : index
    %c0_7 = arith.constant 0 : index
    %9 = vector.load %arg4[%c0_6, %c0_7] : memref<384x128xbf16, #tpu.memory_space<vmem>>, vector<384x128xbf16>
    %cst_8 = arith.constant dense<0.000000e+00> : vector<8x128xf32>
    %10 = tpu.matmul %8, %9, %cst_8 {dimension_numbers = #tpu.dot_dimension_numbers<[1], [0], [0], [1], [0, 0, 1, 1], [], []>} : vector<8x384xbf16>, vector<384x128xbf16>, vector<8x128xf32> -> vector<8x128xf32>
    %c0_9 = arith.constant 0 : index
    %c0_10 = arith.constant 0 : index
    %11 = vector.load %arg5[%c0_9, %c0_10] : memref<1x128xf32, #tpu.memory_space<vmem>>, vector<1x128xf32>
    %12 = vector.broadcast %11 : vector<1x128xf32> to vector<8x128xf32>
    %13 = arith.addf %10, %12 : vector<8x128xf32>
    %cst_11 = arith.constant 0.000000e+00 : f32
    %14 = vector.broadcast %cst_11 : f32 to vector<8x128xf32>
    %15 = arith.maximumf %13, %14 : vector<8x128xf32>
    %16 = arith.truncf %15 : vector<8x128xf32> to vector<8x128xbf16>
    %c0_12 = arith.constant 0 : index
    %c0_13 = arith.constant 0 : index
    %17 = vector.load %arg6[%c0_12, %c0_13] : memref<8x128xbf16, #tpu.memory_space<vmem>>, vector<8x128xbf16>
    tpu.vector_store %arg6[%c0_12, %c0_13], %16 {strides = array<i32>} : memref<8x128xbf16, #tpu.memory_space<vmem>>, vector<8x128xbf16>,
    return
  }
  func.func @transform_0(%arg0: i32) -> (i32, i32) {
    %c0_i32 = arith.constant 0 : i32
    %c0_i32_0 = arith.constant 0 : i32
    %c0_i32_1 = arith.constant 0 : i32
    return %c0_i32, %c0_i32_0 : i32, i32
  }
  func.func @transform_1(%arg0: i32) -> (i32, i32) {
    %c0_i32 = arith.constant 0 : i32
    %c0_i32_0 = arith.constant 0 : i32
    %c0_i32_1 = arith.constant 0 : i32
    return %c0_i32, %c0_i32_0 : i32, i32
  }
  func.func @transform_2(%arg0: i32) -> (i32, i32) {
    %c0_i32 = arith.constant 0 : i32
    %c0_i32_0 = arith.constant 0 : i32
    %c0_i32_1 = arith.constant 0 : i32
    return %c0_i32, %c0_i32_0 : i32, i32
  }
  func.func @transform_3(%arg0: i32) -> (i32, i32) {
    %c0_i32 = arith.constant 0 : i32
    %c0_i32_0 = arith.constant 0 : i32
    %c0_i32_1 = arith.constant 0 : i32
    return %c0_i32, %c0_i32_0 : i32, i32
  }
  func.func @transform_4(%arg0: i32) -> (i32, i32) {
    %c0_i32 = arith.constant 0 : i32
    %c0_i32_0 = arith.constant 0 : i32
    %c0_i32_1 = arith.constant 0 : i32
    return %c0_i32, %c0_i32_0 : i32, i32
  }
  func.func @transform_5(%arg0: i32) -> (i32, i32) {
    %c0_i32 = arith.constant 0 : i32
    %c0_i32_0 = arith.constant 0 : i32
    %c0_i32_1 = arith.constant 0 : i32
    return %c0_i32, %c0_i32_0 : i32, i32
  }
}

</mosaic_0001>

<bundles_post_ra>
// kernel: itracker_image_forward.5
= control target key start
LH: loop header
LB: loop body
LE: loop exit
PB: predicated region body
PF: predicated region fallthrough
CT: control target
= control target key end

     0   :  { %s2525_s12 = smov 0   ;;  %s2527_s13 = smov 0   ;;  %s2903_s0 = inlined_call_operand.vmem [shape: bf16[400,768], index: 0, kind: input, shape index: {}]   ;;  %s2904_s1 = inlined_call_operand.vmem [shape: bf16[768,128], index: 1, kind: input, shape index: {}]   ;;  %s2905_s2 = inlined_call_operand.vmem [shape: f32[1,128], index: 2, kind: input, shape index: {}]   ;;  %s2906_s3 = inlined_call_operand.vmem [shape: bf16[400,128], index: 3, kind: output, shape index: {}]  }
   0x1   :  { %s2529_s14 = smov 0  }
   0x2 LB: > { %s25_s15 = sadd.s32 1, %s2499_s13  ;;  %p1743_p0 = scmp.ge.s32.totalorder %s2503_s14, 1  ;;  %s2503_s14 = sphi %s2529_s14, %s13_s14   ;;  %s2499_s13 = sphi %s2527_s13, %s2908_s13   ;;  %s2495_s12 = sphi %s2525_s12, %s2907_s12  }
   0x3   : > { %p27_p1 = scmp.ge.s32.totalorder %s25_s15, 2  ;;  %p170_p2 = scmp.lt.s32.totalorder %s2503_s14, 3 }
   0x5   : > { %s2910_s15 = smov (%p27_p1, %s25_s15), 0  ;;  %p171_p3 = pnand %p1743_p0, %p170_p2 }
   0x6   : > { %v2319_v0 = vld [vmem:[%s2904_s1 + $0x40] sm:$0xff] (!%p171_p3)   ;;  %s205_s18 = smul.u32 (!%p171_p3), 25, %s2495_s12  ;;  %v2321_v2 = vld [vmem:[%s2904_s1 + $0x48] sm:$0xff] (!%p171_p3)   ;;  %v2323_v4 = vld [vmem:[%s2904_s1 + $0x50] sm:$0xff] (!%p171_p3)  }
   0x7   : > { %174 = sbr.rel (%p171_p3) target bundleno = 413 (0x19d), region = 32  ;;  %v2320_v1 = vld [vmem:[%s2904_s1] sm:$0xff] (!%p171_p3)   ;;  %1996 = vmatprep.subr.bf16.mxu0 (!%p171_p3), %v2319_v0  ;;  %2278 = vmatprep.subr.bf16.mxu1 (!%p171_p3), %v2319_v0  ;;  %v2322_v3 = vld [vmem:[%s2904_s1 + $0x8] sm:$0xff] (!%p171_p3)   ;;  %v2324_v5 = vld [vmem:[%s2904_s1 + $0x10] sm:$0xff] (!%p171_p3)  }
   0x8   : > { %p206_p4 = scmp.lt.s32.totalorder (!%p171_p3), %s205_s18, 49  ;;  %1997 = vmatpush3.bf16.msra.mxu0 (!%p171_p3), %v2320_v1  ;;  %2286 = vmatpush3.bf16.msra.mxu1 (!%p171_p3), %v2320_v1  ;;  %v2325_v6 = vld [vmem:[%s2904_s1 + $0x58] sm:$0xff] (!%p171_p3)   ;;  %v2327_v8 = vld [vmem:[%s2904_s1 + $0x60] sm:$0xff] (!%p171_p3)   ;;  %v2329_v10 = vld [vmem:[%s2904_s1 + $0x68] sm:$0xff] (!%p171_p3)  }
   0x9   : > { %1998 = vmatprep.subr.bf16.mxu0 (!%p171_p3), %v2321_v2  ;;  %2279 = vmatprep.subr.bf16.mxu1 (!%p171_p3), %v2321_v2  ;;  %v2326_v7 = vld [vmem:[%s2904_s1 + $0x18] sm:$0xff] (!%p171_p3)   ;;  %v2328_v9 = vld [vmem:[%s2904_s1 + $0x20] sm:$0xff] (!%p171_p3)   ;;  %v2330_v13 = vld [vmem:[%s2904_s1 + $0x28] sm:$0xff] (!%p171_p3)  }
   0xa   : > { %v2331_v14 = vld [vmem:[%s2904_s1 + $0x70] sm:$0xff] (!%p171_p3)   ;;  %v2333_v16 = vld [vmem:[%s2904_s1 + $0x78] sm:$0xff] (!%p171_p3)   ;;  %v2341_v18 = vld [vmem:[%s2904_s1 + $0x140] sm:$0xff] (!%p171_p3)  }
   0xb   : > { %v2332_v15 = vld [vmem:[%s2904_s1 + $0x30] sm:$0xff] (!%p171_p3)   ;;  %v2334_v17 = vld [vmem:[%s2904_s1 + $0x38] sm:$0xff] (!%p171_p3)   ;;  %v2343_v21 = vld [vmem:[%s2904_s1 + $0xc0] sm:$0xff] (!%p171_p3)  }
   0xc   : > { %1999 = vmatpush3.bf16.msra.mxu0 (!%p171_p3), %v2322_v3  ;;  %2287 = vmatpush3.bf16.msra.mxu1 (!%p171_p3), %v2322_v3  ;;  %v2342_v22 = vld [vmem:[%s2904_s1 + $0x100] sm:$0xff] (!%p171_p3)   ;;  %v2349_v26 = vld [vmem:[%s2904_s1 + $0x148] sm:$0xff] (!%p171_p3)   ;;  %v2355_v32 = vld [vmem:[%s2904_s1 + $0x150] sm:$0xff] (!%p171_p3)  }
   0xd   : > { %2000 = vmatprep.subr.bf16.mxu0 (!%p171_p3), %v2323_v4  ;;  %2280 = vmatprep.subr.bf16.mxu1 (!%p171_p3), %v2323_v4  ;;  %v2348_v25 = vld [vmem:[%s2904_s1 + $0x80] sm:$0xff] (!%p171_p3)   ;;  %v2353_v27 = vld [vmem:[%s2904_s1 + $0xc8] sm:$0xff] (!%p171_p3)   ;;  %v2363_v34 = vld [vmem:[%s2904_s1 + $0xd0] sm:$0xff] (!%p171_p3)  }
   0xe   : > { %s2912_s18 = smov (!%p206_p4, %s205_s18), 49  ;;  %v2352_v28 = vld [vmem:[%s2904_s1 + $0x108] sm:$0xff]   ;;  %v2360_v36 = vld [vmem:[%s2904_s1 + $0x110] sm:$0xff]   ;;  %v2365_v38 = vld [vmem:[%s2904_s1 + $0x158] sm:$0xff]  }
   0xf   : > { %s2294_s4 = smul.u32 24, %s2912_s18  ;;  %v2354_v29 = vld [vmem:[%s2904_s1 + $0x88] sm:$0xff]   ;;  %v2364_v37 = vld [vmem:[%s2904_s1 + $0x90] sm:$0xff]   ;;  %v2373_v39 = vld [vmem:[%s2904_s1 + $0xd8] sm:$0xff]   ;;  %s1745_s29 = sshll.u32 %s2912_s18, 2 }
  0x10   : > { %2001 = vmatpush3.bf16.msra.mxu0 %v2324_v5  ;;  %2288 = vmatpush3.bf16.msra.mxu1 %v2324_v5  ;;  %v2366_v40 = vld [vmem:[%s2904_s1 + $0x118] sm:$0xff]   ;;  %v2375_v44 = vld [vmem:[%s2904_s1 + $0x160] sm:$0xff]   ;;  %v2385_v50 = vld [vmem:[%s2904_s1 + $0x168] sm:$0xff]   ;;  %s2846_s5 = scalar_lea.vmem %s2906_s3, %s1745_s29 }
  0x11   : > { %2002 = vmatprep.subr.bf16.mxu0 %v2325_v6  ;;  %2281 = vmatprep.subr.bf16.mxu1 %v2325_v6  ;;  %s2576_s11 = scalar_lea.vmem %s2903_s0, %s2294_s4  ;;  %v2374_v41 = vld [vmem:[%s2904_s1 + $0x98] sm:$0xff]   ;;  %v2377_v45 = vld [vmem:[%s2904_s1 + $0xe0] sm:$0xff]   ;;  %v2386_v51 = vld [vmem:[%s2904_s1 + $0xe8] sm:$0xff]  }
  0x12   : > { %v2337_v11 = vld [vmem:[%s2576_s11 + $0x4] ss:$24 sps:$4 sm:$0xff]   ;;  %v2340_v12 = vld [vmem:[%s2576_s11 + $0x154] ss:$24 sps:$4 sm:$0xff]   ;;  %v2335_v19 = vld [vmem:[%s2576_s11] ss:$24 sps:$4 sm:$0xff]  }
  0x13   : > { %1108 = vmatprep.mubr.bf16.mxu0 %v2337_v11  ;;  %1164 = vmatprep.mubr.bf16.mxu1 %v2340_v12  ;;  %v2338_v20 = vld [vmem:[%s2576_s11 + $0x150] ss:$24 sps:$4 sm:$0xff]   ;;  %v2344_v23 = vld [vmem:[%s2576_s11 + $0x34] ss:$24 sps:$4 sm:$0xff]   ;;  %v2346_v24 = vld [vmem:[%s2576_s11 + $0x184] ss:$24 sps:$4 sm:$0xff]  }
  0x14   : > { %2003 = vmatpush3.bf16.msra.mxu0 %v2326_v7  ;;  %2289 = vmatpush3.bf16.msra.mxu1 %v2326_v7  ;;  %v2350_v30 = vld [vmem:[%s2576_s11 + $0x30] ss:$24 sps:$4 sm:$0xff]   ;;  %v2351_v31 = vld [vmem:[%s2576_s11 + $0x180] ss:$24 sps:$4 sm:$0xff]   ;;  %v2356_v33 = vld [vmem:[%s2576_s11 + $0x64] ss:$24 sps:$4 sm:$0xff]  }
  0x15   : > { %2004 = vmatprep.subr.bf16.mxu0 %v2327_v8  ;;  %2282 = vmatprep.subr.bf16.mxu1 %v2327_v8  ;;  %v2358_v35 = vld [vmem:[%s2576_s11 + $0x1b4] ss:$24 sps:$4 sm:$0xff]   ;;  %v2361_v42 = vld [vmem:[%s2576_s11 + $0x60] ss:$24 sps:$4 sm:$0xff]   ;;  %v2362_v43 = vld [vmem:[%s2576_s11 + $0x1b0] ss:$24 sps:$4 sm:$0xff]  }
  0x16   : > { %v2367_v46 = vld [vmem:[%s2576_s11 + $0x94] ss:$24 sps:$4 sm:$0xff]   ;;  %v2369_v47 = vld [vmem:[%s2576_s11 + $0x1e4] ss:$24 sps:$4 sm:$0xff]   ;;  %v2371_v52 = vld [vmem:[%s2576_s11 + $0x90] ss:$24 sps:$4 sm:$0xff]  }
  0x17   : > { %v2376_v48 = vld [vmem:[%s2904_s1 + $0x120] sm:$0xff]   ;;  %v2387_v53 = vld [vmem:[%s2904_s1 + $0x128] sm:$0xff]   ;;  %v2394_v58 = vld [vmem:[%s2904_s1 + $0xf0] sm:$0xff]  }
  0x18   : > { %2005 = vmatpush3.bf16.msra.mxu0 %v2328_v9  ;;  %2290 = vmatpush3.bf16.msra.mxu1 %v2328_v9  ;;  %v2382_v49 = vld [vmem:[%s2904_s1 + $0xa0] sm:$0xff]   ;;  %v2388_v54 = vld [vmem:[%s2904_s1 + $0xa8] sm:$0xff]   ;;  %v2395_v59 = vld [vmem:[%s2904_s1 + $0xb0] sm:$0xff]  }
  0x19   : > { %2006 = vmatprep.subr.bf16.mxu0 %v2329_v10  ;;  %2283 = vmatprep.subr.bf16.mxu1 %v2329_v10  ;;  %v2372_v55 = vld [vmem:[%s2576_s11 + $0x1e0] ss:$24 sps:$4 sm:$0xff]   ;;  %v2378_v56 = vld [vmem:[%s2576_s11 + $0xc4] ss:$24 sps:$4 sm:$0xff]   ;;  %v2380_v57 = vld [vmem:[%s2576_s11 + $0x214] ss:$24 sps:$4 sm:$0xff]  }
  0x1a   : > { %v2396_v60 = vld [vmem:[%s2904_s1 + $0x170] sm:$0xff]   ;;  %v301_v61 = vld [vmem:[%s2576_s11 + $0x240] sm:$0xff]  ;;  %v2398_v63 = vld [vmem:[%s2904_s1 + $0xf8] sm:$0xff]  }
  0x1b   : > { %v2397_v62 = vld [vmem:[%s2904_s1 + $0x130] sm:$0xff]   ;;  %v2399_v0 = vld [vmem:[%s2904_s1 + $0xb8] sm:$0xff]   ;;  %v1820_v4 = vcombine.high %v301_v61, %v301_v61  ;;  %v1819_v8 = vcombine.low %v301_v61, %v301_v61  ;;  %v2404_v10 = vld [vmem:[%s2576_s11 + $0xc] ss:$24 sps:$4 sm:$0xff]  }
  0x1c   : > { %2007 = vmatpush3.bf16.msra.mxu0 %v2330_v13  ;;  %2291 = vmatpush3.bf16.msra.mxu1 %v2330_v13  ;;  %v2383_v1 = vld [vmem:[%s2576_s11 + $0xc0] ss:$24 sps:$4 sm:$0xff]   ;;  %v2384_v2 = vld [vmem:[%s2576_s11 + $0x210] ss:$24 sps:$4 sm:$0xff]   ;;  %v2389_v3 = vld [vmem:[%s2576_s11 + $0xf4] ss:$24 sps:$4 sm:$0xff]  }
  0x1d   : > { %2008 = vmatprep.subr.bf16.mxu0 %v2331_v14  ;;  %2284 = vmatprep.subr.bf16.mxu1 %v2331_v14  ;;  %v2406_v5 = vld [vmem:[%s2904_s1 + $0x178] sm:$0xff]   ;;  %v2392_v7 = vld [vmem:[%s2576_s11 + $0xf0] ss:$24 sps:$4 sm:$0xff]   ;;  %v2412_v14 = vld [vmem:[%s2576_s11 + $0x14] ss:$24 sps:$4 sm:$0xff]  }
  0x1e   : > { %v2407_v6 = vld [vmem:[%s2904_s1 + $0x138] sm:$0xff]   ;;  %v2402_v11 = vld [vmem:[%s2576_s11 + $0x8] ss:$24 sps:$4 sm:$0xff]  }
  0x1f   : > { %v2400_v9 = vld [vmem:[%s2576_s11 + $0x124] ss:$24 sps:$4 sm:$0xff]   ;;  %v2405_v12 = vld [vmem:[%s2576_s11 + $0x120] ss:$24 sps:$4 sm:$0xff]  }
  0x20   : > { %2009 = vmatpush3.bf16.msra.mxu0 %v2332_v15  ;;  %2292 = vmatpush3.bf16.msra.mxu1 %v2332_v15  ;;  %v2408_v13 = vld [vmem:[%s2576_s11 + $0x3c] ss:$24 sps:$4 sm:$0xff]   ;;  %v2410_v15 = vld [vmem:[%s2576_s11 + $0x10] ss:$24 sps:$4 sm:$0xff]  }
  0x21   : > { %2010 = vmatprep.subr.bf16.mxu0 %v2333_v16  ;;  %2285 = vmatprep.subr.bf16.mxu1 %v2333_v16  ;;  %v2413_v16 = vld [vmem:[%s2576_s11 + $0x38] ss:$24 sps:$4 sm:$0xff]  }
  0x24   : > { %2011 = vmatpush3.bf16.msra.mxu0 %v2334_v17  ;;  %2293 = vmatpush3.bf16.msra.mxu1 %v2334_v17  ;;  %v2414_v17 = vld [vmem:[%s2576_s11 + $0x6c] ss:$24 sps:$4 sm:$0xff]  }
  0x25   : > { %2184 = vmatprep.subr.bf16.mxu0 %v2341_v18  ;;  %2090 = vmatprep.subr.bf16.mxu1 %v2343_v21  ;;  %v2416_v18 = vld [vmem:[%s2576_s11 + $0x44] ss:$24 sps:$4 sm:$0xff]  }
  0x26   : > { %v2420_v21 = vld [vmem:[%s2576_s11 + $0x9c] ss:$24 sps:$4 sm:$0xff]  }
  0x27   : > { %1109 = vmatmul.mubr.bf16.vlgmr.msra.gmra.mrb[0].mxu0 %v2335_v19  ;;  %1165 = vmatmul.mubr.bf16.vlgmr.msra.gmra.mrb[0].mxu1 %v2338_v20  ;;  %v2418_v19 = vld [vmem:[%s2576_s11 + $0x68] ss:$24 sps:$4 sm:$0xff]  }
  0x28   : > { %2185 = vmatpush3.bf16.msra.mxu0 %v2342_v22  ;;  %1116 = vmatprep.mubr.bf16.mxu0 %v2344_v23  ;;  %v2419_v20 = vld [vmem:[%s2576_s11 + $0x40] ss:$24 sps:$4 sm:$0xff]   ;;  %v2422_v22 = vld [vmem:[%s2576_s11 + $0x74] ss:$24 sps:$4 sm:$0xff]  }
  0x29   : > { %1172 = vmatprep.mubr.bf16.mxu1 %v2346_v24  ;;  %2091 = vmatpush3.bf16.msra.mxu1 %v2348_v25  ;;  %v2424_v23 = vld [vmem:[%s2576_s11 + $0x98] ss:$24 sps:$4 sm:$0xff]   ;;  %v2426_v25 = vld [vmem:[%s2576_s11 + $0xcc] ss:$24 sps:$4 sm:$0xff]  }
  0x2a   : > { %2186 = vmatprep.subr.bf16.mxu0 %v2349_v26  ;;  %2092 = vmatprep.subr.bf16.mxu1 %v2353_v27  ;;  %v2425_v24 = vld [vmem:[%s2576_s11 + $0x70] ss:$24 sps:$4 sm:$0xff]   ;;  %v2428_v26 = vld [vmem:[%s2576_s11 + $0xa4] ss:$24 sps:$4 sm:$0xff]  }
  0x2b   : > { %v2430_v27 = vld [vmem:[%s2576_s11 + $0xc8] ss:$24 sps:$4 sm:$0xff]  }
  0x2c   : > { %2187 = vmatpush3.bf16.msra.mxu0 %v2352_v28  ;;  %v2431_v28 = vld [vmem:[%s2576_s11 + $0xa0] ss:$24 sps:$4 sm:$0xff]  }
  0x2d   : > { %2093 = vmatpush3.bf16.msra.mxu1 %v2354_v29  ;;  %2188 = vmatprep.subr.bf16.mxu0 %v2355_v32  ;;  %v2432_v29 = vld [vmem:[%s2576_s11 + $0xfc] ss:$24 sps:$4 sm:$0xff]   ;;  %v2437_v32 = vld [vmem:[%s2576_s11 + $0xd0] ss:$24 sps:$4 sm:$0xff]  }
  0x2e   : > { %2094 = vmatprep.subr.bf16.mxu1 %v2363_v34  ;;  %v2440_v34 = vld [vmem:[%s2576_s11 + $0x104] ss:$24 sps:$4 sm:$0xff]  }
  0x2f   : > { %1117 = vmatmul.mubr.bf16.gmra.mrb[4].mxu0 %v2350_v30  ;;  %1173 = vmatmul.mubr.bf16.gmra.mrb[4].mxu1 %v2351_v31  ;;  %v2434_v30 = vld [vmem:[%s2576_s11 + $0xd4] ss:$24 sps:$4 sm:$0xff]   ;;  %v2436_v31 = vld [vmem:[%s2576_s11 + $0xf8] ss:$24 sps:$4 sm:$0xff]  }
  0x30   : > { %1124 = vmatprep.mubr.bf16.mxu0 %v2356_v33  ;;  %1180 = vmatprep.mubr.bf16.mxu1 %v2358_v35  ;;  %v2438_v33 = vld [vmem:[%s2576_s11 + $0x12c] ss:$24 sps:$4 sm:$0xff]   ;;  %v2442_v35 = vld [vmem:[%s2576_s11 + $0x128] ss:$24 sps:$4 sm:$0xff]  }
  0x31   : > { %2189 = vmatpush3.bf16.msra.mxu0 %v2360_v36  ;;  %2095 = vmatpush3.bf16.msra.mxu1 %v2364_v37  ;;  %v2443_v36 = vld [vmem:[%s2576_s11 + $0x100] ss:$24 sps:$4 sm:$0xff]   ;;  %v2444_v37 = vld [vmem:[%s2576_s11 + $0x15c] ss:$24 sps:$4 sm:$0xff]  }
  0x32   : > { %2190 = vmatprep.subr.bf16.mxu0 %v2365_v38  ;;  %2096 = vmatprep.subr.bf16.mxu1 %v2373_v39  ;;  %v2446_v38 = vld [vmem:[%s2576_s11 + $0x134] ss:$24 sps:$4 sm:$0xff]   ;;  %v2448_v39 = vld [vmem:[%s2576_s11 + $0x158] ss:$24 sps:$4 sm:$0xff]  }
  0x35   : > { %2191 = vmatpush3.bf16.msra.mxu0 %v2366_v40  ;;  %2097 = vmatpush3.bf16.msra.mxu1 %v2374_v41  ;;  %v2449_v40 = vld [vmem:[%s2576_s11 + $0x130] ss:$24 sps:$4 sm:$0xff]   ;;  %v2450_v41 = vld [vmem:[%s2576_s11 + $0x18c] ss:$24 sps:$4 sm:$0xff]  }
  0x36   : > { %2192 = vmatprep.subr.bf16.mxu0 %v2375_v44  ;;  %2098 = vmatprep.subr.bf16.mxu1 %v2377_v45  ;;  %v2455_v44 = vld [vmem:[%s2576_s11 + $0x160] ss:$24 sps:$4 sm:$0xff]   ;;  %v2456_v45 = vld [vmem:[%s2576_s11 + $0x1bc] ss:$24 sps:$4 sm:$0xff]  }
  0x37   : > { %1125 = vmatmul.mubr.bf16.gmra.mrb[8].mxu0 %v2361_v42  ;;  %1181 = vmatmul.mubr.bf16.gmra.mrb[8].mxu1 %v2362_v43  ;;  %v2452_v42 = vld [vmem:[%s2576_s11 + $0x164] ss:$24 sps:$4 sm:$0xff]   ;;  %v2454_v43 = vld [vmem:[%s2576_s11 + $0x188] ss:$24 sps:$4 sm:$0xff]  }
  0x38   : > { %1132 = vmatprep.mubr.bf16.mxu0 %v2367_v46  ;;  %1188 = vmatprep.mubr.bf16.mxu1 %v2369_v47  ;;  %v2458_v46 = vld [vmem:[%s2576_s11 + $0x194] ss:$24 sps:$4 sm:$0xff]   ;;  %v2460_v47 = vld [vmem:[%s2576_s11 + $0x1b8] ss:$24 sps:$4 sm:$0xff]  }
  0x39   : > { %2193 = vmatpush3.bf16.msra.mxu0 %v2376_v48  ;;  %2099 = vmatpush3.bf16.msra.mxu1 %v2382_v49  ;;  %v2461_v48 = vld [vmem:[%s2576_s11 + $0x190] ss:$24 sps:$4 sm:$0xff]   ;;  %v2462_v49 = vld [vmem:[%s2576_s11 + $0x1ec] ss:$24 sps:$4 sm:$0xff]  }
  0x3a   : > { %2194 = vmatprep.subr.bf16.mxu0 %v2385_v50  ;;  %2100 = vmatprep.subr.bf16.mxu1 %v2386_v51  ;;  %v2464_v50 = vld [vmem:[%s2576_s11 + $0x1c4] ss:$24 sps:$4 sm:$0xff]   ;;  %v2466_v51 = vld [vmem:[%s2576_s11 + $0x1e8] ss:$24 sps:$4 sm:$0xff]  }
  0x3d   : > { %2195 = vmatpush3.bf16.msra.mxu0 %v2387_v53  ;;  %2101 = vmatpush3.bf16.msra.mxu1 %v2388_v54  ;;  %v2468_v53 = vld [vmem:[%s2576_s11 + $0x21c] ss:$24 sps:$4 sm:$0xff]  }
  0x3e   : > { %2102 = vmatprep.subr.bf16.mxu1 %v2394_v58  ;;  %2196 = vmatprep.subr.bf16.mxu0 %v2396_v60  ;;  %v2470_v54 = vld [vmem:[%s2576_s11 + $0x1f4] ss:$24 sps:$4 sm:$0xff]  }
  0x3f   : > { %1133 = vmatmul.mubr.bf16.gmra.mrb[12].mxu0 %v2371_v52  ;;  %1189 = vmatmul.mubr.bf16.gmra.mrb[12].mxu1 %v2372_v55  ;;  %v2467_v52 = vld [vmem:[%s2576_s11 + $0x1c0] ss:$24 sps:$4 sm:$0xff]   ;;  %v302_v55 = vld [vmem:[%s2576_s11 + $0x248] sm:$0xff]  ;;  %v303_v60 = vld [vmem:[%s2576_s11 + $0x250] sm:$0xff] }
  0x40   : > { %1140 = vmatprep.mubr.bf16.mxu0 %v2378_v56  ;;  %1196 = vmatprep.mubr.bf16.mxu1 %v2380_v57  ;;  %v2472_v56 = vld [vmem:[%s2576_s11 + $0x218] ss:$24 sps:$4 sm:$0xff]   ;;  %v1822_v58 = vcombine.high %v302_v55, %v302_v55  ;;  %v1821_v61 = vcombine.low %v302_v55, %v302_v55 }
  0x41   : > { %2103 = vmatpush3.bf16.msra.mxu1 %v2395_v59  ;;  %2197 = vmatpush3.bf16.msra.mxu0 %v2397_v62  ;;  %v2473_v57 = vld [vmem:[%s2576_s11 + $0x1f0] ss:$24 sps:$4 sm:$0xff]   ;;  %v2475_v59 = vld [vmem:[%s2576_s11 + $0x224] ss:$24 sps:$4 sm:$0xff]   ;;  %v2478_v62 = vld [vmem:[%s2576_s11 + $0x220] ss:$24 sps:$4 sm:$0xff]  }
  0x42   : > { %2104 = vmatprep.subr.bf16.mxu1 %v2398_v63  ;;  %2198 = vmatprep.subr.bf16.mxu0 %v2406_v5  ;;  %v1824_v63 = vcombine.high %v303_v60, %v303_v60 }
  0x45   : > { %2105 = vmatpush3.bf16.msra.mxu1 %v2399_v0  ;;  %2199 = vmatpush3.bf16.msra.mxu0 %v2407_v6  ;;  %v1823_v0 = vcombine.low %v303_v60, %v303_v60 }
  0x47   : > { %1141 = vmatmul.mubr.bf16.gmra.mrb[16].mxu0 %v2383_v1  ;;  %1197 = vmatmul.mubr.bf16.gmra.mrb[16].mxu1 %v2384_v2 }
  0x48   : > { %1148 = vmatprep.mubr.bf16.mxu0 %v2389_v3  ;;  %1204 = vmatprep.mubr.bf16.mxu1 %v1820_v4 }
  0x4f   : > { %1149 = vmatmul.mubr.bf16.gmra.mrb[20].mxu0 %v2392_v7  ;;  %1205 = vmatmul.mubr.bf16.gmra.mrb[20].mxu1 %v1819_v8 }
  0x50   : > { %1156 = vmatprep.mubr.bf16.mxu0 %v2400_v9  ;;  %1244 = vmatprep.mubr.bf16.mxu1 %v2404_v10 }
  0x57   : > { %1157 = vmatmul.mubr.bf16.gmra.mrb[24].mxu0 %v2405_v12  ;;  %1245 = vmatmul.mubr.bf16.vlgmr.msra.gmra.mrb[24].mxu1 %v2402_v11 }
  0x58   : > { %1252 = vmatprep.mubr.bf16.mxu1 %v2408_v13  ;;  %1380 = vmatprep.mubr.bf16.mxu0 %v2412_v14 }
  0x5f   : > { %1253 = vmatmul.mubr.bf16.gmra.mrb[28].mxu1 %v2413_v16  ;;  %1381 = vmatmul.mubr.bf16.vlgmr.msra.gmra.mrb[28].mxu0 %v2410_v15 }
  0x60   : > { %1260 = vmatprep.mubr.bf16.mxu1 %v2414_v17  ;;  %1388 = vmatprep.mubr.bf16.mxu0 %v2416_v18 }
  0x67   : > { %1261 = vmatmul.mubr.bf16.gmra.mrb[32].mxu1 %v2418_v19  ;;  %1389 = vmatmul.mubr.bf16.gmra.mrb[32].mxu0 %v2419_v20 }
  0x68   : > { %1268 = vmatprep.mubr.bf16.mxu1 %v2420_v21  ;;  %1396 = vmatprep.mubr.bf16.mxu0 %v2422_v22  ;;  %v2783_v21 = vld [vmem:[%s2905_s2] ss:$0 sm:$0xff] }
  0x6f   : > { %1269 = vmatmul.mubr.bf16.gmra.mrb[36].mxu1 %v2424_v23  ;;  %1397 = vmatmul.mubr.bf16.gmra.mrb[36].mxu0 %v2425_v24 }
  0x70   : > { %1276 = vmatprep.mubr.bf16.mxu1 %v2426_v25  ;;  %1404 = vmatprep.mubr.bf16.mxu0 %v2428_v26 }
  0x77   : > { %1277 = vmatmul.mubr.bf16.gmra.mrb[40].mxu1 %v2430_v27  ;;  %1405 = vmatmul.mubr.bf16.gmra.mrb[40].mxu0 %v2431_v28 }
  0x78   : > { %1284 = vmatprep.mubr.bf16.mxu1 %v2432_v29  ;;  %1412 = vmatprep.mubr.bf16.mxu0 %v2434_v30 }
  0x7f   : > { %1285 = vmatmul.mubr.bf16.gmra.mrb[44].mxu1 %v2436_v31  ;;  %1413 = vmatmul.mubr.bf16.gmra.mrb[44].mxu0 %v2437_v32 }
  0x80   : > { %1292 = vmatprep.mubr.bf16.mxu1 %v2438_v33  ;;  %1420 = vmatprep.mubr.bf16.mxu0 %v2440_v34 }
  0x87   : > { %1293 = vmatmul.mubr.bf16.gmra.mrb[48].mxu1 %v2442_v35  ;;  %1421 = vmatmul.mubr.bf16.gmra.mrb[48].mxu0 %v2443_v36 }
  0x88   : > { %1300 = vmatprep.mubr.bf16.mxu1 %v2444_v37  ;;  %1428 = vmatprep.mubr.bf16.mxu0 %v2446_v38 }
  0x8f   : > { %1301 = vmatmul.mubr.bf16.gmra.mrb[52].mxu1 %v2448_v39  ;;  %1429 = vmatmul.mubr.bf16.gmra.mrb[52].mxu0 %v2449_v40 }
  0x90   : > { %1308 = vmatprep.mubr.bf16.mxu1 %v2450_v41  ;;  %1436 = vmatprep.mubr.bf16.mxu0 %v2452_v42 }
  0x97   : > { %1309 = vmatmul.mubr.bf16.gmra.mrb[56].mxu1 %v2454_v43  ;;  %1437 = vmatmul.mubr.bf16.gmra.mrb[56].mxu0 %v2455_v44 }
  0x98   : > { %1316 = vmatprep.mubr.bf16.mxu1 %v2456_v45  ;;  %1444 = vmatprep.mubr.bf16.mxu0 %v2458_v46 }
  0x9f   : > { %1317 = vmatmul.mubr.bf16.gmra.mrb[60].mxu1 %v2460_v47  ;;  %1445 = vmatmul.mubr.bf16.gmra.mrb[60].mxu0 %v2461_v48 }
  0xa0   : > { %1324 = vmatprep.mubr.bf16.mxu1 %v2462_v49  ;;  %1452 = vmatprep.mubr.bf16.mxu0 %v2464_v50 }
  0xa7   : > { %1325 = vmatmul.mubr.bf16.gmra.mrb[64].mxu1 %v2466_v51  ;;  %1453 = vmatmul.mubr.bf16.gmra.mrb[64].mxu0 %v2467_v52 }
  0xa8   : > { %1332 = vmatprep.mubr.bf16.mxu1 %v2468_v53  ;;  %1460 = vmatprep.mubr.bf16.mxu0 %v2470_v54 }
  0xaf   : > { %1333 = vmatmul.mubr.bf16.gmra.mrb[68].mxu1 %v2472_v56  ;;  %1461 = vmatmul.mubr.bf16.gmra.mrb[68].mxu0 %v2473_v57 }
  0xb0   : > { %1340 = vmatprep.mubr.bf16.mxu1 %v1822_v58  ;;  %1468 = vmatprep.mubr.bf16.mxu0 %v2475_v59 }
  0xb7   : > { %1341 = vmatmul.mubr.bf16.gmra.mrb[72].mxu1 %v1821_v61  ;;  %1469 = vmatmul.mubr.bf16.gmra.mrb[72].mxu0 %v2478_v62 }
  0xb8   : > { %1476 = vmatprep.mubr.bf16.mxu0 %v1824_v63 }
  0xbf   : > { %1477 = vmatmul.mubr.bf16.gmra.mrb[76].mxu0 %v1823_v0 }
  0xfa   : > { %v2012_v1 = vpop.f32.mrb[0].mxu0  ;;  %v2054_v2 = vpop.f32.mrb[0].mxu1 }
  0xfb   : > { %v2013_v3 = vpop.f32.mrb[1].mxu0  ;;  %v2055_v4 = vpop.f32.mrb[1].mxu1 }
  0xfc   : > { %v2770_v5 = vadd.f32 %v2013_v3, %v2012_v1  ;;  %v2015_v6 = vpop.f32.mrb[2].mxu0  ;;  %v2772_v7 = vadd.f32 %v2055_v4, %v2054_v2  ;;  %v2057_v8 = vpop.f32.mrb[2].mxu1 }
  0xfd   : > { %v2016_v9 = vpop.f32.mrb[3].mxu0  ;;  %v2058_v10 = vpop.f32.mrb[3].mxu1 }
  0xfe   : > { %v2774_v11 = vadd.f32 %v2016_v9, %v2015_v6  ;;  %v2776_v12 = vadd.f32 %v2058_v10, %v2057_v8 }
 0x102   : > { %v2018_v13 = vpop.f32.mrb[4].mxu0  ;;  %v2060_v14 = vpop.f32.mrb[4].mxu1 }
 0x103   : > { %v2019_v15 = vpop.f32.mrb[5].mxu0  ;;  %v2061_v16 = vpop.f32.mrb[5].mxu1 }
 0x104   : > { %v2778_v17 = vadd.f32 %v2019_v15, %v2018_v13  ;;  %v2021_v18 = vpop.f32.mrb[6].mxu0  ;;  %v2062_v19 = vadd.f32 %v2061_v16, %v2060_v14  ;;  %v2063_v20 = vpop.f32.mrb[6].mxu1 }
 0x105   : > { %v2022_v22 = vpop.f32.mrb[7].mxu0  ;;  %v2064_v23 = vpop.f32.mrb[7].mxu1 }
 0x106   : > { %v2785_v24 = vadd.f32 %v2022_v22, %v2021_v18  ;;  %v2788_v25 = vadd.f32 %v2062_v19, %v2783_v21  ;;  %v2065_v26 = vadd.f32 %v2064_v23, %v2063_v20 }
 0x108   : > { %v2791_v27 = vadd.f32 %v2065_v26, %v2783_v21 }
 0x10a   : > { %v2024_v28 = vpop.f32.mrb[8].mxu0  ;;  %v2066_v29 = vpop.f32.mrb[8].mxu1 }
 0x10b   : > { %v2025_v30 = vpop.f32.mrb[9].mxu0  ;;  %v2067_v31 = vpop.f32.mrb[9].mxu1 }
 0x10c   : > { %v2793_v32 = vadd.f32 %v2025_v30, %v2024_v28  ;;  %v2027_v33 = vpop.f32.mrb[10].mxu0  ;;  %v2068_v34 = vadd.f32 %v2067_v31, %v2066_v29  ;;  %v2069_v35 = vpop.f32.mrb[10].mxu1  ;;  %v1111_v31 = vadd.f32 %v2770_v5, %v2783_v21 }
 0x10d   : > { %v2028_v36 = vpop.f32.mrb[11].mxu0  ;;  %v2070_v37 = vpop.f32.mrb[11].mxu1 }
 0x10e   : > { %v2795_v38 = vadd.f32 %v2028_v36, %v2027_v33  ;;  %v2798_v39 = vadd.f32 %v2068_v34, %v2783_v21  ;;  %v2071_v40 = vadd.f32 %v2070_v37, %v2069_v35 }
 0x110   : > { %v2801_v41 = vadd.f32 %v2071_v40, %v2783_v21 }
 0x112   : > { %v2030_v42 = vpop.f32.mrb[12].mxu0  ;;  %v2072_v43 = vpop.f32.mrb[12].mxu1 }
 0x113   : > { %v2031_v44 = vpop.f32.mrb[13].mxu0  ;;  %v2073_v45 = vpop.f32.mrb[13].mxu1 }
 0x114   : > { %v2803_v46 = vadd.f32 %v2031_v44, %v2030_v42  ;;  %v2033_v47 = vpop.f32.mrb[14].mxu0  ;;  %v2074_v48 = vadd.f32 %v2073_v45, %v2072_v43  ;;  %v2075_v49 = vpop.f32.mrb[14].mxu1  ;;  %v1114_v42 = vadd.f32 %v2774_v11, %v2783_v21  ;;  %v1122_v11 = vadd.f32 %v2785_v24, %v2783_v21 }
 0x115   : > { %v2034_v50 = vpop.f32.mrb[15].mxu0  ;;  %v2076_v51 = vpop.f32.mrb[15].mxu1 }
 0x116   : > { %v2805_v52 = vadd.f32 %v2034_v50, %v2033_v47  ;;  %v2808_v53 = vadd.f32 %v2074_v48, %v2783_v21  ;;  %v2077_v54 = vadd.f32 %v2076_v51, %v2075_v49  ;;  %v1119_v51 = vadd.f32 %v2778_v17, %v2783_v21 }
 0x118   : > { %v2811_v55 = vadd.f32 %v2077_v54, %v2783_v21 }
 0x11a   : > { %v2036_v56 = vpop.f32.mrb[16].mxu0  ;;  %v2078_v57 = vpop.f32.mrb[16].mxu1 }
 0x11b   : > { %v2037_v58 = vpop.f32.mrb[17].mxu0  ;;  %v2079_v59 = vpop.f32.mrb[17].mxu1 }
 0x11c   : > { %v2813_v60 = vadd.f32 %v2037_v58, %v2036_v56  ;;  %v2039_v61 = vpop.f32.mrb[18].mxu0  ;;  %v2080_v62 = vadd.f32 %v2079_v59, %v2078_v57  ;;  %v2081_v63 = vpop.f32.mrb[18].mxu1 }
 0x11d   : > { %v2040_v0 = vpop.f32.mrb[19].mxu0  ;;  %v2082_v1 = vpop.f32.mrb[19].mxu1 }
 0x11e   : > { %v2815_v2 = vadd.f32 %v2040_v0, %v2039_v61  ;;  %v2818_v3 = vadd.f32 %v2080_v62, %v2783_v21  ;;  %v2083_v4 = vadd.f32 %v2082_v1, %v2081_v63 }
 0x120   : > { %v2821_v6 = vadd.f32 %v2083_v4, %v2783_v21 }
 0x122   : > { %v2042_v8 = vpop.f32.mrb[20].mxu0  ;;  %v2084_v9 = vpop.f32.mrb[20].mxu1 }
 0x123   : > { %v2043_v10 = vpop.f32.mrb[21].mxu0  ;;  %v2085_v13 = vpop.f32.mrb[21].mxu1 }
 0x124   : > { %v2823_v14 = vadd.f32 %v2043_v10, %v2042_v8  ;;  %v2045_v15 = vpop.f32.mrb[22].mxu0  ;;  %v2086_v16 = vadd.f32 %v2085_v13, %v2084_v9  ;;  %v2087_v18 = vpop.f32.mrb[22].mxu1 }
 0x125   : > { %v2046_v19 = vpop.f32.mrb[23].mxu0  ;;  %v2088_v20 = vpop.f32.mrb[23].mxu1 }
 0x126   : > { %v2825_v22 = vadd.f32 %v2046_v19, %v2045_v15  ;;  %v2828_v23 = vadd.f32 %v2086_v16, %v2783_v21  ;;  %v1127_v16 = vadd.f32 %v2793_v32, %v2783_v21 }
 0x12a   : > { %v2048_v26 = vpop.f32.mrb[24].mxu0  ;;  %v2106_v28 = vpop.f32.mrb[24].mxu1 }
 0x12b   : > { %v2049_v29 = vpop.f32.mrb[25].mxu0  ;;  %v2107_v30 = vpop.f32.mrb[25].mxu1 }
 0x12c   : > { %v2832_v33 = vadd.f32 %v2049_v29, %v2048_v26  ;;  %v2108_v34 = vadd.f32 %v2107_v30, %v2106_v28  ;;  %v2051_v35 = vpop.f32.mrb[26].mxu0  ;;  %v2109_v36 = vpop.f32.mrb[26].mxu1  ;;  %v1130_v29 = vadd.f32 %v2795_v38, %v2783_v21 }
 0x12d   : > { %v2052_v37 = vpop.f32.mrb[27].mxu0  ;;  %v2110_v40 = vpop.f32.mrb[27].mxu1 }
 0x12e   : > { %v1247_v43 = vadd.f32 %v2108_v34, %v1111_v31  ;;  %v2836_v44 = vadd.f32 %v2052_v37, %v2051_v35  ;;  %v2111_v45 = vadd.f32 %v2110_v40, %v2109_v36 }
 0x130   : > { %v1250_v47 = vadd.f32 %v2111_v45, %v1114_v42 }
 0x132   : > { %v2112_v48 = vpop.f32.mrb[28].mxu1  ;;  %v2200_v49 = vpop.f32.mrb[28].mxu0 }
 0x133   : > { %v2113_v50 = vpop.f32.mrb[29].mxu1  ;;  %v2201_v5 = vpop.f32.mrb[29].mxu0 }
 0x134   : > { %v2114_v54 = vadd.f32 %v2113_v50, %v2112_v48  ;;  %v2202_v56 = vadd.f32 %v2201_v5, %v2200_v49  ;;  %v2115_v57 = vpop.f32.mrb[30].mxu1  ;;  %v2203_v58 = vpop.f32.mrb[30].mxu0  ;;  %v1135_v50 = vadd.f32 %v2803_v46, %v2783_v21 }
 0x135   : > { %v2116_v59 = vpop.f32.mrb[31].mxu1  ;;  %v2204_v61 = vpop.f32.mrb[31].mxu0 }
 0x136   : > { %v1255_v62 = vadd.f32 %v2114_v54, %v1119_v51  ;;  %v1383_v63 = vadd.f32 %v2202_v56, %v1247_v43  ;;  %v2117_v0 = vadd.f32 %v2116_v59, %v2115_v57  ;;  %v2205_v1 = vadd.f32 %v2204_v61, %v2203_v58 }
 0x137   : > { %v1138_v57 = vadd.f32 %v2805_v52, %v2783_v21 }
 0x138   : > { %v1258_v4 = vadd.f32 %v2117_v0, %v1122_v11  ;;  %v1386_v8 = vadd.f32 %v2205_v1, %v1250_v47  ;;  %v1484_v9 = vmax.f32 %v1383_v63, 0.0 }
 0x13a   : > { %v1485_v10 = vmax.f32 %v1386_v8, 0.0  ;;  %v2118_v13 = vpop.f32.mrb[32].mxu1  ;;  %v2206_v17 = vpop.f32.mrb[32].mxu0 }
 0x13b   : > { %v2119_v24 = vpop.f32.mrb[33].mxu1  ;;  %v2207_v15 = vpop.f32.mrb[33].mxu0 }
 0x13c   : > { %v1928_v18 = vpack.c.bf16 %v1485_v10, %v1484_v9  ;;  %v2120_v19 = vadd.f32 %v2119_v24, %v2118_v13  ;;  %v2208_v20 = vadd.f32 %v2207_v15, %v2206_v17  ;;  %v2121_v26 = vpop.f32.mrb[34].mxu1  ;;  %v2209_v28 = vpop.f32.mrb[34].mxu0  ;;  %v1143_v17 = vadd.f32 %v2813_v60, %v2783_v21 }
 0x13d   : > { %v2122_v30 = vpop.f32.mrb[35].mxu1  ;;  %v2210_v31 = vpop.f32.mrb[35].mxu0 }
 0x13e   : > { %1929 = vst [vmem:[%s2846_s5] sm:$0xff] %v1928_v18   ;;  %v1263_v34 = vadd.f32 %v2120_v19, %v1127_v16  ;;  %v1391_v35 = vadd.f32 %v2208_v20, %v1255_v62  ;;  %v2123_v36 = vadd.f32 %v2122_v30, %v2121_v26  ;;  %v2211_v37 = vadd.f32 %v2210_v31, %v2209_v28 }
 0x13f   : > { %v1146_v19 = vadd.f32 %v2815_v2, %v2783_v21 }
 0x140   : > { %v1266_v40 = vadd.f32 %v2123_v36, %v1130_v29  ;;  %v1394_v42 = vadd.f32 %v2211_v37, %v1258_v4  ;;  %v1486_v43 = vmax.f32 %v1391_v35, 0.0 }
 0x142   : > { %v1487_v32 = vmax.f32 %v1394_v42, 0.0  ;;  %v2124_v45 = vpop.f32.mrb[36].mxu1  ;;  %v2212_v47 = vpop.f32.mrb[36].mxu0 }
 0x143   : > { %v2125_v48 = vpop.f32.mrb[37].mxu1  ;;  %v2213_v49 = vpop.f32.mrb[37].mxu0 }
 0x144   : > { %v1933_v38 = vpack.c.bf16 %v1487_v32, %v1486_v43  ;;  %v2126_v5 = vadd.f32 %v2125_v48, %v2124_v45  ;;  %v2214_v51 = vadd.f32 %v2213_v49, %v2212_v47  ;;  %v2127_v54 = vpop.f32.mrb[38].mxu1  ;;  %v2215_v56 = vpop.f32.mrb[38].mxu0  ;;  %v1151_v32 = vadd.f32 %v2823_v14, %v2783_v21 }
 0x145   : > { %v2128_v58 = vpop.f32.mrb[39].mxu1  ;;  %v2216_v11 = vpop.f32.mrb[39].mxu0 }
 0x146   : > { %1985 = vst [vmem:[%s2846_s5 + $0x8] sm:$0xff] %v1933_v38   ;;  %v1271_v59 = vadd.f32 %v2126_v5, %v1135_v50  ;;  %v1399_v61 = vadd.f32 %v2214_v51, %v1263_v34  ;;  %v2129_v62 = vadd.f32 %v2128_v58, %v2127_v54  ;;  %v2217_v63 = vadd.f32 %v2216_v11, %v2215_v56 }
 0x147   : > { %v1154_v50 = vadd.f32 %v2825_v22, %v2783_v21 }
 0x148   : > { %v1274_v0 = vadd.f32 %v2129_v62, %v1138_v57  ;;  %v1402_v1 = vadd.f32 %v2217_v63, %v1266_v40  ;;  %v1488_v4 = vmax.f32 %v1399_v61, 0.0 }
 0x14a   : > { %v1489_v46 = vmax.f32 %v1402_v1, 0.0  ;;  %v2130_v8 = vpop.f32.mrb[40].mxu1  ;;  %v2218_v9 = vpop.f32.mrb[40].mxu0  ;;  %v1159_v1 = vadd.f32 %v2832_v33, %v2783_v21 }
 0x14b   : > { %v2131_v10 = vpop.f32.mrb[41].mxu1  ;;  %v2219_v13 = vpop.f32.mrb[41].mxu0 }
 0x14c   : > { %v1938_v52 = vpack.c.bf16 %v1489_v46, %v1488_v4  ;;  %v2132_v24 = vadd.f32 %v2131_v10, %v2130_v8  ;;  %v2220_v15 = vadd.f32 %v2219_v13, %v2218_v9  ;;  %v2133_v16 = vpop.f32.mrb[42].mxu1  ;;  %v2221_v18 = vpop.f32.mrb[42].mxu0  ;;  %v1162_v10 = vadd.f32 %v2836_v44, %v2783_v21 }
 0x14d   : > { %v2134_v20 = vpop.f32.mrb[43].mxu1  ;;  %v2222_v26 = vpop.f32.mrb[43].mxu0 }
 0x14e   : > { %1986 = vst [vmem:[%s2846_s5 + $0x10] sm:$0xff] %v1938_v52   ;;  %v1279_v28 = vadd.f32 %v2132_v24, %v1143_v17  ;;  %v1407_v29 = vadd.f32 %v2220_v15, %v1271_v59  ;;  %v2135_v30 = vadd.f32 %v2134_v20, %v2133_v16  ;;  %v2223_v31 = vadd.f32 %v2222_v26, %v2221_v18 }
 0x150   : > { %v1282_v34 = vadd.f32 %v2135_v30, %v1146_v19  ;;  %v1410_v35 = vadd.f32 %v2223_v31, %v1274_v0  ;;  %v1490_v36 = vmax.f32 %v1407_v29, 0.0  ;;  %v1167_v31 = vadd.f32 %v2772_v7, %v2783_v21 }
 0x152   : > { %v1491_v60 = vmax.f32 %v1410_v35, 0.0  ;;  %v2136_v37 = vpop.f32.mrb[44].mxu1  ;;  %v2224_v40 = vpop.f32.mrb[44].mxu0 }
 0x153   : > { %v2137_v42 = vpop.f32.mrb[45].mxu1  ;;  %v2225_v43 = vpop.f32.mrb[45].mxu0 }
 0x154   : > { %v1943_v2 = vpack.c.bf16 %v1491_v60, %v1490_v36  ;;  %v2138_v45 = vadd.f32 %v2137_v42, %v2136_v37  ;;  %v2226_v47 = vadd.f32 %v2225_v43, %v2224_v40  ;;  %v2139_v48 = vpop.f32.mrb[46].mxu1  ;;  %v2227_v49 = vpop.f32.mrb[46].mxu0  ;;  %v1170_v37 = vadd.f32 %v2776_v12, %v2783_v21 }
 0x155   : > { %v2140_v38 = vpop.f32.mrb[47].mxu1  ;;  %v2228_v5 = vpop.f32.mrb[47].mxu0 }
 0x156   : > { %1987 = vst [vmem:[%s2846_s5 + $0x18] sm:$0xff] %v1943_v2   ;;  %v1287_v51 = vadd.f32 %v2138_v45, %v1151_v32  ;;  %v1415_v54 = vadd.f32 %v2226_v47, %v1279_v28  ;;  %v2141_v56 = vadd.f32 %v2140_v38, %v2139_v48  ;;  %v2229_v57 = vadd.f32 %v2228_v5, %v2227_v49 }
 0x158   : > { %v1290_v58 = vadd.f32 %v2141_v56, %v1154_v50  ;;  %v1418_v11 = vadd.f32 %v2229_v57, %v1282_v34  ;;  %v1492_v59 = vmax.f32 %v1415_v54, 0.0 }
 0x15a   : > { %v1493_v14 = vmax.f32 %v1418_v11, 0.0  ;;  %v2142_v61 = vpop.f32.mrb[48].mxu1  ;;  %v2230_v62 = vpop.f32.mrb[48].mxu0 }
 0x15b   : > { %v2143_v63 = vpop.f32.mrb[49].mxu1  ;;  %v2231_v0 = vpop.f32.mrb[49].mxu0 }
 0x15c   : > { %v1948_v22 = vpack.c.bf16 %v1493_v14, %v1492_v59  ;;  %v2144_v4 = vadd.f32 %v2143_v63, %v2142_v61  ;;  %v2232_v46 = vadd.f32 %v2231_v0, %v2230_v62  ;;  %v2145_v8 = vpop.f32.mrb[50].mxu1  ;;  %v2233_v9 = vpop.f32.mrb[50].mxu0 }
 0x15d   : > { %v2146_v13 = vpop.f32.mrb[51].mxu1  ;;  %v2234_v17 = vpop.f32.mrb[51].mxu0 }
 0x15e   : > { %1988 = vst [vmem:[%s2846_s5 + $0x20] sm:$0xff] %v1948_v22   ;;  %v1295_v52 = vadd.f32 %v2144_v4, %v1159_v1  ;;  %v1423_v24 = vadd.f32 %v2232_v46, %v1287_v51  ;;  %v2147_v15 = vadd.f32 %v2146_v13, %v2145_v8  ;;  %v2235_v16 = vadd.f32 %v2234_v17, %v2233_v9 }
 0x160   : > { %v1298_v18 = vadd.f32 %v2147_v15, %v1162_v10  ;;  %v1426_v19 = vadd.f32 %v2235_v16, %v1290_v58  ;;  %v1494_v20 = vmax.f32 %v1423_v24, 0.0 }
 0x162   : > { %v1495_v33 = vmax.f32 %v1426_v19, 0.0  ;;  %v2148_v26 = vpop.f32.mrb[52].mxu1  ;;  %v2236_v28 = vpop.f32.mrb[52].mxu0 }
 0x163   : > { %v2149_v29 = vpop.f32.mrb[53].mxu1  ;;  %v2237_v30 = vpop.f32.mrb[53].mxu0 }
 0x164   : > { %v1953_v44 = vpack.c.bf16 %v1495_v33, %v1494_v20  ;;  %v2150_v34 = vadd.f32 %v2149_v29, %v2148_v26  ;;  %v2238_v35 = vadd.f32 %v2237_v30, %v2236_v28  ;;  %v2151_v36 = vpop.f32.mrb[54].mxu1  ;;  %v2239_v60 = vpop.f32.mrb[54].mxu0 }
 0x165   : > { %v2152_v40 = vpop.f32.mrb[55].mxu1  ;;  %v2240_v42 = vpop.f32.mrb[55].mxu0 }
 0x166   : > { %1989 = vst [vmem:[%s2846_s5 + $0x28] sm:$0xff] %v1953_v44   ;;  %v1303_v43 = vadd.f32 %v2150_v34, %v1167_v31  ;;  %v1431_v32 = vadd.f32 %v2238_v35, %v1295_v52  ;;  %v2153_v2 = vadd.f32 %v2152_v40, %v2151_v36  ;;  %v2241_v45 = vadd.f32 %v2240_v42, %v2239_v60 }
 0x168   : > { %v1306_v47 = vadd.f32 %v2153_v2, %v1170_v37  ;;  %v1434_v48 = vadd.f32 %v2241_v45, %v1298_v18  ;;  %v1496_v49 = vmax.f32 %v1431_v32, 0.0 }
 0x16a   : > { %v1497_v7 = vmax.f32 %v1434_v48, 0.0  ;;  %v2154_v50 = vpop.f32.mrb[56].mxu1  ;;  %v2242_v38 = vpop.f32.mrb[56].mxu0 }
 0x16b   : > { %v2155_v5 = vpop.f32.mrb[57].mxu1  ;;  %v2243_v51 = vpop.f32.mrb[57].mxu0 }
 0x16c   : > { %v1958_v54 = vpack.c.bf16 %v1497_v7, %v1496_v49  ;;  %v2156_v56 = vadd.f32 %v2155_v5, %v2154_v50  ;;  %v2244_v57 = vadd.f32 %v2243_v51, %v2242_v38  ;;  %v2157_v12 = vpop.f32.mrb[58].mxu1  ;;  %v2245_v21 = vpop.f32.mrb[58].mxu0 }
 0x16d   : > { %v2158_v58 = vpop.f32.mrb[59].mxu1  ;;  %v2246_v11 = vpop.f32.mrb[59].mxu0 }
 0x16e   : > { %1990 = vst [vmem:[%s2846_s5 + $0x30] sm:$0xff] %v1958_v54   ;;  %v1311_v59 = vadd.f32 %v2156_v56, %v2788_v25  ;;  %v1439_v14 = vadd.f32 %v2244_v57, %v1303_v43  ;;  %v2159_v61 = vadd.f32 %v2158_v58, %v2157_v12  ;;  %v2247_v62 = vadd.f32 %v2246_v11, %v2245_v21 }
 0x170   : > { %v1314_v63 = vadd.f32 %v2159_v61, %v2791_v27  ;;  %v1442_v0 = vadd.f32 %v2247_v62, %v1306_v47  ;;  %v1498_v1 = vmax.f32 %v1439_v14, 0.0 }
 0x172   : > { %v1499_v22 = vmax.f32 %v1442_v0, 0.0  ;;  %v2160_v4 = vpop.f32.mrb[60].mxu1  ;;  %v2248_v46 = vpop.f32.mrb[60].mxu0 }
 0x173   : > { %v2161_v8 = vpop.f32.mrb[61].mxu1  ;;  %v2249_v9 = vpop.f32.mrb[61].mxu0 }
 0x174   : > { %v1963_v10 = vpack.c.bf16 %v1499_v22, %v1498_v1  ;;  %v2162_v13 = vadd.f32 %v2161_v8, %v2160_v4  ;;  %v2250_v17 = vadd.f32 %v2249_v9, %v2248_v46  ;;  %v2163_v52 = vpop.f32.mrb[62].mxu1  ;;  %v2251_v24 = vpop.f32.mrb[62].mxu0 }
 0x175   : > { %v2164_v15 = vpop.f32.mrb[63].mxu1  ;;  %v2252_v25 = vpop.f32.mrb[63].mxu0 }
 0x176   : > { %1991 = vst [vmem:[%s2846_s5 + $0x38] sm:$0xff] %v1963_v10   ;;  %v1319_v16 = vadd.f32 %v2162_v13, %v2798_v39  ;;  %v1447_v18 = vadd.f32 %v2250_v17, %v1311_v59  ;;  %v2165_v19 = vadd.f32 %v2164_v15, %v2163_v52  ;;  %v2253_v27 = vadd.f32 %v2252_v25, %v2251_v24 }
 0x178   : > { %v1322_v20 = vadd.f32 %v2165_v19, %v2801_v41  ;;  %v1450_v33 = vadd.f32 %v2253_v27, %v1314_v63  ;;  %v1500_v26 = vmax.f32 %v1447_v18, 0.0 }
 0x17a   : > { %v1501_v28 = vmax.f32 %v1450_v33, 0.0  ;;  %v2166_v29 = vpop.f32.mrb[64].mxu1  ;;  %v2254_v30 = vpop.f32.mrb[64].mxu0 }
 0x17b   : > { %v2167_v31 = vpop.f32.mrb[65].mxu1  ;;  %v2255_v44 = vpop.f32.mrb[65].mxu0 }
 0x17c   : > { %v1968_v34 = vpack.c.bf16 %v1501_v28, %v1500_v26  ;;  %v2168_v35 = vadd.f32 %v2167_v31, %v2166_v29  ;;  %v2256_v36 = vadd.f32 %v2255_v44, %v2254_v30  ;;  %v2169_v60 = vpop.f32.mrb[66].mxu1  ;;  %v2257_v37 = vpop.f32.mrb[66].mxu0 }
 0x17d   : > { %v2170_v40 = vpop.f32.mrb[67].mxu1  ;;  %v2258_v39 = vpop.f32.mrb[67].mxu0 }
 0x17e   : > { %1992 = vst [vmem:[%s2846_s5 + $0x40] sm:$0xff] %v1968_v34   ;;  %v1327_v42 = vadd.f32 %v2168_v35, %v2808_v53  ;;  %v1455_v43 = vadd.f32 %v2256_v36, %v1319_v16  ;;  %v2171_v32 = vadd.f32 %v2170_v40, %v2169_v60  ;;  %v2259_v41 = vadd.f32 %v2258_v39, %v2257_v37 }
 0x180   : > { %v1330_v2 = vadd.f32 %v2171_v32, %v2811_v55  ;;  %v1458_v45 = vadd.f32 %v2259_v41, %v1322_v20  ;;  %v1502_v47 = vmax.f32 %v1455_v43, 0.0 }
 0x182   : > { %v1503_v48 = vmax.f32 %v1458_v45, 0.0  ;;  %v2172_v49 = vpop.f32.mrb[68].mxu1  ;;  %v2260_v7 = vpop.f32.mrb[68].mxu0 }
 0x183   : > { %v2173_v50 = vpop.f32.mrb[69].mxu1  ;;  %v2261_v38 = vpop.f32.mrb[69].mxu0 }
 0x184   : > { %v1973_v5 = vpack.c.bf16 %v1503_v48, %v1502_v47  ;;  %v2174_v51 = vadd.f32 %v2173_v50, %v2172_v49  ;;  %v2262_v54 = vadd.f32 %v2261_v38, %v2260_v7  ;;  %v2175_v56 = vpop.f32.mrb[70].mxu1  ;;  %v2263_v57 = vpop.f32.mrb[70].mxu0 }
 0x185   : > { %v2176_v12 = vpop.f32.mrb[71].mxu1  ;;  %v2264_v53 = vpop.f32.mrb[71].mxu0 }
 0x186   : > { %1993 = vst [vmem:[%s2846_s5 + $0x48] sm:$0xff] %v1973_v5   ;;  %v1335_v21 = vadd.f32 %v2174_v51, %v2818_v3  ;;  %v1463_v58 = vadd.f32 %v2262_v54, %v1327_v42  ;;  %v2177_v11 = vadd.f32 %v2176_v12, %v2175_v56  ;;  %v2265_v55 = vadd.f32 %v2264_v53, %v2263_v57 }
 0x188   : > { %v1338_v59 = vadd.f32 %v2177_v11, %v2821_v6  ;;  %v1466_v14 = vadd.f32 %v2265_v55, %v1330_v2  ;;  %v1504_v61 = vmax.f32 %v1463_v58, 0.0 }
 0x18a   : > { %v1505_v62 = vmax.f32 %v1466_v14, 0.0  ;;  %v2178_v63 = vpop.f32.mrb[72].mxu1  ;;  %v2266_v0 = vpop.f32.mrb[72].mxu0 }
 0x18b   : > { %v2179_v1 = vpop.f32.mrb[73].mxu1  ;;  %v2267_v22 = vpop.f32.mrb[73].mxu0 }
 0x18c   : > { %v1978_v4 = vpack.c.bf16 %v1505_v62, %v1504_v61  ;;  %v2180_v46 = vadd.f32 %v2179_v1, %v2178_v63  ;;  %v2268_v8 = vadd.f32 %v2267_v22, %v2266_v0  ;;  %v2269_v9 = vpop.f32.mrb[74].mxu0  ;;  %v2181_v10 = vpop.f32.mrb[74].mxu1 }
 0x18d   : > { %v2270_v3 = vpop.f32.mrb[75].mxu0  ;;  %v2182_v13 = vpop.f32.mrb[75].mxu1 }
 0x18e   : > { %1994 = vst [vmem:[%s2846_s5 + $0x50] sm:$0xff] %v1978_v4   ;;  %v1343_v17 = vadd.f32 %v2180_v46, %v2828_v23  ;;  %v1471_v6 = vadd.f32 %v2268_v8, %v1335_v21  ;;  %v2271_v52 = vadd.f32 %v2270_v3, %v2269_v9 }
 0x190   : > { %v1474_v24 = vadd.f32 %v2271_v52, %v1338_v59  ;;  %v1506_v15 = vmax.f32 %v1471_v6, 0.0 }
 0x192   : > { %v1507_v25 = vmax.f32 %v1474_v24, 0.0  ;;  %v2272_v16 = vpop.f32.mrb[76].mxu0 }
 0x193   : > { %v2273_v18 = vpop.f32.mrb[77].mxu0 }
 0x194   : > { %v1983_v19 = vpack.c.bf16 %v1507_v25, %v1506_v15  ;;  %v2274_v27 = vadd.f32 %v2273_v18, %v2272_v16  ;;  %v2275_v20 = vpop.f32.mrb[78].mxu0 }
 0x195   : > { %v2276_v33 = vpop.f32.mrb[79].mxu0 }
 0x196   : > { %1995 = vst [vmem:[%s2846_s5 + $0x58] sm:$0xff] %v1983_v19   ;;  %v1479_v26 = vadd.f32 %v2274_v27, %v1343_v17 }
 0x198   : > { %v1508_v28 = vmax.f32 %v1479_v26, 0.0 }
 0x19a   : > { %v1924_v29 = vpack.c.bf16 %v1508_v28, %v1508_v28 }
 0x19c   : > { %1634 = vst [vmem:[%s2846_s5 + $0x60] sm:$0xf] %v1924_v29 }
 0x19d PF: > { %s13_s14 = sadd.s32 1, %s2503_s14   ;;  %s2907_s12 = smov %s2499_s13 }
 0x19e   : > { %p10_p5 = scmp.ge.s32.totalorder %s13_s14, 4   ;;  %s2908_s13 = smov %s2910_s15 }
 0x1a0   :  { %12 = sbr.rel (!%p10_p5) target bundleno = 2 (0x2), region = 68 }

// kernel: itracker_image_forward.6
= control target key start
LH: loop header
LB: loop body
LE: loop exit
PB: predicated region body
PF: predicated region fallthrough
CT: control target
= control target key end

     0   :  { %s823_s11 = smov 1   ;;  %s826_s15 = smov 126   ;;  %s1480_s0 = inlined_call_operand.vmem [shape: bf16[2,7,7,128], index: 0, kind: input, shape index: {}]   ;;  %s1481_s2 = inlined_call_operand.vmem [shape: bf16[2,6,7,128], index: 2, kind: input, shape index: {}]   ;;  %s1482_s3 = inlined_call_operand.vmem [shape: bf16[2,6,6,128], index: 3, kind: input, shape index: {}]   ;;  %s1483_s1 = inlined_call_operand.vmem [shape: bf16[2,7,6,128], index: 1, kind: input, shape index: {}]   ;;  %s1484_s4 = inlined_call_operand.vmem [shape: bf16[2,6,6,128], index: 4, kind: output, shape index: {}]  }
   0x1   :  { %v855_v0 = vld [vmem:[%s1480_s0 + $0x8] sm:$0xf]  ;;  %v32_v1 = vld [vmem:[%s1480_s0 + $0xc] sm:$0xf]  ;;  %v17_v8 = vld [vmem:[%s1482_s3] sm:$0x7] }
   0x2   :  { %v19_v2 = vld [vmem:[%s1482_s3 + $0x8] sm:$0x7]  ;;  %v100_v4 = vshrl.u32 %v855_v0, 16  ;;  %v103_v5 = vshll.u32 %v855_v0, 16  ;;  %v109_v6 = vshrl.u32 %v32_v1, 16  ;;  %v112_v7 = vshll.u32 %v32_v1, 16 }
   0x3   :  { %v866_v3 = vld [vmem:[%s1481_s2 + $0x8] sm:$0xf]  ;;  %v29_v11 = vld [vmem:[%s1480_s0] sm:$0xf]  ;;  %v881_v16 = vld [vmem:[%s1480_s0 + $0x4] sm:$0xf]  ;;  %v71_v17 = vmax.bf16 %v855_v0, %v19_v2 }
   0x4   :  { %v312_v9 = vshrl.u32 %v866_v3, 16  ;;  %v315_v10 = vshll.u32 %v866_v3, 16  ;;  %v102_v12 = vrot.slane %v100_v4, 4  ;;  %v105_v13 = vrot.slane %v103_v5, 5  ;;  %v887_v20 = vld [vmem:[%s1481_s2] sm:$0xf] }
   0x5   :  { %v111_v14 = vrot.slane %v109_v6, 4  ;;  %v114_v15 = vrot.slane %v112_v7, 5  ;;  %v69_v21 = vmax.bf16 %v29_v11, %v17_v8  ;;  %v82_v24 = vshrl.u32 %v29_v11, 16  ;;  %v20_v26 = vld [vmem:[%s1482_s3 + $0xc] sm:$0x7] }
   0x6   :  { %v314_v18 = vrot.slane %v312_v9, 4  ;;  %v317_v19 = vrot.slane %v315_v10, 5  ;;  %v106_v22 = vor.u32 %v105_v13, %v102_v12  ;;  %v85_v25 = vshll.u32 %v29_v11, 16  ;;  %v898_v31 = vld [vmem:[%s1480_s0 + $0x10] sm:$0xf] }
   0x7   :  { %v115_v23 = vor.u32 %v114_v15, %v111_v14  ;;  %v91_v28 = vshrl.u32 %v881_v16, 16  ;;  %v94_v29 = vshll.u32 %v881_v16, 16  ;;  %v294_v30 = vshrl.u32 %v887_v20, 16  ;;  %v905_v36 = vld [vmem:[%s1481_s2 + $0xc] sm:$0xf] }
   0x8   :  { %v318_v27 = vor.u32 %v317_v19, %v314_v18  ;;  %v900_v32 = vrot.slane %v106_v22, 4  ;;  %v84_v34 = vrot.slane %v82_v24, 4  ;;  %v87_v35 = vrot.slane %v85_v25, 5  ;;  %v18_v53 = vld [vmem:[%s1482_s3 + $0x4] sm:$0x7] }
   0x9   :  { %v116_v33 = vrot.slane %v115_v23, 4  ;;  %v93_v38 = vrot.slane %v91_v28, 4  ;;  %v96_v39 = vrot.slane %v94_v29, 5  ;;  %v296_v40 = vrot.slane %v294_v30, 4  ;;  %v920_v54 = vld [vmem:[%s1481_s2 + $0x4] sm:$0xf] }
   0xa   :  { %v907_v37 = vrot.slane %v318_v27, 4  ;;  %v203_v41 = vmax.bf16 %v900_v32, %v71_v17  ;;  %v88_v42 = vor.u32 %v87_v35, %v84_v34  ;;  %v297_v43 = vshll.u32 %v887_v20, 16  ;;  %v45_v55 = vld [vmem:[%s1483_s1 + $0x8] sm:$0x7]  ;;  %v22_v7 = vld [vmem:[%s1482_s3 + $0x14] sm:$0x7] }
   0xb   :  { %v72_v44 = vmax.bf16 %v32_v1, %v20_v26  ;;  %v97_v45 = vor.u32 %v96_v39, %v93_v38  ;;  %v118_v46 = vshrl.u32 %v898_v31, 16  ;;  %v121_v47 = vshll.u32 %v898_v31, 16  ;;  %v940_v12 = vld [vmem:[%s1480_s0 + $0x14] sm:$0xf]  ;;  %v43_v13 = vld [vmem:[%s1483_s1] sm:$0x7] }
   0xc   :  { %v321_v48 = vshrl.u32 %v905_v36, 16  ;;  %v215_v49 = vmax.bf16 %v203_v41, %v32_v1  ;;  %v89_v50 = vrot.slane %v88_v42, 4  ;;  %v299_v51 = vrot.slane %v297_v43, 5  ;;  %v46_v1 = vld [vmem:[%s1483_s1 + $0xc] sm:$0x7] }
   0xd   :  { %v204_v52 = vmax.bf16 %v116_v33, %v72_v44  ;;  %v98_v56 = vrot.slane %v97_v45, 4  ;;  %v120_v57 = vrot.slane %v118_v46, 4  ;;  %v123_v58 = vrot.slane %v121_v47, 5  ;;  %v44_v23 = vld [vmem:[%s1483_s1 + $0x4] sm:$0x7] }
   0xe   :  { %v323_v59 = vrot.slane %v321_v48, 4  ;;  %v247_v60 = vmax.bf16 %v215_v49, %v116_v33  ;;  %v201_v61 = vmax.bf16 %v89_v50, %v69_v21  ;;  %v300_v62 = vor.u32 %v299_v51, %v296_v40  ;;  %v958_v30 = vld [vmem:[%s1483_s1 + $0x10] sm:$0x7]  ;;  %v35_v34 = vld [vmem:[%s1480_s0 + $0x18] sm:$0xf] }
   0xf   :  { %v216_v63 = vmax.bf16 %v204_v52, %v898_v31  ;;  %v124_v2 = vor.u32 %v123_v58, %v120_v57  ;;  %v324_v4 = vshll.u32 %v905_v36, 16  ;;  %v70_v5 = vmax.bf16 %v881_v16, %v18_v53  ;;  %v21_v57 = vld [vmem:[%s1482_s3 + $0x10] sm:$0x7] }
  0x10   :  { %v303_v6 = vshrl.u32 %v920_v54, 16  ;;  %v259_v8 = vmax.bf16 %v247_v60, %v45_v55  ;;  %v213_v9 = vmax.bf16 %v201_v61, %v881_v16  ;;  %v301_v10 = vrot.slane %v300_v62, 4  ;;  %v983_v58 = vld [vmem:[%s1481_s2 + $0x10] sm:$0xf] }
  0x11   :  { %v306_v11 = vshll.u32 %v920_v54, 16  ;;  %v945_v14 = vrot.slane %v124_v2, 4  ;;  %v326_v15 = vrot.slane %v324_v4, 5  ;;  %v202_v17 = vmax.bf16 %v98_v56, %v70_v5 }
  0x12   :  { %v305_v18 = vrot.slane %v303_v6, 4  ;;  %v271_v19 = vmax.bf16 %v259_v8, %v46_v1  ;;  %v245_v21 = vmax.bf16 %v213_v9, %v98_v56  ;;  %v74_v22 = vmax.bf16 %v940_v12, %v22_v7 }
  0x13   :  { %v308_v16 = vrot.slane %v306_v11, 5  ;;  %v248_v24 = vmax.bf16 %v216_v63, %v945_v14  ;;  %v327_v25 = vor.u32 %v326_v15, %v323_v59  ;;  %v214_v26 = vmax.bf16 %v202_v17, %v855_v0 }
  0x14   :  { %v127_v27 = vshrl.u32 %v940_v12, 16  ;;  %v283_v28 = vmax.bf16 %v271_v19, %v866_v3  ;;  %v257_v29 = vmax.bf16 %v245_v21, %v43_v13  ;;  %v130_v35 = vshll.u32 %v940_v12, 16  ;;  %v968_v3 = vld [vmem:[%s1481_s2 + $0x14] sm:$0xf] }
  0x15   :  { %v309_v33 = vor.u32 %v308_v16, %v305_v18  ;;  %v260_v38 = vmax.bf16 %v248_v24, %v46_v1  ;;  %v328_v39 = vrot.slane %v327_v25, 4  ;;  %v246_v0 = vmax.bf16 %v214_v26, %v900_v32  ;;  %v48_v19 = vld [vmem:[%s1483_s1 + $0x14] sm:$0x7]  ;;  %v1033_v24 = vld [vmem:[%s1481_s2 + $0x1c] sm:$0xf] }
  0x16   :  { %v129_v40 = vrot.slane %v127_v27, 4  ;;  %v415_v41 = vmax.bf16 %v907_v37, %v283_v28  ;;  %v269_v42 = vmax.bf16 %v257_v29, %v44_v23  ;;  %v132_v44 = vrot.slane %v130_v35, 5 }
  0x17   :  { %v310_v43 = vrot.slane %v309_v33, 4  ;;  %v272_v45 = vmax.bf16 %v260_v38, %v958_v30  ;;  %v258_v46 = vmax.bf16 %v246_v0, %v44_v23  ;;  %v226_v47 = vshrl.u32 %v35_v34, 16 }
  0x18   :  { %v229_v48 = vshll.u32 %v35_v34, 16  ;;  %v972_v49 = vunpack.c.l.bf16 %v415_v41  ;;  %v281_v32 = vmax.bf16 %v269_v42, %v887_v20  ;;  %v133_v50 = vor.u32 %v132_v44, %v129_v40 }
  0x19   :  { %v339_v51 = vshrl.u32 %v968_v3, 16  ;;  %v284_v52 = vmax.bf16 %v272_v45, %v905_v36  ;;  %v270_v53 = vmax.bf16 %v258_v46, %v45_v55  ;;  %v228_v56 = vrot.slane %v226_v47, 4 }
  0x1a   :  { %v231_v37 = vrot.slane %v229_v48, 5  ;;  %v987_v20 = vmul.f32 %v972_v49, %v972_v49  ;;  %v413_v59 = vmax.bf16 %v301_v10, %v281_v32  ;;  %v134_v60 = vrot.slane %v133_v50, 4  ;;  %v1005_v10 = vld [vmem:[%s1480_s0 + $0x20] sm:$0xf]  ;;  %v36_v48 = vld [vmem:[%s1480_s0 + $0x1c] sm:$0xf] }
  0x1b   :  { %v341_v61 = vrot.slane %v339_v51, 4  ;;  %v416_v36 = vmax.bf16 %v328_v39, %v284_v52  ;;  %v282_v55 = vmax.bf16 %v270_v53, %v920_v54  ;;  %v342_v63 = vshll.u32 %v968_v3, 16  ;;  %v24_v54 = vld [vmem:[%s1482_s3 + $0x1c] sm:$0x7]  ;;  %v1063_v53 = vld [vmem:[%s1481_s2 + $0x18] sm:$0xf] }
  0x1c   :  { %v232_v62 = vor.u32 %v231_v37, %v228_v56  ;;  %456 = vrot.lane.b32.xlu1 %v987_v20, %s823_s11  ;;  %v993_v1 = vunpack.c.l.bf16 %v413_v59  ;;  %v206_v2 = vmax.bf16 %v134_v60, %v74_v22  ;;  %v73_v4 = vmax.bf16 %v898_v31, %v21_v57  ;;  %v1025_v22 = vld [vmem:[%s1480_s0 + $0x24] sm:$0xf] }
  0x1d   :  { %v330_v5 = vshrl.u32 %v983_v58, 16  ;;  %v997_v6 = vunpack.c.l.bf16 %v416_v36  ;;  %v414_v7 = vmax.bf16 %v310_v43, %v282_v55  ;;  %v344_v9 = vrot.slane %v342_v63, 5  ;;  %v23_v43 = vld [vmem:[%s1482_s3 + $0x18] sm:$0x7] }
  0x1e   :  { %v233_v8 = vrot.slane %v232_v62, 4  ;;  %v1009_v11 = vmul.f32 %v993_v1, %v993_v1  ;;  %v218_v31 = vmax.bf16 %v206_v2, %v35_v34  ;;  %v205_v13 = vmax.bf16 %v945_v14, %v73_v4  ;;  %v26_v4 = vld [vmem:[%s1482_s3 + $0x24] sm:$0x7] }
  0x1f   :  { %v332_v15 = vrot.slane %v330_v5, 4  ;;  %v1014_v17 = vmul.f32 %v997_v6, %v997_v6  ;;  %v1016_v18 = vunpack.c.l.bf16 %v414_v7  ;;  %v345_v21 = vor.u32 %v344_v9, %v341_v61  ;;  %v1074_v9 = vld [vmem:[%s1480_s0 + $0x28] sm:$0xf] }
  0x20   :  { %v333_v16 = vshll.u32 %v983_v58, 16  ;;  %452 = vrot.lane.b32.xlu0 %v1009_v11, %s823_s11  ;;  %v250_v14 = vmax.bf16 %v233_v8, %v218_v31  ;;  %v217_v23 = vmax.bf16 %v205_v13, %v940_v12  ;;  %v76_v25 = vmax.bf16 %v1005_v10, %v24_v54  ;;  %v49_v12 = vld [vmem:[%s1483_s1 + $0x18] sm:$0x7] }
  0x21   :  { %v145_v26 = vshrl.u32 %v1005_v10, 16  ;;  %458 = vrot.lane.b32.xlu1 %v1014_v17, %s823_s11  ;;  %v1041_v27 = vmul.f32 %v1016_v18, %v1016_v18  ;;  %v346_v28 = vrot.slane %v345_v21, 4  ;;  %v148_v33 = vshll.u32 %v1005_v10, 16 }
  0x22   :  { %v335_v29 = vrot.slane %v333_v16, 5  ;;  %v262_v34 = vmax.bf16 %v250_v14, %v48_v19  ;;  %v249_v35 = vmax.bf16 %v217_v23, %v134_v60  ;;  %v154_v39 = vshrl.u32 %v1025_v22, 16 }
  0x23   :  { %v147_v38 = vrot.slane %v145_v26, 4  ;;  %v150_v40 = vrot.slane %v148_v33, 5  ;;  %v157_v41 = vshll.u32 %v1025_v22, 16  ;;  %v357_v42 = vshrl.u32 %v1033_v24, 16  ;;  %v51_v26 = vld [vmem:[%s1483_s1 + $0x20] sm:$0x7] }
  0x24   :  { %v336_v0 = vor.u32 %v335_v29, %v332_v15  ;;  %454 = vrot.lane.b32.xlu0 %v1041_v27, %s823_s11  ;;  %v274_v44 = vmax.bf16 %v262_v34, %v49_v12  ;;  %v261_v45 = vmax.bf16 %v249_v35, %v958_v30  ;;  %v156_v46 = vrot.slane %v154_v39, 4  ;;  %v1081_v15 = vld [vmem:[%s1480_s0 + $0x2c] sm:$0xf]  ;;  %v1098_v12 = vld [vmem:[%s1483_s1 + $0x24] sm:$0x7] }
  0x25   :  { %v360_v47 = vshll.u32 %v1033_v24, 16  ;;  %v151_v50 = vor.u32 %v150_v40, %v147_v38  ;;  %v159_v51 = vrot.slane %v157_v41, 5  ;;  %v359_v52 = vrot.slane %v357_v42, 4  ;;  %v1105_v38 = vld [vmem:[%s1481_s2 + $0x24] sm:$0xf] }
  0x26   :  { %v337_v32 = vrot.slane %v336_v0, 4  ;;  %v286_v56 = vmax.bf16 %v274_v44, %v968_v3  ;;  %v273_v37 = vmax.bf16 %v261_v45, %v48_v19  ;;  %v75_v57 = vmax.bf16 %v36_v48, %v23_v43  ;;  %v25_v43 = vld [vmem:[%s1482_s3 + $0x20] sm:$0x7] }
  0x27   :  { %v362_v30 = vrot.slane %v360_v47, 5  ;;  %v152_v59 = vrot.slane %v151_v50, 4  ;;  %v160_v60 = vor.u32 %v159_v51, %v156_v46  ;;  %v136_v61 = vshrl.u32 %v36_v48, 16 }
  0x28   :  { %v139_v36 = vshll.u32 %v36_v48, 16  ;;  %v418_v55 = vmax.bf16 %v346_v28, %v286_v56  ;;  %v285_v62 = vmax.bf16 %v273_v37, %v983_v58  ;;  %v348_v2 = vshrl.u32 %v1063_v53, 16 }
  0x29   :  { %v363_v63 = vor.u32 %v362_v30, %v359_v52  ;;  %v161_v5 = vrot.slane %v160_v60, 4  ;;  %v208_v7 = vmax.bf16 %v152_v59, %v76_v25  ;;  %v138_v3 = vrot.slane %v136_v61, 4  ;;  %v1125_v52 = vld [vmem:[%s1481_s2 + $0x20] sm:$0xf]  ;;  %v50_v60 = vld [vmem:[%s1483_s1 + $0x1c] sm:$0x7] }
  0x2a   :  { %v141_v8 = vrot.slane %v139_v36, 5  ;;  %v1076_v54 = vunpack.c.l.bf16 %v418_v55  ;;  %v417_v31 = vmax.bf16 %v337_v32, %v285_v62  ;;  %v350_v13 = vrot.slane %v348_v2, 4 }
  0x2b   :  { %v364_v58 = vrot.slane %v363_v63, 4  ;;  %v220_v19 = vmax.bf16 %v208_v7, %v1025_v22  ;;  %v351_v16 = vshll.u32 %v1063_v53, 16  ;;  %v78_v14 = vmax.bf16 %v1074_v9, %v26_v4 }
  0x2c   :  { %v142_v21 = vor.u32 %v141_v8, %v138_v3  ;;  %v1088_v23 = vmul.f32 %v1076_v54, %v1076_v54  ;;  %v1090_v25 = vunpack.c.l.bf16 %v417_v31  ;;  %v163_v28 = vshrl.u32 %v1074_v9, 16 }
  0x2d   :  { %v166_v29 = vshll.u32 %v1074_v9, 16  ;;  %v252_v33 = vmax.bf16 %v220_v19, %v161_v5  ;;  %v353_v35 = vrot.slane %v351_v16, 5  ;;  %v172_v39 = vshrl.u32 %v1081_v15, 16 }
  0x2e   :  { %v143_v34 = vrot.slane %v142_v21, 4  ;;  %462 = vrot.lane.b32.xlu1 %v1088_v23, %s823_s11  ;;  %v1112_v0 = vmul.f32 %v1090_v25, %v1090_v25  ;;  %v165_v40 = vrot.slane %v163_v28, 4  ;;  %v175_v42 = vshll.u32 %v1081_v15, 16  ;;  %v1148_v21 = vld [vmem:[%s1480_s0 + $0x34] sm:$0xf] }
  0x2f   :  { %v168_v41 = vrot.slane %v166_v29, 5  ;;  %v264_v44 = vmax.bf16 %v252_v33, %v51_v26  ;;  %v354_v46 = vor.u32 %v353_v35, %v350_v13  ;;  %v174_v47 = vrot.slane %v172_v39, 4  ;;  %v1142_v13 = vld [vmem:[%s1480_s0 + $0x30] sm:$0xf] }
  0x30   :  { %v207_v45 = vmax.bf16 %v143_v34, %v75_v57  ;;  %460 = vrot.lane.b32.xlu0 %v1112_v0, %s823_s11  ;;  %v177_v32 = vrot.slane %v175_v42, 5  ;;  %v375_v50 = vshrl.u32 %v1105_v38, 16  ;;  %v378_v51 = vshll.u32 %v1105_v38, 16 }
  0x31   :  { %v169_v48 = vor.u32 %v168_v41, %v165_v40  ;;  %v276_v56 = vmax.bf16 %v264_v44, %v1098_v12  ;;  %v355_v30 = vrot.slane %v354_v46, 4  ;;  %v77_v57 = vmax.bf16 %v1025_v22, %v25_v43  ;;  %v1161_v41 = vld [vmem:[%s1481_s2 + $0x2c] sm:$0xf] }
  0x32   :  { %v219_v37 = vmax.bf16 %v207_v45, %v1005_v10  ;;  %v178_v36 = vor.u32 %v177_v32, %v174_v47  ;;  %v377_v55 = vrot.slane %v375_v50, 4  ;;  %v380_v62 = vrot.slane %v378_v51, 5  ;;  %v28_v10 = vld [vmem:[%s1482_s3 + $0x2c] sm:$0x7] }
  0x33   :  { %v170_v61 = vrot.slane %v169_v48, 4  ;;  %v288_v63 = vmax.bf16 %v276_v56, %v1033_v24  ;;  %v209_v4 = vmax.bf16 %v161_v5, %v77_v57  ;;  %v366_v7 = vshrl.u32 %v1125_v52, 16  ;;  %v54_v45 = vld [vmem:[%s1483_s1 + $0x2c] sm:$0x7]  ;;  %v27_v48 = vld [vmem:[%s1482_s3 + $0x28] sm:$0x7] }
  0x34   :  { %v251_v2 = vmax.bf16 %v219_v37, %v152_v59  ;;  %v179_v3 = vrot.slane %v178_v36, 4  ;;  %v381_v8 = vor.u32 %v380_v62, %v377_v55  ;;  %v369_v31 = vshll.u32 %v1125_v52, 16  ;;  %v67_v55 = vld [vmem:[%s1481_s2 + $0x28] sm:$0xf] }
  0x35   :  { %v210_v22 = vmax.bf16 %v170_v61, %v78_v14  ;;  %v420_v19 = vmax.bf16 %v364_v58, %v288_v63  ;;  %v221_v59 = vmax.bf16 %v209_v4, %v1074_v9  ;;  %v368_v5 = vrot.slane %v366_v7, 4  ;;  %v53_v58 = vld [vmem:[%s1483_s1 + $0x28] sm:$0x7] }
  0x36   :  { %v263_v24 = vmax.bf16 %v251_v2, %v50_v60  ;;  %v382_v14 = vrot.slane %v381_v8, 4  ;;  %v371_v28 = vrot.slane %v369_v31, 5  ;;  %v80_v29 = vmax.bf16 %v1142_v13, %v28_v10 }
  0x37   :  { %v222_v16 = vmax.bf16 %v210_v22, %v1081_v15  ;;  %v1152_v33 = vunpack.c.l.bf16 %v420_v19  ;;  %v253_v9 = vmax.bf16 %v221_v59, %v170_v61  ;;  %v181_v35 = vshrl.u32 %v1142_v13, 16 }
  0x38   :  { %v275_v34 = vmax.bf16 %v263_v24, %v51_v26  ;;  %v372_v40 = vor.u32 %v371_v28, %v368_v5  ;;  %v184_v42 = vshll.u32 %v1142_v13, 16  ;;  %v235_v43 = vshrl.u32 %v1148_v21, 16 }
  0x39   :  { %v254_v39 = vmax.bf16 %v222_v16, %v179_v3  ;;  %v1167_v26 = vmul.f32 %v1152_v33, %v1152_v33  ;;  %v265_v46 = vmax.bf16 %v253_v9, %v1098_v12  ;;  %v183_v47 = vrot.slane %v181_v35, 4 }
  0x3a   :  { %v287_v44 = vmax.bf16 %v275_v34, %v1063_v53  ;;  %v373_v50 = vrot.slane %v372_v40, 4  ;;  %v186_v51 = vrot.slane %v184_v42, 5  ;;  %v237_v56 = vrot.slane %v235_v43, 4 }
  0x3b   :  { %v266_v32 = vmax.bf16 %v254_v39, %v53_v58  ;;  %466 = vrot.lane.b32.xlu1 %v1167_v26, %s823_s11  ;;  %v277_v53 = vmax.bf16 %v265_v46, %v53_v58  ;;  %v238_v57 = vshll.u32 %v1148_v21, 16  ;;  %v393_v60 = vshrl.u32 %v1161_v41, 16 }
  0x3c   :  { %v419_v37 = vmax.bf16 %v355_v30, %v287_v44  ;;  %v187_v12 = vor.u32 %v186_v51, %v183_v47  ;;  %v396_v36 = vshll.u32 %v1161_v41, 16  ;;  %v79_v62 = vmax.bf16 %v1081_v15, %v27_v48 }
  0x3d   :  { %v278_v61 = vmax.bf16 %v266_v32, %v54_v45  ;;  %v289_v2 = vmax.bf16 %v277_v53, %v1125_v52  ;;  %v240_v30 = vrot.slane %v238_v57, 5  ;;  %v395_v10 = vrot.slane %v393_v60, 4 }
  0x3e   :  { %v1186_v63 = vunpack.c.l.bf16 %v419_v37  ;;  %v188_v7 = vrot.slane %v187_v12, 4  ;;  %v211_v22 = vmax.bf16 %v179_v3, %v79_v62  ;;  %v384_v24 = vshrl.u32 %v67_v55, 16 }
  0x3f   :  { %v290_v4 = vmax.bf16 %v278_v61, %v1105_v38  ;;  %v421_v31 = vmax.bf16 %v373_v50, %v289_v2  ;;  %v241_v19 = vor.u32 %v240_v30, %v237_v56  ;;  %v398_v15 = vrot.slane %v396_v36, 5 }
  0x40   :  { %v1192_v8 = vmul.f32 %v1186_v63, %v1186_v63  ;;  %v212_v5 = vmax.bf16 %v188_v7, %v80_v29  ;;  %v223_v16 = vmax.bf16 %v211_v22, %v1142_v13  ;;  %v386_v28 = vrot.slane %v384_v24, 4  ;;  %v55_v13 = vld [vmem:[%s1483_s1 + $0x30] sm:$0x7] }
  0x41   :  { %v422_v59 = vmax.bf16 %v382_v14, %v290_v4  ;;  %v1197_v52 = vunpack.c.l.bf16 %v421_v31  ;;  %v242_v38 = vrot.slane %v241_v19, 4  ;;  %v387_v3 = vshll.u32 %v67_v55, 16 }
  0x42   :  { %464 = vrot.lane.b32.xlu0 %v1192_v8, %s823_s11  ;;  %v224_v58 = vmax.bf16 %v212_v5, %v1148_v21  ;;  %v255_v9 = vmax.bf16 %v223_v16, %v188_v7  ;;  %v399_v40 = vor.u32 %v398_v15, %v395_v10  ;;  %v56_v21 = vld [vmem:[%s1483_s1 + $0x34] sm:$0x7]  ;;  %s824_s1 = smov 127  }
  0x43   :  { %v1199_v34 = vunpack.c.l.bf16 %v422_v59  ;;  %v1204_v14 = vmul.f32 %v1197_v52, %v1197_v52  ;;  %v389_v29 = vrot.slane %v387_v3, 5 }
  0x44   :  { %v256_v39 = vmax.bf16 %v242_v38, %v224_v58  ;;  %v267_v42 = vmax.bf16 %v255_v9, %v54_v45  ;;  %v400_v32 = vrot.slane %v399_v40, 4 }
  0x45   :  { %v1211_v35 = vmul.f32 %v1199_v34, %v1199_v34  ;;  %v390_v43 = vor.u32 %v389_v29, %v386_v28 }
  0x46   :  { %468 = vrot.lane.b32.xlu0 %v1204_v14, %s823_s11  ;;  %v268_v44 = vmax.bf16 %v256_v39, %v55_v13  ;;  %v279_v46 = vmax.bf16 %v267_v42, %v55_v13  ;;  %v449_v39 = vlaneseq }
  0x47   :  { %470 = vrot.lane.b32.xlu1 %v1211_v35, %s823_s11  ;;  %v391_v47 = vrot.slane %v390_v43, 4 }
  0x48   :  { %v280_v48 = vmax.bf16 %v268_v44, %v56_v21  ;;  %v291_v50 = vmax.bf16 %v279_v46, %v67_v55  ;;  %v1283_v21 = vand.u32 127, %v449_v39 }
  0x4a   :  { %v292_v51 = vmax.bf16 %v280_v48, %v1161_v41  ;;  %v423_v45 = vmax.bf16 %v391_v47, %v291_v50  ;;  %vm451_vm0 = vcmp.ge.s32.totalorder %v1283_v21, 1  ;;  %vm500_vm1 = vcmp.le.s32.totalorder %v1283_v21, 126 }
  0x4b   :  { %vm549_vm2 = vcmp.ge.s32.totalorder %v1283_v21, 2  ;;  %vm598_vm3 = vcmp.le.s32.totalorder %v1283_v21, 125 }
  0x4c   :  { %v424_v56 = vmax.bf16 %v400_v32, %v292_v51  ;;  %v1221_v37 = vunpack.c.l.bf16 %v423_v45 }
  0x4e   :  { %1487 = vst [vmem:[#allocation2_spill] sm:$0xff] %v1221_v37  ;;  %v1223_v53 = vunpack.c.l.bf16 %v424_v56  ;;  %v1227_v57 = vmul.f32 %v1221_v37, %v1221_v37 }
  0x50   :  { %1488 = vst [vmem:[#allocation3_spill] sm:$0xff] %v1223_v53  ;;  %v1231_v60 = vmul.f32 %v1223_v53, %v1223_v53  ;;  %472 = vrot.lane.b32.xlu0 %v1227_v57, %s823_s11 }
  0x52   :  { %474 = vrot.lane.b32.xlu1 %v1231_v60, %s823_s11  ;;  %s825_s11 = smov 2  }
  0x54   :  { %501 = vrot.lane.b32.xlu0 %v1009_v11, %s824_s1 }
  0x56   :  { %503 = vrot.lane.b32.xlu1 %v1041_v27, %s824_s1 }
  0x58   :  { %505 = vrot.lane.b32.xlu0 %v987_v20, %s824_s1 }
  0x5a   :  { %507 = vrot.lane.b32.xlu1 %v1014_v17, %s824_s1 }
  0x5c   :  { %509 = vrot.lane.b32.xlu0 %v1112_v0, %s824_s1 }
  0x5e   :  { %511 = vrot.lane.b32.xlu1 %v1088_v23, %s824_s1 }
  0x60   :  { %513 = vrot.lane.b32.xlu0 %v1192_v8, %s824_s1 }
  0x62   :  { %515 = vrot.lane.b32.xlu1 %v1167_v26, %s824_s1 }
  0x64   :  { %517 = vrot.lane.b32.xlu0 %v1204_v14, %s824_s1 }
  0x66   :  { %519 = vrot.lane.b32.xlu1 %v1211_v35, %s824_s1 }
  0x68   :  { %521 = vrot.lane.b32.xlu0 %v1227_v57, %s824_s1 }
  0x6a   :  { %523 = vrot.lane.b32.xlu1 %v1231_v60, %s824_s1 }
  0x6c   :  { %550 = vrot.lane.b32.xlu0 %v1009_v11, %s825_s11 }
  0x6e   :  { %552 = vrot.lane.b32.xlu1 %v1041_v27, %s825_s11 }
  0x70   :  { %554 = vrot.lane.b32.xlu0 %v987_v20, %s825_s11 }
  0x72   :  { %556 = vrot.lane.b32.xlu1 %v1014_v17, %s825_s11 }
  0x74   :  { %558 = vrot.lane.b32.xlu0 %v1112_v0, %s825_s11 }
  0x76   :  { %560 = vrot.lane.b32.xlu1 %v1088_v23, %s825_s11 }
  0x78   :  { %562 = vrot.lane.b32.xlu0 %v1192_v8, %s825_s11 }
  0x7a   :  { %564 = vrot.lane.b32.xlu1 %v1167_v26, %s825_s11 }
  0x7c   :  { %566 = vrot.lane.b32.xlu0 %v1204_v14, %s825_s11 }
  0x7e   :  { %568 = vrot.lane.b32.xlu1 %v1211_v35, %s825_s11 }
  0x80   :  { %570 = vrot.lane.b32.xlu0 %v1227_v57, %s825_s11 }
  0x82   :  { %572 = vrot.lane.b32.xlu1 %v1231_v60, %s825_s11 }
  0x84   :  { %599 = vrot.lane.b32.xlu0 %v1009_v11, %s826_s15 }
  0x86   :  { %601 = vrot.lane.b32.xlu1 %v1041_v27, %s826_s15 }
  0x88   :  { %603 = vrot.lane.b32.xlu0 %v987_v20, %s826_s15 }
  0x8a   :  { %605 = vrot.lane.b32.xlu1 %v1014_v17, %s826_s15 }
  0x8c   :  { %607 = vrot.lane.b32.xlu0 %v1112_v0, %s826_s15 }
  0x8e   :  { %609 = vrot.lane.b32.xlu1 %v1088_v23, %s826_s15  ;;  %v457_v61 = vpop.permute.xlu1 %456 }
  0x8f   :  { %v478_v47 = vsel %vm451_vm0, %v457_v61, 0.0 }
  0x90   :  { %611 = vrot.lane.b32.xlu0 %v1192_v8, %s826_s15  ;;  %v490_v61 = vadd.f32 %v478_v47, %v987_v20 }
  0x92   :  { %613 = vrot.lane.b32.xlu1 %v1167_v26, %s826_s15  ;;  %v453_v41 = vpop.permute.xlu0 %452 }
  0x93   :  { %v459_v36 = vpop.permute.xlu1 %458  ;;  %v476_v48 = vsel %vm451_vm0, %v453_v41, 0.0 }
  0x94   :  { %615 = vrot.lane.b32.xlu0 %v1204_v14, %s826_s15  ;;  %v479_v50 = vsel %vm451_vm0, %v459_v36, 0.0  ;;  %v488_v41 = vadd.f32 %v476_v48, %v1009_v11 }
  0x96   :  { %617 = vrot.lane.b32.xlu1 %v1211_v35, %s826_s15  ;;  %v455_v12 = vpop.permute.xlu0 %454 }
  0x97   :  { %v477_v51 = vsel %vm451_vm0, %v455_v12, 0.0  ;;  %v491_v12 = vadd.f32 %v479_v50, %v1014_v17 }
  0x98   :  { %619 = vrot.lane.b32.xlu0 %v1227_v57, %s826_s15  ;;  %v489_v20 = vadd.f32 %v477_v51, %v1041_v27 }
  0x9a   :  { %621 = vrot.lane.b32.xlu1 %v1231_v60, %s826_s15 }
  0xa0   :  { %v463_v62 = vpop.permute.xlu1 %462 }
  0xa1   :  { %v481_v45 = vsel %vm451_vm0, %v463_v62, 0.0 }
  0xa2   :  { %v461_v55 = vpop.permute.xlu0 %460  ;;  %v493_v11 = vadd.f32 %v481_v45, %v1088_v23 }
  0xa3   :  { %v480_v39 = vsel %vm451_vm0, %v461_v55, 0.0 }
  0xad   :  { %v467_v30 = vpop.permute.xlu1 %466 }
  0xae   :  { %v483_v36 = vsel %vm451_vm0, %v467_v30, 0.0  ;;  %v492_v30 = vadd.f32 %v480_v39, %v1112_v0 }
  0xaf   :  { %v495_v23 = vadd.f32 %v483_v36, %v1167_v26 }
  0xb4   :  { %v465_v2 = vpop.permute.xlu0 %464 }
  0xb5   :  { %v482_v62 = vsel %vm451_vm0, %v465_v2, 0.0 }
  0xb8   :  { %v469_v4 = vpop.permute.xlu0 %468 }
  0xb9   :  { %v471_v7 = vpop.permute.xlu1 %470  ;;  %v484_v53 = vsel %vm451_vm0, %v469_v4, 0.0 }
  0xba   :  { %v485_v55 = vsel %vm451_vm0, %v471_v7, 0.0  ;;  %v494_v7 = vadd.f32 %v482_v62, %v1192_v8  ;;  %v496_v48 = vadd.f32 %v484_v53, %v1204_v14 }
  0xc2   :  { %v473_v10 = vpop.permute.xlu0 %472 }
  0xc3   :  { %v486_v4 = vsel %vm451_vm0, %v473_v10, 0.0 }
  0xc4   :  { %v475_v22 = vpop.permute.xlu1 %474  ;;  %v1353_v8 = vadd.f32 %v486_v4, %v1227_v57 }
  0xc5   :  { %v487_v2 = vsel %vm451_vm0, %v475_v22, 0.0 }
  0xc6   :  { %v502_v31 = vpop.permute.xlu0 %501  ;;  %v1350_v26 = vadd.f32 %v487_v2, %v1231_v60 }
  0xc7   :  { %v525_v17 = vsel %vm500_vm1, %v502_v31, 0.0  ;;  %v497_v31 = vadd.f32 %v485_v55, %v1211_v35 }
  0xc8   :  { %v504_v19 = vpop.permute.xlu1 %503  ;;  %v537_v22 = vadd.f32 %v525_v17, %v488_v41 }
  0xc9   :  { %v526_v47 = vsel %vm500_vm1, %v504_v19, 0.0 }
  0xca   :  { %v506_v24 = vpop.permute.xlu0 %505  ;;  %v538_v14 = vadd.f32 %v526_v47, %v489_v20 }
  0xcb   :  { %v527_v19 = vsel %vm500_vm1, %v506_v24, 0.0 }
  0xcc   :  { %v508_v59 = vpop.permute.xlu1 %507  ;;  %v539_v45 = vadd.f32 %v527_v19, %v490_v61 }
  0xcd   :  { %v528_v10 = vsel %vm500_vm1, %v508_v59, 0.0 }
  0xce   :  { %v510_v5 = vpop.permute.xlu0 %509  ;;  %v540_v60 = vadd.f32 %v528_v10, %v491_v12 }
  0xcf   :  { %v529_v59 = vsel %vm500_vm1, %v510_v5, 0.0 }
  0xd0   :  { %v512_v15 = vpop.permute.xlu1 %511  ;;  %v541_v62 = vadd.f32 %v529_v59, %v492_v30 }
  0xd1   :  { %v530_v35 = vsel %vm500_vm1, %v512_v15, 0.0 }
  0xd2   :  { %v514_v16 = vpop.permute.xlu0 %513  ;;  %v542_v36 = vadd.f32 %v530_v35, %v493_v11 }
  0xd3   :  { %v531_v24 = vsel %vm500_vm1, %v514_v16, 0.0 }
  0xd4   :  { %v1273_v38 = vpop.permute.xlu1 %515  ;;  %v543_v12 = vadd.f32 %v531_v24, %v494_v7 }
  0xd5   :  { %v532_v15 = vsel %vm500_vm1, %v1273_v38, 0.0 }
  0xd6   :  { %v1275_v28 = vpop.permute.xlu0 %517  ;;  %v544_v2 = vadd.f32 %v532_v15, %v495_v23 }
  0xd8   :  { %v1277_v3 = vpop.permute.xlu1 %519 }
  0xd9   :  { %v534_v23 = vsel %vm500_vm1, %v1277_v3, 0.0 }
  0xda   :  { %v1279_v58 = vpop.permute.xlu0 %521 }
  0xdc   :  { %v1281_v9 = vpop.permute.xlu1 %523 }
  0xde   :  { %v551_v13 = vpop.permute.xlu0 %550 }
  0xdf   :  { %v574_v0 = vsel %vm549_vm2, %v551_v13, 0.0 }
  0xe0   :  { %v553_v29 = vpop.permute.xlu1 %552  ;;  %v586_v13 = vadd.f32 %v574_v0, %v537_v22 }
  0xe1   :  { %v575_v53 = vsel %vm549_vm2, %v553_v29, 0.0 }
  0xe2   :  { %v555_v40 = vpop.permute.xlu0 %554  ;;  %v587_v29 = vadd.f32 %v575_v53, %v538_v14 }
  0xe3   :  { %v576_v57 = vsel %vm549_vm2, %v555_v40, 0.0 }
  0xe4   :  { %v557_v42 = vpop.permute.xlu1 %556  ;;  %v588_v40 = vadd.f32 %v576_v57, %v539_v45  ;;  %v546_v45 = vadd.f32 %v534_v23, %v497_v31 }
  0xe5   :  { %v577_v5 = vsel %vm549_vm2, %v557_v42, 0.0  ;;  %v533_v42 = vsel %vm500_vm1, %v1275_v28, 0.0 }
  0xe6   :  { %v1285_v43 = vpop.permute.xlu0 %558  ;;  %v589_v4 = vadd.f32 %v577_v5, %v540_v60  ;;  %v545_v35 = vadd.f32 %v533_v42, %v496_v48 }
  0xe7   :  { %v578_v20 = vsel %vm549_vm2, %v1285_v43, 0.0 }
  0xe8   :  { %v1287_v44 = vpop.permute.xlu1 %560  ;;  %v590_v22 = vadd.f32 %v578_v20, %v541_v62 }
  0xe9   :  { %v579_v30 = vsel %vm549_vm2, %v1287_v44, 0.0 }
  0xea   :  { %v1290_v46 = vpop.permute.xlu0 %562  ;;  %v591_v59 = vadd.f32 %v579_v30, %v542_v36 }
  0xeb   :  { %v580_v28 = vsel %vm549_vm2, %v1290_v46, 0.0 }
  0xec   :  { %v1296_v32 = vpop.permute.xlu1 %564  ;;  %v592_v57 = vadd.f32 %v580_v28, %v543_v12 }
  0xed   :  { %v581_v24 = vsel %vm549_vm2, %v1296_v32, 0.0 }
  0xee   :  { %v1306_v56 = vpop.permute.xlu0 %566 }
  0xf0   :  { %v1320_v37 = vpop.permute.xlu1 %568 }
  0xf1   :  { %v583_v31 = vsel %vm549_vm2, %v1320_v37, 0.0 }
  0xf2   :  { %v1335_v27 = vpop.permute.xlu0 %570 }
  0xf4   :  { %v1347_v50 = vpop.permute.xlu1 %572 }
  0xf6   :  { %v600_v51 = vpop.permute.xlu0 %599 }
  0xf7   :  { %v623_v41 = vsel %vm598_vm3, %v600_v51, 0.0 }
  0xf8   :  { %v602_v39 = vpop.permute.xlu1 %601  ;;  %v635_v16 = vadd.f32 %v623_v41, %v586_v13  ;;  %v582_v41 = vsel %vm549_vm2, %v1306_v56, 0.0 }
  0xf9   :  { %v624_v61 = vsel %vm598_vm3, %v602_v39, 0.0  ;;  %v535_v39 = vsel %vm500_vm1, %v1279_v58, 0.0  ;;  %v594_v20 = vadd.f32 %v582_v41, %v545_v35  ;;  %v584_v58 = vsel %vm549_vm2, %v1335_v27, 0.0 }
  0xfa   :  { %v636_v55 = vadd.f32 %v624_v61, %v587_v29  ;;  %v647_v17 = vmul.f32 2e-05, %v635_v16  ;;  %v604_v38 = vpop.permute.xlu0 %603  ;;  %v593_v16 = vadd.f32 %v581_v24, %v544_v2  ;;  %v547_v42 = vadd.f32 %v535_v39, %v1353_v8 }
  0xfb   :  { %v625_v11 = vsel %vm598_vm3, %v604_v38, 0.0 }
  0xfc   :  { %v648_v47 = vmul.f32 2e-05, %v636_v55  ;;  %v659_v7 = vadd.f32 1.0, %v647_v17  ;;  %v606_v0 = vpop.permute.xlu1 %605  ;;  %v637_v43 = vadd.f32 %v625_v11, %v588_v40  ;;  %v536_v40 = vsel %vm500_vm1, %v1281_v9, 0.0 }
  0xfd   :  { %v626_v10 = vsel %vm598_vm3, %v606_v0, 0.0  ;;  %v585_v9 = vsel %vm549_vm2, %v1347_v50, 0.0  ;;  %v596_v23 = vadd.f32 %v584_v58, %v547_v42 }
  0xfe   :  { %v660_v19 = vadd.f32 1.0, %v648_v47  ;;  %775 = vlog2.f32 %v659_v7  ;;  %v638_v14 = vadd.f32 %v626_v10, %v589_v4  ;;  %v649_v44 = vmul.f32 2e-05, %v637_v43  ;;  %v608_v53 = vpop.permute.xlu0 %607 }
  0xff   :  { %v627_v3 = vsel %vm598_vm3, %v608_v53, 0.0  ;;  %v595_v4 = vadd.f32 %v583_v31, %v546_v45  ;;  %v548_v43 = vadd.f32 %v536_v40, %v1350_v26 }
 0x100   :  { %777 = vlog2.f32 %v660_v19  ;;  %v650_v13 = vmul.f32 2e-05, %v638_v14  ;;  %v661_v46 = vadd.f32 1.0, %v649_v44  ;;  %v610_v51 = vpop.permute.xlu1 %609  ;;  %v639_v60 = vadd.f32 %v627_v3, %v590_v22 }
 0x101   :  { %v628_v48 = vsel %vm598_vm3, %v610_v51, 0.0  ;;  %v597_v44 = vadd.f32 %v585_v9, %v548_v43 }
 0x102   :  { %v662_v15 = vadd.f32 1.0, %v650_v13  ;;  %779 = vlog2.f32 %v661_v46  ;;  %v640_v32 = vadd.f32 %v628_v48, %v591_v59  ;;  %v651_v29 = vmul.f32 2e-05, %v639_v60  ;;  %v612_v5 = vpop.permute.xlu0 %611 }
 0x103   :  { %v629_v56 = vsel %vm598_vm3, %v612_v5, 0.0 }
 0x104   :  { %781 = vlog2.f32 %v662_v15  ;;  %v652_v36 = vmul.f32 2e-05, %v640_v32  ;;  %v663_v62 = vadd.f32 1.0, %v651_v29  ;;  %v614_v12 = vpop.permute.xlu1 %613  ;;  %v641_v61 = vadd.f32 %v629_v56, %v592_v57 }
 0x105   :  { %v630_v37 = vsel %vm598_vm3, %v614_v12, 0.0 }
 0x106   :  { %v664_v55 = vadd.f32 1.0, %v652_v36  ;;  %783 = vlog2.f32 %v663_v62  ;;  %v642_v17 = vadd.f32 %v630_v37, %v593_v16  ;;  %v653_v38 = vmul.f32 2e-05, %v641_v61  ;;  %v616_v2 = vpop.permute.xlu0 %615 }
 0x107   :  { %v631_v11 = vsel %vm598_vm3, %v616_v2, 0.0 }
 0x108   :  { %v776_v30 = vpop.eup %775  ;;  %785 = vlog2.f32 %v664_v55  ;;  %v654_v27 = vmul.f32 2e-05, %v642_v17  ;;  %v665_v47 = vadd.f32 1.0, %v653_v38  ;;  %v618_v7 = vpop.permute.xlu1 %617  ;;  %v643_v0 = vadd.f32 %v631_v11, %v594_v20 }
 0x109   :  { %v672_v22 = vmul.f32 0.6931472, %v776_v30  ;;  %v632_v8 = vsel %vm598_vm3, %v618_v7, 0.0 }
 0x10a   :  { %v778_v28 = vpop.eup %777  ;;  %v666_v10 = vadd.f32 1.0, %v654_v27  ;;  %787 = vlog2.f32 %v665_v47  ;;  %v644_v50 = vadd.f32 %v632_v8, %v595_v4  ;;  %v655_v19 = vmul.f32 2e-05, %v643_v0  ;;  %v620_v14 = vpop.permute.xlu0 %619 }
 0x10b   :  { %v674_v53 = vmul.f32 0.6931472, %v778_v28  ;;  %v695_v35 = vmul.f32 -0.75, %v672_v22  ;;  %v633_v59 = vsel %vm598_vm3, %v620_v14, 0.0 }
 0x10c   :  { %v780_v24 = vpop.eup %779  ;;  %789 = vlog2.f32 %v666_v10  ;;  %v656_v26 = vmul.f32 2e-05, %v644_v50  ;;  %v667_v3 = vadd.f32 1.0, %v655_v19  ;;  %v622_v13 = vpop.permute.xlu1 %621  ;;  %v645_v46 = vadd.f32 %v633_v59, %v596_v23 }
 0x10d   :  { %v696_v51 = vmul.f32 -0.75, %v674_v53  ;;  %v707_v60 = vmul.f32 1.442695, %v695_v35  ;;  %v676_v45 = vmul.f32 0.6931472, %v780_v24  ;;  %v634_v57 = vsel %vm598_vm3, %v622_v13, 0.0 }
 0x10e   :  { %v782_v41 = vpop.eup %781  ;;  %v668_v48 = vadd.f32 1.0, %v656_v26  ;;  %791 = vlog2.f32 %v667_v3  ;;  %v646_v15 = vadd.f32 %v634_v57, %v597_v44  ;;  %v657_v32 = vmul.f32 2e-05, %v645_v46 }
 0x10f   :  { %v709_v29 = vmul.f32 1.442695, %v696_v51  ;;  %793 = vpow2.f32 %v707_v60  ;;  %v678_v5 = vmul.f32 0.6931472, %v782_v41  ;;  %v697_v39 = vmul.f32 -0.75, %v676_v45 }
 0x110   :  { %v784_v16 = vpop.eup %783  ;;  %795 = vlog2.f32 %v668_v48  ;;  %v658_v31 = vmul.f32 2e-05, %v646_v15  ;;  %v669_v56 = vadd.f32 1.0, %v657_v32 }
 0x111   :  { %797 = vpow2.f32 %v709_v29  ;;  %v698_v36 = vmul.f32 -0.75, %v678_v5  ;;  %v711_v62 = vmul.f32 1.442695, %v697_v39  ;;  %v680_v12 = vmul.f32 0.6931472, %v784_v16 }
 0x112   :  { %v786_v61 = vpop.eup %785  ;;  %v670_v21 = vadd.f32 1.0, %v658_v31  ;;  %799 = vlog2.f32 %v669_v56 }
 0x113   :  { %v713_v40 = vmul.f32 1.442695, %v698_v36  ;;  %801 = vpow2.f32 %v711_v62  ;;  %v682_v20 = vmul.f32 0.6931472, %v786_v61  ;;  %v699_v58 = vmul.f32 -0.75, %v680_v12 }
 0x114   :  { %v788_v37 = vpop.eup %787  ;;  %803 = vlog2.f32 %v670_v21 }
 0x115   :  { %805 = vpow2.f32 %v713_v40  ;;  %v700_v55 = vmul.f32 -0.75, %v682_v20  ;;  %v715_v17 = vmul.f32 1.442695, %v699_v58  ;;  %v684_v38 = vmul.f32 0.6931472, %v788_v37 }
 0x116   :  { %v790_v2 = vpop.eup %789 }
 0x117   :  { %v717_v42 = vmul.f32 1.442695, %v700_v55  ;;  %807 = vpow2.f32 %v715_v17  ;;  %v686_v4 = vmul.f32 0.6931472, %v790_v2  ;;  %v701_v9 = vmul.f32 -0.75, %v684_v38 }
 0x118   :  { %v792_v11 = vpop.eup %791 }
 0x119   :  { %v794_v30 = vpop.eup %793  ;;  %809 = vpow2.f32 %v717_v42  ;;  %v702_v27 = vmul.f32 -0.75, %v686_v4  ;;  %v719_v47 = vmul.f32 1.442695, %v701_v9  ;;  %v688_v7 = vmul.f32 0.6931472, %v792_v11 }
 0x11a   :  { %v796_v0 = vpop.eup %795  ;;  %v731_v43 = vmul.f32 %v794_v30, %v993_v1 }
 0x11b   :  { %v798_v23 = vpop.eup %797  ;;  %v721_v22 = vmul.f32 1.442695, %v702_v27  ;;  %811 = vpow2.f32 %v719_v47  ;;  %v690_v8 = vmul.f32 0.6931472, %v796_v0  ;;  %v703_v28 = vmul.f32 -0.75, %v688_v7 }
 0x11c   :  { %v800_v10 = vpop.eup %799  ;;  %v732_v50 = vmul.f32 %v798_v23, %v1016_v18  ;;  %v743_v19 = vpack.c.bf16 %v731_v43, %v731_v43 }
 0x11d   :  { %v802_v14 = vpop.eup %801  ;;  %813 = vpow2.f32 %v721_v22  ;;  %v704_v44 = vmul.f32 -0.75, %v690_v8  ;;  %v723_v53 = vmul.f32 1.442695, %v703_v28  ;;  %v692_v35 = vmul.f32 0.6931472, %v800_v10 }
 0x11e   :  { %v804_v59 = vpop.eup %803  ;;  %v744_v24 = vpack.c.bf16 %v732_v50, %v732_v50  ;;  %755 = vst [vmem:[%s1484_s4] sm:$0x7] %v743_v19  ;;  %v733_v1 = vmul.f32 %v802_v14, %v972_v49 }
 0x11f   :  { %v806_v26 = vpop.eup %805  ;;  %v725_v3 = vmul.f32 1.442695, %v704_v44  ;;  %815 = vpow2.f32 %v723_v53  ;;  %v694_v13 = vmul.f32 0.6931472, %v804_v59  ;;  %v705_v46 = vmul.f32 -0.75, %v692_v35 }
 0x120   :  { %756 = vst [vmem:[%s1484_s4 + $0x4] sm:$0x7] %v744_v24  ;;  %v734_v18 = vmul.f32 %v806_v26, %v997_v6  ;;  %v745_v51 = vpack.c.bf16 %v733_v1, %v733_v1 }
 0x121   :  { %v808_v60 = vpop.eup %807  ;;  %817 = vpow2.f32 %v725_v3  ;;  %v706_v45 = vmul.f32 -0.75, %v694_v13  ;;  %v727_v57 = vmul.f32 1.442695, %v705_v46 }
 0x122   :  { %v746_v41 = vpack.c.bf16 %v734_v18, %v734_v18  ;;  %757 = vst [vmem:[%s1484_s4 + $0x8] sm:$0x7] %v745_v51  ;;  %v735_v49 = vmul.f32 %v808_v60, %v1090_v25 }
 0x123   :  { %v810_v48 = vpop.eup %809  ;;  %v729_v15 = vmul.f32 1.442695, %v706_v45  ;;  %819 = vpow2.f32 %v727_v57 }
 0x124   :  { %758 = vst [vmem:[%s1484_s4 + $0xc] sm:$0x7] %v746_v41  ;;  %v736_v6 = vmul.f32 %v810_v48, %v1076_v54  ;;  %v747_v32 = vpack.c.bf16 %v735_v49, %v735_v49 }
 0x125   :  { %v812_v29 = vpop.eup %811  ;;  %821 = vpow2.f32 %v729_v15 }
 0x126   :  { %v748_v5 = vpack.c.bf16 %v736_v6, %v736_v6  ;;  %759 = vst [vmem:[%s1484_s4 + $0x10] sm:$0x7] %v747_v32  ;;  %v737_v39 = vmul.f32 %v812_v29, %v1186_v63 }
 0x127   :  { %v814_v25 = vpop.eup %813 }
 0x128   :  { %760 = vst [vmem:[%s1484_s4 + $0x14] sm:$0x7] %v748_v5  ;;  %v738_v16 = vmul.f32 %v814_v25, %v1152_v33  ;;  %v749_v31 = vpack.c.bf16 %v737_v39, %v737_v39  ;;  %v1489_v33 = vld [vmem:[#allocation2_spill] sm:$0xff] }
 0x129   :  { %v816_v56 = vpop.eup %815 }
 0x12a   :  { %v750_v54 = vpack.c.bf16 %v738_v16, %v738_v16  ;;  %761 = vst [vmem:[%s1484_s4 + $0x18] sm:$0x7] %v749_v31  ;;  %v739_v36 = vmul.f32 %v816_v56, %v1197_v52  ;;  %v1490_v52 = vld [vmem:[#allocation3_spill] sm:$0xff] }
 0x12b   :  { %v818_v62 = vpop.eup %817 }
 0x12c   :  { %762 = vst [vmem:[%s1484_s4 + $0x1c] sm:$0x7] %v750_v54  ;;  %v740_v63 = vmul.f32 %v818_v62, %v1199_v34  ;;  %v751_v12 = vpack.c.bf16 %v739_v36, %v739_v36 }
 0x12d   :  { %v820_v61 = vpop.eup %819 }
 0x12e   :  { %v752_v21 = vpack.c.bf16 %v740_v63, %v740_v63  ;;  %763 = vst [vmem:[%s1484_s4 + $0x20] sm:$0x7] %v751_v12  ;;  %v741_v40 = vmul.f32 %v820_v61, %v1489_v33 }
 0x12f   :  { %v822_v20 = vpop.eup %821 }
 0x130   :  { %764 = vst [vmem:[%s1484_s4 + $0x24] sm:$0x7] %v752_v21  ;;  %v742_v58 = vmul.f32 %v822_v20, %v1490_v52  ;;  %v753_v37 = vpack.c.bf16 %v741_v40, %v741_v40 }
 0x132   :  { %v754_v55 = vpack.c.bf16 %v742_v58, %v742_v58  ;;  %765 = vst [vmem:[%s1484_s4 + $0x28] sm:$0x7] %v753_v37 }
 0x134   :  { %766 = vst [vmem:[%s1484_s4 + $0x2c] sm:$0x7] %v754_v55 }

// kernel: itracker_image_forward.7
= control target key start
LH: loop header
LB: loop body
LE: loop exit
PB: predicated region body
PF: predicated region fallthrough
CT: control target
= control target key end

     0   :  { %s6812_s12 = smov 0   ;;  %s6814_s13 = smov 0   ;;  %s8444_s0 = inlined_call_operand.vmem [shape: bf16[72,3200], index: 0, kind: input, shape index: {}]   ;;  %s8445_s1 = inlined_call_operand.vmem [shape: bf16[3200,256], index: 1, kind: input, shape index: {}]   ;;  %s8446_s2 = inlined_call_operand.vmem [shape: f32[1,256], index: 2, kind: input, shape index: {}]   ;;  %s8447_s3 = inlined_call_operand.vmem [shape: bf16[72,256], index: 3, kind: output, shape index: {}]  }
   0x1   :  { %s6816_s14 = smov 0   ;;  %s6818_s15 = smov 0  }
   0x2   :  { %s6820_s16 = smov 0  }
   0x3 LB: > { %s22_s17 = sadd.s32 1, %s6784_s15  ;;  %s5338_s18 = sadd.s32 4294967295, %s6788_s16   ;;  %s6788_s16 = sphi %s6820_s16, %s13_s16   ;;  %s6784_s15 = sphi %s6818_s15, %s8452_s15   ;;  %s6780_s14 = sphi %s6816_s14, %s8451_s14   ;;  %s6776_s13 = sphi %s6814_s13, %s8450_s13   ;;  %s6772_s12 = sphi %s6812_s12, %s8449_s12  }
   0x4   : > { %p23_p0 = scmp.ge.s32.totalorder %s22_s17, 2  ;;  %p65_p1 = scmp.ne.s32.totalorder %s6776_s13, %s6772_s12 }
   0x5   : > { %p66_p2 = scmp.eq.s32.totalorder %s6788_s16, 0  ;;  %p123_p4 = scmp.eq.s32.totalorder %s5338_s18, 1 }
   0x6   : > { %s8454_s17 = smov (%p23_p0, %s22_s17), 0  ;;  %s58_s20 = sadd.s32 1, %s6776_s13 }
   0x7   : > { %p67_p3 = por %p66_p2, %p65_p1  ;;  %s55_s19 = ssub.s32 %s6784_s15, %s8454_s17 }
   0x8   : > { %p56_p5 = scmp.eq.s32.totalorder %s55_s19, 0  ;;  %p6847_p6 = por %p123_p4, %p65_p1 }
   0x9   : > { %p5342_p7 = scmp.ge.s32.totalorder %s6788_s16, 2 }
   0xa   : > { %s6852_s22 = scalar_select %p56_p5, %s6776_s13, %s58_s20  }
   0xb   : > { %155 = sbr.rel (%p5342_p7) target bundleno = 289 (0x121), region = 20 }
  0x12   : > { %158 = sbr.rel (!%p67_p3) target bundleno = 289 (0x121), region = 24  ;;  %s160_s23 = sand.u32 (%p67_p3), 1, %s6776_s13  }
  0x13   : > { %s5343_s24 = sshll.u32 (%p67_p3), %s6784_s15, 2  ;;  %s6332_s25 = smul.u32 (%p67_p3), 1600, %s160_s23 }
  0x14   : > { %s6860_s28 = scalar_lea.vmem (%p67_p3), %s8445_s1, %s5343_s24 }
  0x15   : > { %v180_v0 = vld [vmem:[%s6860_s28] sm:$0xf] (%p67_p3)  ;;  %v182_v1 = vld [vmem:[%s6860_s28 + $0x8] sm:$0xf] (%p67_p3)  ;;  %v184_v2 = vld [vmem:[%s6860_s28 + $0x10] sm:$0xf] (%p67_p3) }
  0x16   : > { %v186_v3 = vld [vmem:[%s6860_s28 + $0x18] sm:$0xf] (%p67_p3)  ;;  %v188_v4 = vld [vmem:[%s6860_s28 + $0x20] sm:$0xf] (%p67_p3)  ;;  %s6867_s29 = scalar_lea.vmem (%p67_p3), [#allocation2], %s6332_s25 }
  0x17   : > { %181 = vst [vmem:[%s6867_s29] sm:$0xf] (%p67_p3), %v180_v0  ;;  %183 = vst [vmem:[%s6867_s29 + $0x4] sm:$0xf] (%p67_p3), %v182_v1  ;;  %v190_v5 = vld [vmem:[%s6860_s28 + $0x28] sm:$0xf] (%p67_p3) }
  0x18   : > { %185 = vst [vmem:[%s6867_s29 + $0x8] sm:$0xf] (%p67_p3), %v184_v2  ;;  %187 = vst [vmem:[%s6867_s29 + $0xc] sm:$0xf] (%p67_p3), %v186_v3  ;;  %v192_v6 = vld [vmem:[%s6860_s28 + $0x30] sm:$0xf] (%p67_p3) }
  0x19   : > { %189 = vst [vmem:[%s6867_s29 + $0x10] sm:$0xf] %v188_v4  ;;  %v194_v7 = vld [vmem:[%s6860_s28 + $0x38] sm:$0xf]  ;;  %191 = vst [vmem:[%s6867_s29 + $0x14] sm:$0xf] %v190_v5 }
  0x1a   : > { %193 = vst [vmem:[%s6867_s29 + $0x18] sm:$0xf] %v192_v6  ;;  %195 = vst [vmem:[%s6867_s29 + $0x1c] sm:$0xf] %v194_v7  ;;  %v196_v8 = vld [vmem:[%s6860_s28 + $0x40] sm:$0xf] }
  0x1b   : > { %v198_v9 = vld [vmem:[%s6860_s28 + $0x48] sm:$0xf]  ;;  %v200_v10 = vld [vmem:[%s6860_s28 + $0x50] sm:$0xf]  ;;  %197 = vst [vmem:[%s6867_s29 + $0x20] sm:$0xf] %v196_v8 }
  0x1c   : > { %199 = vst [vmem:[%s6867_s29 + $0x24] sm:$0xf] %v198_v9  ;;  %201 = vst [vmem:[%s6867_s29 + $0x28] sm:$0xf] %v200_v10  ;;  %v202_v11 = vld [vmem:[%s6860_s28 + $0x58] sm:$0xf] }
  0x1d   : > { %v204_v12 = vld [vmem:[%s6860_s28 + $0x60] sm:$0xf]  ;;  %v206_v13 = vld [vmem:[%s6860_s28 + $0x68] sm:$0xf]  ;;  %203 = vst [vmem:[%s6867_s29 + $0x2c] sm:$0xf] %v202_v11 }
  0x1e   : > { %205 = vst [vmem:[%s6867_s29 + $0x30] sm:$0xf] %v204_v12  ;;  %207 = vst [vmem:[%s6867_s29 + $0x34] sm:$0xf] %v206_v13  ;;  %v208_v14 = vld [vmem:[%s6860_s28 + $0x70] sm:$0xf] }
  0x1f   : > { %v210_v15 = vld [vmem:[%s6860_s28 + $0x78] sm:$0xf]  ;;  %v212_v16 = vld [vmem:[%s6860_s28 + $0x80] sm:$0xf]  ;;  %209 = vst [vmem:[%s6867_s29 + $0x38] sm:$0xf] %v208_v14 }
  0x20   : > { %211 = vst [vmem:[%s6867_s29 + $0x3c] sm:$0xf] %v210_v15  ;;  %213 = vst [vmem:[%s6867_s29 + $0x40] sm:$0xf] %v212_v16  ;;  %v214_v17 = vld [vmem:[%s6860_s28 + $0x88] sm:$0xf] }
  0x21   : > { %v216_v18 = vld [vmem:[%s6860_s28 + $0x90] sm:$0xf]  ;;  %v218_v19 = vld [vmem:[%s6860_s28 + $0x98] sm:$0xf]  ;;  %215 = vst [vmem:[%s6867_s29 + $0x44] sm:$0xf] %v214_v17 }
  0x22   : > { %217 = vst [vmem:[%s6867_s29 + $0x48] sm:$0xf] %v216_v18  ;;  %219 = vst [vmem:[%s6867_s29 + $0x4c] sm:$0xf] %v218_v19  ;;  %v220_v20 = vld [vmem:[%s6860_s28 + $0xa0] sm:$0xf] }
  0x23   : > { %v222_v21 = vld [vmem:[%s6860_s28 + $0xa8] sm:$0xf]  ;;  %v224_v22 = vld [vmem:[%s6860_s28 + $0xb0] sm:$0xf]  ;;  %221 = vst [vmem:[%s6867_s29 + $0x50] sm:$0xf] %v220_v20 }
  0x24   : > { %223 = vst [vmem:[%s6867_s29 + $0x54] sm:$0xf] %v222_v21  ;;  %225 = vst [vmem:[%s6867_s29 + $0x58] sm:$0xf] %v224_v22  ;;  %v226_v23 = vld [vmem:[%s6860_s28 + $0xb8] sm:$0xf] }
  0x25   : > { %v228_v24 = vld [vmem:[%s6860_s28 + $0xc0] sm:$0xf]  ;;  %v230_v25 = vld [vmem:[%s6860_s28 + $0xc8] sm:$0xf]  ;;  %227 = vst [vmem:[%s6867_s29 + $0x5c] sm:$0xf] %v226_v23 }
  0x26   : > { %229 = vst [vmem:[%s6867_s29 + $0x60] sm:$0xf] %v228_v24  ;;  %231 = vst [vmem:[%s6867_s29 + $0x64] sm:$0xf] %v230_v25  ;;  %v232_v26 = vld [vmem:[%s6860_s28 + $0xd0] sm:$0xf] }
  0x27   : > { %v234_v27 = vld [vmem:[%s6860_s28 + $0xd8] sm:$0xf]  ;;  %v236_v28 = vld [vmem:[%s6860_s28 + $0xe0] sm:$0xf]  ;;  %233 = vst [vmem:[%s6867_s29 + $0x68] sm:$0xf] %v232_v26 }
  0x28   : > { %235 = vst [vmem:[%s6867_s29 + $0x6c] sm:$0xf] %v234_v27  ;;  %237 = vst [vmem:[%s6867_s29 + $0x70] sm:$0xf] %v236_v28  ;;  %v238_v29 = vld [vmem:[%s6860_s28 + $0xe8] sm:$0xf] }
  0x29   : > { %v240_v30 = vld [vmem:[%s6860_s28 + $0xf0] sm:$0xf]  ;;  %v242_v31 = vld [vmem:[%s6860_s28 + $0xf8] sm:$0xf]  ;;  %239 = vst [vmem:[%s6867_s29 + $0x74] sm:$0xf] %v238_v29 }
  0x2a   : > { %241 = vst [vmem:[%s6867_s29 + $0x78] sm:$0xf] %v240_v30  ;;  %243 = vst [vmem:[%s6867_s29 + $0x7c] sm:$0xf] %v242_v31  ;;  %v244_v32 = vld [vmem:[%s6860_s28 + $0x100] sm:$0xf] }
  0x2b   : > { %v246_v33 = vld [vmem:[%s6860_s28 + $0x108] sm:$0xf]  ;;  %v248_v34 = vld [vmem:[%s6860_s28 + $0x110] sm:$0xf]  ;;  %245 = vst [vmem:[%s6867_s29 + $0x80] sm:$0xf] %v244_v32 }
  0x2c   : > { %247 = vst [vmem:[%s6867_s29 + $0x84] sm:$0xf] %v246_v33  ;;  %249 = vst [vmem:[%s6867_s29 + $0x88] sm:$0xf] %v248_v34  ;;  %v250_v35 = vld [vmem:[%s6860_s28 + $0x118] sm:$0xf] }
  0x2d   : > { %v252_v36 = vld [vmem:[%s6860_s28 + $0x120] sm:$0xf]  ;;  %v254_v37 = vld [vmem:[%s6860_s28 + $0x128] sm:$0xf]  ;;  %251 = vst [vmem:[%s6867_s29 + $0x8c] sm:$0xf] %v250_v35 }
  0x2e   : > { %253 = vst [vmem:[%s6867_s29 + $0x90] sm:$0xf] %v252_v36  ;;  %255 = vst [vmem:[%s6867_s29 + $0x94] sm:$0xf] %v254_v37  ;;  %v256_v38 = vld [vmem:[%s6860_s28 + $0x130] sm:$0xf] }
  0x2f   : > { %v258_v39 = vld [vmem:[%s6860_s28 + $0x138] sm:$0xf]  ;;  %v260_v40 = vld [vmem:[%s6860_s28 + $0x140] sm:$0xf]  ;;  %257 = vst [vmem:[%s6867_s29 + $0x98] sm:$0xf] %v256_v38 }
  0x30   : > { %259 = vst [vmem:[%s6867_s29 + $0x9c] sm:$0xf] %v258_v39  ;;  %261 = vst [vmem:[%s6867_s29 + $0xa0] sm:$0xf] %v260_v40  ;;  %v262_v41 = vld [vmem:[%s6860_s28 + $0x148] sm:$0xf] }
  0x31   : > { %v264_v42 = vld [vmem:[%s6860_s28 + $0x150] sm:$0xf]  ;;  %v266_v43 = vld [vmem:[%s6860_s28 + $0x158] sm:$0xf]  ;;  %263 = vst [vmem:[%s6867_s29 + $0xa4] sm:$0xf] %v262_v41 }
  0x32   : > { %265 = vst [vmem:[%s6867_s29 + $0xa8] sm:$0xf] %v264_v42  ;;  %267 = vst [vmem:[%s6867_s29 + $0xac] sm:$0xf] %v266_v43  ;;  %v268_v44 = vld [vmem:[%s6860_s28 + $0x160] sm:$0xf] }
  0x33   : > { %v270_v45 = vld [vmem:[%s6860_s28 + $0x168] sm:$0xf]  ;;  %v272_v46 = vld [vmem:[%s6860_s28 + $0x170] sm:$0xf]  ;;  %269 = vst [vmem:[%s6867_s29 + $0xb0] sm:$0xf] %v268_v44 }
  0x34   : > { %271 = vst [vmem:[%s6867_s29 + $0xb4] sm:$0xf] %v270_v45  ;;  %273 = vst [vmem:[%s6867_s29 + $0xb8] sm:$0xf] %v272_v46  ;;  %v274_v47 = vld [vmem:[%s6860_s28 + $0x178] sm:$0xf] }
  0x35   : > { %v276_v48 = vld [vmem:[%s6860_s28 + $0x180] sm:$0xf]  ;;  %v278_v49 = vld [vmem:[%s6860_s28 + $0x188] sm:$0xf]  ;;  %275 = vst [vmem:[%s6867_s29 + $0xbc] sm:$0xf] %v274_v47 }
  0x36   : > { %277 = vst [vmem:[%s6867_s29 + $0xc0] sm:$0xf] %v276_v48  ;;  %279 = vst [vmem:[%s6867_s29 + $0xc4] sm:$0xf] %v278_v49  ;;  %v280_v50 = vld [vmem:[%s6860_s28 + $0x190] sm:$0xf] }
  0x37   : > { %v282_v51 = vld [vmem:[%s6860_s28 + $0x198] sm:$0xf]  ;;  %v284_v52 = vld [vmem:[%s6860_s28 + $0x1a0] sm:$0xf]  ;;  %281 = vst [vmem:[%s6867_s29 + $0xc8] sm:$0xf] %v280_v50 }
  0x38   : > { %283 = vst [vmem:[%s6867_s29 + $0xcc] sm:$0xf] %v282_v51  ;;  %285 = vst [vmem:[%s6867_s29 + $0xd0] sm:$0xf] %v284_v52  ;;  %v286_v53 = vld [vmem:[%s6860_s28 + $0x1a8] sm:$0xf] }
  0x39   : > { %v288_v54 = vld [vmem:[%s6860_s28 + $0x1b0] sm:$0xf]  ;;  %v290_v55 = vld [vmem:[%s6860_s28 + $0x1b8] sm:$0xf]  ;;  %287 = vst [vmem:[%s6867_s29 + $0xd4] sm:$0xf] %v286_v53 }
  0x3a   : > { %289 = vst [vmem:[%s6867_s29 + $0xd8] sm:$0xf] %v288_v54  ;;  %291 = vst [vmem:[%s6867_s29 + $0xdc] sm:$0xf] %v290_v55  ;;  %v292_v56 = vld [vmem:[%s6860_s28 + $0x1c0] sm:$0xf] }
  0x3b   : > { %v294_v57 = vld [vmem:[%s6860_s28 + $0x1c8] sm:$0xf]  ;;  %v296_v58 = vld [vmem:[%s6860_s28 + $0x1d0] sm:$0xf]  ;;  %293 = vst [vmem:[%s6867_s29 + $0xe0] sm:$0xf] %v292_v56 }
  0x3c   : > { %295 = vst [vmem:[%s6867_s29 + $0xe4] sm:$0xf] %v294_v57  ;;  %297 = vst [vmem:[%s6867_s29 + $0xe8] sm:$0xf] %v296_v58  ;;  %v298_v59 = vld [vmem:[%s6860_s28 + $0x1d8] sm:$0xf] }
  0x3d   : > { %v300_v60 = vld [vmem:[%s6860_s28 + $0x1e0] sm:$0xf]  ;;  %v302_v61 = vld [vmem:[%s6860_s28 + $0x1e8] sm:$0xf]  ;;  %299 = vst [vmem:[%s6867_s29 + $0xec] sm:$0xf] %v298_v59 }
  0x3e   : > { %301 = vst [vmem:[%s6867_s29 + $0xf0] sm:$0xf] %v300_v60  ;;  %303 = vst [vmem:[%s6867_s29 + $0xf4] sm:$0xf] %v302_v61  ;;  %v304_v62 = vld [vmem:[%s6860_s28 + $0x1f0] sm:$0xf] }
  0x3f   : > { %v306_v63 = vld [vmem:[%s6860_s28 + $0x1f8] sm:$0xf]  ;;  %v308_v0 = vld [vmem:[%s6860_s28 + $0x200] sm:$0xf]  ;;  %305 = vst [vmem:[%s6867_s29 + $0xf8] sm:$0xf] %v304_v62 }
  0x40   : > { %307 = vst [vmem:[%s6867_s29 + $0xfc] sm:$0xf] %v306_v63  ;;  %309 = vst [vmem:[%s6867_s29 + $0x100] sm:$0xf] %v308_v0  ;;  %v310_v1 = vld [vmem:[%s6860_s28 + $0x208] sm:$0xf] }
  0x41   : > { %v312_v2 = vld [vmem:[%s6860_s28 + $0x210] sm:$0xf]  ;;  %v314_v3 = vld [vmem:[%s6860_s28 + $0x218] sm:$0xf]  ;;  %311 = vst [vmem:[%s6867_s29 + $0x104] sm:$0xf] %v310_v1 }
  0x42   : > { %313 = vst [vmem:[%s6867_s29 + $0x108] sm:$0xf] %v312_v2  ;;  %315 = vst [vmem:[%s6867_s29 + $0x10c] sm:$0xf] %v314_v3  ;;  %v316_v4 = vld [vmem:[%s6860_s28 + $0x220] sm:$0xf] }
  0x43   : > { %v318_v5 = vld [vmem:[%s6860_s28 + $0x228] sm:$0xf]  ;;  %v320_v6 = vld [vmem:[%s6860_s28 + $0x230] sm:$0xf]  ;;  %317 = vst [vmem:[%s6867_s29 + $0x110] sm:$0xf] %v316_v4 }
  0x44   : > { %319 = vst [vmem:[%s6867_s29 + $0x114] sm:$0xf] %v318_v5  ;;  %321 = vst [vmem:[%s6867_s29 + $0x118] sm:$0xf] %v320_v6  ;;  %v322_v7 = vld [vmem:[%s6860_s28 + $0x238] sm:$0xf] }
  0x45   : > { %v324_v8 = vld [vmem:[%s6860_s28 + $0x240] sm:$0xf]  ;;  %v326_v9 = vld [vmem:[%s6860_s28 + $0x248] sm:$0xf]  ;;  %323 = vst [vmem:[%s6867_s29 + $0x11c] sm:$0xf] %v322_v7 }
  0x46   : > { %325 = vst [vmem:[%s6867_s29 + $0x120] sm:$0xf] %v324_v8  ;;  %327 = vst [vmem:[%s6867_s29 + $0x124] sm:$0xf] %v326_v9  ;;  %v328_v10 = vld [vmem:[%s6860_s28 + $0x250] sm:$0xf] }
  0x47   : > { %v330_v11 = vld [vmem:[%s6860_s28 + $0x258] sm:$0xf]  ;;  %v332_v12 = vld [vmem:[%s6860_s28 + $0x260] sm:$0xf]  ;;  %329 = vst [vmem:[%s6867_s29 + $0x128] sm:$0xf] %v328_v10 }
  0x48   : > { %331 = vst [vmem:[%s6867_s29 + $0x12c] sm:$0xf] %v330_v11  ;;  %333 = vst [vmem:[%s6867_s29 + $0x130] sm:$0xf] %v332_v12  ;;  %v334_v13 = vld [vmem:[%s6860_s28 + $0x268] sm:$0xf] }
  0x49   : > { %v336_v14 = vld [vmem:[%s6860_s28 + $0x270] sm:$0xf]  ;;  %v338_v15 = vld [vmem:[%s6860_s28 + $0x278] sm:$0xf]  ;;  %335 = vst [vmem:[%s6867_s29 + $0x134] sm:$0xf] %v334_v13 }
  0x4a   : > { %337 = vst [vmem:[%s6867_s29 + $0x138] sm:$0xf] %v336_v14  ;;  %339 = vst [vmem:[%s6867_s29 + $0x13c] sm:$0xf] %v338_v15  ;;  %v340_v16 = vld [vmem:[%s6860_s28 + $0x280] sm:$0xf] }
  0x4b   : > { %v342_v17 = vld [vmem:[%s6860_s28 + $0x288] sm:$0xf]  ;;  %v344_v18 = vld [vmem:[%s6860_s28 + $0x290] sm:$0xf]  ;;  %341 = vst [vmem:[%s6867_s29 + $0x140] sm:$0xf] %v340_v16 }
  0x4c   : > { %343 = vst [vmem:[%s6867_s29 + $0x144] sm:$0xf] %v342_v17  ;;  %345 = vst [vmem:[%s6867_s29 + $0x148] sm:$0xf] %v344_v18  ;;  %v346_v19 = vld [vmem:[%s6860_s28 + $0x298] sm:$0xf] }
  0x4d   : > { %v348_v20 = vld [vmem:[%s6860_s28 + $0x2a0] sm:$0xf]  ;;  %v350_v21 = vld [vmem:[%s6860_s28 + $0x2a8] sm:$0xf]  ;;  %347 = vst [vmem:[%s6867_s29 + $0x14c] sm:$0xf] %v346_v19 }
  0x4e   : > { %349 = vst [vmem:[%s6867_s29 + $0x150] sm:$0xf] %v348_v20  ;;  %351 = vst [vmem:[%s6867_s29 + $0x154] sm:$0xf] %v350_v21  ;;  %v352_v22 = vld [vmem:[%s6860_s28 + $0x2b0] sm:$0xf] }
  0x4f   : > { %v354_v23 = vld [vmem:[%s6860_s28 + $0x2b8] sm:$0xf]  ;;  %v356_v24 = vld [vmem:[%s6860_s28 + $0x2c0] sm:$0xf]  ;;  %353 = vst [vmem:[%s6867_s29 + $0x158] sm:$0xf] %v352_v22 }
  0x50   : > { %355 = vst [vmem:[%s6867_s29 + $0x15c] sm:$0xf] %v354_v23  ;;  %357 = vst [vmem:[%s6867_s29 + $0x160] sm:$0xf] %v356_v24  ;;  %v358_v25 = vld [vmem:[%s6860_s28 + $0x2c8] sm:$0xf] }
  0x51   : > { %v360_v26 = vld [vmem:[%s6860_s28 + $0x2d0] sm:$0xf]  ;;  %v362_v27 = vld [vmem:[%s6860_s28 + $0x2d8] sm:$0xf]  ;;  %359 = vst [vmem:[%s6867_s29 + $0x164] sm:$0xf] %v358_v25 }
  0x52   : > { %361 = vst [vmem:[%s6867_s29 + $0x168] sm:$0xf] %v360_v26  ;;  %363 = vst [vmem:[%s6867_s29 + $0x16c] sm:$0xf] %v362_v27  ;;  %v364_v28 = vld [vmem:[%s6860_s28 + $0x2e0] sm:$0xf] }
  0x53   : > { %v366_v29 = vld [vmem:[%s6860_s28 + $0x2e8] sm:$0xf]  ;;  %v368_v30 = vld [vmem:[%s6860_s28 + $0x2f0] sm:$0xf]  ;;  %365 = vst [vmem:[%s6867_s29 + $0x170] sm:$0xf] %v364_v28 }
  0x54   : > { %367 = vst [vmem:[%s6867_s29 + $0x174] sm:$0xf] %v366_v29  ;;  %369 = vst [vmem:[%s6867_s29 + $0x178] sm:$0xf] %v368_v30  ;;  %v370_v31 = vld [vmem:[%s6860_s28 + $0x2f8] sm:$0xf] }
  0x55   : > { %v372_v32 = vld [vmem:[%s6860_s28 + $0x300] sm:$0xf]  ;;  %v374_v33 = vld [vmem:[%s6860_s28 + $0x308] sm:$0xf]  ;;  %371 = vst [vmem:[%s6867_s29 + $0x17c] sm:$0xf] %v370_v31 }
  0x56   : > { %373 = vst [vmem:[%s6867_s29 + $0x180] sm:$0xf] %v372_v32  ;;  %375 = vst [vmem:[%s6867_s29 + $0x184] sm:$0xf] %v374_v33  ;;  %v376_v34 = vld [vmem:[%s6860_s28 + $0x310] sm:$0xf] }
  0x57   : > { %v378_v35 = vld [vmem:[%s6860_s28 + $0x318] sm:$0xf]  ;;  %v380_v36 = vld [vmem:[%s6860_s28 + $0x320] sm:$0xf]  ;;  %377 = vst [vmem:[%s6867_s29 + $0x188] sm:$0xf] %v376_v34 }
  0x58   : > { %379 = vst [vmem:[%s6867_s29 + $0x18c] sm:$0xf] %v378_v35  ;;  %381 = vst [vmem:[%s6867_s29 + $0x190] sm:$0xf] %v380_v36  ;;  %v382_v37 = vld [vmem:[%s6860_s28 + $0x328] sm:$0xf] }
  0x59   : > { %v384_v38 = vld [vmem:[%s6860_s28 + $0x330] sm:$0xf]  ;;  %v386_v39 = vld [vmem:[%s6860_s28 + $0x338] sm:$0xf]  ;;  %383 = vst [vmem:[%s6867_s29 + $0x194] sm:$0xf] %v382_v37 }
  0x5a   : > { %385 = vst [vmem:[%s6867_s29 + $0x198] sm:$0xf] %v384_v38  ;;  %387 = vst [vmem:[%s6867_s29 + $0x19c] sm:$0xf] %v386_v39  ;;  %v388_v40 = vld [vmem:[%s6860_s28 + $0x340] sm:$0xf] }
  0x5b   : > { %v390_v41 = vld [vmem:[%s6860_s28 + $0x348] sm:$0xf]  ;;  %v392_v42 = vld [vmem:[%s6860_s28 + $0x350] sm:$0xf]  ;;  %389 = vst [vmem:[%s6867_s29 + $0x1a0] sm:$0xf] %v388_v40 }
  0x5c   : > { %391 = vst [vmem:[%s6867_s29 + $0x1a4] sm:$0xf] %v390_v41  ;;  %393 = vst [vmem:[%s6867_s29 + $0x1a8] sm:$0xf] %v392_v42  ;;  %v394_v43 = vld [vmem:[%s6860_s28 + $0x358] sm:$0xf] }
  0x5d   : > { %v396_v44 = vld [vmem:[%s6860_s28 + $0x360] sm:$0xf]  ;;  %v398_v45 = vld [vmem:[%s6860_s28 + $0x368] sm:$0xf]  ;;  %395 = vst [vmem:[%s6867_s29 + $0x1ac] sm:$0xf] %v394_v43 }
  0x5e   : > { %397 = vst [vmem:[%s6867_s29 + $0x1b0] sm:$0xf] %v396_v44  ;;  %399 = vst [vmem:[%s6867_s29 + $0x1b4] sm:$0xf] %v398_v45  ;;  %v400_v46 = vld [vmem:[%s6860_s28 + $0x370] sm:$0xf] }
  0x5f   : > { %v402_v47 = vld [vmem:[%s6860_s28 + $0x378] sm:$0xf]  ;;  %v404_v48 = vld [vmem:[%s6860_s28 + $0x380] sm:$0xf]  ;;  %401 = vst [vmem:[%s6867_s29 + $0x1b8] sm:$0xf] %v400_v46 }
  0x60   : > { %403 = vst [vmem:[%s6867_s29 + $0x1bc] sm:$0xf] %v402_v47  ;;  %405 = vst [vmem:[%s6867_s29 + $0x1c0] sm:$0xf] %v404_v48  ;;  %v406_v49 = vld [vmem:[%s6860_s28 + $0x388] sm:$0xf] }
  0x61   : > { %v408_v50 = vld [vmem:[%s6860_s28 + $0x390] sm:$0xf]  ;;  %v410_v51 = vld [vmem:[%s6860_s28 + $0x398] sm:$0xf]  ;;  %407 = vst [vmem:[%s6867_s29 + $0x1c4] sm:$0xf] %v406_v49 }
  0x62   : > { %409 = vst [vmem:[%s6867_s29 + $0x1c8] sm:$0xf] %v408_v50  ;;  %411 = vst [vmem:[%s6867_s29 + $0x1cc] sm:$0xf] %v410_v51  ;;  %v412_v52 = vld [vmem:[%s6860_s28 + $0x3a0] sm:$0xf] }
  0x63   : > { %v414_v53 = vld [vmem:[%s6860_s28 + $0x3a8] sm:$0xf]  ;;  %v416_v54 = vld [vmem:[%s6860_s28 + $0x3b0] sm:$0xf]  ;;  %413 = vst [vmem:[%s6867_s29 + $0x1d0] sm:$0xf] %v412_v52 }
  0x64   : > { %415 = vst [vmem:[%s6867_s29 + $0x1d4] sm:$0xf] %v414_v53  ;;  %417 = vst [vmem:[%s6867_s29 + $0x1d8] sm:$0xf] %v416_v54  ;;  %v418_v55 = vld [vmem:[%s6860_s28 + $0x3b8] sm:$0xf] }
  0x65   : > { %v420_v56 = vld [vmem:[%s6860_s28 + $0x3c0] sm:$0xf]  ;;  %v422_v57 = vld [vmem:[%s6860_s28 + $0x3c8] sm:$0xf]  ;;  %419 = vst [vmem:[%s6867_s29 + $0x1dc] sm:$0xf] %v418_v55 }
  0x66   : > { %421 = vst [vmem:[%s6867_s29 + $0x1e0] sm:$0xf] %v420_v56  ;;  %423 = vst [vmem:[%s6867_s29 + $0x1e4] sm:$0xf] %v422_v57  ;;  %v424_v58 = vld [vmem:[%s6860_s28 + $0x3d0] sm:$0xf] }
  0x67   : > { %v426_v59 = vld [vmem:[%s6860_s28 + $0x3d8] sm:$0xf]  ;;  %v428_v60 = vld [vmem:[%s6860_s28 + $0x3e0] sm:$0xf]  ;;  %425 = vst [vmem:[%s6867_s29 + $0x1e8] sm:$0xf] %v424_v58 }
  0x68   : > { %427 = vst [vmem:[%s6867_s29 + $0x1ec] sm:$0xf] %v426_v59  ;;  %429 = vst [vmem:[%s6867_s29 + $0x1f0] sm:$0xf] %v428_v60  ;;  %v430_v61 = vld [vmem:[%s6860_s28 + $0x3e8] sm:$0xf] }
  0x69   : > { %v432_v62 = vld [vmem:[%s6860_s28 + $0x3f0] sm:$0xf]  ;;  %v434_v63 = vld [vmem:[%s6860_s28 + $0x3f8] sm:$0xf]  ;;  %431 = vst [vmem:[%s6867_s29 + $0x1f4] sm:$0xf] %v430_v61 }
  0x6a   : > { %433 = vst [vmem:[%s6867_s29 + $0x1f8] sm:$0xf] %v432_v62  ;;  %435 = vst [vmem:[%s6867_s29 + $0x1fc] sm:$0xf] %v434_v63  ;;  %v436_v0 = vld [vmem:[%s6860_s28 + $0x400] sm:$0xf] }
  0x6b   : > { %v438_v1 = vld [vmem:[%s6860_s28 + $0x408] sm:$0xf]  ;;  %v440_v2 = vld [vmem:[%s6860_s28 + $0x410] sm:$0xf]  ;;  %437 = vst [vmem:[%s6867_s29 + $0x200] sm:$0xf] %v436_v0 }
  0x6c   : > { %439 = vst [vmem:[%s6867_s29 + $0x204] sm:$0xf] %v438_v1  ;;  %441 = vst [vmem:[%s6867_s29 + $0x208] sm:$0xf] %v440_v2  ;;  %v442_v3 = vld [vmem:[%s6860_s28 + $0x418] sm:$0xf] }
  0x6d   : > { %v444_v4 = vld [vmem:[%s6860_s28 + $0x420] sm:$0xf]  ;;  %v446_v5 = vld [vmem:[%s6860_s28 + $0x428] sm:$0xf]  ;;  %443 = vst [vmem:[%s6867_s29 + $0x20c] sm:$0xf] %v442_v3 }
  0x6e   : > { %445 = vst [vmem:[%s6867_s29 + $0x210] sm:$0xf] %v444_v4  ;;  %447 = vst [vmem:[%s6867_s29 + $0x214] sm:$0xf] %v446_v5  ;;  %v448_v6 = vld [vmem:[%s6860_s28 + $0x430] sm:$0xf] }
  0x6f   : > { %v450_v7 = vld [vmem:[%s6860_s28 + $0x438] sm:$0xf]  ;;  %v452_v8 = vld [vmem:[%s6860_s28 + $0x440] sm:$0xf]  ;;  %449 = vst [vmem:[%s6867_s29 + $0x218] sm:$0xf] %v448_v6 }
  0x70   : > { %451 = vst [vmem:[%s6867_s29 + $0x21c] sm:$0xf] %v450_v7  ;;  %453 = vst [vmem:[%s6867_s29 + $0x220] sm:$0xf] %v452_v8  ;;  %v454_v9 = vld [vmem:[%s6860_s28 + $0x448] sm:$0xf] }
  0x71   : > { %v456_v10 = vld [vmem:[%s6860_s28 + $0x450] sm:$0xf]  ;;  %v458_v11 = vld [vmem:[%s6860_s28 + $0x458] sm:$0xf]  ;;  %455 = vst [vmem:[%s6867_s29 + $0x224] sm:$0xf] %v454_v9 }
  0x72   : > { %457 = vst [vmem:[%s6867_s29 + $0x228] sm:$0xf] %v456_v10  ;;  %459 = vst [vmem:[%s6867_s29 + $0x22c] sm:$0xf] %v458_v11  ;;  %v460_v12 = vld [vmem:[%s6860_s28 + $0x460] sm:$0xf] }
  0x73   : > { %v462_v13 = vld [vmem:[%s6860_s28 + $0x468] sm:$0xf]  ;;  %v464_v14 = vld [vmem:[%s6860_s28 + $0x470] sm:$0xf]  ;;  %461 = vst [vmem:[%s6867_s29 + $0x230] sm:$0xf] %v460_v12 }
  0x74   : > { %463 = vst [vmem:[%s6867_s29 + $0x234] sm:$0xf] %v462_v13  ;;  %465 = vst [vmem:[%s6867_s29 + $0x238] sm:$0xf] %v464_v14  ;;  %v466_v15 = vld [vmem:[%s6860_s28 + $0x478] sm:$0xf] }
  0x75   : > { %v468_v16 = vld [vmem:[%s6860_s28 + $0x480] sm:$0xf]  ;;  %v470_v17 = vld [vmem:[%s6860_s28 + $0x488] sm:$0xf]  ;;  %467 = vst [vmem:[%s6867_s29 + $0x23c] sm:$0xf] %v466_v15 }
  0x76   : > { %469 = vst [vmem:[%s6867_s29 + $0x240] sm:$0xf] %v468_v16  ;;  %471 = vst [vmem:[%s6867_s29 + $0x244] sm:$0xf] %v470_v17  ;;  %v472_v18 = vld [vmem:[%s6860_s28 + $0x490] sm:$0xf] }
  0x77   : > { %v474_v19 = vld [vmem:[%s6860_s28 + $0x498] sm:$0xf]  ;;  %v476_v20 = vld [vmem:[%s6860_s28 + $0x4a0] sm:$0xf]  ;;  %473 = vst [vmem:[%s6867_s29 + $0x248] sm:$0xf] %v472_v18 }
  0x78   : > { %475 = vst [vmem:[%s6867_s29 + $0x24c] sm:$0xf] %v474_v19  ;;  %477 = vst [vmem:[%s6867_s29 + $0x250] sm:$0xf] %v476_v20  ;;  %v478_v21 = vld [vmem:[%s6860_s28 + $0x4a8] sm:$0xf] }
  0x79   : > { %v480_v22 = vld [vmem:[%s6860_s28 + $0x4b0] sm:$0xf]  ;;  %v482_v23 = vld [vmem:[%s6860_s28 + $0x4b8] sm:$0xf]  ;;  %479 = vst [vmem:[%s6867_s29 + $0x254] sm:$0xf] %v478_v21 }
  0x7a   : > { %481 = vst [vmem:[%s6867_s29 + $0x258] sm:$0xf] %v480_v22  ;;  %483 = vst [vmem:[%s6867_s29 + $0x25c] sm:$0xf] %v482_v23  ;;  %v484_v24 = vld [vmem:[%s6860_s28 + $0x4c0] sm:$0xf] }
  0x7b   : > { %v486_v25 = vld [vmem:[%s6860_s28 + $0x4c8] sm:$0xf]  ;;  %v488_v26 = vld [vmem:[%s6860_s28 + $0x4d0] sm:$0xf]  ;;  %485 = vst [vmem:[%s6867_s29 + $0x260] sm:$0xf] %v484_v24 }
  0x7c   : > { %487 = vst [vmem:[%s6867_s29 + $0x264] sm:$0xf] %v486_v25  ;;  %489 = vst [vmem:[%s6867_s29 + $0x268] sm:$0xf] %v488_v26  ;;  %v490_v27 = vld [vmem:[%s6860_s28 + $0x4d8] sm:$0xf] }
  0x7d   : > { %v492_v28 = vld [vmem:[%s6860_s28 + $0x4e0] sm:$0xf]  ;;  %v494_v29 = vld [vmem:[%s6860_s28 + $0x4e8] sm:$0xf]  ;;  %491 = vst [vmem:[%s6867_s29 + $0x26c] sm:$0xf] %v490_v27 }
  0x7e   : > { %493 = vst [vmem:[%s6867_s29 + $0x270] sm:$0xf] %v492_v28  ;;  %495 = vst [vmem:[%s6867_s29 + $0x274] sm:$0xf] %v494_v29  ;;  %v496_v30 = vld [vmem:[%s6860_s28 + $0x4f0] sm:$0xf] }
  0x7f   : > { %v498_v31 = vld [vmem:[%s6860_s28 + $0x4f8] sm:$0xf]  ;;  %v500_v32 = vld [vmem:[%s6860_s28 + $0x500] sm:$0xf]  ;;  %497 = vst [vmem:[%s6867_s29 + $0x278] sm:$0xf] %v496_v30 }
  0x80   : > { %499 = vst [vmem:[%s6867_s29 + $0x27c] sm:$0xf] %v498_v31  ;;  %501 = vst [vmem:[%s6867_s29 + $0x280] sm:$0xf] %v500_v32  ;;  %v502_v33 = vld [vmem:[%s6860_s28 + $0x508] sm:$0xf] }
  0x81   : > { %v504_v34 = vld [vmem:[%s6860_s28 + $0x510] sm:$0xf]  ;;  %v506_v35 = vld [vmem:[%s6860_s28 + $0x518] sm:$0xf]  ;;  %503 = vst [vmem:[%s6867_s29 + $0x284] sm:$0xf] %v502_v33 }
  0x82   : > { %505 = vst [vmem:[%s6867_s29 + $0x288] sm:$0xf] %v504_v34  ;;  %507 = vst [vmem:[%s6867_s29 + $0x28c] sm:$0xf] %v506_v35  ;;  %v508_v36 = vld [vmem:[%s6860_s28 + $0x520] sm:$0xf] }
  0x83   : > { %v510_v37 = vld [vmem:[%s6860_s28 + $0x528] sm:$0xf]  ;;  %v512_v38 = vld [vmem:[%s6860_s28 + $0x530] sm:$0xf]  ;;  %509 = vst [vmem:[%s6867_s29 + $0x290] sm:$0xf] %v508_v36 }
  0x84   : > { %511 = vst [vmem:[%s6867_s29 + $0x294] sm:$0xf] %v510_v37  ;;  %513 = vst [vmem:[%s6867_s29 + $0x298] sm:$0xf] %v512_v38  ;;  %v514_v39 = vld [vmem:[%s6860_s28 + $0x538] sm:$0xf] }
  0x85   : > { %v516_v40 = vld [vmem:[%s6860_s28 + $0x540] sm:$0xf]  ;;  %v518_v41 = vld [vmem:[%s6860_s28 + $0x548] sm:$0xf]  ;;  %515 = vst [vmem:[%s6867_s29 + $0x29c] sm:$0xf] %v514_v39 }
  0x86   : > { %517 = vst [vmem:[%s6867_s29 + $0x2a0] sm:$0xf] %v516_v40  ;;  %519 = vst [vmem:[%s6867_s29 + $0x2a4] sm:$0xf] %v518_v41  ;;  %v520_v42 = vld [vmem:[%s6860_s28 + $0x550] sm:$0xf] }
  0x87   : > { %v522_v43 = vld [vmem:[%s6860_s28 + $0x558] sm:$0xf]  ;;  %v524_v44 = vld [vmem:[%s6860_s28 + $0x560] sm:$0xf]  ;;  %521 = vst [vmem:[%s6867_s29 + $0x2a8] sm:$0xf] %v520_v42 }
  0x88   : > { %523 = vst [vmem:[%s6867_s29 + $0x2ac] sm:$0xf] %v522_v43  ;;  %525 = vst [vmem:[%s6867_s29 + $0x2b0] sm:$0xf] %v524_v44  ;;  %v526_v45 = vld [vmem:[%s6860_s28 + $0x568] sm:$0xf] }
  0x89   : > { %v528_v46 = vld [vmem:[%s6860_s28 + $0x570] sm:$0xf]  ;;  %v530_v47 = vld [vmem:[%s6860_s28 + $0x578] sm:$0xf]  ;;  %527 = vst [vmem:[%s6867_s29 + $0x2b4] sm:$0xf] %v526_v45 }
  0x8a   : > { %529 = vst [vmem:[%s6867_s29 + $0x2b8] sm:$0xf] %v528_v46  ;;  %531 = vst [vmem:[%s6867_s29 + $0x2bc] sm:$0xf] %v530_v47  ;;  %v532_v48 = vld [vmem:[%s6860_s28 + $0x580] sm:$0xf] }
  0x8b   : > { %v534_v49 = vld [vmem:[%s6860_s28 + $0x588] sm:$0xf]  ;;  %v536_v50 = vld [vmem:[%s6860_s28 + $0x590] sm:$0xf]  ;;  %533 = vst [vmem:[%s6867_s29 + $0x2c0] sm:$0xf] %v532_v48 }
  0x8c   : > { %535 = vst [vmem:[%s6867_s29 + $0x2c4] sm:$0xf] %v534_v49  ;;  %537 = vst [vmem:[%s6867_s29 + $0x2c8] sm:$0xf] %v536_v50  ;;  %v538_v51 = vld [vmem:[%s6860_s28 + $0x598] sm:$0xf] }
  0x8d   : > { %v540_v52 = vld [vmem:[%s6860_s28 + $0x5a0] sm:$0xf]  ;;  %v542_v53 = vld [vmem:[%s6860_s28 + $0x5a8] sm:$0xf]  ;;  %539 = vst [vmem:[%s6867_s29 + $0x2cc] sm:$0xf] %v538_v51 }
  0x8e   : > { %541 = vst [vmem:[%s6867_s29 + $0x2d0] sm:$0xf] %v540_v52  ;;  %543 = vst [vmem:[%s6867_s29 + $0x2d4] sm:$0xf] %v542_v53  ;;  %v544_v54 = vld [vmem:[%s6860_s28 + $0x5b0] sm:$0xf] }
  0x8f   : > { %v546_v55 = vld [vmem:[%s6860_s28 + $0x5b8] sm:$0xf]  ;;  %v548_v56 = vld [vmem:[%s6860_s28 + $0x5c0] sm:$0xf]  ;;  %545 = vst [vmem:[%s6867_s29 + $0x2d8] sm:$0xf] %v544_v54 }
  0x90   : > { %547 = vst [vmem:[%s6867_s29 + $0x2dc] sm:$0xf] %v546_v55  ;;  %549 = vst [vmem:[%s6867_s29 + $0x2e0] sm:$0xf] %v548_v56  ;;  %v550_v57 = vld [vmem:[%s6860_s28 + $0x5c8] sm:$0xf] }
  0x91   : > { %v552_v58 = vld [vmem:[%s6860_s28 + $0x5d0] sm:$0xf]  ;;  %v554_v59 = vld [vmem:[%s6860_s28 + $0x5d8] sm:$0xf]  ;;  %551 = vst [vmem:[%s6867_s29 + $0x2e4] sm:$0xf] %v550_v57 }
  0x92   : > { %553 = vst [vmem:[%s6867_s29 + $0x2e8] sm:$0xf] %v552_v58  ;;  %555 = vst [vmem:[%s6867_s29 + $0x2ec] sm:$0xf] %v554_v59  ;;  %v556_v60 = vld [vmem:[%s6860_s28 + $0x5e0] sm:$0xf] }
  0x93   : > { %v558_v61 = vld [vmem:[%s6860_s28 + $0x5e8] sm:$0xf]  ;;  %v560_v62 = vld [vmem:[%s6860_s28 + $0x5f0] sm:$0xf]  ;;  %557 = vst [vmem:[%s6867_s29 + $0x2f0] sm:$0xf] %v556_v60 }
  0x94   : > { %559 = vst [vmem:[%s6867_s29 + $0x2f4] sm:$0xf] %v558_v61  ;;  %561 = vst [vmem:[%s6867_s29 + $0x2f8] sm:$0xf] %v560_v62  ;;  %v562_v63 = vld [vmem:[%s6860_s28 + $0x5f8] sm:$0xf] }
  0x95   : > { %v564_v0 = vld [vmem:[%s6860_s28 + $0x600] sm:$0xf]  ;;  %v566_v1 = vld [vmem:[%s6860_s28 + $0x608] sm:$0xf]  ;;  %563 = vst [vmem:[%s6867_s29 + $0x2fc] sm:$0xf] %v562_v63 }
  0x96   : > { %565 = vst [vmem:[%s6867_s29 + $0x300] sm:$0xf] %v564_v0  ;;  %567 = vst [vmem:[%s6867_s29 + $0x304] sm:$0xf] %v566_v1  ;;  %v568_v2 = vld [vmem:[%s6860_s28 + $0x610] sm:$0xf] }
  0x97   : > { %v570_v3 = vld [vmem:[%s6860_s28 + $0x618] sm:$0xf]  ;;  %v572_v4 = vld [vmem:[%s6860_s28 + $0x620] sm:$0xf]  ;;  %569 = vst [vmem:[%s6867_s29 + $0x308] sm:$0xf] %v568_v2 }
  0x98   : > { %571 = vst [vmem:[%s6867_s29 + $0x30c] sm:$0xf] %v570_v3  ;;  %573 = vst [vmem:[%s6867_s29 + $0x310] sm:$0xf] %v572_v4  ;;  %v574_v5 = vld [vmem:[%s6860_s28 + $0x628] sm:$0xf] }
  0x99   : > { %v576_v6 = vld [vmem:[%s6860_s28 + $0x630] sm:$0xf]  ;;  %v578_v7 = vld [vmem:[%s6860_s28 + $0x638] sm:$0xf]  ;;  %575 = vst [vmem:[%s6867_s29 + $0x314] sm:$0xf] %v574_v5 }
  0x9a   : > { %577 = vst [vmem:[%s6867_s29 + $0x318] sm:$0xf] %v576_v6  ;;  %579 = vst [vmem:[%s6867_s29 + $0x31c] sm:$0xf] %v578_v7  ;;  %v580_v8 = vld [vmem:[%s6860_s28 + $0x640] sm:$0xf] }
  0x9b   : > { %v582_v9 = vld [vmem:[%s6860_s28 + $0x648] sm:$0xf]  ;;  %v584_v10 = vld [vmem:[%s6860_s28 + $0x650] sm:$0xf]  ;;  %581 = vst [vmem:[%s6867_s29 + $0x320] sm:$0xf] %v580_v8 }
  0x9c   : > { %583 = vst [vmem:[%s6867_s29 + $0x324] sm:$0xf] %v582_v9  ;;  %585 = vst [vmem:[%s6867_s29 + $0x328] sm:$0xf] %v584_v10  ;;  %v586_v11 = vld [vmem:[%s6860_s28 + $0x658] sm:$0xf] }
  0x9d   : > { %v588_v12 = vld [vmem:[%s6860_s28 + $0x660] sm:$0xf]  ;;  %v590_v13 = vld [vmem:[%s6860_s28 + $0x668] sm:$0xf]  ;;  %587 = vst [vmem:[%s6867_s29 + $0x32c] sm:$0xf] %v586_v11 }
  0x9e   : > { %589 = vst [vmem:[%s6867_s29 + $0x330] sm:$0xf] %v588_v12  ;;  %591 = vst [vmem:[%s6867_s29 + $0x334] sm:$0xf] %v590_v13  ;;  %v592_v14 = vld [vmem:[%s6860_s28 + $0x670] sm:$0xf] }
  0x9f   : > { %v594_v15 = vld [vmem:[%s6860_s28 + $0x678] sm:$0xf]  ;;  %v596_v16 = vld [vmem:[%s6860_s28 + $0x680] sm:$0xf]  ;;  %593 = vst [vmem:[%s6867_s29 + $0x338] sm:$0xf] %v592_v14 }
  0xa0   : > { %595 = vst [vmem:[%s6867_s29 + $0x33c] sm:$0xf] %v594_v15  ;;  %597 = vst [vmem:[%s6867_s29 + $0x340] sm:$0xf] %v596_v16  ;;  %v598_v17 = vld [vmem:[%s6860_s28 + $0x688] sm:$0xf] }
  0xa1   : > { %v600_v18 = vld [vmem:[%s6860_s28 + $0x690] sm:$0xf]  ;;  %v602_v19 = vld [vmem:[%s6860_s28 + $0x698] sm:$0xf]  ;;  %599 = vst [vmem:[%s6867_s29 + $0x344] sm:$0xf] %v598_v17 }
  0xa2   : > { %601 = vst [vmem:[%s6867_s29 + $0x348] sm:$0xf] %v600_v18  ;;  %603 = vst [vmem:[%s6867_s29 + $0x34c] sm:$0xf] %v602_v19  ;;  %v604_v20 = vld [vmem:[%s6860_s28 + $0x6a0] sm:$0xf] }
  0xa3   : > { %v606_v21 = vld [vmem:[%s6860_s28 + $0x6a8] sm:$0xf]  ;;  %v608_v22 = vld [vmem:[%s6860_s28 + $0x6b0] sm:$0xf]  ;;  %605 = vst [vmem:[%s6867_s29 + $0x350] sm:$0xf] %v604_v20 }
  0xa4   : > { %607 = vst [vmem:[%s6867_s29 + $0x354] sm:$0xf] %v606_v21  ;;  %609 = vst [vmem:[%s6867_s29 + $0x358] sm:$0xf] %v608_v22  ;;  %v610_v23 = vld [vmem:[%s6860_s28 + $0x6b8] sm:$0xf] }
  0xa5   : > { %v612_v24 = vld [vmem:[%s6860_s28 + $0x6c0] sm:$0xf]  ;;  %v614_v25 = vld [vmem:[%s6860_s28 + $0x6c8] sm:$0xf]  ;;  %611 = vst [vmem:[%s6867_s29 + $0x35c] sm:$0xf] %v610_v23 }
  0xa6   : > { %613 = vst [vmem:[%s6867_s29 + $0x360] sm:$0xf] %v612_v24  ;;  %615 = vst [vmem:[%s6867_s29 + $0x364] sm:$0xf] %v614_v25  ;;  %v616_v26 = vld [vmem:[%s6860_s28 + $0x6d0] sm:$0xf] }
  0xa7   : > { %v618_v27 = vld [vmem:[%s6860_s28 + $0x6d8] sm:$0xf]  ;;  %v620_v28 = vld [vmem:[%s6860_s28 + $0x6e0] sm:$0xf]  ;;  %617 = vst [vmem:[%s6867_s29 + $0x368] sm:$0xf] %v616_v26 }
  0xa8   : > { %619 = vst [vmem:[%s6867_s29 + $0x36c] sm:$0xf] %v618_v27  ;;  %621 = vst [vmem:[%s6867_s29 + $0x370] sm:$0xf] %v620_v28  ;;  %v622_v29 = vld [vmem:[%s6860_s28 + $0x6e8] sm:$0xf] }
  0xa9   : > { %v624_v30 = vld [vmem:[%s6860_s28 + $0x6f0] sm:$0xf]  ;;  %v626_v31 = vld [vmem:[%s6860_s28 + $0x6f8] sm:$0xf]  ;;  %623 = vst [vmem:[%s6867_s29 + $0x374] sm:$0xf] %v622_v29 }
  0xaa   : > { %625 = vst [vmem:[%s6867_s29 + $0x378] sm:$0xf] %v624_v30  ;;  %627 = vst [vmem:[%s6867_s29 + $0x37c] sm:$0xf] %v626_v31  ;;  %v628_v32 = vld [vmem:[%s6860_s28 + $0x700] sm:$0xf] }
  0xab   : > { %v630_v33 = vld [vmem:[%s6860_s28 + $0x708] sm:$0xf]  ;;  %v632_v34 = vld [vmem:[%s6860_s28 + $0x710] sm:$0xf]  ;;  %629 = vst [vmem:[%s6867_s29 + $0x380] sm:$0xf] %v628_v32 }
  0xac   : > { %631 = vst [vmem:[%s6867_s29 + $0x384] sm:$0xf] %v630_v33  ;;  %633 = vst [vmem:[%s6867_s29 + $0x388] sm:$0xf] %v632_v34  ;;  %v634_v35 = vld [vmem:[%s6860_s28 + $0x718] sm:$0xf] }
  0xad   : > { %v636_v36 = vld [vmem:[%s6860_s28 + $0x720] sm:$0xf]  ;;  %v638_v37 = vld [vmem:[%s6860_s28 + $0x728] sm:$0xf]  ;;  %635 = vst [vmem:[%s6867_s29 + $0x38c] sm:$0xf] %v634_v35 }
  0xae   : > { %637 = vst [vmem:[%s6867_s29 + $0x390] sm:$0xf] %v636_v36  ;;  %639 = vst [vmem:[%s6867_s29 + $0x394] sm:$0xf] %v638_v37  ;;  %v640_v38 = vld [vmem:[%s6860_s28 + $0x730] sm:$0xf] }
  0xaf   : > { %v642_v39 = vld [vmem:[%s6860_s28 + $0x738] sm:$0xf]  ;;  %v644_v40 = vld [vmem:[%s6860_s28 + $0x740] sm:$0xf]  ;;  %641 = vst [vmem:[%s6867_s29 + $0x398] sm:$0xf] %v640_v38 }
  0xb0   : > { %643 = vst [vmem:[%s6867_s29 + $0x39c] sm:$0xf] %v642_v39  ;;  %645 = vst [vmem:[%s6867_s29 + $0x3a0] sm:$0xf] %v644_v40  ;;  %v646_v41 = vld [vmem:[%s6860_s28 + $0x748] sm:$0xf] }
  0xb1   : > { %v648_v42 = vld [vmem:[%s6860_s28 + $0x750] sm:$0xf]  ;;  %v650_v43 = vld [vmem:[%s6860_s28 + $0x758] sm:$0xf]  ;;  %647 = vst [vmem:[%s6867_s29 + $0x3a4] sm:$0xf] %v646_v41 }
  0xb2   : > { %649 = vst [vmem:[%s6867_s29 + $0x3a8] sm:$0xf] %v648_v42  ;;  %651 = vst [vmem:[%s6867_s29 + $0x3ac] sm:$0xf] %v650_v43  ;;  %v652_v44 = vld [vmem:[%s6860_s28 + $0x760] sm:$0xf] }
  0xb3   : > { %v654_v45 = vld [vmem:[%s6860_s28 + $0x768] sm:$0xf]  ;;  %v656_v46 = vld [vmem:[%s6860_s28 + $0x770] sm:$0xf]  ;;  %653 = vst [vmem:[%s6867_s29 + $0x3b0] sm:$0xf] %v652_v44 }
  0xb4   : > { %655 = vst [vmem:[%s6867_s29 + $0x3b4] sm:$0xf] %v654_v45  ;;  %657 = vst [vmem:[%s6867_s29 + $0x3b8] sm:$0xf] %v656_v46  ;;  %v658_v47 = vld [vmem:[%s6860_s28 + $0x778] sm:$0xf] }
  0xb5   : > { %v660_v48 = vld [vmem:[%s6860_s28 + $0x780] sm:$0xf]  ;;  %v662_v49 = vld [vmem:[%s6860_s28 + $0x788] sm:$0xf]  ;;  %659 = vst [vmem:[%s6867_s29 + $0x3bc] sm:$0xf] %v658_v47 }
  0xb6   : > { %661 = vst [vmem:[%s6867_s29 + $0x3c0] sm:$0xf] %v660_v48  ;;  %663 = vst [vmem:[%s6867_s29 + $0x3c4] sm:$0xf] %v662_v49  ;;  %v664_v50 = vld [vmem:[%s6860_s28 + $0x790] sm:$0xf] }
  0xb7   : > { %v666_v51 = vld [vmem:[%s6860_s28 + $0x798] sm:$0xf]  ;;  %v668_v52 = vld [vmem:[%s6860_s28 + $0x7a0] sm:$0xf]  ;;  %665 = vst [vmem:[%s6867_s29 + $0x3c8] sm:$0xf] %v664_v50 }
  0xb8   : > { %667 = vst [vmem:[%s6867_s29 + $0x3cc] sm:$0xf] %v666_v51  ;;  %669 = vst [vmem:[%s6867_s29 + $0x3d0] sm:$0xf] %v668_v52  ;;  %v670_v53 = vld [vmem:[%s6860_s28 + $0x7a8] sm:$0xf] }
  0xb9   : > { %v672_v54 = vld [vmem:[%s6860_s28 + $0x7b0] sm:$0xf]  ;;  %v674_v55 = vld [vmem:[%s6860_s28 + $0x7b8] sm:$0xf]  ;;  %671 = vst [vmem:[%s6867_s29 + $0x3d4] sm:$0xf] %v670_v53 }
  0xba   : > { %673 = vst [vmem:[%s6867_s29 + $0x3d8] sm:$0xf] %v672_v54  ;;  %675 = vst [vmem:[%s6867_s29 + $0x3dc] sm:$0xf] %v674_v55  ;;  %v676_v56 = vld [vmem:[%s6860_s28 + $0x7c0] sm:$0xf] }
  0xbb   : > { %v678_v57 = vld [vmem:[%s6860_s28 + $0x7c8] sm:$0xf]  ;;  %v680_v58 = vld [vmem:[%s6860_s28 + $0x7d0] sm:$0xf]  ;;  %677 = vst [vmem:[%s6867_s29 + $0x3e0] sm:$0xf] %v676_v56 }
  0xbc   : > { %679 = vst [vmem:[%s6867_s29 + $0x3e4] sm:$0xf] %v678_v57  ;;  %681 = vst [vmem:[%s6867_s29 + $0x3e8] sm:$0xf] %v680_v58  ;;  %v682_v59 = vld [vmem:[%s6860_s28 + $0x7d8] sm:$0xf] }
  0xbd   : > { %v684_v60 = vld [vmem:[%s6860_s28 + $0x7e0] sm:$0xf]  ;;  %v686_v61 = vld [vmem:[%s6860_s28 + $0x7e8] sm:$0xf]  ;;  %683 = vst [vmem:[%s6867_s29 + $0x3ec] sm:$0xf] %v682_v59 }
  0xbe   : > { %685 = vst [vmem:[%s6867_s29 + $0x3f0] sm:$0xf] %v684_v60  ;;  %687 = vst [vmem:[%s6867_s29 + $0x3f4] sm:$0xf] %v686_v61  ;;  %v688_v62 = vld [vmem:[%s6860_s28 + $0x7f0] sm:$0xf] }
  0xbf   : > { %v690_v63 = vld [vmem:[%s6860_s28 + $0x7f8] sm:$0xf]  ;;  %v692_v0 = vld [vmem:[%s6860_s28 + $0x800] sm:$0xf]  ;;  %689 = vst [vmem:[%s6867_s29 + $0x3f8] sm:$0xf] %v688_v62 }
  0xc0   : > { %691 = vst [vmem:[%s6867_s29 + $0x3fc] sm:$0xf] %v690_v63  ;;  %693 = vst [vmem:[%s6867_s29 + $0x400] sm:$0xf] %v692_v0  ;;  %v694_v1 = vld [vmem:[%s6860_s28 + $0x808] sm:$0xf] }
  0xc1   : > { %v696_v2 = vld [vmem:[%s6860_s28 + $0x810] sm:$0xf]  ;;  %v698_v3 = vld [vmem:[%s6860_s28 + $0x818] sm:$0xf]  ;;  %695 = vst [vmem:[%s6867_s29 + $0x404] sm:$0xf] %v694_v1 }
  0xc2   : > { %697 = vst [vmem:[%s6867_s29 + $0x408] sm:$0xf] %v696_v2  ;;  %699 = vst [vmem:[%s6867_s29 + $0x40c] sm:$0xf] %v698_v3  ;;  %v700_v4 = vld [vmem:[%s6860_s28 + $0x820] sm:$0xf] }
  0xc3   : > { %v702_v5 = vld [vmem:[%s6860_s28 + $0x828] sm:$0xf]  ;;  %v704_v6 = vld [vmem:[%s6860_s28 + $0x830] sm:$0xf]  ;;  %701 = vst [vmem:[%s6867_s29 + $0x410] sm:$0xf] %v700_v4 }
  0xc4   : > { %703 = vst [vmem:[%s6867_s29 + $0x414] sm:$0xf] %v702_v5  ;;  %705 = vst [vmem:[%s6867_s29 + $0x418] sm:$0xf] %v704_v6  ;;  %v706_v7 = vld [vmem:[%s6860_s28 + $0x838] sm:$0xf] }
  0xc5   : > { %v708_v8 = vld [vmem:[%s6860_s28 + $0x840] sm:$0xf]  ;;  %v710_v9 = vld [vmem:[%s6860_s28 + $0x848] sm:$0xf]  ;;  %707 = vst [vmem:[%s6867_s29 + $0x41c] sm:$0xf] %v706_v7 }
  0xc6   : > { %709 = vst [vmem:[%s6867_s29 + $0x420] sm:$0xf] %v708_v8  ;;  %711 = vst [vmem:[%s6867_s29 + $0x424] sm:$0xf] %v710_v9  ;;  %v712_v10 = vld [vmem:[%s6860_s28 + $0x850] sm:$0xf] }
  0xc7   : > { %v714_v11 = vld [vmem:[%s6860_s28 + $0x858] sm:$0xf]  ;;  %v716_v12 = vld [vmem:[%s6860_s28 + $0x860] sm:$0xf]  ;;  %713 = vst [vmem:[%s6867_s29 + $0x428] sm:$0xf] %v712_v10 }
  0xc8   : > { %715 = vst [vmem:[%s6867_s29 + $0x42c] sm:$0xf] %v714_v11  ;;  %717 = vst [vmem:[%s6867_s29 + $0x430] sm:$0xf] %v716_v12  ;;  %v718_v13 = vld [vmem:[%s6860_s28 + $0x868] sm:$0xf] }
  0xc9   : > { %v720_v14 = vld [vmem:[%s6860_s28 + $0x870] sm:$0xf]  ;;  %v722_v15 = vld [vmem:[%s6860_s28 + $0x878] sm:$0xf]  ;;  %719 = vst [vmem:[%s6867_s29 + $0x434] sm:$0xf] %v718_v13 }
  0xca   : > { %721 = vst [vmem:[%s6867_s29 + $0x438] sm:$0xf] %v720_v14  ;;  %723 = vst [vmem:[%s6867_s29 + $0x43c] sm:$0xf] %v722_v15  ;;  %v724_v16 = vld [vmem:[%s6860_s28 + $0x880] sm:$0xf] }
  0xcb   : > { %v726_v17 = vld [vmem:[%s6860_s28 + $0x888] sm:$0xf]  ;;  %v728_v18 = vld [vmem:[%s6860_s28 + $0x890] sm:$0xf]  ;;  %725 = vst [vmem:[%s6867_s29 + $0x440] sm:$0xf] %v724_v16 }
  0xcc   : > { %727 = vst [vmem:[%s6867_s29 + $0x444] sm:$0xf] %v726_v17  ;;  %729 = vst [vmem:[%s6867_s29 + $0x448] sm:$0xf] %v728_v18  ;;  %v730_v19 = vld [vmem:[%s6860_s28 + $0x898] sm:$0xf] }
  0xcd   : > { %v732_v20 = vld [vmem:[%s6860_s28 + $0x8a0] sm:$0xf]  ;;  %v734_v21 = vld [vmem:[%s6860_s28 + $0x8a8] sm:$0xf]  ;;  %731 = vst [vmem:[%s6867_s29 + $0x44c] sm:$0xf] %v730_v19 }
  0xce   : > { %733 = vst [vmem:[%s6867_s29 + $0x450] sm:$0xf] %v732_v20  ;;  %735 = vst [vmem:[%s6867_s29 + $0x454] sm:$0xf] %v734_v21  ;;  %v736_v22 = vld [vmem:[%s6860_s28 + $0x8b0] sm:$0xf] }
  0xcf   : > { %v738_v23 = vld [vmem:[%s6860_s28 + $0x8b8] sm:$0xf]  ;;  %v740_v24 = vld [vmem:[%s6860_s28 + $0x8c0] sm:$0xf]  ;;  %737 = vst [vmem:[%s6867_s29 + $0x458] sm:$0xf] %v736_v22 }
  0xd0   : > { %739 = vst [vmem:[%s6867_s29 + $0x45c] sm:$0xf] %v738_v23  ;;  %741 = vst [vmem:[%s6867_s29 + $0x460] sm:$0xf] %v740_v24  ;;  %v742_v25 = vld [vmem:[%s6860_s28 + $0x8c8] sm:$0xf] }
  0xd1   : > { %v744_v26 = vld [vmem:[%s6860_s28 + $0x8d0] sm:$0xf]  ;;  %v746_v27 = vld [vmem:[%s6860_s28 + $0x8d8] sm:$0xf]  ;;  %743 = vst [vmem:[%s6867_s29 + $0x464] sm:$0xf] %v742_v25 }
  0xd2   : > { %745 = vst [vmem:[%s6867_s29 + $0x468] sm:$0xf] %v744_v26  ;;  %747 = vst [vmem:[%s6867_s29 + $0x46c] sm:$0xf] %v746_v27  ;;  %v748_v28 = vld [vmem:[%s6860_s28 + $0x8e0] sm:$0xf] }
  0xd3   : > { %v750_v29 = vld [vmem:[%s6860_s28 + $0x8e8] sm:$0xf]  ;;  %v752_v30 = vld [vmem:[%s6860_s28 + $0x8f0] sm:$0xf]  ;;  %749 = vst [vmem:[%s6867_s29 + $0x470] sm:$0xf] %v748_v28 }
  0xd4   : > { %751 = vst [vmem:[%s6867_s29 + $0x474] sm:$0xf] %v750_v29  ;;  %753 = vst [vmem:[%s6867_s29 + $0x478] sm:$0xf] %v752_v30  ;;  %v754_v31 = vld [vmem:[%s6860_s28 + $0x8f8] sm:$0xf] }
  0xd5   : > { %v756_v32 = vld [vmem:[%s6860_s28 + $0x900] sm:$0xf]  ;;  %v758_v33 = vld [vmem:[%s6860_s28 + $0x908] sm:$0xf]  ;;  %755 = vst [vmem:[%s6867_s29 + $0x47c] sm:$0xf] %v754_v31 }
  0xd6   : > { %757 = vst [vmem:[%s6867_s29 + $0x480] sm:$0xf] %v756_v32  ;;  %759 = vst [vmem:[%s6867_s29 + $0x484] sm:$0xf] %v758_v33  ;;  %v760_v34 = vld [vmem:[%s6860_s28 + $0x910] sm:$0xf] }
  0xd7   : > { %v762_v35 = vld [vmem:[%s6860_s28 + $0x918] sm:$0xf]  ;;  %v764_v36 = vld [vmem:[%s6860_s28 + $0x920] sm:$0xf]  ;;  %761 = vst [vmem:[%s6867_s29 + $0x488] sm:$0xf] %v760_v34 }
  0xd8   : > { %763 = vst [vmem:[%s6867_s29 + $0x48c] sm:$0xf] %v762_v35  ;;  %765 = vst [vmem:[%s6867_s29 + $0x490] sm:$0xf] %v764_v36  ;;  %v766_v37 = vld [vmem:[%s6860_s28 + $0x928] sm:$0xf] }
  0xd9   : > { %v768_v38 = vld [vmem:[%s6860_s28 + $0x930] sm:$0xf]  ;;  %v770_v39 = vld [vmem:[%s6860_s28 + $0x938] sm:$0xf]  ;;  %767 = vst [vmem:[%s6867_s29 + $0x494] sm:$0xf] %v766_v37 }
  0xda   : > { %769 = vst [vmem:[%s6867_s29 + $0x498] sm:$0xf] %v768_v38  ;;  %771 = vst [vmem:[%s6867_s29 + $0x49c] sm:$0xf] %v770_v39  ;;  %v772_v40 = vld [vmem:[%s6860_s28 + $0x940] sm:$0xf] }
  0xdb   : > { %v774_v41 = vld [vmem:[%s6860_s28 + $0x948] sm:$0xf]  ;;  %v776_v42 = vld [vmem:[%s6860_s28 + $0x950] sm:$0xf]  ;;  %773 = vst [vmem:[%s6867_s29 + $0x4a0] sm:$0xf] %v772_v40 }
  0xdc   : > { %775 = vst [vmem:[%s6867_s29 + $0x4a4] sm:$0xf] %v774_v41  ;;  %777 = vst [vmem:[%s6867_s29 + $0x4a8] sm:$0xf] %v776_v42  ;;  %v778_v43 = vld [vmem:[%s6860_s28 + $0x958] sm:$0xf] }
  0xdd   : > { %v780_v44 = vld [vmem:[%s6860_s28 + $0x960] sm:$0xf]  ;;  %v782_v45 = vld [vmem:[%s6860_s28 + $0x968] sm:$0xf]  ;;  %779 = vst [vmem:[%s6867_s29 + $0x4ac] sm:$0xf] %v778_v43 }
  0xde   : > { %781 = vst [vmem:[%s6867_s29 + $0x4b0] sm:$0xf] %v780_v44  ;;  %783 = vst [vmem:[%s6867_s29 + $0x4b4] sm:$0xf] %v782_v45  ;;  %v784_v46 = vld [vmem:[%s6860_s28 + $0x970] sm:$0xf] }
  0xdf   : > { %v786_v47 = vld [vmem:[%s6860_s28 + $0x978] sm:$0xf]  ;;  %v788_v48 = vld [vmem:[%s6860_s28 + $0x980] sm:$0xf]  ;;  %785 = vst [vmem:[%s6867_s29 + $0x4b8] sm:$0xf] %v784_v46 }
  0xe0   : > { %787 = vst [vmem:[%s6867_s29 + $0x4bc] sm:$0xf] %v786_v47  ;;  %789 = vst [vmem:[%s6867_s29 + $0x4c0] sm:$0xf] %v788_v48  ;;  %v790_v49 = vld [vmem:[%s6860_s28 + $0x988] sm:$0xf] }
  0xe1   : > { %v792_v50 = vld [vmem:[%s6860_s28 + $0x990] sm:$0xf]  ;;  %v794_v51 = vld [vmem:[%s6860_s28 + $0x998] sm:$0xf]  ;;  %791 = vst [vmem:[%s6867_s29 + $0x4c4] sm:$0xf] %v790_v49 }
  0xe2   : > { %793 = vst [vmem:[%s6867_s29 + $0x4c8] sm:$0xf] %v792_v50  ;;  %795 = vst [vmem:[%s6867_s29 + $0x4cc] sm:$0xf] %v794_v51  ;;  %v796_v52 = vld [vmem:[%s6860_s28 + $0x9a0] sm:$0xf] }
  0xe3   : > { %v798_v53 = vld [vmem:[%s6860_s28 + $0x9a8] sm:$0xf]  ;;  %v800_v54 = vld [vmem:[%s6860_s28 + $0x9b0] sm:$0xf]  ;;  %797 = vst [vmem:[%s6867_s29 + $0x4d0] sm:$0xf] %v796_v52 }
  0xe4   : > { %799 = vst [vmem:[%s6867_s29 + $0x4d4] sm:$0xf] %v798_v53  ;;  %801 = vst [vmem:[%s6867_s29 + $0x4d8] sm:$0xf] %v800_v54  ;;  %v802_v55 = vld [vmem:[%s6860_s28 + $0x9b8] sm:$0xf] }
  0xe5   : > { %v804_v56 = vld [vmem:[%s6860_s28 + $0x9c0] sm:$0xf]  ;;  %v806_v57 = vld [vmem:[%s6860_s28 + $0x9c8] sm:$0xf]  ;;  %803 = vst [vmem:[%s6867_s29 + $0x4dc] sm:$0xf] %v802_v55 }
  0xe6   : > { %805 = vst [vmem:[%s6867_s29 + $0x4e0] sm:$0xf] %v804_v56  ;;  %807 = vst [vmem:[%s6867_s29 + $0x4e4] sm:$0xf] %v806_v57  ;;  %v808_v58 = vld [vmem:[%s6860_s28 + $0x9d0] sm:$0xf] }
  0xe7   : > { %v810_v59 = vld [vmem:[%s6860_s28 + $0x9d8] sm:$0xf]  ;;  %v812_v60 = vld [vmem:[%s6860_s28 + $0x9e0] sm:$0xf]  ;;  %809 = vst [vmem:[%s6867_s29 + $0x4e8] sm:$0xf] %v808_v58 }
  0xe8   : > { %811 = vst [vmem:[%s6867_s29 + $0x4ec] sm:$0xf] %v810_v59  ;;  %813 = vst [vmem:[%s6867_s29 + $0x4f0] sm:$0xf] %v812_v60  ;;  %v814_v61 = vld [vmem:[%s6860_s28 + $0x9e8] sm:$0xf] }
  0xe9   : > { %v816_v62 = vld [vmem:[%s6860_s28 + $0x9f0] sm:$0xf]  ;;  %v818_v63 = vld [vmem:[%s6860_s28 + $0x9f8] sm:$0xf]  ;;  %815 = vst [vmem:[%s6867_s29 + $0x4f4] sm:$0xf] %v814_v61 }
  0xea   : > { %817 = vst [vmem:[%s6867_s29 + $0x4f8] sm:$0xf] %v816_v62  ;;  %819 = vst [vmem:[%s6867_s29 + $0x4fc] sm:$0xf] %v818_v63  ;;  %v820_v0 = vld [vmem:[%s6860_s28 + $0xa00] sm:$0xf] }
  0xeb   : > { %v822_v1 = vld [vmem:[%s6860_s28 + $0xa08] sm:$0xf]  ;;  %v824_v2 = vld [vmem:[%s6860_s28 + $0xa10] sm:$0xf]  ;;  %821 = vst [vmem:[%s6867_s29 + $0x500] sm:$0xf] %v820_v0 }
  0xec   : > { %823 = vst [vmem:[%s6867_s29 + $0x504] sm:$0xf] %v822_v1  ;;  %825 = vst [vmem:[%s6867_s29 + $0x508] sm:$0xf] %v824_v2  ;;  %v826_v3 = vld [vmem:[%s6860_s28 + $0xa18] sm:$0xf] }
  0xed   : > { %v828_v4 = vld [vmem:[%s6860_s28 + $0xa20] sm:$0xf]  ;;  %v830_v5 = vld [vmem:[%s6860_s28 + $0xa28] sm:$0xf]  ;;  %827 = vst [vmem:[%s6867_s29 + $0x50c] sm:$0xf] %v826_v3 }
  0xee   : > { %829 = vst [vmem:[%s6867_s29 + $0x510] sm:$0xf] %v828_v4  ;;  %831 = vst [vmem:[%s6867_s29 + $0x514] sm:$0xf] %v830_v5  ;;  %v832_v6 = vld [vmem:[%s6860_s28 + $0xa30] sm:$0xf] }
  0xef   : > { %v834_v7 = vld [vmem:[%s6860_s28 + $0xa38] sm:$0xf]  ;;  %v836_v8 = vld [vmem:[%s6860_s28 + $0xa40] sm:$0xf]  ;;  %833 = vst [vmem:[%s6867_s29 + $0x518] sm:$0xf] %v832_v6 }
  0xf0   : > { %835 = vst [vmem:[%s6867_s29 + $0x51c] sm:$0xf] %v834_v7  ;;  %837 = vst [vmem:[%s6867_s29 + $0x520] sm:$0xf] %v836_v8  ;;  %v838_v9 = vld [vmem:[%s6860_s28 + $0xa48] sm:$0xf] }
  0xf1   : > { %v840_v10 = vld [vmem:[%s6860_s28 + $0xa50] sm:$0xf]  ;;  %v842_v11 = vld [vmem:[%s6860_s28 + $0xa58] sm:$0xf]  ;;  %839 = vst [vmem:[%s6867_s29 + $0x524] sm:$0xf] %v838_v9 }
  0xf2   : > { %841 = vst [vmem:[%s6867_s29 + $0x528] sm:$0xf] %v840_v10  ;;  %843 = vst [vmem:[%s6867_s29 + $0x52c] sm:$0xf] %v842_v11  ;;  %v844_v12 = vld [vmem:[%s6860_s28 + $0xa60] sm:$0xf] }
  0xf3   : > { %v846_v13 = vld [vmem:[%s6860_s28 + $0xa68] sm:$0xf]  ;;  %v848_v14 = vld [vmem:[%s6860_s28 + $0xa70] sm:$0xf]  ;;  %845 = vst [vmem:[%s6867_s29 + $0x530] sm:$0xf] %v844_v12 }
  0xf4   : > { %847 = vst [vmem:[%s6867_s29 + $0x534] sm:$0xf] %v846_v13  ;;  %849 = vst [vmem:[%s6867_s29 + $0x538] sm:$0xf] %v848_v14  ;;  %v850_v15 = vld [vmem:[%s6860_s28 + $0xa78] sm:$0xf] }
  0xf5   : > { %v852_v16 = vld [vmem:[%s6860_s28 + $0xa80] sm:$0xf]  ;;  %v854_v17 = vld [vmem:[%s6860_s28 + $0xa88] sm:$0xf]  ;;  %851 = vst [vmem:[%s6867_s29 + $0x53c] sm:$0xf] %v850_v15 }
  0xf6   : > { %853 = vst [vmem:[%s6867_s29 + $0x540] sm:$0xf] %v852_v16  ;;  %855 = vst [vmem:[%s6867_s29 + $0x544] sm:$0xf] %v854_v17  ;;  %v856_v18 = vld [vmem:[%s6860_s28 + $0xa90] sm:$0xf] }
  0xf7   : > { %v858_v19 = vld [vmem:[%s6860_s28 + $0xa98] sm:$0xf]  ;;  %v860_v20 = vld [vmem:[%s6860_s28 + $0xaa0] sm:$0xf]  ;;  %857 = vst [vmem:[%s6867_s29 + $0x548] sm:$0xf] %v856_v18 }
  0xf8   : > { %859 = vst [vmem:[%s6867_s29 + $0x54c] sm:$0xf] %v858_v19  ;;  %861 = vst [vmem:[%s6867_s29 + $0x550] sm:$0xf] %v860_v20  ;;  %v862_v21 = vld [vmem:[%s6860_s28 + $0xaa8] sm:$0xf] }
  0xf9   : > { %v864_v22 = vld [vmem:[%s6860_s28 + $0xab0] sm:$0xf]  ;;  %v866_v23 = vld [vmem:[%s6860_s28 + $0xab8] sm:$0xf]  ;;  %863 = vst [vmem:[%s6867_s29 + $0x554] sm:$0xf] %v862_v21 }
  0xfa   : > { %865 = vst [vmem:[%s6867_s29 + $0x558] sm:$0xf] %v864_v22  ;;  %867 = vst [vmem:[%s6867_s29 + $0x55c] sm:$0xf] %v866_v23  ;;  %v868_v24 = vld [vmem:[%s6860_s28 + $0xac0] sm:$0xf] }
  0xfb   : > { %v870_v25 = vld [vmem:[%s6860_s28 + $0xac8] sm:$0xf]  ;;  %v872_v26 = vld [vmem:[%s6860_s28 + $0xad0] sm:$0xf]  ;;  %869 = vst [vmem:[%s6867_s29 + $0x560] sm:$0xf] %v868_v24 }
  0xfc   : > { %871 = vst [vmem:[%s6867_s29 + $0x564] sm:$0xf] %v870_v25  ;;  %873 = vst [vmem:[%s6867_s29 + $0x568] sm:$0xf] %v872_v26  ;;  %v874_v27 = vld [vmem:[%s6860_s28 + $0xad8] sm:$0xf] }
  0xfd   : > { %v876_v28 = vld [vmem:[%s6860_s28 + $0xae0] sm:$0xf]  ;;  %v878_v29 = vld [vmem:[%s6860_s28 + $0xae8] sm:$0xf]  ;;  %875 = vst [vmem:[%s6867_s29 + $0x56c] sm:$0xf] %v874_v27 }
  0xfe   : > { %877 = vst [vmem:[%s6867_s29 + $0x570] sm:$0xf] %v876_v28  ;;  %879 = vst [vmem:[%s6867_s29 + $0x574] sm:$0xf] %v878_v29  ;;  %v880_v30 = vld [vmem:[%s6860_s28 + $0xaf0] sm:$0xf] }
  0xff   : > { %v882_v31 = vld [vmem:[%s6860_s28 + $0xaf8] sm:$0xf]  ;;  %v884_v32 = vld [vmem:[%s6860_s28 + $0xb00] sm:$0xf]  ;;  %881 = vst [vmem:[%s6867_s29 + $0x578] sm:$0xf] %v880_v30 }
 0x100   : > { %883 = vst [vmem:[%s6867_s29 + $0x57c] sm:$0xf] %v882_v31  ;;  %885 = vst [vmem:[%s6867_s29 + $0x580] sm:$0xf] %v884_v32  ;;  %v886_v33 = vld [vmem:[%s6860_s28 + $0xb08] sm:$0xf] }
 0x101   : > { %v888_v34 = vld [vmem:[%s6860_s28 + $0xb10] sm:$0xf]  ;;  %v890_v35 = vld [vmem:[%s6860_s28 + $0xb18] sm:$0xf]  ;;  %887 = vst [vmem:[%s6867_s29 + $0x584] sm:$0xf] %v886_v33 }
 0x102   : > { %889 = vst [vmem:[%s6867_s29 + $0x588] sm:$0xf] %v888_v34  ;;  %891 = vst [vmem:[%s6867_s29 + $0x58c] sm:$0xf] %v890_v35  ;;  %v892_v36 = vld [vmem:[%s6860_s28 + $0xb20] sm:$0xf] }
 0x103   : > { %v894_v37 = vld [vmem:[%s6860_s28 + $0xb28] sm:$0xf]  ;;  %v896_v38 = vld [vmem:[%s6860_s28 + $0xb30] sm:$0xf]  ;;  %893 = vst [vmem:[%s6867_s29 + $0x590] sm:$0xf] %v892_v36 }
 0x104   : > { %895 = vst [vmem:[%s6867_s29 + $0x594] sm:$0xf] %v894_v37  ;;  %897 = vst [vmem:[%s6867_s29 + $0x598] sm:$0xf] %v896_v38  ;;  %v898_v39 = vld [vmem:[%s6860_s28 + $0xb38] sm:$0xf] }
 0x105   : > { %v900_v40 = vld [vmem:[%s6860_s28 + $0xb40] sm:$0xf]  ;;  %v902_v41 = vld [vmem:[%s6860_s28 + $0xb48] sm:$0xf]  ;;  %899 = vst [vmem:[%s6867_s29 + $0x59c] sm:$0xf] %v898_v39 }
 0x106   : > { %901 = vst [vmem:[%s6867_s29 + $0x5a0] sm:$0xf] %v900_v40  ;;  %903 = vst [vmem:[%s6867_s29 + $0x5a4] sm:$0xf] %v902_v41  ;;  %v904_v42 = vld [vmem:[%s6860_s28 + $0xb50] sm:$0xf] }
 0x107   : > { %v906_v43 = vld [vmem:[%s6860_s28 + $0xb58] sm:$0xf]  ;;  %v908_v44 = vld [vmem:[%s6860_s28 + $0xb60] sm:$0xf]  ;;  %905 = vst [vmem:[%s6867_s29 + $0x5a8] sm:$0xf] %v904_v42 }
 0x108   : > { %907 = vst [vmem:[%s6867_s29 + $0x5ac] sm:$0xf] %v906_v43  ;;  %909 = vst [vmem:[%s6867_s29 + $0x5b0] sm:$0xf] %v908_v44  ;;  %v910_v45 = vld [vmem:[%s6860_s28 + $0xb68] sm:$0xf] }
 0x109   : > { %v912_v46 = vld [vmem:[%s6860_s28 + $0xb70] sm:$0xf]  ;;  %v914_v47 = vld [vmem:[%s6860_s28 + $0xb78] sm:$0xf]  ;;  %911 = vst [vmem:[%s6867_s29 + $0x5b4] sm:$0xf] %v910_v45 }
 0x10a   : > { %913 = vst [vmem:[%s6867_s29 + $0x5b8] sm:$0xf] %v912_v46  ;;  %915 = vst [vmem:[%s6867_s29 + $0x5bc] sm:$0xf] %v914_v47  ;;  %v916_v48 = vld [vmem:[%s6860_s28 + $0xb80] sm:$0xf] }
 0x10b   : > { %v918_v49 = vld [vmem:[%s6860_s28 + $0xb88] sm:$0xf]  ;;  %v920_v50 = vld [vmem:[%s6860_s28 + $0xb90] sm:$0xf]  ;;  %917 = vst [vmem:[%s6867_s29 + $0x5c0] sm:$0xf] %v916_v48 }
 0x10c   : > { %919 = vst [vmem:[%s6867_s29 + $0x5c4] sm:$0xf] %v918_v49  ;;  %921 = vst [vmem:[%s6867_s29 + $0x5c8] sm:$0xf] %v920_v50  ;;  %v922_v51 = vld [vmem:[%s6860_s28 + $0xb98] sm:$0xf] }
 0x10d   : > { %v924_v52 = vld [vmem:[%s6860_s28 + $0xba0] sm:$0xf]  ;;  %v926_v53 = vld [vmem:[%s6860_s28 + $0xba8] sm:$0xf]  ;;  %923 = vst [vmem:[%s6867_s29 + $0x5cc] sm:$0xf] %v922_v51 }
 0x10e   : > { %925 = vst [vmem:[%s6867_s29 + $0x5d0] sm:$0xf] %v924_v52  ;;  %927 = vst [vmem:[%s6867_s29 + $0x5d4] sm:$0xf] %v926_v53  ;;  %v928_v54 = vld [vmem:[%s6860_s28 + $0xbb0] sm:$0xf] }
 0x10f   : > { %v930_v55 = vld [vmem:[%s6860_s28 + $0xbb8] sm:$0xf]  ;;  %v932_v56 = vld [vmem:[%s6860_s28 + $0xbc0] sm:$0xf]  ;;  %929 = vst [vmem:[%s6867_s29 + $0x5d8] sm:$0xf] %v928_v54 }
 0x110   : > { %931 = vst [vmem:[%s6867_s29 + $0x5dc] sm:$0xf] %v930_v55  ;;  %933 = vst [vmem:[%s6867_s29 + $0x5e0] sm:$0xf] %v932_v56  ;;  %v934_v57 = vld [vmem:[%s6860_s28 + $0xbc8] sm:$0xf] }
 0x111   : > { %v936_v58 = vld [vmem:[%s6860_s28 + $0xbd0] sm:$0xf]  ;;  %v938_v59 = vld [vmem:[%s6860_s28 + $0xbd8] sm:$0xf]  ;;  %935 = vst [vmem:[%s6867_s29 + $0x5e4] sm:$0xf] %v934_v57 }
 0x112   : > { %937 = vst [vmem:[%s6867_s29 + $0x5e8] sm:$0xf] %v936_v58  ;;  %939 = vst [vmem:[%s6867_s29 + $0x5ec] sm:$0xf] %v938_v59  ;;  %v940_v60 = vld [vmem:[%s6860_s28 + $0xbe0] sm:$0xf] }
 0x113   : > { %v942_v61 = vld [vmem:[%s6860_s28 + $0xbe8] sm:$0xf]  ;;  %v944_v62 = vld [vmem:[%s6860_s28 + $0xbf0] sm:$0xf]  ;;  %941 = vst [vmem:[%s6867_s29 + $0x5f0] sm:$0xf] %v940_v60 }
 0x114   : > { %943 = vst [vmem:[%s6867_s29 + $0x5f4] sm:$0xf] %v942_v61  ;;  %945 = vst [vmem:[%s6867_s29 + $0x5f8] sm:$0xf] %v944_v62  ;;  %v946_v63 = vld [vmem:[%s6860_s28 + $0xbf8] sm:$0xf] }
 0x115   : > { %v948_v0 = vld [vmem:[%s6860_s28 + $0xc00] sm:$0xf]  ;;  %v950_v1 = vld [vmem:[%s6860_s28 + $0xc08] sm:$0xf]  ;;  %947 = vst [vmem:[%s6867_s29 + $0x5fc] sm:$0xf] %v946_v63 }
 0x116   : > { %949 = vst [vmem:[%s6867_s29 + $0x600] sm:$0xf] %v948_v0  ;;  %951 = vst [vmem:[%s6867_s29 + $0x604] sm:$0xf] %v950_v1  ;;  %v952_v2 = vld [vmem:[%s6860_s28 + $0xc10] sm:$0xf] }
 0x117   : > { %v954_v3 = vld [vmem:[%s6860_s28 + $0xc18] sm:$0xf]  ;;  %v956_v4 = vld [vmem:[%s6860_s28 + $0xc20] sm:$0xf]  ;;  %953 = vst [vmem:[%s6867_s29 + $0x608] sm:$0xf] %v952_v2 }
 0x118   : > { %955 = vst [vmem:[%s6867_s29 + $0x60c] sm:$0xf] %v954_v3  ;;  %957 = vst [vmem:[%s6867_s29 + $0x610] sm:$0xf] %v956_v4  ;;  %v958_v5 = vld [vmem:[%s6860_s28 + $0xc28] sm:$0xf] }
 0x119   : > { %v960_v6 = vld [vmem:[%s6860_s28 + $0xc30] sm:$0xf]  ;;  %v962_v7 = vld [vmem:[%s6860_s28 + $0xc38] sm:$0xf]  ;;  %959 = vst [vmem:[%s6867_s29 + $0x614] sm:$0xf] %v958_v5 }
 0x11a   : > { %961 = vst [vmem:[%s6867_s29 + $0x618] sm:$0xf] %v960_v6  ;;  %963 = vst [vmem:[%s6867_s29 + $0x61c] sm:$0xf] %v962_v7  ;;  %v964_v8 = vld [vmem:[%s6860_s28 + $0xc40] sm:$0xf] }
 0x11b   : > { %v966_v9 = vld [vmem:[%s6860_s28 + $0xc48] sm:$0xf]  ;;  %v968_v10 = vld [vmem:[%s6860_s28 + $0xc50] sm:$0xf]  ;;  %965 = vst [vmem:[%s6867_s29 + $0x620] sm:$0xf] %v964_v8 }
 0x11c   : > { %967 = vst [vmem:[%s6867_s29 + $0x624] sm:$0xf] %v966_v9  ;;  %969 = vst [vmem:[%s6867_s29 + $0x628] sm:$0xf] %v968_v10  ;;  %v970_v11 = vld [vmem:[%s6860_s28 + $0xc58] sm:$0xf] }
 0x11d   : > { %v972_v12 = vld [vmem:[%s6860_s28 + $0xc60] sm:$0xf]  ;;  %v974_v13 = vld [vmem:[%s6860_s28 + $0xc68] sm:$0xf]  ;;  %971 = vst [vmem:[%s6867_s29 + $0x62c] sm:$0xf] %v970_v11 }
 0x11e   : > { %973 = vst [vmem:[%s6867_s29 + $0x630] sm:$0xf] %v972_v12  ;;  %975 = vst [vmem:[%s6867_s29 + $0x634] sm:$0xf] %v974_v13  ;;  %v976_v14 = vld [vmem:[%s6860_s28 + $0xc70] sm:$0xf] }
 0x11f   : > { %v978_v15 = vld [vmem:[%s6860_s28 + $0xc78] sm:$0xf]  ;;  %977 = vst [vmem:[%s6867_s29 + $0x638] sm:$0xf] %v976_v14 }
 0x120   : > { %979 = vst [vmem:[%s6867_s29 + $0x63c] sm:$0xf] %v978_v15 }
 0x121 PF: > { %p5344_p8 = scmp.ge.s32.totalorder %s6788_s16, 1  ;;  %p1807_p9 = scmp.lt.s32.totalorder %s6788_s16, 3 }
 0x123   : > { %p1808_p10 = pnand %p5344_p8, %p1807_p9 }
 0x124   : > { %s1814_s30 = sand.u32 (!%p1808_p10), 1, %s6772_s12   ;;  %v6411_v16 = vld [vmem:[%s8444_s0 + $0x4] ss:$100 sps:$4 sm:$0xff] (!%p1808_p10)   ;;  %v6414_v17 = vld [vmem:[%s8444_s0 + $0xc] ss:$100 sps:$4 sm:$0xff] (!%p1808_p10)   ;;  %p1852_p11 = scmp.lt.s32.totalorder (!%p1808_p10), %s6780_s14, 1 }
 0x125   : > { %1811 = sbr.rel (%p1808_p10) target bundleno = 816 (0x330), region = 69  ;;  %4205 = vmatprep.mubr.bf16.mxu0 (!%p1808_p10), %v6411_v16  ;;  %4277 = vmatprep.mubr.bf16.mxu1 (!%p1808_p10), %v6414_v17  ;;  %v6409_v48 = vld [vmem:[%s8444_s0] ss:$100 sps:$4 sm:$0xff] (!%p1808_p10)   ;;  %v6412_v50 = vld [vmem:[%s8444_s0 + $0x8] ss:$100 sps:$4 sm:$0xff] (!%p1808_p10)   ;;  %vm6791_vm0 = vmmov (!%p1808_p10), 0  }
 0x126   : > { %s6333_s4 = smul.u32 (!%p1808_p10), 1600, %s1814_s30  ;;  %v6419_v52 = vld [vmem:[%s8444_s0 + $0xcc] ss:$100 sps:$4 sm:$0xff] (!%p1808_p10)   ;;  %v6421_v57 = vld [vmem:[%s8444_s0 + $0xd4] ss:$100 sps:$4 sm:$0xff] (!%p1808_p10)  }
 0x127   : > { %v6423_v58 = vld [vmem:[%s8444_s0 + $0xc8] ss:$100 sps:$4 sm:$0xff] (!%p1808_p10)   ;;  %v6424_v59 = vld [vmem:[%s8444_s0 + $0xd0] ss:$100 sps:$4 sm:$0xff] (!%p1808_p10)   ;;  %v6433_v3 = vld [vmem:[%s8444_s0 + $0x19c] ss:$100 sps:$4 sm:$0xff] (!%p1808_p10)  }
 0x128   : > { %s7675_s9 = scalar_lea.vmem (!%p1808_p10), [#allocation2], %s6333_s4  ;;  %v6431_v2 = vld [vmem:[%s8444_s0 + $0x194] ss:$100 sps:$4 sm:$0xff] (!%p1808_p10)   ;;  %v6445_v14 = vld [vmem:[%s8444_s0 + $0x25c] ss:$100 sps:$4 sm:$0xff] (!%p1808_p10)   ;;  %s6334_s20 = smul.u32 (!%p1808_p10), 36, %s1814_s30 }
 0x129   : > { %v6377_v18 = vld [vmem:[%s7675_s9 + $0x40] sm:$0xff] (!%p1808_p10)   ;;  %v6381_v22 = vld [vmem:[%s7675_s9 + $0x48] sm:$0xff] (!%p1808_p10)   ;;  %v6385_v26 = vld [vmem:[%s7675_s9 + $0x50] sm:$0xff] (!%p1808_p10)  }
 0x12a   : > { %v6378_v19 = vld [vmem:[%s7675_s9 + $0xc0] sm:$0xff] (!%p1808_p10)   ;;  %5715 = vmatprep.subr.bf16.mxu0 (!%p1808_p10), %v6377_v18  ;;  %v6382_v23 = vld [vmem:[%s7675_s9 + $0xc8] sm:$0xff] (!%p1808_p10)   ;;  %v6386_v27 = vld [vmem:[%s7675_s9 + $0xd0] sm:$0xff] (!%p1808_p10)   ;;  %s8403_s23 = scalar_lea.vmem (!%p1808_p10), [#allocation3], %s6334_s20 }
 0x12b   : > { %v6379_v20 = vld [vmem:[%s7675_s9] sm:$0xff] (!%p1808_p10)   ;;  %5761 = vmatprep.subr.bf16.mxu1 (!%p1808_p10), %v6378_v19  ;;  %v6383_v24 = vld [vmem:[%s7675_s9 + $0x8] sm:$0xff] (!%p1808_p10)   ;;  %v6387_v28 = vld [vmem:[%s7675_s9 + $0x10] sm:$0xff] (!%p1808_p10)  }
 0x12c   : > { %v6380_v21 = vld [vmem:[%s7675_s9 + $0x80] sm:$0xff]   ;;  %5716 = vmatpush3.bf16.msra.mxu0 %v6379_v20  ;;  %v6384_v25 = vld [vmem:[%s7675_s9 + $0x88] sm:$0xff]   ;;  %v6388_v29 = vld [vmem:[%s7675_s9 + $0x90] sm:$0xff]   ;;  %s1853_s4 = scalar_select %p1852_p11, %s6780_s14, 1 }
 0x12d   : > { %5762 = vmatpush3.bf16.msra.mxu1 %v6380_v21  ;;  %5717 = vmatprep.subr.bf16.mxu0 %v6381_v22  ;;  %v6389_v30 = vld [vmem:[%s7675_s9 + $0x58] sm:$0xff]   ;;  %v6393_v34 = vld [vmem:[%s7675_s9 + $0x60] sm:$0xff]   ;;  %v6397_v38 = vld [vmem:[%s7675_s9 + $0x68] sm:$0xff]   ;;  %s5680_s12 = sshll.u32 (%p6847_p6), %s6780_s14, 2 }
 0x12e   : > { %5763 = vmatprep.subr.bf16.mxu1 %v6382_v23  ;;  %v6390_v31 = vld [vmem:[%s7675_s9 + $0xd8] sm:$0xff]   ;;  %v6394_v35 = vld [vmem:[%s7675_s9 + $0xe0] sm:$0xff]   ;;  %v6398_v39 = vld [vmem:[%s7675_s9 + $0xe8] sm:$0xff]   ;;  %s1854_s18 = scalar_lea.vmem %s8446_s2, %s1853_s4  ;;  %s5175_s25 = scalar_lea.vmem (%p6847_p6), %s8447_s3, %s5680_s12 }
 0x12f   : > { %v6391_v32 = vld [vmem:[%s7675_s9 + $0x18] sm:$0xff]   ;;  %v6395_v36 = vld [vmem:[%s7675_s9 + $0x20] sm:$0xff]   ;;  %v6399_v40 = vld [vmem:[%s7675_s9 + $0x28] sm:$0xff]  }
 0x130   : > { %5718 = vmatpush3.bf16.msra.mxu0 %v6383_v24  ;;  %v6392_v33 = vld [vmem:[%s7675_s9 + $0x98] sm:$0xff]   ;;  %v6396_v37 = vld [vmem:[%s7675_s9 + $0xa0] sm:$0xff]   ;;  %v6400_v41 = vld [vmem:[%s7675_s9 + $0xa8] sm:$0xff]  }
 0x131   : > { %5764 = vmatpush3.bf16.msra.mxu1 %v6384_v25  ;;  %5719 = vmatprep.subr.bf16.mxu0 %v6385_v26  ;;  %v6401_v42 = vld [vmem:[%s7675_s9 + $0x70] sm:$0xff]   ;;  %v6405_v46 = vld [vmem:[%s7675_s9 + $0x78] sm:$0xff]   ;;  %v6415_v53 = vld [vmem:[%s7675_s9 + $0x140] sm:$0xff]  }
 0x132   : > { %5765 = vmatprep.subr.bf16.mxu1 %v6386_v27  ;;  %v6402_v43 = vld [vmem:[%s7675_s9 + $0xf0] sm:$0xff]   ;;  %v6406_v47 = vld [vmem:[%s7675_s9 + $0xf8] sm:$0xff]   ;;  %v6416_v54 = vld [vmem:[%s7675_s9 + $0x100] sm:$0xff]  }
 0x133   : > { %v6403_v44 = vld [vmem:[%s7675_s9 + $0x30] sm:$0xff]   ;;  %v6407_v49 = vld [vmem:[%s7675_s9 + $0x38] sm:$0xff]   ;;  %v6417_v55 = vld [vmem:[%s7675_s9 + $0x148] sm:$0xff]  }
 0x134   : > { %5720 = vmatpush3.bf16.msra.mxu0 %v6387_v28  ;;  %v6404_v45 = vld [vmem:[%s7675_s9 + $0xb0] sm:$0xff]   ;;  %v6408_v51 = vld [vmem:[%s7675_s9 + $0xb8] sm:$0xff]   ;;  %v6418_v56 = vld [vmem:[%s7675_s9 + $0x108] sm:$0xff]  }
 0x135   : > { %5766 = vmatpush3.bf16.msra.mxu1 %v6388_v29  ;;  %5721 = vmatprep.subr.bf16.mxu0 %v6389_v30  ;;  %v6425_v60 = vld [vmem:[%s7675_s9 + $0x1c0] sm:$0xff]   ;;  %v6427_v62 = vld [vmem:[%s7675_s9 + $0x150] sm:$0xff]   ;;  %v6429_v0 = vld [vmem:[%s7675_s9 + $0x1c8] sm:$0xff]  }
 0x136   : > { %5767 = vmatprep.subr.bf16.mxu1 %v6390_v31  ;;  %v6426_v61 = vld [vmem:[%s7675_s9 + $0x180] sm:$0xff]   ;;  %v6428_v63 = vld [vmem:[%s7675_s9 + $0x110] sm:$0xff]   ;;  %v6430_v1 = vld [vmem:[%s7675_s9 + $0x188] sm:$0xff]  }
 0x137   : > { %v6435_v4 = vld [vmem:[%s7675_s9 + $0x158] sm:$0xff]   ;;  %v6436_v5 = vld [vmem:[%s8444_s0 + $0x190] ss:$100 sps:$4 sm:$0xff]   ;;  %v6441_v10 = vld [vmem:[%s7675_s9 + $0x160] sm:$0xff]  }
 0x138   : > { %5722 = vmatpush3.bf16.msra.mxu0 %v6391_v32  ;;  %v6437_v6 = vld [vmem:[%s8444_s0 + $0x198] ss:$100 sps:$4 sm:$0xff]   ;;  %v6439_v8 = vld [vmem:[%s7675_s9 + $0x1d0] sm:$0xff]   ;;  %v6443_v12 = vld [vmem:[%s7675_s9 + $0x120] sm:$0xff]  }
 0x139   : > { %5768 = vmatpush3.bf16.msra.mxu1 %v6392_v33  ;;  %5723 = vmatprep.subr.bf16.mxu0 %v6393_v34  ;;  %v6438_v7 = vld [vmem:[%s7675_s9 + $0x118] sm:$0xff]   ;;  %v6440_v9 = vld [vmem:[%s7675_s9 + $0x190] sm:$0xff]   ;;  %v6447_v15 = vld [vmem:[%s8444_s0 + $0x264] ss:$100 sps:$4 sm:$0xff]  }
 0x13a   : > { %5769 = vmatprep.subr.bf16.mxu1 %v6394_v35  ;;  %v6442_v11 = vld [vmem:[%s7675_s9 + $0x1d8] sm:$0xff]   ;;  %v6450_v17 = vld [vmem:[%s8444_s0 + $0x260] ss:$100 sps:$4 sm:$0xff]   ;;  %v6452_v19 = vld [vmem:[%s7675_s9 + $0x168] sm:$0xff]  }
 0x13b   : > { %v6444_v13 = vld [vmem:[%s7675_s9 + $0x198] sm:$0xff]   ;;  %v6451_v18 = vld [vmem:[%s7675_s9 + $0x1e0] sm:$0xff]   ;;  %v6454_v21 = vld [vmem:[%s7675_s9 + $0x128] sm:$0xff]  }
 0x13c   : > { %5724 = vmatpush3.bf16.msra.mxu0 %v6395_v36  ;;  %v6449_v16 = vld [vmem:[%s8444_s0 + $0x258] ss:$100 sps:$4 sm:$0xff]   ;;  %v6453_v20 = vld [vmem:[%s7675_s9 + $0x1a0] sm:$0xff]   ;;  %v6455_v22 = vld [vmem:[%s7675_s9 + $0x1e8] sm:$0xff]  }
 0x13d   : > { %5770 = vmatpush3.bf16.msra.mxu1 %v6396_v37  ;;  %5725 = vmatprep.subr.bf16.mxu0 %v6397_v38  ;;  %v6456_v23 = vld [vmem:[%s7675_s9 + $0x1a8] sm:$0xff]   ;;  %v6457_v24 = vld [vmem:[%s7675_s9 + $0x170] sm:$0xff]   ;;  %v1961_v25 = vld [vmem:[%s8444_s0 + $0x320] sm:$0xff] }
 0x13e   : > { %5771 = vmatprep.subr.bf16.mxu1 %v6398_v39  ;;  %v5447_v26 = vcombine.high %v1961_v25, %v1961_v25  ;;  %v1962_v27 = vld [vmem:[%s8444_s0 + $0x328] sm:$0xff]  ;;  %v5446_v28 = vcombine.low %v1961_v25, %v1961_v25  ;;  %v6460_v30 = vld [vmem:[%s7675_s9 + $0x130] sm:$0xff]   ;;  %v6465_v34 = vld [vmem:[%s7675_s9 + $0x178] sm:$0xff]  }
 0x13f   : > { %v5449_v29 = vcombine.high %v1962_v27, %v1962_v27  ;;  %v5448_v31 = vcombine.low %v1962_v27, %v1962_v27  ;;  %v6463_v32 = vld [vmem:[%s7675_s9 + $0x1f0] sm:$0xff]   ;;  %v6466_v35 = vld [vmem:[%s7675_s9 + $0x138] sm:$0xff]  }
 0x140   : > { %5726 = vmatpush3.bf16.msra.mxu0 %v6399_v40  ;;  %v6464_v33 = vld [vmem:[%s7675_s9 + $0x1b0] sm:$0xff]   ;;  %v6467_v36 = vld [vmem:[%s7675_s9 + $0x1f8] sm:$0xff]  }
 0x141   : > { %5772 = vmatpush3.bf16.msra.mxu1 %v6400_v41  ;;  %5727 = vmatprep.subr.bf16.mxu0 %v6401_v42  ;;  %v6468_v37 = vld [vmem:[%s7675_s9 + $0x1b8] sm:$0xff]   ;;  %v6469_v38 = vld [vmem:[%s8444_s0 + $0x10] ss:$100 sps:$4 sm:$0xff]   ;;  %v6475_v42 = vld [vmem:[%s7675_s9 + $0x240] sm:$0xff]  }
 0x142   : > { %5773 = vmatprep.subr.bf16.mxu1 %v6402_v43  ;;  %v6471_v39 = vld [vmem:[%s8444_s0 + $0x14] ss:$100 sps:$4 sm:$0xff]   ;;  %v6474_v41 = vld [vmem:[%s8444_s0 + $0x1c] ss:$100 sps:$4 sm:$0xff]  }
 0x143   : > { %v6472_v40 = vld [vmem:[%s8444_s0 + $0x18] ss:$100 sps:$4 sm:$0xff]   ;;  %v6476_v43 = vld [vmem:[%s7675_s9 + $0x200] sm:$0xff]  }
 0x144   : > { %5728 = vmatpush3.bf16.msra.mxu0 %v6403_v44  ;;  %v6477_v44 = vld [vmem:[%s7675_s9 + $0x248] sm:$0xff]   ;;  %v6526_v25 = vld [vmem:[%s7675_s9 + $0x238] sm:$0xff]  }
 0x145   : > { %5774 = vmatpush3.bf16.msra.mxu1 %v6404_v45  ;;  %5729 = vmatprep.subr.bf16.mxu0 %v6405_v46  ;;  %v6478_v45 = vld [vmem:[%s7675_s9 + $0x208] sm:$0xff]   ;;  %v6479_v46 = vld [vmem:[%s8444_s0 + $0xdc] ss:$100 sps:$4 sm:$0xff]  }
 0x146   : > { %5775 = vmatprep.subr.bf16.mxu1 %v6406_v47  ;;  %v6481_v47 = vld [vmem:[%s8444_s0 + $0xe4] ss:$100 sps:$4 sm:$0xff]   ;;  %v6528_v27 = vld [vmem:[%s7675_s9 + $0x2b8] sm:$0xff]  }
 0x148   : > { %5730 = vmatpush3.bf16.msra.mxu0 %v6407_v49  ;;  %v6484_v49 = vld [vmem:[%s8444_s0 + $0xe0] ss:$100 sps:$4 sm:$0xff]  }
 0x149   : > { %5776 = vmatpush3.bf16.msra.mxu1 %v6408_v51  ;;  %5807 = vmatprep.subr.bf16.mxu0 %v6415_v53  ;;  %v6486_v51 = vld [vmem:[%s7675_s9 + $0x280] sm:$0xff]   ;;  %v6488_v53 = vld [vmem:[%s7675_s9 + $0x210] sm:$0xff]  }
 0x14a   : > { %5853 = vmatprep.subr.bf16.mxu1 %v6425_v60  ;;  %v6497_v60 = vld [vmem:[%s8444_s0 + $0x1a8] ss:$100 sps:$4 sm:$0xff]  }
 0x14b   : > { %4206 = vmatmul.mubr.bf16.vlgmr.msra.gmra.mrb[0].mxu0 %v6409_v48  ;;  %v6483_v48 = vld [vmem:[%s8444_s0 + $0xd8] ss:$100 sps:$4 sm:$0xff]  }
 0x14c   : > { %4278 = vmatmul.mubr.bf16.vlgmr.msra.gmra.mrb[0].mxu1 %v6412_v50  ;;  %5808 = vmatpush3.bf16.msra.mxu0 %v6416_v54  ;;  %v6485_v50 = vld [vmem:[%s7675_s9 + $0x2c0] sm:$0xff]   ;;  %v6489_v54 = vld [vmem:[%s7675_s9 + $0x2c8] sm:$0xff]  }
 0x14d   : > { %5809 = vmatprep.subr.bf16.mxu0 %v6417_v55  ;;  %4213 = vmatprep.mubr.bf16.mxu0 %v6419_v52  ;;  %v6487_v52 = vld [vmem:[%s7675_s9 + $0x250] sm:$0xff]   ;;  %v6490_v55 = vld [vmem:[%s7675_s9 + $0x288] sm:$0xff]  }
 0x14e   : > { %4285 = vmatprep.mubr.bf16.mxu1 %v6421_v57  ;;  %5854 = vmatpush3.bf16.msra.mxu1 %v6426_v61  ;;  %v6493_v57 = vld [vmem:[%s8444_s0 + $0x1ac] ss:$100 sps:$4 sm:$0xff]   ;;  %v6498_v61 = vld [vmem:[%s7675_s9 + $0x218] sm:$0xff]  }
 0x14f   : > { %5855 = vmatprep.subr.bf16.mxu1 %v6429_v0  ;;  %v6501_v0 = vld [vmem:[%s7675_s9 + $0x260] sm:$0xff]  }
 0x150   : > { %5810 = vmatpush3.bf16.msra.mxu0 %v6418_v56  ;;  %v6491_v56 = vld [vmem:[%s8444_s0 + $0x1a4] ss:$100 sps:$4 sm:$0xff]  }
 0x151   : > { %5811 = vmatprep.subr.bf16.mxu0 %v6427_v62  ;;  %v6499_v62 = vld [vmem:[%s7675_s9 + $0x2d0] sm:$0xff]  }
 0x152   : > { %5856 = vmatpush3.bf16.msra.mxu1 %v6430_v1  ;;  %v6502_v1 = vld [vmem:[%s7675_s9 + $0x2d8] sm:$0xff]  }
 0x153   : > { %4214 = vmatmul.mubr.bf16.gmra.mrb[4].mxu0 %v6423_v58  ;;  %5857 = vmatprep.subr.bf16.mxu1 %v6439_v8  ;;  %v6495_v58 = vld [vmem:[%s7675_s9 + $0x258] sm:$0xff]   ;;  %v6511_v8 = vld [vmem:[%s7675_s9 + $0x2e0] sm:$0xff]  }
 0x154   : > { %4286 = vmatmul.mubr.bf16.gmra.mrb[4].mxu1 %v6424_v59  ;;  %5812 = vmatpush3.bf16.msra.mxu0 %v6428_v63  ;;  %v6496_v59 = vld [vmem:[%s8444_s0 + $0x1a0] ss:$100 sps:$4 sm:$0xff]   ;;  %v6500_v63 = vld [vmem:[%s7675_s9 + $0x290] sm:$0xff]  }
 0x155   : > { %4221 = vmatprep.mubr.bf16.mxu0 %v6431_v2  ;;  %4293 = vmatprep.mubr.bf16.mxu1 %v6433_v3  ;;  %v6503_v2 = vld [vmem:[%s7675_s9 + $0x220] sm:$0xff]   ;;  %v6504_v3 = vld [vmem:[%s7675_s9 + $0x298] sm:$0xff]  }
 0x156   : > { %5813 = vmatprep.subr.bf16.mxu0 %v6435_v4  ;;  %5858 = vmatpush3.bf16.msra.mxu1 %v6440_v9  ;;  %v6505_v4 = vld [vmem:[%s8444_s0 + $0x26c] ss:$100 sps:$4 sm:$0xff]  }
 0x157   : > { %5859 = vmatprep.subr.bf16.mxu1 %v6442_v11  ;;  %v6512_v9 = vld [vmem:[%s7675_s9 + $0x268] sm:$0xff]  }
 0x158   : > { %5814 = vmatpush3.bf16.msra.mxu0 %v6438_v7  ;;  %v6510_v7 = vld [vmem:[%s8444_s0 + $0x270] ss:$100 sps:$4 sm:$0xff]   ;;  %v6514_v11 = vld [vmem:[%s7675_s9 + $0x228] sm:$0xff]  }
 0x159   : > { %5815 = vmatprep.subr.bf16.mxu0 %v6441_v10  ;;  %v6513_v10 = vld [vmem:[%s7675_s9 + $0x2a0] sm:$0xff]  }
 0x15a   : > { %5860 = vmatpush3.bf16.msra.mxu1 %v6444_v13  ;;  %v6516_v13 = vld [vmem:[%s7675_s9 + $0x2a8] sm:$0xff]  }
 0x15b   : > { %4222 = vmatmul.mubr.bf16.gmra.mrb[8].mxu0 %v6436_v5  ;;  %5861 = vmatprep.subr.bf16.mxu1 %v6451_v18  ;;  %v6507_v5 = vld [vmem:[%s8444_s0 + $0x274] ss:$100 sps:$4 sm:$0xff]  }
 0x15c   : > { %4294 = vmatmul.mubr.bf16.gmra.mrb[8].mxu1 %v6437_v6  ;;  %5816 = vmatpush3.bf16.msra.mxu0 %v6443_v12  ;;  %v6509_v6 = vld [vmem:[%s8444_s0 + $0x268] ss:$100 sps:$4 sm:$0xff]  }
 0x15d   : > { %4229 = vmatprep.mubr.bf16.mxu0 %v6445_v14  ;;  %4301 = vmatprep.mubr.bf16.mxu1 %v6447_v15  ;;  %v6515_v12 = vld [vmem:[%s7675_s9 + $0x2e8] sm:$0xff]   ;;  %v6517_v14 = vld [vmem:[%s7675_s9 + $0x270] sm:$0xff]  }
 0x15e   : > { %5817 = vmatprep.subr.bf16.mxu0 %v6452_v19  ;;  %5862 = vmatpush3.bf16.msra.mxu1 %v6453_v20  ;;  %v1963_v15 = vld [vmem:[%s8444_s0 + $0x330] sm:$0xff] }
 0x15f   : > { %5863 = vmatprep.subr.bf16.mxu1 %v6455_v22  ;;  %v6520_v19 = vld [vmem:[%s7675_s9 + $0x230] sm:$0xff]   ;;  %v5450_v20 = vcombine.low %v1963_v15, %v1963_v15 }
 0x160   : > { %5818 = vmatpush3.bf16.msra.mxu0 %v6454_v21  ;;  %v6523_v22 = vld [vmem:[%s7675_s9 + $0x2f0] sm:$0xff]  }
 0x161   : > { %5819 = vmatprep.subr.bf16.mxu0 %v6457_v24  ;;  %v6525_v24 = vld [vmem:[%s7675_s9 + $0x278] sm:$0xff]  }
 0x162   : > { %5864 = vmatpush3.bf16.msra.mxu1 %v6456_v23  ;;  %v6524_v23 = vld [vmem:[%s7675_s9 + $0x2b0] sm:$0xff]  }
 0x163   : > { %4230 = vmatmul.mubr.bf16.gmra.mrb[12].mxu0 %v6449_v16  ;;  %5865 = vmatprep.subr.bf16.mxu1 %v6463_v32  ;;  %v1964_v16 = vld [vmem:[%s8444_s0 + $0x338] sm:$0xff]  ;;  %v6535_v32 = vld [vmem:[%s7675_s9 + $0x340] sm:$0xff]  }
 0x164   : > { %4302 = vmatmul.mubr.bf16.gmra.mrb[12].mxu1 %v6450_v17  ;;  %4237 = vmatprep.mubr.bf16.mxu0 %v5447_v26  ;;  %v5451_v17 = vcombine.high %v1963_v15, %v1963_v15  ;;  %v5453_v18 = vcombine.high %v1964_v16, %v1964_v16  ;;  %v5452_v21 = vcombine.low %v1964_v16, %v1964_v16  ;;  %v6527_v26 = vld [vmem:[%s7675_s9 + $0x2f8] sm:$0xff]  }
 0x165   : > { %4309 = vmatprep.mubr.bf16.mxu1 %v5449_v29  ;;  %5820 = vmatpush3.bf16.msra.mxu0 %v6460_v30  ;;  %v6531_v29 = vld [vmem:[%s8444_s0 + $0x24] ss:$100 sps:$4 sm:$0xff]   ;;  %v6586_v15 = vld [vmem:[%s7675_s9 + $0x338] sm:$0xff]  }
 0x166   : > { %5866 = vmatpush3.bf16.msra.mxu1 %v6464_v33  ;;  %5821 = vmatprep.subr.bf16.mxu0 %v6465_v34  ;;  %v6532_v30 = vld [vmem:[%s8444_s0 + $0x28] ss:$100 sps:$4 sm:$0xff]   ;;  %v6536_v33 = vld [vmem:[%s7675_s9 + $0x300] sm:$0xff]   ;;  %v6587_v16 = vld [vmem:[%s7675_s9 + $0x3f8] sm:$0xff]  }
 0x167   : > { %5867 = vmatprep.subr.bf16.mxu1 %v6467_v36  ;;  %v6537_v34 = vld [vmem:[%s7675_s9 + $0x348] sm:$0xff]  }
 0x168   : > { %v6539_v36 = vld [vmem:[%s8444_s0 + $0xec] ss:$100 sps:$4 sm:$0xff]  }
 0x169   : > { %5822 = vmatpush3.bf16.msra.mxu0 %v6466_v35  ;;  %v6538_v35 = vld [vmem:[%s7675_s9 + $0x308] sm:$0xff]  }
 0x16a   : > { %5868 = vmatpush3.bf16.msra.mxu1 %v6468_v37  ;;  %5899 = vmatprep.subr.bf16.mxu0 %v6475_v42  ;;  %v6541_v37 = vld [vmem:[%s8444_s0 + $0xf4] ss:$100 sps:$4 sm:$0xff]  }
 0x16b   : > { %4238 = vmatmul.mubr.bf16.gmra.mrb[16].mxu0 %v5446_v28  ;;  %5945 = vmatprep.subr.bf16.mxu1 %v6485_v50  ;;  %v6529_v28 = vld [vmem:[%s8444_s0 + $0x20] ss:$100 sps:$4 sm:$0xff]   ;;  %v6547_v42 = vld [vmem:[%s7675_s9 + $0x350] sm:$0xff]   ;;  %v6557_v50 = vld [vmem:[%s8444_s0 + $0x1b8] ss:$100 sps:$4 sm:$0xff]  }
 0x16c   : > { %4310 = vmatmul.mubr.bf16.gmra.mrb[16].mxu1 %v5448_v31  ;;  %4349 = vmatprep.mubr.bf16.mxu0 %v6471_v39  ;;  %v6534_v31 = vld [vmem:[%s8444_s0 + $0x2c] ss:$100 sps:$4 sm:$0xff]  }
 0x16d   : > { %4421 = vmatprep.mubr.bf16.mxu1 %v6474_v41  ;;  %v6544_v39 = vld [vmem:[%s8444_s0 + $0xf0] ss:$100 sps:$4 sm:$0xff]   ;;  %v6546_v41 = vld [vmem:[%s7675_s9 + $0x380] sm:$0xff]  }
 0x173   : > { %4350 = vmatmul.mubr.bf16.vlgmr.msra.gmra.mrb[20].mxu0 %v6469_v38  ;;  %v6543_v38 = vld [vmem:[%s8444_s0 + $0xe8] ss:$100 sps:$4 sm:$0xff]  }
 0x174   : > { %4422 = vmatmul.mubr.bf16.vlgmr.msra.gmra.mrb[20].mxu1 %v6472_v40  ;;  %5900 = vmatpush3.bf16.msra.mxu0 %v6476_v43  ;;  %v6545_v40 = vld [vmem:[%s7675_s9 + $0x3c0] sm:$0xff]   ;;  %v6548_v43 = vld [vmem:[%s7675_s9 + $0x310] sm:$0xff]  }
 0x175   : > { %5901 = vmatprep.subr.bf16.mxu0 %v6477_v44  ;;  %4357 = vmatprep.mubr.bf16.mxu0 %v6479_v46  ;;  %v6549_v44 = vld [vmem:[%s7675_s9 + $0x3c8] sm:$0xff]   ;;  %v6551_v46 = vld [vmem:[%s8444_s0 + $0x1b4] ss:$100 sps:$4 sm:$0xff]  }
 0x176   : > { %4429 = vmatprep.mubr.bf16.mxu1 %v6481_v47  ;;  %5946 = vmatpush3.bf16.msra.mxu1 %v6486_v51  ;;  %v6553_v47 = vld [vmem:[%s8444_s0 + $0x1bc] ss:$100 sps:$4 sm:$0xff]  }
 0x177   : > { %5947 = vmatprep.subr.bf16.mxu1 %v6489_v54  ;;  %v6558_v51 = vld [vmem:[%s7675_s9 + $0x318] sm:$0xff]   ;;  %v6561_v54 = vld [vmem:[%s7675_s9 + $0x360] sm:$0xff]  }
 0x178   : > { %5902 = vmatpush3.bf16.msra.mxu0 %v6478_v45  ;;  %v6550_v45 = vld [vmem:[%s7675_s9 + $0x388] sm:$0xff]  }
 0x179   : > { %5903 = vmatprep.subr.bf16.mxu0 %v6487_v52  ;;  %v6559_v52 = vld [vmem:[%s7675_s9 + $0x3d0] sm:$0xff]  }
 0x17a   : > { %5948 = vmatpush3.bf16.msra.mxu1 %v6490_v55  ;;  %v6562_v55 = vld [vmem:[%s7675_s9 + $0x3d8] sm:$0xff]  }
 0x17b   : > { %4358 = vmatmul.mubr.bf16.gmra.mrb[24].mxu0 %v6483_v48  ;;  %5949 = vmatprep.subr.bf16.mxu1 %v6499_v62  ;;  %v6555_v48 = vld [vmem:[%s7675_s9 + $0x358] sm:$0xff]   ;;  %v6571_v62 = vld [vmem:[%s7675_s9 + $0x3e0] sm:$0xff]  }
 0x17c   : > { %4430 = vmatmul.mubr.bf16.gmra.mrb[24].mxu1 %v6484_v49  ;;  %5904 = vmatpush3.bf16.msra.mxu0 %v6488_v53  ;;  %v6556_v49 = vld [vmem:[%s8444_s0 + $0x1b0] ss:$100 sps:$4 sm:$0xff]  }
 0x17d   : > { %4365 = vmatprep.mubr.bf16.mxu0 %v6491_v56  ;;  %4437 = vmatprep.mubr.bf16.mxu1 %v6493_v57  ;;  %v6560_v53 = vld [vmem:[%s7675_s9 + $0x390] sm:$0xff]   ;;  %v6563_v56 = vld [vmem:[%s7675_s9 + $0x320] sm:$0xff]   ;;  %v6564_v57 = vld [vmem:[%s7675_s9 + $0x398] sm:$0xff]  }
 0x17e   : > { %5905 = vmatprep.subr.bf16.mxu0 %v6495_v58  ;;  %5950 = vmatpush3.bf16.msra.mxu1 %v6500_v63  ;;  %v6565_v58 = vld [vmem:[%s8444_s0 + $0x27c] ss:$100 sps:$4 sm:$0xff]   ;;  %v6572_v63 = vld [vmem:[%s7675_s9 + $0x368] sm:$0xff]  }
 0x17f   : > { %5951 = vmatprep.subr.bf16.mxu1 %v6502_v1  ;;  %v6574_v1 = vld [vmem:[%s7675_s9 + $0x328] sm:$0xff]  }
 0x180   : > { %5906 = vmatpush3.bf16.msra.mxu0 %v6498_v61  ;;  %v6570_v61 = vld [vmem:[%s8444_s0 + $0x280] ss:$100 sps:$4 sm:$0xff]  }
 0x181   : > { %5907 = vmatprep.subr.bf16.mxu0 %v6501_v0  ;;  %v6573_v0 = vld [vmem:[%s7675_s9 + $0x3a0] sm:$0xff]  }
 0x182   : > { %5952 = vmatpush3.bf16.msra.mxu1 %v6504_v3  ;;  %v6576_v3 = vld [vmem:[%s7675_s9 + $0x3a8] sm:$0xff]  }
 0x183   : > { %4366 = vmatmul.mubr.bf16.gmra.mrb[28].mxu0 %v6496_v59  ;;  %5953 = vmatprep.subr.bf16.mxu1 %v6511_v8  ;;  %v6567_v59 = vld [vmem:[%s8444_s0 + $0x284] ss:$100 sps:$4 sm:$0xff]  }
 0x184   : > { %4438 = vmatmul.mubr.bf16.gmra.mrb[28].mxu1 %v6497_v60  ;;  %5908 = vmatpush3.bf16.msra.mxu0 %v6503_v2  ;;  %v6569_v60 = vld [vmem:[%s8444_s0 + $0x278] ss:$100 sps:$4 sm:$0xff]   ;;  %v6575_v2 = vld [vmem:[%s7675_s9 + $0x3e8] sm:$0xff]  }
 0x185   : > { %4373 = vmatprep.mubr.bf16.mxu0 %v6505_v4  ;;  %4445 = vmatprep.mubr.bf16.mxu1 %v6507_v5  ;;  %v6577_v4 = vld [vmem:[%s7675_s9 + $0x370] sm:$0xff]   ;;  %v1965_v5 = vld [vmem:[%s8444_s0 + $0x340] sm:$0xff] }
 0x186   : > { %5909 = vmatprep.subr.bf16.mxu0 %v6512_v9  ;;  %5954 = vmatpush3.bf16.msra.mxu1 %v6513_v10  ;;  %v6580_v9 = vld [vmem:[%s7675_s9 + $0x330] sm:$0xff]   ;;  %v5454_v10 = vcombine.low %v1965_v5, %v1965_v5 }
 0x187   : > { %5955 = vmatprep.subr.bf16.mxu1 %v6515_v12  ;;  %v6583_v12 = vld [vmem:[%s7675_s9 + $0x3f0] sm:$0xff]  }
 0x188   : > { %5910 = vmatpush3.bf16.msra.mxu0 %v6514_v11 }
 0x189   : > { %5911 = vmatprep.subr.bf16.mxu0 %v6517_v14  ;;  %v6585_v14 = vld [vmem:[%s7675_s9 + $0x378] sm:$0xff]  }
 0x18a   : > { %5956 = vmatpush3.bf16.msra.mxu1 %v6516_v13  ;;  %v6584_v13 = vld [vmem:[%s7675_s9 + $0x3b0] sm:$0xff]  }
 0x18b   : > { %4374 = vmatmul.mubr.bf16.gmra.mrb[32].mxu0 %v6509_v6  ;;  %5957 = vmatprep.subr.bf16.mxu1 %v6523_v22  ;;  %v1966_v6 = vld [vmem:[%s8444_s0 + $0x348] sm:$0xff]  ;;  %v6595_v22 = vld [vmem:[%s7675_s9 + $0x440] sm:$0xff]  }
 0x18c   : > { %4446 = vmatmul.mubr.bf16.gmra.mrb[32].mxu1 %v6510_v7  ;;  %4381 = vmatprep.mubr.bf16.mxu0 %v5451_v17  ;;  %v5455_v7 = vcombine.high %v1965_v5, %v1965_v5  ;;  %v5457_v8 = vcombine.high %v1966_v6, %v1966_v6  ;;  %v5456_v11 = vcombine.low %v1966_v6, %v1966_v6  ;;  %v6588_v17 = vld [vmem:[%s7675_s9 + $0x3b8] sm:$0xff]  }
 0x18d   : > { %4453 = vmatprep.mubr.bf16.mxu1 %v5453_v18  ;;  %5912 = vmatpush3.bf16.msra.mxu0 %v6520_v19  ;;  %v6589_v18 = vld [vmem:[%s8444_s0 + $0x30] ss:$100 sps:$4 sm:$0xff]   ;;  %v6646_v5 = vld [vmem:[%s7675_s9 + $0x438] sm:$0xff]  }
 0x18e   : > { %5958 = vmatpush3.bf16.msra.mxu1 %v6524_v23  ;;  %5913 = vmatprep.subr.bf16.mxu0 %v6525_v24  ;;  %v6591_v19 = vld [vmem:[%s8444_s0 + $0x34] ss:$100 sps:$4 sm:$0xff]   ;;  %v6596_v23 = vld [vmem:[%s7675_s9 + $0x400] sm:$0xff]   ;;  %v6597_v24 = vld [vmem:[%s7675_s9 + $0x448] sm:$0xff]  }
 0x18f   : > { %5959 = vmatprep.subr.bf16.mxu1 %v6527_v26  ;;  %v6599_v26 = vld [vmem:[%s8444_s0 + $0xfc] ss:$100 sps:$4 sm:$0xff]  }
 0x190   : > { %v6647_v6 = vld [vmem:[%s7675_s9 + $0x4f8] sm:$0xff]  }
 0x191   : > { %5914 = vmatpush3.bf16.msra.mxu0 %v6526_v25  ;;  %v6598_v25 = vld [vmem:[%s7675_s9 + $0x408] sm:$0xff]  }
 0x192   : > { %5960 = vmatpush3.bf16.msra.mxu1 %v6528_v27  ;;  %5991 = vmatprep.subr.bf16.mxu0 %v6535_v32  ;;  %v6601_v27 = vld [vmem:[%s8444_s0 + $0x104] ss:$100 sps:$4 sm:$0xff]   ;;  %v6607_v32 = vld [vmem:[%s7675_s9 + $0x450] sm:$0xff]  }
 0x193   : > { %4382 = vmatmul.mubr.bf16.gmra.mrb[36].mxu0 %v5450_v20  ;;  %6037 = vmatprep.subr.bf16.mxu1 %v6545_v40  ;;  %v6592_v20 = vld [vmem:[%s8444_s0 + $0x38] ss:$100 sps:$4 sm:$0xff]   ;;  %v6617_v40 = vld [vmem:[%s8444_s0 + $0x1c8] ss:$100 sps:$4 sm:$0xff]  }
 0x194   : > { %4454 = vmatmul.mubr.bf16.gmra.mrb[36].mxu1 %v5452_v21  ;;  %4493 = vmatprep.mubr.bf16.mxu0 %v6531_v29  ;;  %v6594_v21 = vld [vmem:[%s8444_s0 + $0x3c] ss:$100 sps:$4 sm:$0xff]  }
 0x195   : > { %4565 = vmatprep.mubr.bf16.mxu1 %v6534_v31  ;;  %v6604_v29 = vld [vmem:[%s8444_s0 + $0x100] ss:$100 sps:$4 sm:$0xff]  }
 0x196   : > { %v6606_v31 = vld [vmem:[%s7675_s9 + $0x480] sm:$0xff]  }
 0x19b   : > { %4494 = vmatmul.mubr.bf16.vlgmr.msra.gmra.mrb[40].mxu0 %v6529_v28  ;;  %v6603_v28 = vld [vmem:[%s8444_s0 + $0xf8] ss:$100 sps:$4 sm:$0xff]  }
 0x19c   : > { %4566 = vmatmul.mubr.bf16.vlgmr.msra.gmra.mrb[40].mxu1 %v6532_v30  ;;  %5992 = vmatpush3.bf16.msra.mxu0 %v6536_v33  ;;  %v6605_v30 = vld [vmem:[%s7675_s9 + $0x4c0] sm:$0xff]   ;;  %v6608_v33 = vld [vmem:[%s7675_s9 + $0x410] sm:$0xff]  }
 0x19d   : > { %5993 = vmatprep.subr.bf16.mxu0 %v6537_v34  ;;  %4501 = vmatprep.mubr.bf16.mxu0 %v6539_v36  ;;  %v6609_v34 = vld [vmem:[%s7675_s9 + $0x4c8] sm:$0xff]  }
 0x19e   : > { %4573 = vmatprep.mubr.bf16.mxu1 %v6541_v37  ;;  %6038 = vmatpush3.bf16.msra.mxu1 %v6546_v41  ;;  %v6611_v36 = vld [vmem:[%s8444_s0 + $0x1c4] ss:$100 sps:$4 sm:$0xff]   ;;  %v6613_v37 = vld [vmem:[%s8444_s0 + $0x1cc] ss:$100 sps:$4 sm:$0xff]   ;;  %v6618_v41 = vld [vmem:[%s7675_s9 + $0x418] sm:$0xff]  }
 0x19f   : > { %6039 = vmatprep.subr.bf16.mxu1 %v6549_v44  ;;  %v6621_v44 = vld [vmem:[%s7675_s9 + $0x460] sm:$0xff]  }
 0x1a0   : > { %5994 = vmatpush3.bf16.msra.mxu0 %v6538_v35  ;;  %v6610_v35 = vld [vmem:[%s7675_s9 + $0x488] sm:$0xff]  }
 0x1a1   : > { %5995 = vmatprep.subr.bf16.mxu0 %v6547_v42  ;;  %v6619_v42 = vld [vmem:[%s7675_s9 + $0x4d0] sm:$0xff]  }
 0x1a2   : > { %6040 = vmatpush3.bf16.msra.mxu1 %v6550_v45  ;;  %v6622_v45 = vld [vmem:[%s7675_s9 + $0x4d8] sm:$0xff]  }
 0x1a3   : > { %4502 = vmatmul.mubr.bf16.gmra.mrb[44].mxu0 %v6543_v38  ;;  %6041 = vmatprep.subr.bf16.mxu1 %v6559_v52  ;;  %v6615_v38 = vld [vmem:[%s7675_s9 + $0x458] sm:$0xff]   ;;  %v6631_v52 = vld [vmem:[%s7675_s9 + $0x4e0] sm:$0xff]  }
 0x1a4   : > { %4574 = vmatmul.mubr.bf16.gmra.mrb[44].mxu1 %v6544_v39  ;;  %5996 = vmatpush3.bf16.msra.mxu0 %v6548_v43  ;;  %v6616_v39 = vld [vmem:[%s8444_s0 + $0x1c0] ss:$100 sps:$4 sm:$0xff]   ;;  %v6620_v43 = vld [vmem:[%s7675_s9 + $0x490] sm:$0xff]  }
 0x1a5   : > { %4509 = vmatprep.mubr.bf16.mxu0 %v6551_v46  ;;  %4581 = vmatprep.mubr.bf16.mxu1 %v6553_v47  ;;  %v6623_v46 = vld [vmem:[%s7675_s9 + $0x420] sm:$0xff]   ;;  %v6624_v47 = vld [vmem:[%s7675_s9 + $0x498] sm:$0xff]  }
 0x1a6   : > { %5997 = vmatprep.subr.bf16.mxu0 %v6555_v48  ;;  %6042 = vmatpush3.bf16.msra.mxu1 %v6560_v53  ;;  %v6625_v48 = vld [vmem:[%s8444_s0 + $0x28c] ss:$100 sps:$4 sm:$0xff]  }
 0x1a7   : > { %6043 = vmatprep.subr.bf16.mxu1 %v6562_v55  ;;  %v6632_v53 = vld [vmem:[%s7675_s9 + $0x468] sm:$0xff]  }
 0x1a8   : > { %5998 = vmatpush3.bf16.msra.mxu0 %v6558_v51  ;;  %v6630_v51 = vld [vmem:[%s8444_s0 + $0x290] ss:$100 sps:$4 sm:$0xff]   ;;  %v6634_v55 = vld [vmem:[%s7675_s9 + $0x428] sm:$0xff]  }
 0x1a9   : > { %5999 = vmatprep.subr.bf16.mxu0 %v6561_v54  ;;  %v6633_v54 = vld [vmem:[%s7675_s9 + $0x4a0] sm:$0xff]  }
 0x1aa   : > { %6044 = vmatpush3.bf16.msra.mxu1 %v6564_v57  ;;  %v6636_v57 = vld [vmem:[%s7675_s9 + $0x4a8] sm:$0xff]  }
 0x1ab   : > { %4510 = vmatmul.mubr.bf16.gmra.mrb[48].mxu0 %v6556_v49  ;;  %6045 = vmatprep.subr.bf16.mxu1 %v6571_v62  ;;  %v6627_v49 = vld [vmem:[%s8444_s0 + $0x294] ss:$100 sps:$4 sm:$0xff]  }
 0x1ac   : > { %4582 = vmatmul.mubr.bf16.gmra.mrb[48].mxu1 %v6557_v50  ;;  %6000 = vmatpush3.bf16.msra.mxu0 %v6563_v56  ;;  %v6629_v50 = vld [vmem:[%s8444_s0 + $0x288] ss:$100 sps:$4 sm:$0xff]  }
 0x1ad   : > { %4517 = vmatprep.mubr.bf16.mxu0 %v6565_v58  ;;  %4589 = vmatprep.mubr.bf16.mxu1 %v6567_v59  ;;  %v6635_v56 = vld [vmem:[%s7675_s9 + $0x4e8] sm:$0xff]   ;;  %v6637_v58 = vld [vmem:[%s7675_s9 + $0x470] sm:$0xff]  }
 0x1ae   : > { %6001 = vmatprep.subr.bf16.mxu0 %v6572_v63  ;;  %6046 = vmatpush3.bf16.msra.mxu1 %v6573_v0  ;;  %v1967_v59 = vld [vmem:[%s8444_s0 + $0x350] sm:$0xff] }
 0x1af   : > { %6047 = vmatprep.subr.bf16.mxu1 %v6575_v2  ;;  %v5458_v62 = vcombine.low %v1967_v59, %v1967_v59  ;;  %v6640_v0 = vld [vmem:[%s7675_s9 + $0x430] sm:$0xff]  }
 0x1b0   : > { %6002 = vmatpush3.bf16.msra.mxu0 %v6574_v1  ;;  %v6643_v2 = vld [vmem:[%s7675_s9 + $0x4f0] sm:$0xff]  }
 0x1b1   : > { %6003 = vmatprep.subr.bf16.mxu0 %v6577_v4  ;;  %v6645_v4 = vld [vmem:[%s7675_s9 + $0x478] sm:$0xff]  }
 0x1b2   : > { %6048 = vmatpush3.bf16.msra.mxu1 %v6576_v3  ;;  %v6644_v3 = vld [vmem:[%s7675_s9 + $0x4b0] sm:$0xff]  }
 0x1b3   : > { %4518 = vmatmul.mubr.bf16.gmra.mrb[52].mxu0 %v6569_v60  ;;  %6049 = vmatprep.subr.bf16.mxu1 %v6583_v12  ;;  %v5459_v60 = vcombine.high %v1967_v59, %v1967_v59  ;;  %v6655_v12 = vld [vmem:[%s7675_s9 + $0x540] sm:$0xff]   ;;  %v6706_v59 = vld [vmem:[%s7675_s9 + $0x538] sm:$0xff]  }
 0x1b4   : > { %4590 = vmatmul.mubr.bf16.gmra.mrb[52].mxu1 %v6570_v61  ;;  %4525 = vmatprep.mubr.bf16.mxu0 %v5455_v7  ;;  %v1968_v61 = vld [vmem:[%s8444_s0 + $0x358] sm:$0xff] }
 0x1b5   : > { %4597 = vmatprep.mubr.bf16.mxu1 %v5457_v8  ;;  %6004 = vmatpush3.bf16.msra.mxu0 %v6580_v9  ;;  %v5461_v63 = vcombine.high %v1968_v61, %v1968_v61  ;;  %v5460_v1 = vcombine.low %v1968_v61, %v1968_v61  ;;  %v6648_v7 = vld [vmem:[%s7675_s9 + $0x4b8] sm:$0xff]   ;;  %v6649_v8 = vld [vmem:[%s8444_s0 + $0x40] ss:$100 sps:$4 sm:$0xff]  }
 0x1b6   : > { %6050 = vmatpush3.bf16.msra.mxu1 %v6584_v13  ;;  %6005 = vmatprep.subr.bf16.mxu0 %v6585_v14  ;;  %v6651_v9 = vld [vmem:[%s8444_s0 + $0x44] ss:$100 sps:$4 sm:$0xff]   ;;  %v6708_v61 = vld [vmem:[%s7675_s9 + $0x5b8] sm:$0xff]  }
 0x1b7   : > { %6051 = vmatprep.subr.bf16.mxu1 %v6587_v16  ;;  %v6656_v13 = vld [vmem:[%s7675_s9 + $0x500] sm:$0xff]   ;;  %v6657_v14 = vld [vmem:[%s7675_s9 + $0x548] sm:$0xff]  }
 0x1b8   : > { %v6659_v16 = vld [vmem:[%s8444_s0 + $0x10c] ss:$100 sps:$4 sm:$0xff]  }
 0x1b9   : > { %6006 = vmatpush3.bf16.msra.mxu0 %v6586_v15  ;;  %v6658_v15 = vld [vmem:[%s7675_s9 + $0x508] sm:$0xff]  }
 0x1ba   : > { %6052 = vmatpush3.bf16.msra.mxu1 %v6588_v17  ;;  %6083 = vmatprep.subr.bf16.mxu0 %v6595_v22  ;;  %v6661_v17 = vld [vmem:[%s8444_s0 + $0x114] ss:$100 sps:$4 sm:$0xff]  }
 0x1bb   : > { %4526 = vmatmul.mubr.bf16.gmra.mrb[56].mxu0 %v5454_v10  ;;  %6129 = vmatprep.subr.bf16.mxu1 %v6605_v30  ;;  %v6652_v10 = vld [vmem:[%s8444_s0 + $0x48] ss:$100 sps:$4 sm:$0xff]   ;;  %v6667_v22 = vld [vmem:[%s7675_s9 + $0x550] sm:$0xff]   ;;  %v6677_v30 = vld [vmem:[%s8444_s0 + $0x1d8] ss:$100 sps:$4 sm:$0xff]  }
 0x1bc   : > { %4598 = vmatmul.mubr.bf16.gmra.mrb[56].mxu1 %v5456_v11  ;;  %4637 = vmatprep.mubr.bf16.mxu0 %v6591_v19  ;;  %v6654_v11 = vld [vmem:[%s8444_s0 + $0x4c] ss:$100 sps:$4 sm:$0xff]  }
 0x1bd   : > { %4709 = vmatprep.mubr.bf16.mxu1 %v6594_v21  ;;  %v6664_v19 = vld [vmem:[%s8444_s0 + $0x110] ss:$100 sps:$4 sm:$0xff]   ;;  %v6666_v21 = vld [vmem:[%s7675_s9 + $0x580] sm:$0xff]  }
 0x1c3   : > { %4638 = vmatmul.mubr.bf16.vlgmr.msra.gmra.mrb[60].mxu0 %v6589_v18  ;;  %v6663_v18 = vld [vmem:[%s8444_s0 + $0x108] ss:$100 sps:$4 sm:$0xff]  }
 0x1c4   : > { %4710 = vmatmul.mubr.bf16.vlgmr.msra.gmra.mrb[60].mxu1 %v6592_v20  ;;  %6084 = vmatpush3.bf16.msra.mxu0 %v6596_v23  ;;  %v6665_v20 = vld [vmem:[%s7675_s9 + $0x5c0] sm:$0xff]   ;;  %v6668_v23 = vld [vmem:[%s7675_s9 + $0x510] sm:$0xff]  }
 0x1c5   : > { %6085 = vmatprep.subr.bf16.mxu0 %v6597_v24  ;;  %4645 = vmatprep.mubr.bf16.mxu0 %v6599_v26  ;;  %v6669_v24 = vld [vmem:[%s7675_s9 + $0x5c8] sm:$0xff]   ;;  %v6671_v26 = vld [vmem:[%s8444_s0 + $0x1d4] ss:$100 sps:$4 sm:$0xff]  }
 0x1c6   : > { %4717 = vmatprep.mubr.bf16.mxu1 %v6601_v27  ;;  %6130 = vmatpush3.bf16.msra.mxu1 %v6606_v31  ;;  %v6673_v27 = vld [vmem:[%s8444_s0 + $0x1dc] ss:$100 sps:$4 sm:$0xff]  }
 0x1c7   : > { %6131 = vmatprep.subr.bf16.mxu1 %v6609_v34  ;;  %v6678_v31 = vld [vmem:[%s7675_s9 + $0x518] sm:$0xff]   ;;  %v6681_v34 = vld [vmem:[%s7675_s9 + $0x560] sm:$0xff]  }
 0x1c8   : > { %6086 = vmatpush3.bf16.msra.mxu0 %v6598_v25  ;;  %v6670_v25 = vld [vmem:[%s7675_s9 + $0x588] sm:$0xff]  }
 0x1c9   : > { %6087 = vmatprep.subr.bf16.mxu0 %v6607_v32  ;;  %v6679_v32 = vld [vmem:[%s7675_s9 + $0x5d0] sm:$0xff]  }
 0x1ca   : > { %6132 = vmatpush3.bf16.msra.mxu1 %v6610_v35  ;;  %v6682_v35 = vld [vmem:[%s7675_s9 + $0x5d8] sm:$0xff]  }
 0x1cb   : > { %4646 = vmatmul.mubr.bf16.gmra.mrb[64].mxu0 %v6603_v28  ;;  %6133 = vmatprep.subr.bf16.mxu1 %v6619_v42  ;;  %v6675_v28 = vld [vmem:[%s7675_s9 + $0x558] sm:$0xff]   ;;  %v6691_v42 = vld [vmem:[%s7675_s9 + $0x5e0] sm:$0xff]  }
 0x1cc   : > { %4718 = vmatmul.mubr.bf16.gmra.mrb[64].mxu1 %v6604_v29  ;;  %6088 = vmatpush3.bf16.msra.mxu0 %v6608_v33  ;;  %v6676_v29 = vld [vmem:[%s8444_s0 + $0x1d0] ss:$100 sps:$4 sm:$0xff]  }
 0x1cd   : > { %4653 = vmatprep.mubr.bf16.mxu0 %v6611_v36  ;;  %4725 = vmatprep.mubr.bf16.mxu1 %v6613_v37  ;;  %v6680_v33 = vld [vmem:[%s7675_s9 + $0x590] sm:$0xff]   ;;  %v6683_v36 = vld [vmem:[%s7675_s9 + $0x520] sm:$0xff]   ;;  %v6684_v37 = vld [vmem:[%s7675_s9 + $0x598] sm:$0xff]  }
 0x1ce   : > { %6089 = vmatprep.subr.bf16.mxu0 %v6615_v38  ;;  %6134 = vmatpush3.bf16.msra.mxu1 %v6620_v43  ;;  %v6685_v38 = vld [vmem:[%s8444_s0 + $0x29c] ss:$100 sps:$4 sm:$0xff]   ;;  %v6692_v43 = vld [vmem:[%s7675_s9 + $0x568] sm:$0xff]  }
 0x1cf   : > { %6135 = vmatprep.subr.bf16.mxu1 %v6622_v45  ;;  %v6694_v45 = vld [vmem:[%s7675_s9 + $0x528] sm:$0xff]  }
 0x1d0   : > { %6090 = vmatpush3.bf16.msra.mxu0 %v6618_v41  ;;  %v6690_v41 = vld [vmem:[%s8444_s0 + $0x2a0] ss:$100 sps:$4 sm:$0xff]  }
 0x1d1   : > { %6091 = vmatprep.subr.bf16.mxu0 %v6621_v44  ;;  %v6693_v44 = vld [vmem:[%s7675_s9 + $0x5a0] sm:$0xff]  }
 0x1d2   : > { %6136 = vmatpush3.bf16.msra.mxu1 %v6624_v47  ;;  %v6696_v47 = vld [vmem:[%s7675_s9 + $0x5a8] sm:$0xff]  }
 0x1d3   : > { %4654 = vmatmul.mubr.bf16.gmra.mrb[68].mxu0 %v6616_v39  ;;  %6137 = vmatprep.subr.bf16.mxu1 %v6631_v52  ;;  %v6687_v39 = vld [vmem:[%s8444_s0 + $0x2a4] ss:$100 sps:$4 sm:$0xff]  }
 0x1d4   : > { %4726 = vmatmul.mubr.bf16.gmra.mrb[68].mxu1 %v6617_v40  ;;  %6092 = vmatpush3.bf16.msra.mxu0 %v6623_v46  ;;  %v6689_v40 = vld [vmem:[%s8444_s0 + $0x298] ss:$100 sps:$4 sm:$0xff]   ;;  %v6695_v46 = vld [vmem:[%s7675_s9 + $0x5e8] sm:$0xff]  }
 0x1d5   : > { %4661 = vmatprep.mubr.bf16.mxu0 %v6625_v48  ;;  %4733 = vmatprep.mubr.bf16.mxu1 %v6627_v49  ;;  %v6697_v48 = vld [vmem:[%s7675_s9 + $0x570] sm:$0xff]   ;;  %v1969_v49 = vld [vmem:[%s8444_s0 + $0x360] sm:$0xff] }
 0x1d6   : > { %6093 = vmatprep.subr.bf16.mxu0 %v6632_v53  ;;  %6138 = vmatpush3.bf16.msra.mxu1 %v6633_v54  ;;  %v6700_v53 = vld [vmem:[%s7675_s9 + $0x530] sm:$0xff]   ;;  %v5462_v54 = vcombine.low %v1969_v49, %v1969_v49 }
 0x1d7   : > { %6139 = vmatprep.subr.bf16.mxu1 %v6635_v56  ;;  %v6703_v56 = vld [vmem:[%s7675_s9 + $0x5f0] sm:$0xff]  }
 0x1d8   : > { %6094 = vmatpush3.bf16.msra.mxu0 %v6634_v55 }
 0x1d9   : > { %6095 = vmatprep.subr.bf16.mxu0 %v6637_v58  ;;  %v6705_v58 = vld [vmem:[%s7675_s9 + $0x578] sm:$0xff]  }
 0x1da   : > { %6140 = vmatpush3.bf16.msra.mxu1 %v6636_v57  ;;  %v6704_v57 = vld [vmem:[%s7675_s9 + $0x5b0] sm:$0xff]  }
 0x1db   : > { %4662 = vmatmul.mubr.bf16.gmra.mrb[72].mxu0 %v6629_v50  ;;  %6141 = vmatprep.subr.bf16.mxu1 %v6643_v2  ;;  %v1970_v50 = vld [vmem:[%s8444_s0 + $0x368] sm:$0xff] }
 0x1dc   : > { %4734 = vmatmul.mubr.bf16.gmra.mrb[72].mxu1 %v6630_v51  ;;  %4669 = vmatprep.mubr.bf16.mxu0 %v5459_v60  ;;  %v5463_v51 = vcombine.high %v1969_v49, %v1969_v49  ;;  %v5465_v52 = vcombine.high %v1970_v50, %v1970_v50  ;;  %v5464_v55 = vcombine.low %v1970_v50, %v1970_v50  ;;  %v6707_v60 = vld [vmem:[%s7675_s9 + $0x5f8] sm:$0xff]  }
 0x1dd   : > { %4741 = vmatprep.mubr.bf16.mxu1 %v5461_v63  ;;  %6096 = vmatpush3.bf16.msra.mxu0 %v6640_v0  ;;  %v6711_v63 = vld [vmem:[%s8444_s0 + $0x54] ss:$100 sps:$4 sm:$0xff]  }
 0x1de   : > { %6142 = vmatpush3.bf16.msra.mxu1 %v6644_v3  ;;  %6097 = vmatprep.subr.bf16.mxu0 %v6645_v4  ;;  %v6712_v0 = vld [vmem:[%s8444_s0 + $0x58] ss:$100 sps:$4 sm:$0xff]   ;;  %v6715_v4 = vld [vmem:[%s7675_s9 + $0x600] sm:$0xff]  }
 0x1df   : > { %6143 = vmatprep.subr.bf16.mxu1 %v6647_v6  ;;  %v6714_v3 = vld [vmem:[%s8444_s0 + $0x5c] ss:$100 sps:$4 sm:$0xff]   ;;  %v6734_v50 = vld [vmem:[%s8444_s0 + $0x2b4] ss:$100 sps:$4 sm:$0xff]  }
 0x1e1   : > { %6098 = vmatpush3.bf16.msra.mxu0 %v6646_v5 }
 0x1e2   : > { %6144 = vmatpush3.bf16.msra.mxu1 %v6648_v7  ;;  %6175 = vmatprep.subr.bf16.mxu0 %v6655_v12  ;;  %v6716_v12 = vld [vmem:[%s7675_s9 + $0x608] sm:$0xff]  }
 0x1e3   : > { %4670 = vmatmul.mubr.bf16.gmra.mrb[76].mxu0 %v5458_v62  ;;  %6221 = vmatprep.subr.bf16.mxu1 %v6665_v20  ;;  %v6709_v62 = vld [vmem:[%s8444_s0 + $0x50] ss:$100 sps:$4 sm:$0xff]   ;;  %v6722_v20 = vld [vmem:[%s8444_s0 + $0x120] ss:$100 sps:$4 sm:$0xff]  }
 0x1e4   : > { %4742 = vmatmul.mubr.bf16.gmra.mrb[76].mxu1 %v5460_v1  ;;  %4781 = vmatprep.mubr.bf16.mxu0 %v6651_v9  ;;  %v6790_v1 = vmov 0.0   ;;  %v6717_v9 = vld [vmem:[%s8444_s0 + $0x11c] ss:$100 sps:$4 sm:$0xff]  }
 0x1e5   : > { %4853 = vmatprep.mubr.bf16.mxu1 %v6654_v11 }
 0x1eb   : > { %4782 = vmatmul.mubr.bf16.vlgmr.msra.gmra.mrb[80].mxu0 %v6649_v8 }
 0x1ec   : > { %4854 = vmatmul.mubr.bf16.vlgmr.msra.gmra.mrb[80].mxu1 %v6652_v10  ;;  %6176 = vmatpush3.bf16.msra.mxu0 %v6656_v13  ;;  %v6719_v13 = vld [vmem:[%s8444_s0 + $0x124] ss:$100 sps:$4 sm:$0xff]  }
 0x1ed   : > { %6177 = vmatprep.subr.bf16.mxu0 %v6657_v14  ;;  %4789 = vmatprep.mubr.bf16.mxu0 %v6659_v16  ;;  %v6721_v16 = vld [vmem:[%s8444_s0 + $0x118] ss:$100 sps:$4 sm:$0xff]  }
 0x1ee   : > { %4861 = vmatprep.mubr.bf16.mxu1 %v6661_v17  ;;  %6222 = vmatpush3.bf16.msra.mxu1 %v6666_v21 }
 0x1ef   : > { %6223 = vmatprep.subr.bf16.mxu1 %v6669_v24 }
 0x1f0   : > { %6178 = vmatpush3.bf16.msra.mxu0 %v6658_v15 }
 0x1f1   : > { %6179 = vmatprep.subr.bf16.mxu0 %v6667_v22 }
 0x1f2   : > { %6224 = vmatpush3.bf16.msra.mxu1 %v6670_v25  ;;  %v6723_v25 = vld [vmem:[%s7675_s9 + $0x610] sm:$0xff]  }
 0x1f3   : > { %4790 = vmatmul.mubr.bf16.gmra.mrb[84].mxu0 %v6663_v18  ;;  %6225 = vmatprep.subr.bf16.mxu1 %v6679_v32  ;;  %v8164_v18 = vld [vmem:[%s1854_s18] ss:$0 sm:$0xff] }
 0x1f4   : > { %4862 = vmatmul.mubr.bf16.gmra.mrb[84].mxu1 %v6664_v19  ;;  %6180 = vmatpush3.bf16.msra.mxu0 %v6668_v23 }
 0x1f5   : > { %4797 = vmatprep.mubr.bf16.mxu0 %v6671_v26  ;;  %4869 = vmatprep.mubr.bf16.mxu1 %v6673_v27  ;;  %v6724_v26 = vld [vmem:[%s8444_s0 + $0x1e4] ss:$100 sps:$4 sm:$0xff]   ;;  %v6726_v27 = vld [vmem:[%s8444_s0 + $0x1ec] ss:$100 sps:$4 sm:$0xff]  }
 0x1f6   : > { %6181 = vmatprep.subr.bf16.mxu0 %v6675_v28  ;;  %6226 = vmatpush3.bf16.msra.mxu1 %v6680_v33 }
 0x1f7   : > { %6227 = vmatprep.subr.bf16.mxu1 %v6682_v35 }
 0x1f8   : > { %6182 = vmatpush3.bf16.msra.mxu0 %v6678_v31 }
 0x1f9   : > { %6183 = vmatprep.subr.bf16.mxu0 %v6681_v34 }
 0x1fa   : > { %6228 = vmatpush3.bf16.msra.mxu1 %v6684_v37 }
 0x1fb   : > { %4798 = vmatmul.mubr.bf16.gmra.mrb[88].mxu0 %v6676_v29  ;;  %6229 = vmatprep.subr.bf16.mxu1 %v6691_v42 }
 0x1fc   : > { %4870 = vmatmul.mubr.bf16.gmra.mrb[88].mxu1 %v6677_v30  ;;  %6184 = vmatpush3.bf16.msra.mxu0 %v6683_v36  ;;  %v6730_v36 = vld [vmem:[%s7675_s9 + $0x618] sm:$0xff]  }
 0x1fd   : > { %4805 = vmatprep.mubr.bf16.mxu0 %v6685_v38  ;;  %4877 = vmatprep.mubr.bf16.mxu1 %v6687_v39 }
 0x1fe   : > { %6185 = vmatprep.subr.bf16.mxu0 %v6692_v43  ;;  %6230 = vmatpush3.bf16.msra.mxu1 %v6693_v44  ;;  %v6729_v43 = vld [vmem:[%s8444_s0 + $0x1e8] ss:$100 sps:$4 sm:$0xff]  }
 0x1ff   : > { %6231 = vmatprep.subr.bf16.mxu1 %v6695_v46 }
 0x200   : > { %6186 = vmatpush3.bf16.msra.mxu0 %v6694_v45 }
 0x201   : > { %6187 = vmatprep.subr.bf16.mxu0 %v6697_v48  ;;  %v6732_v48 = vld [vmem:[%s8444_s0 + $0x2ac] ss:$100 sps:$4 sm:$0xff]  }
 0x202   : > { %6232 = vmatpush3.bf16.msra.mxu1 %v6696_v47  ;;  %v6731_v47 = vld [vmem:[%s7675_s9 + $0x620] sm:$0xff]  }
 0x203   : > { %4806 = vmatmul.mubr.bf16.gmra.mrb[92].mxu0 %v6689_v40  ;;  %6233 = vmatprep.subr.bf16.mxu1 %v6703_v56 }
 0x204   : > { %4878 = vmatmul.mubr.bf16.gmra.mrb[92].mxu1 %v6690_v41  ;;  %4813 = vmatprep.mubr.bf16.mxu0 %v5463_v51  ;;  %v6728_v41 = vld [vmem:[%s8444_s0 + $0x1e0] ss:$100 sps:$4 sm:$0xff]  }
 0x205   : > { %4885 = vmatprep.mubr.bf16.mxu1 %v5465_v52  ;;  %6188 = vmatpush3.bf16.msra.mxu0 %v6700_v53 }
 0x206   : > { %6234 = vmatpush3.bf16.msra.mxu1 %v6704_v57  ;;  %6189 = vmatprep.subr.bf16.mxu0 %v6705_v58 }
 0x207   : > { %6235 = vmatprep.subr.bf16.mxu1 %v6707_v60  ;;  %v6738_v60 = vld [vmem:[%s7675_s9 + $0x628] sm:$0xff]  }
 0x209   : > { %6190 = vmatpush3.bf16.msra.mxu0 %v6706_v59 }
 0x20a   : > { %6280 = vmatprep.subr.bf16.mxu0 %v6790_v1  ;;  %6236 = vmatpush3.bf16.msra.mxu1 %v6708_v61 }
 0x20b   : > { %4814 = vmatmul.mubr.bf16.gmra.mrb[96].mxu0 %v5462_v54  ;;  %6316 = vmatprep.subr.bf16.mxu1 %v6790_v1 }
 0x20c   : > { %4886 = vmatmul.mubr.bf16.gmra.mrb[96].mxu1 %v5464_v55  ;;  %4925 = vmatprep.mubr.bf16.mxu0 %v6711_v63 }
 0x20d   : > { %4997 = vmatprep.mubr.bf16.mxu1 %v6714_v3 }
 0x213   : > { %4926 = vmatmul.mubr.bf16.vlgmr.msra.gmra.mrb[100].mxu0 %v6709_v62 }
 0x214   : > { %4998 = vmatmul.mubr.bf16.vlgmr.msra.gmra.mrb[100].mxu1 %v6712_v0  ;;  %6281 = vmatpush3.bf16.msra.mxu0 %v6715_v4  ;;  %v1971_v0 = vld [vmem:[%s8444_s0 + $0x370] sm:$0xff] }
 0x215   : > { %6324 = vmatpush3.bf16.msra.mxu1 %v6715_v4  ;;  %6282 = vmatprep.subr.bf16.mxu0 %v6790_v1 }
 0x216   : > { %4933 = vmatprep.mubr.bf16.mxu0 %v6717_v9  ;;  %5005 = vmatprep.mubr.bf16.mxu1 %v6719_v13 }
 0x217   : > { %6317 = vmatprep.subr.bf16.mxu1 %v6790_v1 }
 0x218   : > { %6283 = vmatpush3.bf16.msra.mxu0 %v6716_v12 }
 0x219   : > { %6325 = vmatpush3.bf16.msra.mxu1 %v6716_v12  ;;  %6284 = vmatprep.subr.bf16.mxu0 %v6790_v1 }
 0x21a   : > { %6318 = vmatprep.subr.bf16.mxu1 %v6790_v1 }
 0x21b   : > { %4934 = vmatmul.mubr.bf16.gmra.mrb[104].mxu0 %v6721_v16 }
 0x21c   : > { %5006 = vmatmul.mubr.bf16.gmra.mrb[104].mxu1 %v6722_v20  ;;  %6285 = vmatpush3.bf16.msra.mxu0 %v6723_v25 }
 0x21d   : > { %4941 = vmatprep.mubr.bf16.mxu0 %v6724_v26  ;;  %5013 = vmatprep.mubr.bf16.mxu1 %v6726_v27  ;;  %v6744_v26 = vld [vmem:[%s7675_s9 + $0x638] sm:$0xff]  }
 0x21e   : > { %v5731_v2 = vpop.f32.mrb[0].mxu0  ;;  %6286 = vmatprep.subr.bf16.mxu0 %v6790_v1  ;;  %6326 = vmatpush3.bf16.msra.mxu1 %v6723_v25 }
 0x21f   : > { %v5732_v5 = vpop.f32.mrb[1].mxu0  ;;  %v5777_v8 = vpop.f32.mrb[0].mxu1  ;;  %6319 = vmatprep.subr.bf16.mxu1 %v6790_v1 }
 0x220   : > { %v5733_v6 = vadd.f32 %v5732_v5, %v5731_v2  ;;  %v5734_v7 = vpop.f32.mrb[2].mxu0  ;;  %v5778_v11 = vpop.f32.mrb[1].mxu1  ;;  %6287 = vmatpush3.bf16.msra.mxu0 %v6730_v36  ;;  %v1972_v5 = vld [vmem:[%s8444_s0 + $0x378] sm:$0xff] }
 0x221   : > { %v5735_v10 = vpop.f32.mrb[3].mxu0  ;;  %v5779_v15 = vadd.f32 %v5778_v11, %v5777_v8  ;;  %v5780_v17 = vpop.f32.mrb[2].mxu1  ;;  %6288 = vmatprep.subr.bf16.mxu0 %v6790_v1  ;;  %v5469_v11 = vcombine.high %v1972_v5, %v1972_v5 }
 0x222   : > { %v5736_v14 = vadd.f32 %v5735_v10, %v5734_v7  ;;  %v5781_v19 = vpop.f32.mrb[3].mxu1  ;;  %v4208_v21 = vadd.f32 %v5733_v6, %v8164_v18  ;;  %6327 = vmatpush3.bf16.msra.mxu1 %v6730_v36  ;;  %v6736_v6 = vld [vmem:[%s8444_s0 + $0x2a8] ss:$100 sps:$4 sm:$0xff]   ;;  %v6737_v7 = vld [vmem:[%s8444_s0 + $0x2b0] ss:$100 sps:$4 sm:$0xff]   ;;  %v5467_v10 = vcombine.high %v1971_v0, %v1971_v0 }
 0x223   : > { %v5782_v23 = vadd.f32 %v5781_v19, %v5780_v17  ;;  %4942 = vmatmul.mubr.bf16.gmra.mrb[108].mxu0 %v6728_v41  ;;  %6320 = vmatprep.subr.bf16.mxu1 %v6790_v1 }
 0x224   : > { %v4211_v22 = vadd.f32 %v5736_v14, %v8164_v18  ;;  %v8180_v28 = vadd.f32 %v5779_v15, %v4208_v21  ;;  %5014 = vmatmul.mubr.bf16.gmra.mrb[108].mxu1 %v6729_v43  ;;  %6289 = vmatpush3.bf16.msra.mxu0 %v6731_v47  ;;  %v6741_v14 = vld [vmem:[%s7675_s9 + $0x630] sm:$0xff]  }
 0x225   : > { %4949 = vmatprep.mubr.bf16.mxu0 %v6732_v48  ;;  %5021 = vmatprep.mubr.bf16.mxu1 %v6734_v50  ;;  %v6746_v48 = vld [vmem:[%s8444_s0 + $0x2b8] ss:$100 sps:$4 sm:$0xff]  }
 0x226   : > { %v5737_v24 = vpop.f32.mrb[4].mxu0  ;;  %v8182_v29 = vadd.f32 %v5782_v23, %v4211_v22  ;;  %6328 = vmatpush3.bf16.msra.mxu1 %v6731_v47  ;;  %6290 = vmatprep.subr.bf16.mxu0 %v6790_v1  ;;  %v6745_v47 = vld [vmem:[%s8444_s0 + $0x60] ss:$100 sps:$4 sm:$0xff]  }
 0x227   : > { %v5738_v30 = vpop.f32.mrb[5].mxu0  ;;  %v5783_v33 = vpop.f32.mrb[4].mxu1  ;;  %6321 = vmatprep.subr.bf16.mxu1 %v6790_v1 }
 0x228   : > { %v5739_v31 = vadd.f32 %v5738_v30, %v5737_v24  ;;  %v5740_v32 = vpop.f32.mrb[6].mxu0  ;;  %v5784_v35 = vpop.f32.mrb[5].mxu1  ;;  %6291 = vmatpush3.bf16.msra.mxu0 %v6738_v60 }
 0x229   : > { %v5741_v34 = vpop.f32.mrb[7].mxu0  ;;  %v5785_v39 = vadd.f32 %v5784_v35, %v5783_v33  ;;  %v5786_v40 = vpop.f32.mrb[6].mxu1  ;;  %6292 = vmatprep.subr.bf16.mxu0 %v6790_v1 }
 0x22a   : > { %v4216_v37 = vadd.f32 %v5739_v31, %v8164_v18  ;;  %v5742_v38 = vadd.f32 %v5741_v34, %v5740_v32  ;;  %v5787_v42 = vpop.f32.mrb[7].mxu1  ;;  %6329 = vmatpush3.bf16.msra.mxu1 %v6738_v60  ;;  %v5466_v31 = vcombine.low %v1971_v0, %v1971_v0  ;;  %v5468_v32 = vcombine.low %v1972_v5, %v1972_v5  ;;  %v6747_v0 = vld [vmem:[%s8444_s0 + $0x128] ss:$100 sps:$4 sm:$0xff]  }
 0x22b   : > { %v5788_v46 = vadd.f32 %v5787_v42, %v5786_v40  ;;  %4950 = vmatmul.mubr.bf16.gmra.mrb[112].mxu0 %v6736_v6  ;;  %6322 = vmatprep.subr.bf16.mxu1 %v6790_v1 }
 0x22c   : > { %v4219_v44 = vadd.f32 %v5742_v38, %v8164_v18  ;;  %v8195_v45 = vadd.f32 %v5785_v39, %v4216_v37  ;;  %5022 = vmatmul.mubr.bf16.gmra.mrb[112].mxu1 %v6737_v7  ;;  %4957 = vmatprep.mubr.bf16.mxu0 %v5467_v10 }
 0x22d   : > { %5029 = vmatprep.mubr.bf16.mxu1 %v5469_v11  ;;  %6293 = vmatpush3.bf16.msra.mxu0 %v6741_v14 }
 0x22e   : > { %v5743_v49 = vpop.f32.mrb[8].mxu0  ;;  %v8205_v51 = vadd.f32 %v5788_v46, %v4219_v44  ;;  %6330 = vmatpush3.bf16.msra.mxu1 %v6741_v14  ;;  %6294 = vmatprep.subr.bf16.mxu0 %v6790_v1 }
 0x22f   : > { %v5744_v52 = vpop.f32.mrb[9].mxu0  ;;  %v5789_v53 = vpop.f32.mrb[8].mxu1  ;;  %6323 = vmatprep.subr.bf16.mxu1 %v6790_v1 }
 0x230   : > { %v5745_v54 = vadd.f32 %v5744_v52, %v5743_v49  ;;  %v5746_v55 = vpop.f32.mrb[10].mxu0  ;;  %v5790_v56 = vpop.f32.mrb[9].mxu1 }
 0x231   : > { %v5747_v57 = vpop.f32.mrb[11].mxu0  ;;  %v5791_v58 = vadd.f32 %v5790_v56, %v5789_v53  ;;  %v5792_v59 = vpop.f32.mrb[10].mxu1  ;;  %6295 = vmatpush3.bf16.msra.mxu0 %v6744_v26 }
 0x232   : > { %v4224_v61 = vadd.f32 %v5745_v54, %v8164_v18  ;;  %v5748_v62 = vadd.f32 %v5747_v57, %v5746_v55  ;;  %v5793_v63 = vpop.f32.mrb[11].mxu1  ;;  %6331 = vmatpush3.bf16.msra.mxu1 %v6744_v26 }
 0x233   : > { %v5794_v2 = vadd.f32 %v5793_v63, %v5792_v59  ;;  %4958 = vmatmul.mubr.bf16.gmra.mrb[116].mxu0 %v5466_v31 }
 0x234   : > { %v4227_v3 = vadd.f32 %v5748_v62, %v8164_v18  ;;  %v8215_v4 = vadd.f32 %v5791_v58, %v4224_v61  ;;  %5030 = vmatmul.mubr.bf16.gmra.mrb[116].mxu1 %v5468_v32  ;;  %6296 = vmatprep.mubr.msk.bf16.mxu0 %vm6791_vm0, %v6790_v1 }
 0x235   : > { %6308 = vmatprep.mubr.msk.bf16.mxu1 %vm6791_vm0, %v6790_v1 }
 0x236   : > { %v8228_v8 = vadd.f32 %v5794_v2, %v4227_v3  ;;  %v5749_v9 = vpop.f32.mrb[12].mxu0  ;;  %v6748_v2 = vld [vmem:[%s8444_s0 + $0x380] ss:$0 sps:$4 sm:$0xff]  }
 0x237   : > { %v5750_v12 = vpop.f32.mrb[13].mxu0  ;;  %v5795_v13 = vpop.f32.mrb[12].mxu1 }
 0x238   : > { %v5751_v15 = vadd.f32 %v5750_v12, %v5749_v9  ;;  %v5752_v16 = vpop.f32.mrb[14].mxu0  ;;  %v5796_v17 = vpop.f32.mrb[13].mxu1 }
 0x239   : > { %v5753_v19 = vpop.f32.mrb[15].mxu0  ;;  %v5797_v20 = vadd.f32 %v5796_v17, %v5795_v13  ;;  %v5798_v21 = vpop.f32.mrb[14].mxu1 }
 0x23a   : > { %v4232_v22 = vadd.f32 %v5751_v15, %v8164_v18  ;;  %v5754_v23 = vadd.f32 %v5753_v19, %v5752_v16  ;;  %v5799_v24 = vpop.f32.mrb[15].mxu1 }
 0x23b   : > { %v5800_v25 = vadd.f32 %v5799_v24, %v5798_v21  ;;  %6297 = vmatmul.mubr.bf16.vlgmr.msra.gmra.mrb[120].mxu0 %v6745_v47 }
 0x23c   : > { %v4235_v27 = vadd.f32 %v5754_v23, %v8164_v18  ;;  %v8236_v30 = vadd.f32 %v5797_v20, %v4232_v22  ;;  %6309 = vmatmul.mubr.bf16.vlgmr.msra.gmra.mrb[120].mxu1 %v6746_v48  ;;  %6300 = vmatprep.mubr.msk.bf16.mxu0 %vm6791_vm0, %v6790_v1  ;;  %v6749_v20 = vld [vmem:[%s8444_s0 + $0x1f0] ss:$100 sps:$4 sm:$0xff]  }
 0x23d   : > { %6312 = vmatprep.mubr.msk.bf16.mxu1 %vm6791_vm0, %v6790_v1 }
 0x23e   : > { %v8240_v33 = vadd.f32 %v5800_v25, %v4235_v27  ;;  %v5755_v34 = vpop.f32.mrb[16].mxu0 }
 0x23f   : > { %v5801_v35 = vpop.f32.mrb[16].mxu1  ;;  %v5756_v36 = vpop.f32.mrb[17].mxu0 }
 0x240   : > { %v5802_v37 = vpop.f32.mrb[17].mxu1  ;;  %v5757_v38 = vadd.f32 %v5756_v36, %v5755_v34  ;;  %v5758_v39 = vpop.f32.mrb[18].mxu0 }
 0x241   : > { %v5803_v40 = vadd.f32 %v5802_v37, %v5801_v35  ;;  %v5804_v41 = vpop.f32.mrb[18].mxu1  ;;  %v5759_v42 = vpop.f32.mrb[19].mxu0 }
 0x242   : > { %v5805_v43 = vpop.f32.mrb[19].mxu1  ;;  %v4240_v44 = vadd.f32 %v5757_v38, %v8164_v18 }
 0x243   : > { %6301 = vmatmul.mubr.bf16.gmra.mrb[124].mxu0 %v6747_v0 }
 0x244   : > { %v8247_v46 = vadd.f32 %v5803_v40, %v4240_v44  ;;  %6313 = vmatmul.mubr.bf16.gmra.mrb[124].mxu1 %v6748_v2  ;;  %6304 = vmatprep.mubr.msk.bf16.mxu0 %vm6791_vm0, %v6790_v1 }
 0x246   : > { %v5823_v49 = vpop.f32.mrb[20].mxu0 }
 0x247   : > { %v5824_v50 = vpop.f32.mrb[21].mxu0  ;;  %v5869_v52 = vpop.f32.mrb[20].mxu1 }
 0x248   : > { %v5825_v53 = vadd.f32 %v5824_v50, %v5823_v49  ;;  %v5826_v54 = vpop.f32.mrb[22].mxu0  ;;  %v5870_v55 = vpop.f32.mrb[21].mxu1 }
 0x249   : > { %v5827_v56 = vpop.f32.mrb[23].mxu0  ;;  %v5871_v18 = vadd.f32 %v5870_v55, %v5869_v52  ;;  %v5872_v57 = vpop.f32.mrb[22].mxu1 }
 0x24a   : > { %v4352_v58 = vadd.f32 %v5825_v53, %v8180_v28  ;;  %v5828_v59 = vadd.f32 %v5827_v56, %v5826_v54  ;;  %v5873_v60 = vpop.f32.mrb[23].mxu1 }
 0x24b   : > { %v5874_v61 = vadd.f32 %v5873_v60, %v5872_v57  ;;  %6305 = vmatmul.mubr.bf16.gmra.mrb[128].mxu0 %v6749_v20 }
 0x24c   : > { %v4355_v62 = vadd.f32 %v5828_v59, %v8182_v29  ;;  %v8261_v63 = vadd.f32 %v5871_v18, %v4352_v58 }
 0x24e   : > { %v8269_v3 = vadd.f32 %v5874_v61, %v4355_v62  ;;  %v5829_v5 = vpop.f32.mrb[24].mxu0 }
 0x24f   : > { %v5830_v6 = vpop.f32.mrb[25].mxu0  ;;  %v5875_v28 = vpop.f32.mrb[24].mxu1 }
 0x250   : > { %v5831_v7 = vadd.f32 %v5830_v6, %v5829_v5  ;;  %v5832_v9 = vpop.f32.mrb[26].mxu0  ;;  %v5876_v10 = vpop.f32.mrb[25].mxu1 }
 0x251   : > { %v5833_v29 = vpop.f32.mrb[27].mxu0  ;;  %v5877_v11 = vadd.f32 %v5876_v10, %v5875_v28  ;;  %v5878_v12 = vpop.f32.mrb[26].mxu1 }
 0x252   : > { %v4360_v13 = vadd.f32 %v5831_v7, %v8195_v45  ;;  %v5834_v14 = vadd.f32 %v5833_v29, %v5832_v9  ;;  %v5879_v15 = vpop.f32.mrb[27].mxu1 }
 0x253   : > { %v5880_v16 = vadd.f32 %v5879_v15, %v5878_v12 }
 0x254   : > { %v4363_v17 = vadd.f32 %v5834_v14, %v8205_v51  ;;  %v8275_v19 = vadd.f32 %v5877_v11, %v4360_v13 }
 0x256   : > { %v8280_v21 = vadd.f32 %v5880_v16, %v4363_v17  ;;  %v5835_v22 = vpop.f32.mrb[28].mxu0 }
 0x257   : > { %v5836_v23 = vpop.f32.mrb[29].mxu0  ;;  %v5881_v24 = vpop.f32.mrb[28].mxu1 }
 0x258   : > { %v5837_v25 = vadd.f32 %v5836_v23, %v5835_v22  ;;  %v5838_v1 = vpop.f32.mrb[30].mxu0  ;;  %v5882_v26 = vpop.f32.mrb[29].mxu1 }
 0x259   : > { %v5839_v45 = vpop.f32.mrb[31].mxu0  ;;  %v5883_v27 = vadd.f32 %v5882_v26, %v5881_v24  ;;  %v5884_v31 = vpop.f32.mrb[30].mxu1 }
 0x25a   : > { %v4368_v51 = vadd.f32 %v5837_v25, %v8215_v4  ;;  %v5840_v32 = vadd.f32 %v5839_v45, %v5838_v1  ;;  %v5885_v34 = vpop.f32.mrb[31].mxu1 }
 0x25b   : > { %v5886_v35 = vadd.f32 %v5885_v34, %v5884_v31 }
 0x25c   : > { %v4371_v36 = vadd.f32 %v5840_v32, %v8228_v8  ;;  %v8284_v37 = vadd.f32 %v5883_v27, %v4368_v51 }
 0x25e   : > { %v8286_v38 = vadd.f32 %v5886_v35, %v4371_v36  ;;  %v5841_v39 = vpop.f32.mrb[32].mxu0 }
 0x25f   : > { %v5842_v40 = vpop.f32.mrb[33].mxu0  ;;  %v5887_v41 = vpop.f32.mrb[32].mxu1 }
 0x260   : > { %v5843_v42 = vadd.f32 %v5842_v40, %v5841_v39  ;;  %v5844_v43 = vpop.f32.mrb[34].mxu0  ;;  %v5888_v44 = vpop.f32.mrb[33].mxu1 }
 0x261   : > { %v5845_v47 = vpop.f32.mrb[35].mxu0  ;;  %v5889_v48 = vadd.f32 %v5888_v44, %v5887_v41  ;;  %v5890_v49 = vpop.f32.mrb[34].mxu1 }
 0x262   : > { %v4376_v4 = vadd.f32 %v5843_v42, %v8236_v30  ;;  %v5846_v50 = vadd.f32 %v5845_v47, %v5844_v43  ;;  %v5891_v52 = vpop.f32.mrb[35].mxu1 }
 0x263   : > { %v5892_v53 = vadd.f32 %v5891_v52, %v5890_v49 }
 0x264   : > { %v4379_v8 = vadd.f32 %v5846_v50, %v8240_v33  ;;  %v8290_v54 = vadd.f32 %v5889_v48, %v4376_v4 }
 0x266   : > { %v8292_v55 = vadd.f32 %v5892_v53, %v4379_v8  ;;  %v5847_v18 = vpop.f32.mrb[36].mxu0 }
 0x267   : > { %v5893_v56 = vpop.f32.mrb[36].mxu1  ;;  %v5848_v58 = vpop.f32.mrb[37].mxu0 }
 0x268   : > { %v5894_v57 = vpop.f32.mrb[37].mxu1  ;;  %v5849_v61 = vadd.f32 %v5848_v58, %v5847_v18  ;;  %v5850_v62 = vpop.f32.mrb[38].mxu0 }
 0x269   : > { %v5895_v59 = vadd.f32 %v5894_v57, %v5893_v56  ;;  %v5896_v60 = vpop.f32.mrb[38].mxu1  ;;  %v5851_v2 = vpop.f32.mrb[39].mxu0 }
 0x26a   : > { %v5897_v0 = vpop.f32.mrb[39].mxu1  ;;  %v4384_v30 = vadd.f32 %v5849_v61, %v8247_v46 }
 0x26c   : > { %v8295_v5 = vadd.f32 %v5895_v59, %v4384_v30 }
 0x26e   : > { %v5915_v6 = vpop.f32.mrb[40].mxu0 }
 0x26f   : > { %v5961_v33 = vpop.f32.mrb[40].mxu1  ;;  %v5916_v28 = vpop.f32.mrb[41].mxu0 }
 0x270   : > { %v5962_v7 = vpop.f32.mrb[41].mxu1  ;;  %v5917_v9 = vadd.f32 %v5916_v28, %v5915_v6  ;;  %v5918_v10 = vpop.f32.mrb[42].mxu0 }
 0x271   : > { %v5963_v29 = vadd.f32 %v5962_v7, %v5961_v33  ;;  %v5964_v11 = vpop.f32.mrb[42].mxu1  ;;  %v5919_v12 = vpop.f32.mrb[43].mxu0 }
 0x272   : > { %v5965_v13 = vpop.f32.mrb[43].mxu1  ;;  %v4496_v14 = vadd.f32 %v5917_v9, %v8261_v63  ;;  %v5920_v15 = vadd.f32 %v5919_v12, %v5918_v10 }
 0x273   : > { %v5966_v16 = vadd.f32 %v5965_v13, %v5964_v11 }
 0x274   : > { %v4499_v17 = vadd.f32 %v5920_v15, %v8269_v3  ;;  %v8299_v20 = vadd.f32 %v5963_v29, %v4496_v14 }
 0x276   : > { %v8301_v46 = vadd.f32 %v5966_v16, %v4499_v17  ;;  %v5921_v22 = vpop.f32.mrb[44].mxu0 }
 0x277   : > { %v5967_v23 = vpop.f32.mrb[44].mxu1  ;;  %v5922_v24 = vpop.f32.mrb[45].mxu0 }
 0x278   : > { %v5968_v25 = vpop.f32.mrb[45].mxu1  ;;  %v5923_v1 = vadd.f32 %v5922_v24, %v5921_v22  ;;  %v5924_v26 = vpop.f32.mrb[46].mxu0 }
 0x279   : > { %v5969_v45 = vadd.f32 %v5968_v25, %v5967_v23  ;;  %v5970_v27 = vpop.f32.mrb[46].mxu1  ;;  %v5925_v31 = vpop.f32.mrb[47].mxu0 }
 0x27a   : > { %v5971_v51 = vpop.f32.mrb[47].mxu1  ;;  %v4504_v63 = vadd.f32 %v5923_v1, %v8275_v19  ;;  %v5926_v32 = vadd.f32 %v5925_v31, %v5924_v26 }
 0x27b   : > { %v5972_v34 = vadd.f32 %v5971_v51, %v5970_v27 }
 0x27c   : > { %v4507_v3 = vadd.f32 %v5926_v32, %v8280_v21  ;;  %v8305_v35 = vadd.f32 %v5969_v45, %v4504_v63 }
 0x27e   : > { %v8307_v36 = vadd.f32 %v5972_v34, %v4507_v3  ;;  %v5927_v39 = vpop.f32.mrb[48].mxu0 }
 0x27f   : > { %v5973_v40 = vpop.f32.mrb[48].mxu1  ;;  %v5928_v41 = vpop.f32.mrb[49].mxu0 }
 0x280   : > { %v5974_v42 = vpop.f32.mrb[49].mxu1  ;;  %v5929_v43 = vadd.f32 %v5928_v41, %v5927_v39  ;;  %v5930_v44 = vpop.f32.mrb[50].mxu0 }
 0x281   : > { %v5975_v47 = vadd.f32 %v5974_v42, %v5973_v40  ;;  %v5976_v48 = vpop.f32.mrb[50].mxu1  ;;  %v5931_v49 = vpop.f32.mrb[51].mxu0 }
 0x282   : > { %v5977_v4 = vpop.f32.mrb[51].mxu1  ;;  %v4512_v19 = vadd.f32 %v5929_v43, %v8284_v37  ;;  %v5932_v50 = vadd.f32 %v5931_v49, %v5930_v44 }
 0x283   : > { %v5978_v52 = vadd.f32 %v5977_v4, %v5976_v48 }
 0x284   : > { %v4515_v21 = vadd.f32 %v5932_v50, %v8286_v38  ;;  %v8311_v53 = vadd.f32 %v5975_v47, %v4512_v19 }
 0x286   : > { %v8313_v8 = vadd.f32 %v5978_v52, %v4515_v21  ;;  %v5933_v56 = vpop.f32.mrb[52].mxu0 }
 0x287   : > { %v5934_v18 = vpop.f32.mrb[53].mxu0  ;;  %v5979_v57 = vpop.f32.mrb[52].mxu1 }
 0x288   : > { %v5935_v58 = vadd.f32 %v5934_v18, %v5933_v56  ;;  %v5936_v59 = vpop.f32.mrb[54].mxu0  ;;  %v5980_v60 = vpop.f32.mrb[53].mxu1 }
 0x289   : > { %v5937_v61 = vpop.f32.mrb[55].mxu0  ;;  %v5981_v62 = vadd.f32 %v5980_v60, %v5979_v57  ;;  %v5982_v0 = vpop.f32.mrb[54].mxu1 }
 0x28a   : > { %v4520_v2 = vadd.f32 %v5935_v58, %v8290_v54  ;;  %v5938_v37 = vadd.f32 %v5937_v61, %v5936_v59  ;;  %v5983_v30 = vpop.f32.mrb[55].mxu1 }
 0x28b   : > { %v5984_v6 = vadd.f32 %v5983_v30, %v5982_v0 }
 0x28c   : > { %v4523_v38 = vadd.f32 %v5938_v37, %v8292_v55  ;;  %v8317_v33 = vadd.f32 %v5981_v62, %v4520_v2 }
 0x28e   : > { %v8319_v28 = vadd.f32 %v5984_v6, %v4523_v38  ;;  %v5939_v9 = vpop.f32.mrb[56].mxu0 }
 0x28f   : > { %v5985_v7 = vpop.f32.mrb[56].mxu1  ;;  %v5940_v29 = vpop.f32.mrb[57].mxu0 }
 0x290   : > { %v5986_v10 = vpop.f32.mrb[57].mxu1  ;;  %v5941_v13 = vadd.f32 %v5940_v29, %v5939_v9  ;;  %v5942_v14 = vpop.f32.mrb[58].mxu0 }
 0x291   : > { %v5987_v11 = vadd.f32 %v5986_v10, %v5985_v7  ;;  %v5988_v12 = vpop.f32.mrb[58].mxu1  ;;  %v5943_v16 = vpop.f32.mrb[59].mxu0 }
 0x292   : > { %v5989_v15 = vpop.f32.mrb[59].mxu1  ;;  %v4528_v54 = vadd.f32 %v5941_v13, %v8295_v5 }
 0x294   : > { %v8322_v17 = vadd.f32 %v5987_v11, %v4528_v54 }
 0x296   : > { %v6007_v22 = vpop.f32.mrb[60].mxu0 }
 0x297   : > { %v6053_v55 = vpop.f32.mrb[60].mxu1  ;;  %v6008_v23 = vpop.f32.mrb[61].mxu0 }
 0x298   : > { %v6054_v24 = vpop.f32.mrb[61].mxu1  ;;  %v6009_v25 = vadd.f32 %v6008_v23, %v6007_v22  ;;  %v6010_v1 = vpop.f32.mrb[62].mxu0 }
 0x299   : > { %v6055_v26 = vadd.f32 %v6054_v24, %v6053_v55  ;;  %v6056_v45 = vpop.f32.mrb[62].mxu1  ;;  %v6011_v27 = vpop.f32.mrb[63].mxu0 }
 0x29a   : > { %v6057_v31 = vpop.f32.mrb[63].mxu1  ;;  %v4640_v51 = vadd.f32 %v6009_v25, %v8299_v20  ;;  %v6012_v63 = vadd.f32 %v6011_v27, %v6010_v1 }
 0x29b   : > { %v6058_v32 = vadd.f32 %v6057_v31, %v6056_v45 }
 0x29c   : > { %v4643_v34 = vadd.f32 %v6012_v63, %v8301_v46  ;;  %v8326_v3 = vadd.f32 %v6055_v26, %v4640_v51 }
 0x29e   : > { %v8328_v5 = vadd.f32 %v6058_v32, %v4643_v34  ;;  %v6013_v39 = vpop.f32.mrb[64].mxu0 }
 0x29f   : > { %v6059_v40 = vpop.f32.mrb[64].mxu1  ;;  %v6014_v41 = vpop.f32.mrb[65].mxu0 }
 0x2a0   : > { %v6060_v42 = vpop.f32.mrb[65].mxu1  ;;  %v6015_v43 = vadd.f32 %v6014_v41, %v6013_v39  ;;  %v6016_v44 = vpop.f32.mrb[66].mxu0 }
 0x2a1   : > { %v6061_v47 = vadd.f32 %v6060_v42, %v6059_v40  ;;  %v6062_v48 = vpop.f32.mrb[66].mxu1  ;;  %v6017_v49 = vpop.f32.mrb[67].mxu0 }
 0x2a2   : > { %v6063_v4 = vpop.f32.mrb[67].mxu1  ;;  %v4648_v20 = vadd.f32 %v6015_v43, %v8305_v35  ;;  %v6018_v19 = vadd.f32 %v6017_v49, %v6016_v44 }
 0x2a3   : > { %v6064_v50 = vadd.f32 %v6063_v4, %v6062_v48 }
 0x2a4   : > { %v4651_v46 = vadd.f32 %v6018_v19, %v8307_v36  ;;  %v8332_v52 = vadd.f32 %v6061_v47, %v4648_v20 }
 0x2a6   : > { %v8334_v21 = vadd.f32 %v6064_v50, %v4651_v46  ;;  %v6019_v56 = vpop.f32.mrb[68].mxu0 }
 0x2a7   : > { %v6065_v18 = vpop.f32.mrb[68].mxu1  ;;  %v6020_v57 = vpop.f32.mrb[69].mxu0 }
 0x2a8   : > { %v6066_v58 = vpop.f32.mrb[69].mxu1  ;;  %v6021_v59 = vadd.f32 %v6020_v57, %v6019_v56  ;;  %v6022_v60 = vpop.f32.mrb[70].mxu0 }
 0x2a9   : > { %v6067_v61 = vadd.f32 %v6066_v58, %v6065_v18  ;;  %v6068_v62 = vpop.f32.mrb[70].mxu1  ;;  %v6023_v0 = vpop.f32.mrb[71].mxu0 }
 0x2aa   : > { %v6069_v2 = vpop.f32.mrb[71].mxu1  ;;  %v4656_v35 = vadd.f32 %v6021_v59, %v8311_v53  ;;  %v6024_v37 = vadd.f32 %v6023_v0, %v6022_v60 }
 0x2ab   : > { %v6070_v30 = vadd.f32 %v6069_v2, %v6068_v62 }
 0x2ac   : > { %v4659_v36 = vadd.f32 %v6024_v37, %v8313_v8  ;;  %v8338_v6 = vadd.f32 %v6067_v61, %v4656_v35 }
 0x2ae   : > { %v8340_v38 = vadd.f32 %v6070_v30, %v4659_v36  ;;  %v6025_v7 = vpop.f32.mrb[72].mxu0 }
 0x2af   : > { %v6071_v9 = vpop.f32.mrb[72].mxu1  ;;  %v6026_v10 = vpop.f32.mrb[73].mxu0 }
 0x2b0   : > { %v6072_v29 = vpop.f32.mrb[73].mxu1  ;;  %v6027_v11 = vadd.f32 %v6026_v10, %v6025_v7  ;;  %v6028_v12 = vpop.f32.mrb[74].mxu0 }
 0x2b1   : > { %v6073_v13 = vadd.f32 %v6072_v29, %v6071_v9  ;;  %v6074_v14 = vpop.f32.mrb[74].mxu1  ;;  %v6029_v15 = vpop.f32.mrb[75].mxu0 }
 0x2b2   : > { %v6075_v16 = vpop.f32.mrb[75].mxu1  ;;  %v4664_v53 = vadd.f32 %v6027_v11, %v8317_v33  ;;  %v6030_v54 = vadd.f32 %v6029_v15, %v6028_v12 }
 0x2b3   : > { %v6076_v22 = vadd.f32 %v6075_v16, %v6074_v14 }
 0x2b4   : > { %v4667_v8 = vadd.f32 %v6030_v54, %v8319_v28  ;;  %v8344_v55 = vadd.f32 %v6073_v13, %v4664_v53 }
 0x2b6   : > { %v8346_v23 = vadd.f32 %v6076_v22, %v4667_v8  ;;  %v6031_v24 = vpop.f32.mrb[76].mxu0 }
 0x2b7   : > { %v6077_v25 = vpop.f32.mrb[76].mxu1  ;;  %v6032_v1 = vpop.f32.mrb[77].mxu0 }
 0x2b8   : > { %v6078_v26 = vpop.f32.mrb[77].mxu1  ;;  %v6033_v45 = vadd.f32 %v6032_v1, %v6031_v24  ;;  %v6034_v27 = vpop.f32.mrb[78].mxu0 }
 0x2b9   : > { %v6079_v31 = vadd.f32 %v6078_v26, %v6077_v25  ;;  %v6080_v51 = vpop.f32.mrb[78].mxu1  ;;  %v6035_v63 = vpop.f32.mrb[79].mxu0 }
 0x2ba   : > { %v6081_v32 = vpop.f32.mrb[79].mxu1  ;;  %v4672_v33 = vadd.f32 %v6033_v45, %v8322_v17 }
 0x2bc   : > { %v8349_v34 = vadd.f32 %v6079_v31, %v4672_v33 }
 0x2be   : > { %v6099_v39 = vpop.f32.mrb[80].mxu0 }
 0x2bf   : > { %v6100_v28 = vpop.f32.mrb[81].mxu0  ;;  %v6145_v40 = vpop.f32.mrb[80].mxu1 }
 0x2c0   : > { %v6101_v41 = vadd.f32 %v6100_v28, %v6099_v39  ;;  %v6102_v42 = vpop.f32.mrb[82].mxu0  ;;  %v6146_v43 = vpop.f32.mrb[81].mxu1 }
 0x2c1   : > { %v6103_v44 = vpop.f32.mrb[83].mxu0  ;;  %v6147_v47 = vadd.f32 %v6146_v43, %v6145_v40  ;;  %v6148_v48 = vpop.f32.mrb[82].mxu1 }
 0x2c2   : > { %v4784_v49 = vadd.f32 %v6101_v41, %v8326_v3  ;;  %v6104_v4 = vadd.f32 %v6103_v44, %v6102_v42  ;;  %v6149_v20 = vpop.f32.mrb[83].mxu1 }
 0x2c3   : > { %v6150_v19 = vadd.f32 %v6149_v20, %v6148_v48 }
 0x2c4   : > { %v4787_v50 = vadd.f32 %v6104_v4, %v8328_v5  ;;  %v8353_v46 = vadd.f32 %v6147_v47, %v4784_v49 }
 0x2c6   : > { %v8355_v17 = vadd.f32 %v6150_v19, %v4787_v50  ;;  %v6105_v56 = vpop.f32.mrb[84].mxu0 }
 0x2c7   : > { %v6106_v18 = vpop.f32.mrb[85].mxu0  ;;  %v6151_v57 = vpop.f32.mrb[84].mxu1 }
 0x2c8   : > { %v6107_v58 = vadd.f32 %v6106_v18, %v6105_v56  ;;  %v6108_v59 = vpop.f32.mrb[86].mxu0  ;;  %v6152_v60 = vpop.f32.mrb[85].mxu1 }
 0x2c9   : > { %v6109_v61 = vpop.f32.mrb[87].mxu0  ;;  %v6153_v62 = vadd.f32 %v6152_v60, %v6151_v57  ;;  %v6154_v0 = vpop.f32.mrb[86].mxu1 }
 0x2ca   : > { %v4792_v3 = vadd.f32 %v6107_v58, %v8332_v52  ;;  %v6110_v2 = vadd.f32 %v6109_v61, %v6108_v59  ;;  %v6155_v35 = vpop.f32.mrb[87].mxu1 }
 0x2cb   : > { %v6156_v37 = vadd.f32 %v6155_v35, %v6154_v0 }
 0x2cc   : > { %v4795_v5 = vadd.f32 %v6110_v2, %v8334_v21  ;;  %v8359_v30 = vadd.f32 %v6153_v62, %v4792_v3 }
 0x2ce   : > { %v8361_v36 = vadd.f32 %v6156_v37, %v4795_v5  ;;  %v6111_v7 = vpop.f32.mrb[88].mxu0 }
 0x2cf   : > { %v6112_v9 = vpop.f32.mrb[89].mxu0  ;;  %v6157_v10 = vpop.f32.mrb[88].mxu1 }
 0x2d0   : > { %v6113_v29 = vadd.f32 %v6112_v9, %v6111_v7  ;;  %v6114_v11 = vpop.f32.mrb[90].mxu0  ;;  %v6158_v12 = vpop.f32.mrb[89].mxu1 }
 0x2d1   : > { %v6115_v13 = vpop.f32.mrb[91].mxu0  ;;  %v6159_v14 = vadd.f32 %v6158_v12, %v6157_v10  ;;  %v6160_v15 = vpop.f32.mrb[90].mxu1 }
 0x2d2   : > { %v4800_v52 = vadd.f32 %v6113_v29, %v8338_v6  ;;  %v6116_v16 = vadd.f32 %v6115_v13, %v6114_v11  ;;  %v6161_v53 = vpop.f32.mrb[91].mxu1 }
 0x2d3   : > { %v6162_v54 = vadd.f32 %v6161_v53, %v6160_v15 }
 0x2d4   : > { %v4803_v21 = vadd.f32 %v6116_v16, %v8340_v38  ;;  %v8365_v22 = vadd.f32 %v6159_v14, %v4800_v52 }
 0x2d6   : > { %v8367_v8 = vadd.f32 %v6162_v54, %v4803_v21  ;;  %v6117_v24 = vpop.f32.mrb[92].mxu0 }
 0x2d7   : > { %v6118_v25 = vpop.f32.mrb[93].mxu0  ;;  %v6163_v1 = vpop.f32.mrb[92].mxu1 }
 0x2d8   : > { %v6119_v26 = vadd.f32 %v6118_v25, %v6117_v24  ;;  %v6120_v45 = vpop.f32.mrb[94].mxu0  ;;  %v6164_v27 = vpop.f32.mrb[93].mxu1 }
 0x2d9   : > { %v6121_v31 = vpop.f32.mrb[95].mxu0  ;;  %v6165_v51 = vadd.f32 %v6164_v27, %v6163_v1  ;;  %v6166_v63 = vpop.f32.mrb[94].mxu1 }
 0x2da   : > { %v4808_v6 = vadd.f32 %v6119_v26, %v8344_v55  ;;  %v6122_v32 = vadd.f32 %v6121_v31, %v6120_v45  ;;  %v6167_v33 = vpop.f32.mrb[95].mxu1 }
 0x2db   : > { %v6168_v39 = vadd.f32 %v6167_v33, %v6166_v63 }
 0x2dc   : > { %v4811_v38 = vadd.f32 %v6122_v32, %v8346_v23  ;;  %v8371_v28 = vadd.f32 %v6165_v51, %v4808_v6 }
 0x2de   : > { %v8373_v40 = vadd.f32 %v6168_v39, %v4811_v38  ;;  %v6123_v42 = vpop.f32.mrb[96].mxu0 }
 0x2df   : > { %v6169_v41 = vpop.f32.mrb[96].mxu1  ;;  %v6124_v44 = vpop.f32.mrb[97].mxu0 }
 0x2e0   : > { %v6170_v43 = vpop.f32.mrb[97].mxu1  ;;  %v6125_v49 = vadd.f32 %v6124_v44, %v6123_v42  ;;  %v6126_v4 = vpop.f32.mrb[98].mxu0 }
 0x2e1   : > { %v6171_v47 = vadd.f32 %v6170_v43, %v6169_v41  ;;  %v6172_v48 = vpop.f32.mrb[98].mxu1  ;;  %v6127_v19 = vpop.f32.mrb[99].mxu0 }
 0x2e2   : > { %v6173_v20 = vpop.f32.mrb[99].mxu1  ;;  %v4816_v55 = vadd.f32 %v6125_v49, %v8349_v34 }
 0x2e4   : > { %v8376_v50 = vadd.f32 %v6171_v47, %v4816_v55 }
 0x2e6   : > { %v6191_v56 = vpop.f32.mrb[100].mxu0 }
 0x2e7   : > { %v6237_v23 = vpop.f32.mrb[100].mxu1  ;;  %v6192_v18 = vpop.f32.mrb[101].mxu0 }
 0x2e8   : > { %v6238_v57 = vpop.f32.mrb[101].mxu1  ;;  %v6193_v58 = vadd.f32 %v6192_v18, %v6191_v56  ;;  %v6194_v59 = vpop.f32.mrb[102].mxu0 }
 0x2e9   : > { %v6239_v60 = vadd.f32 %v6238_v57, %v6237_v23  ;;  %v6240_v61 = vpop.f32.mrb[102].mxu1  ;;  %v6195_v62 = vpop.f32.mrb[103].mxu0 }
 0x2ea   : > { %v6241_v0 = vpop.f32.mrb[103].mxu1  ;;  %v4928_v3 = vadd.f32 %v6193_v58, %v8353_v46  ;;  %v6196_v2 = vadd.f32 %v6195_v62, %v6194_v59 }
 0x2eb   : > { %v6242_v35 = vadd.f32 %v6241_v0, %v6240_v61 }
 0x2ec   : > { %v4931_v37 = vadd.f32 %v6196_v2, %v8355_v17  ;;  %v8380_v5 = vadd.f32 %v6239_v60, %v4928_v3 }
 0x2ee   : > { %v6197_v34 = vpop.f32.mrb[104].mxu0  ;;  %v8382_v9 = vadd.f32 %v6242_v35, %v4931_v37 }
 0x2ef   : > { %v6243_v7 = vpop.f32.mrb[104].mxu1  ;;  %v6198_v10 = vpop.f32.mrb[105].mxu0 }
 0x2f0   : > { %v6244_v29 = vpop.f32.mrb[105].mxu1  ;;  %v6199_v11 = vadd.f32 %v6198_v10, %v6197_v34  ;;  %v6200_v12 = vpop.f32.mrb[106].mxu0 }
 0x2f1   : > { %v6245_v13 = vadd.f32 %v6244_v29, %v6243_v7  ;;  %v6246_v14 = vpop.f32.mrb[106].mxu1  ;;  %v6201_v15 = vpop.f32.mrb[107].mxu0 }
 0x2f2   : > { %v6247_v52 = vpop.f32.mrb[107].mxu1  ;;  %v4936_v46 = vadd.f32 %v6199_v11, %v8359_v30  ;;  %v6202_v16 = vadd.f32 %v6201_v15, %v6200_v12 }
 0x2f3   : > { %v6248_v53 = vadd.f32 %v6247_v52, %v6246_v14 }
 0x2f4   : > { %v4939_v17 = vadd.f32 %v6202_v16, %v8361_v36  ;;  %v8386_v54 = vadd.f32 %v6245_v13, %v4936_v46 }
 0x2f6   : > { %v6203_v21 = vpop.f32.mrb[108].mxu0  ;;  %v8388_v25 = vadd.f32 %v6248_v53, %v4939_v17 }
 0x2f7   : > { %v6249_v24 = vpop.f32.mrb[108].mxu1  ;;  %v6204_v1 = vpop.f32.mrb[109].mxu0 }
 0x2f8   : > { %v6250_v26 = vpop.f32.mrb[109].mxu1  ;;  %v6205_v45 = vadd.f32 %v6204_v1, %v6203_v21  ;;  %v6206_v27 = vpop.f32.mrb[110].mxu0 }
 0x2f9   : > { %v6251_v31 = vadd.f32 %v6250_v26, %v6249_v24  ;;  %v6252_v51 = vpop.f32.mrb[110].mxu1  ;;  %v6207_v63 = vpop.f32.mrb[111].mxu0 }
 0x2fa   : > { %v6253_v6 = vpop.f32.mrb[111].mxu1  ;;  %v4944_v30 = vadd.f32 %v6205_v45, %v8365_v22  ;;  %v6208_v32 = vadd.f32 %v6207_v63, %v6206_v27 }
 0x2fb   : > { %v6254_v33 = vadd.f32 %v6253_v6, %v6252_v51 }
 0x2fc   : > { %v4947_v36 = vadd.f32 %v6208_v32, %v8367_v8  ;;  %v8392_v39 = vadd.f32 %v6251_v31, %v4944_v30 }
 0x2fe   : > { %v6209_v38 = vpop.f32.mrb[112].mxu0  ;;  %v8394_v42 = vadd.f32 %v6254_v33, %v4947_v36 }
 0x2ff   : > { %v6255_v41 = vpop.f32.mrb[112].mxu1  ;;  %v6210_v43 = vpop.f32.mrb[113].mxu0 }
 0x300   : > { %v6256_v44 = vpop.f32.mrb[113].mxu1  ;;  %v6211_v47 = vadd.f32 %v6210_v43, %v6209_v38  ;;  %v6212_v48 = vpop.f32.mrb[114].mxu0 }
 0x301   : > { %v6257_v49 = vadd.f32 %v6256_v44, %v6255_v41  ;;  %v6258_v4 = vpop.f32.mrb[114].mxu1  ;;  %v6213_v20 = vpop.f32.mrb[115].mxu0 }
 0x302   : > { %v6259_v19 = vpop.f32.mrb[115].mxu1  ;;  %v4952_v22 = vadd.f32 %v6211_v47, %v8371_v28  ;;  %v6214_v55 = vadd.f32 %v6213_v20, %v6212_v48 }
 0x303   : > { %v6260_v56 = vadd.f32 %v6259_v19, %v6258_v4 }
 0x304   : > { %v4955_v8 = vadd.f32 %v6214_v55, %v8373_v40  ;;  %v5024_v23 = vadd.f32 %v6257_v49, %v4952_v22 }
 0x306   : > { %v6215_v18 = vpop.f32.mrb[116].mxu0  ;;  %v5027_v58 = vadd.f32 %v6260_v56, %v4955_v8 }
 0x307   : > { %v6261_v57 = vpop.f32.mrb[116].mxu1  ;;  %v6216_v59 = vpop.f32.mrb[117].mxu0 }
 0x308   : > { %v6262_v60 = vpop.f32.mrb[117].mxu1  ;;  %v6217_v61 = vadd.f32 %v6216_v59, %v6215_v18  ;;  %v6218_v62 = vpop.f32.mrb[118].mxu0 }
 0x309   : > { %v6263_v0 = vadd.f32 %v6262_v60, %v6261_v57  ;;  %v6264_v3 = vpop.f32.mrb[118].mxu1  ;;  %v6219_v2 = vpop.f32.mrb[119].mxu0 }
 0x30a   : > { %v6265_v35 = vpop.f32.mrb[119].mxu1  ;;  %v4960_v37 = vadd.f32 %v6217_v61, %v8376_v50 }
 0x30c   : > { %v5032_v28 = vadd.f32 %v6263_v0, %v4960_v37 }
 0x30e   : > { %v5071_v34 = vpop.f32.mrb[120].mxu0 }
 0x30f   : > { %v5095_v7 = vpop.f32.mrb[120].mxu1  ;;  %v5072_v40 = vadd.f32 %v5071_v34, %v8380_v5  ;;  %v6298_v29 = vpop.f32.mrb[121].mxu0 }
 0x310   : > { %v5096_v10 = vadd.f32 %v5095_v7, %v5024_v23  ;;  %v6310_v11 = vpop.f32.mrb[121].mxu1  ;;  %v5074_v12 = vpop.f32.mrb[122].mxu0 }
 0x311   : > { %v5098_v13 = vpop.f32.mrb[122].mxu1  ;;  %v5075_v14 = vadd.f32 %v5074_v12, %v8382_v9  ;;  %v6299_v52 = vpop.f32.mrb[123].mxu0  ;;  %v5109_v16 = vmax.f32 %v5072_v40, 0.0 }
 0x312   : > { %v5099_v15 = vadd.f32 %v5098_v13, %v5027_v58  ;;  %v6311_v46 = vpop.f32.mrb[123].mxu1  ;;  %v5115_v53 = vmax.f32 %v5096_v10, 0.0 }
 0x313   : > { %v5110_v50 = vmax.f32 %v5075_v14, 0.0 }
 0x314   : > { %v5116_v17 = vmax.f32 %v5099_v15, 0.0 }
 0x315   : > { %v5695_v21 = vpack.c.bf16 %v5110_v50, %v5109_v16 }
 0x316   : > { %v5710_v24 = vpack.c.bf16 %v5116_v17, %v5115_v53  ;;  %v5079_v1 = vpop.f32.mrb[124].mxu0 }
 0x317   : > { %v5103_v5 = vpop.f32.mrb[124].mxu1  ;;  %5696 = vst [vmem:[%s8403_s23] sm:$0xff] %v5695_v21   ;;  %v5080_v9 = vadd.f32 %v5079_v1, %v8386_v54  ;;  %v6302_v45 = vpop.f32.mrb[125].mxu0 }
 0x318   : > { %5714 = vst [vmem:[%s8403_s23 + $0x18] sm:$0xff] %v5710_v24   ;;  %v5104_v26 = vadd.f32 %v5103_v5, %v5032_v28  ;;  %v6314_v27 = vpop.f32.mrb[125].mxu1  ;;  %v5082_v31 = vpop.f32.mrb[126].mxu0 }
 0x319   : > { %v5106_v51 = vpop.f32.mrb[126].mxu1  ;;  %v5083_v6 = vadd.f32 %v5082_v31, %v8388_v25  ;;  %v6303_v30 = vpop.f32.mrb[127].mxu0  ;;  %v5111_v33 = vmax.f32 %v5080_v9, 0.0 }
 0x31a   : > { %v5117_v63 = vmax.f32 %v5104_v26, 0.0  ;;  %v6315_v32 = vpop.f32.mrb[127].mxu1 }
 0x31b   : > { %v5112_v38 = vmax.f32 %v5083_v6, 0.0 }
 0x31c   : > { %v5691_v36 = vpack.c.bf16 %v5117_v63, %v5117_v63 }
 0x31d   : > { %v5700_v41 = vpack.c.bf16 %v5112_v38, %v5111_v33 }
 0x31e   : > { %5163 = vst [vmem:[%s8403_s23 + $0x20] sm:$0xf] %v5691_v36  ;;  %v5087_v43 = vpop.f32.mrb[128].mxu0 }
 0x31f   : > { %5712 = vst [vmem:[%s8403_s23 + $0x8] sm:$0xff] %v5700_v41   ;;  %v5088_v54 = vadd.f32 %v5087_v43, %v8392_v39  ;;  %v6306_v44 = vpop.f32.mrb[129].mxu0  ;;  %v5191_v39 = vld [vmem:[%s8403_s23] sm:$0xf] (%p6847_p6)  ;;  %v5203_v8 = vld [vmem:[%s8403_s23 + $0x18] sm:$0xf] (%p6847_p6) }
 0x320   : > { %v5090_v47 = vpop.f32.mrb[130].mxu0  ;;  %5192 = vst [vmem:[%s5175_s25] sm:$0xf] (%p6847_p6), %v5191_v39  ;;  %v5205_v23 = vld [vmem:[%s8403_s23 + $0x1c] sm:$0xf] (%p6847_p6)  ;;  %5204 = vst [vmem:[%s5175_s25 + $0x30] sm:$0xf] (%p6847_p6), %v5203_v8 }
 0x321   : > { %v5091_v48 = vadd.f32 %v5090_v47, %v8394_v42  ;;  %v6307_v49 = vpop.f32.mrb[131].mxu0  ;;  %v5113_v4 = vmax.f32 %v5088_v54, 0.0  ;;  %5170 = sbr.rel (!%p6847_p6) target bundleno = 816 (0x330), region = 77  ;;  %v5193_v42 = vld [vmem:[%s8403_s23 + $0x4] sm:$0xf] (%p6847_p6) }
 0x322   : > { %5194 = vst [vmem:[%s5175_s25 + $0x8] sm:$0xf] (%p6847_p6), %v5193_v42  ;;  %5206 = vst [vmem:[%s5175_s25 + $0x38] sm:$0xf] (%p6847_p6), %v5205_v23 }
 0x323   : > { %v5114_v20 = vmax.f32 %v5091_v48, 0.0 }
 0x325   : > { %v5705_v25 = vpack.c.bf16 %v5114_v20, %v5113_v4  ;;  %v5207_v18 = vld [vmem:[%s8403_s23 + $0x20] sm:$0xf] (%p6847_p6) }
 0x326   : > { %v5195_v19 = vld [vmem:[%s8403_s23 + $0x8] sm:$0xf] (%p6847_p6)  ;;  %v5197_v22 = vld [vmem:[%s8403_s23 + $0xc] sm:$0xf] (%p6847_p6)  ;;  %5208 = vst [vmem:[%s5175_s25 + $0x40] sm:$0xf] (%p6847_p6), %v5207_v18 }
 0x327   : > { %5713 = vst [vmem:[%s8403_s23 + $0x10] sm:$0xff] %v5705_v25   ;;  %5196 = vst [vmem:[%s5175_s25 + $0x10] sm:$0xf] (%p6847_p6), %v5195_v19 }
 0x328   : > { %5198 = vst [vmem:[%s5175_s25 + $0x18] sm:$0xf] %v5197_v22 }
 0x32e   : > { %v5199_v55 = vld [vmem:[%s8403_s23 + $0x10] sm:$0xf]  ;;  %v5201_v56 = vld [vmem:[%s8403_s23 + $0x14] sm:$0xf] }
 0x32f   : > { %5200 = vst [vmem:[%s5175_s25 + $0x20] sm:$0xf] %v5199_v55  ;;  %5202 = vst [vmem:[%s5175_s25 + $0x28] sm:$0xf] %v5201_v56 }
 0x330 PF: > { %s13_s16 = sadd.s32 1, %s6788_s16   ;;  %s8449_s12 = smov %s6776_s13 }
 0x331   : > { %p10_p12 = scmp.ge.s32.totalorder %s13_s16, 4   ;;  %s8450_s13 = smov %s6852_s22 }
 0x332   : > { %s8451_s14 = smov %s6784_s15  ;;  %s8452_s15 = smov %s8454_s17 }
 0x333   :  { %12 = sbr.rel (!%p10_p12) target bundleno = 3 (0x3), region = 155 }

// kernel: itracker_image_forward.8
= control target key start
LH: loop header
LB: loop body
LE: loop exit
PB: predicated region body
PF: predicated region fallthrough
CT: control target
= control target key end

     0   :  { %vm81_vm0 = vsmask.f32 256  ;;  %vm82_vm1 = vsmask.f32 1284  ;;  %vm84_vm2 = vsmask.f32 2312  ;;  %v292_v21 = vlaneseq  ;;  %s1217_s0 = inlined_call_operand.vmem [shape: bf16[2,3,3,256], index: 0, kind: input, shape index: {}]   ;;  %s1218_s3 = inlined_call_operand.vmem [shape: bf16[2,2,2,256], index: 3, kind: input, shape index: {}]   ;;  %s1219_s2 = inlined_call_operand.vmem [shape: bf16[2,2,3,256], index: 2, kind: input, shape index: {}]   ;;  %s1220_s1 = inlined_call_operand.vmem [shape: bf16[2,3,2,256], index: 1, kind: input, shape index: {}]   ;;  %s1221_s4 = inlined_call_operand.vmem [shape: bf16[2,2,2,256], index: 4, kind: output, shape index: {}]  }
   0x1   :  { %v19_v0 = vld [vmem:[%s1218_s3 + $0x4] sm:$0x3]  ;;  %v20_v1 = vld [vmem:[%s1218_s3 + $0x6] sm:$0x3]  ;;  %vm83_vm3 = vmor %vm81_vm0, %vm82_vm1  ;;  %vm86_vm5 = vsmask.f32 3340 }
   0x2   :  { %v837_v2 = vld.sshfl [vmem:[%s1217_s0 + $0xc] sm:$0x33 pattern:$0x75316420]  ;;  %vm85_vm4 = vmor %vm83_vm3, %vm84_vm2  ;;  %vm88_vm7 = vsmask.f32 4368 }
   0x3   :  { %v838_v3 = vld.sshfl [vmem:[%s1217_s0 + $0x10] sm:$0x33 pattern:$0x75316420]  ;;  %v79_v4 = vcombine.high %v837_v2, %v837_v2  ;;  %vm87_vm6 = vmor %vm85_vm4, %vm86_vm5  ;;  %v75_v7 = vmax.bf16 %v837_v2, %v19_v0  ;;  %vm90_vm9 = vsmask.f32 5396 }
   0x4   :  { %v931_v5 = vld.sshfl [vmem:[%s1219_s2 + $0x8] sm:$0x33 pattern:$0x75316420]  ;;  %v80_v6 = vcombine.high %v838_v3, %v838_v3  ;;  %vm89_vm8 = vmor %vm87_vm6, %vm88_vm7  ;;  %vm92_vm10 = vsmask.f32 6424  ;;  %v76_v12 = vmax.bf16 %v838_v3, %v20_v1 }
   0x5   :  { %vm94_vm11 = vsmask.f32 7452  ;;  %vm91_vm12 = vmor %vm89_vm8, %vm90_vm9  ;;  %v115_v8 = vshrl.u32 %v837_v2, 16  ;;  %v120_v9 = vshll.u32 %v79_v4, 16  ;;  %v124_v10 = vshrl.u32 %v838_v3, 16  ;;  %s887_s26 = smov 127  }
   0x6   :  { %v129_v11 = vshll.u32 %v80_v6, 16  ;;  %vm93_vm13 = vmor %vm91_vm12, %vm92_vm10  ;;  %v17_v14 = vld [vmem:[%s1218_s3] sm:$0x3]  ;;  %v238_v17 = vcombine.high %v931_v5, %v931_v5  ;;  %v18_v18 = vld [vmem:[%s1218_s3 + $0x2] sm:$0x3]  ;;  %v259_v35 = vshrl.u32 %v931_v5, 16 }
   0x7   :  { %vm933_vm14 = vmor %vm93_vm13, %vm94_vm11  ;;  %v835_v19 = vld.sshfl [vmem:[%s1217_s0] sm:$0x33 pattern:$0x75316420]  ;;  %v30_v23 = vld [vmem:[%s1220_s1 + $0x6] sm:$0x3] }
   0x8   :  { %v122_v15 = vsel %vm933_vm14, %v115_v8, %v120_v9  ;;  %v131_v16 = vsel %vm933_vm14, %v124_v10, %v129_v11  ;;  %v836_v22 = vld.sshfl [vmem:[%s1217_s0 + $0x4] sm:$0x33 pattern:$0x75316420]  ;;  %v77_v26 = vcombine.high %v835_v19, %v835_v19  ;;  %v97_v28 = vshrl.u32 %v835_v19, 16  ;;  %s888_s27 = smov 2  }
   0x9   :  { %v138_v20 = vmax.bf16 %v122_v15, %v75_v7  ;;  %v139_v24 = vmax.bf16 %v131_v16, %v76_v12  ;;  %v961_v25 = vld.sshfl [vmem:[%s1219_s2] sm:$0x33 pattern:$0x75316420]  ;;  %v78_v27 = vcombine.high %v836_v22, %v836_v22  ;;  %v73_v30 = vmax.bf16 %v835_v19, %v17_v14  ;;  %v31_v34 = vld [vmem:[%s1220_s1 + $0x8] sm:$0x3] }
   0xa   :  { %v74_v31 = vmax.bf16 %v836_v22, %v18_v18  ;;  %v106_v32 = vshrl.u32 %v836_v22, 16  ;;  %v844_v33 = vld.sshfl [vmem:[%s1217_s0 + $0x14] sm:$0x33 pattern:$0x75316420]  ;;  %v264_v36 = vshll.u32 %v238_v17, 16  ;;  %v236_v47 = vcombine.high %v961_v25, %v961_v25 }
   0xb   :  { %v160_v29 = vmax.bf16 %v838_v3, %v138_v20  ;;  %v102_v37 = vshll.u32 %v77_v26, 16  ;;  %v111_v38 = vshll.u32 %v78_v27, 16  ;;  %v885_v40 = vmov 1983009808   ;;  %v27_v0 = vld [vmem:[%s1220_s1] sm:$0x3] }
   0xc   :  { %v302_v41 = vunpack.c.l.s4 %v885_v40  ;;  %v971_v42 = vshrl.u32 %v292_v21, 7  ;;  %v850_v43 = vld.sshfl [vmem:[%s1219_s2 + $0xc] sm:$0x33 pattern:$0x75316420]  ;;  %v163_v44 = vcombine.high %v844_v33, %v844_v33  ;;  %v174_v48 = vshrl.u32 %v844_v33, 16 }
   0xd   :  { %v186_v39 = vmax.bf16 %v160_v29, %v131_v16  ;;  %v104_v45 = vsel %vm933_vm14, %v97_v28, %v102_v37  ;;  %v113_v46 = vsel %vm933_vm14, %v106_v32, %v111_v38  ;;  %v843_v49 = vld.sshfl [vmem:[%s1217_s0 + $0x8] sm:$0x33 pattern:$0x75316420]  ;;  %v161_v53 = vmax.bf16 %v844_v33, %v139_v24  ;;  %v28_v6 = vld [vmem:[%s1220_s1 + $0x2] sm:$0x3] }
   0xe   :  { %v136_v51 = vmax.bf16 %v104_v45, %v73_v30  ;;  %v137_v52 = vmax.bf16 %v113_v46, %v74_v31  ;;  %v848_v54 = vld.sshfl [vmem:[%s1219_s2 + $0x4] sm:$0x33 pattern:$0x75316420]  ;;  %v179_v55 = vshll.u32 %v163_v44, 16  ;;  %v239_v56 = vcombine.high %v850_v43, %v850_v43  ;;  %s889_s28 = smov 126  }
   0xf   :  { %v190_v50 = vmax.bf16 %v186_v39, %v30_v23  ;;  %v162_v57 = vcombine.high %v843_v49, %v843_v49  ;;  %v165_v58 = vshrl.u32 %v843_v49, 16  ;;  %v266_v60 = vsel %vm933_vm14, %v259_v35, %v264_v36  ;;  %v32_v11 = vld [vmem:[%s1220_s1 + $0xa] sm:$0x3]  ;;  %v29_v20 = vld [vmem:[%s1220_s1 + $0x4] sm:$0x3]  ;;  %s886_s1 = smov 1  }
  0x10   :  { %v158_v61 = vmax.bf16 %v836_v22, %v136_v51  ;;  %v159_v62 = vmax.bf16 %v843_v49, %v137_v52  ;;  %v303_v63 = vunpack.c.0.s8 %v302_v41  ;;  %v181_v1 = vsel %vm933_vm14, %v174_v48, %v179_v55 }
  0x11   :  { %v194_v59 = vmax.bf16 %v190_v50, %v31_v34  ;;  %v170_v2 = vshll.u32 %v162_v57, 16  ;;  %v237_v3 = vcombine.high %v848_v54, %v848_v54  ;;  %v241_v8 = vshrl.u32 %v961_v25, 16 }
  0x12   :  { %v184_v7 = vmax.bf16 %v158_v61, %v113_v46  ;;  %v187_v9 = vmax.bf16 %v181_v1, %v161_v53  ;;  %v246_v10 = vshll.u32 %v236_v47, 16  ;;  %v268_v12 = vshrl.u32 %v850_v43, 16 }
  0x13   :  { %v234_v4 = vmax.bf16 %v931_v5, %v194_v59  ;;  %v273_v14 = vshll.u32 %v239_v56, 16  ;;  %v172_v15 = vsel %vm933_vm14, %v165_v58, %v170_v2  ;;  %v1006_v19 = vsub.s32 %v303_v63, %v971_v42 }
  0x14   :  { %v188_v5 = vmax.bf16 %v184_v7, %v27_v0  ;;  %v191_v17 = vmax.bf16 %v187_v9, %v31_v34  ;;  %v185_v18 = vmax.bf16 %v172_v15, %v159_v62  ;;  %v250_v22 = vshrl.u32 %v848_v54, 16 }
  0x15   :  { %v282_v16 = vmax.bf16 %v266_v60, %v234_v4  ;;  %v255_v23 = vshll.u32 %v237_v3, 16  ;;  %v248_v29 = vsel %vm933_vm14, %v241_v8, %v246_v10  ;;  %v275_v30 = vsel %vm933_vm14, %v268_v12, %v273_v14 }
  0x16   :  { %v192_v26 = vmax.bf16 %v188_v5, %v28_v6  ;;  %v195_v27 = vmax.bf16 %v191_v17, %v32_v11  ;;  %v189_v28 = vmax.bf16 %v185_v18, %v28_v6  ;;  %v1053_v4 = vand.u32 127, %v292_v21 }
  0x17   :  { %v1011_v24 = vunpack.c.l.bf16 %v282_v16  ;;  %v257_v35 = vsel %vm933_vm14, %v250_v22, %v255_v23 }
  0x18   :  { %v232_v32 = vmax.bf16 %v961_v25, %v192_v26  ;;  %v235_v33 = vmax.bf16 %v850_v43, %v195_v27  ;;  %v193_v34 = vmax.bf16 %v189_v28, %v29_v20  ;;  %vm357_vm15 = vcmp.lt.s32.totalorder %v1053_v4, 1 }
  0x19   :  { %v1019_v31 = vmul.f32 %v1011_v24, %v1011_v24  ;;  %vm295_vm0 = vcmp.ge.s32.totalorder %v1053_v4, 1  ;;  %v1070_v14 = vadd.s32 128, %v1053_v4  ;;  %vm440_vm1 = vcmp.lt.s32.totalorder %v1053_v4, 127 }
  0x1a   :  { %v280_v37 = vmax.bf16 %v248_v29, %v232_v32  ;;  %v283_v38 = vmax.bf16 %v275_v30, %v235_v33  ;;  %v233_v39 = vmax.bf16 %v848_v54, %v193_v34  ;;  %vm523_vm2 = vcmp.lt.s32.totalorder %v1053_v4, 2 }
  0x1b   :  { %v323_v36 = vrot.slane %v1019_v31, %v1006_v19  ;;  %vm423_vm3 = vcmp.le.s32.totalorder %v1070_v14, 254  ;;  %vm505_vm4 = vcmp.ge.s32.totalorder %v1053_v4, 2  ;;  %vm589_vm5 = vcmp.le.s32.totalorder %v1070_v14, 253 }
  0x1c   :  { %v1026_v40 = vunpack.c.l.bf16 %v280_v37  ;;  %v1028_v41 = vunpack.c.l.bf16 %v283_v38  ;;  %v281_v44 = vmax.bf16 %v257_v35, %v233_v39  ;;  %vm606_vm6 = vcmp.lt.s32.totalorder %v1053_v4, 126 }
  0x1d   :  { %345 = vrot.lane.b32.xlu1 %v323_v36, %s886_s1  ;;  %v324_v52 = vcombine.high %v323_v36, %v323_v36 }
  0x1e   :  { %v1032_v25 = vmul.f32 %v1026_v40, %v1026_v40  ;;  %v1036_v13 = vmul.f32 %v1028_v41, %v1028_v41  ;;  %v1038_v43 = vunpack.c.l.bf16 %v281_v44 }
  0x20   :  { %v307_v45 = vrot.slane %v1032_v25, %v1006_v19  ;;  %v331_v46 = vrot.slane %v1036_v13, %v1006_v19  ;;  %v1046_v47 = vmul.f32 %v1038_v43, %v1038_v43 }
  0x22   :  { %341 = vrot.lane.b32.xlu0 %v307_v45, %s886_s1  ;;  %347 = vrot.lane.b32.xlu1 %v331_v46, %s886_s1  ;;  %v315_v48 = vrot.slane %v1046_v47, %v1006_v19  ;;  %v308_v50 = vcombine.high %v307_v45, %v307_v45  ;;  %v332_v51 = vcombine.high %v331_v46, %v331_v46 }
  0x24   :  { %v316_v49 = vcombine.high %v315_v48, %v315_v48 }
  0x26   :  { %343 = vrot.lane.b32.xlu0 %v315_v48, %s886_s1  ;;  %426 = vrot.lane.b32.xlu1 %v315_v48, %s887_s26 }
  0x2a   :  { %424 = vrot.lane.b32.xlu0 %v307_v45, %s887_s26  ;;  %430 = vrot.lane.b32.xlu1 %v331_v46, %s887_s26 }
  0x2e   :  { %428 = vrot.lane.b32.xlu0 %v323_v36, %s887_s26  ;;  %351 = vrot.lane.b32.xlu1 %v316_v49, %s886_s1 }
  0x32   :  { %349 = vrot.lane.b32.xlu0 %v308_v50, %s886_s1  ;;  %355 = vrot.lane.b32.xlu1 %v332_v51, %s886_s1 }
  0x36   :  { %353 = vrot.lane.b32.xlu0 %v324_v52, %s886_s1  ;;  %434 = vrot.lane.b32.xlu1 %v316_v49, %s887_s26 }
  0x3a   :  { %432 = vrot.lane.b32.xlu0 %v308_v50, %s887_s26  ;;  %438 = vrot.lane.b32.xlu1 %v332_v51, %s887_s26 }
  0x3e   :  { %436 = vrot.lane.b32.xlu0 %v324_v52, %s887_s26  ;;  %509 = vrot.lane.b32.xlu1 %v315_v48, %s888_s27 }
  0x42   :  { %507 = vrot.lane.b32.xlu0 %v307_v45, %s888_s27  ;;  %513 = vrot.lane.b32.xlu1 %v331_v46, %s888_s27 }
  0x46   :  { %511 = vrot.lane.b32.xlu0 %v323_v36, %s888_s27  ;;  %517 = vrot.lane.b32.xlu1 %v316_v49, %s888_s27 }
  0x4a   :  { %515 = vrot.lane.b32.xlu0 %v308_v50, %s888_s27  ;;  %521 = vrot.lane.b32.xlu1 %v332_v51, %s888_s27 }
  0x4e   :  { %519 = vrot.lane.b32.xlu0 %v324_v52, %s888_s27  ;;  %592 = vrot.lane.b32.xlu1 %v315_v48, %s889_s28 }
  0x52   :  { %590 = vrot.lane.b32.xlu0 %v307_v45, %s889_s28  ;;  %596 = vrot.lane.b32.xlu1 %v331_v46, %s889_s28 }
  0x56   :  { %594 = vrot.lane.b32.xlu0 %v323_v36, %s889_s28  ;;  %600 = vrot.lane.b32.xlu1 %v316_v49, %s889_s28 }
  0x5a   :  { %598 = vrot.lane.b32.xlu0 %v308_v50, %s889_s28  ;;  %604 = vrot.lane.b32.xlu1 %v332_v51, %s889_s28 }
  0x5e   :  { %602 = vrot.lane.b32.xlu0 %v324_v52, %s889_s28 }
  0x8f   :  { %v346_v53 = vpop.permute.xlu1 %345 }
  0x94   :  { %v342_v54 = vpop.permute.xlu0 %341  ;;  %v348_v55 = vpop.permute.xlu1 %347 }
  0x98   :  { %v344_v56 = vpop.permute.xlu0 %343  ;;  %v427_v57 = vpop.permute.xlu1 %426 }
  0x9c   :  { %v425_v58 = vpop.permute.xlu0 %424  ;;  %v431_v59 = vpop.permute.xlu1 %430 }
  0xa0   :  { %v1050_v60 = vpop.permute.xlu0 %428  ;;  %v352_v61 = vpop.permute.xlu1 %351 }
  0xa1   :  { %v363_v10 = vsel %vm357_vm15, %v352_v61, %v344_v56  ;;  %v359_v11 = vsel %vm357_vm15, %v344_v56, %v352_v61 }
  0xa2   :  { %v368_v21 = vsel %vm295_vm0, %v363_v10, 0.0 }
  0xa3   :  { %v390_v5 = vcombine.low %v368_v21, %v359_v11 }
  0xa4   :  { %v350_v62 = vpop.permute.xlu0 %349  ;;  %v356_v63 = vpop.permute.xlu1 %355 }
  0xa5   :  { %v362_v12 = vsel %vm357_vm15, %v350_v62, %v342_v54  ;;  %v358_v17 = vsel %vm357_vm15, %v342_v54, %v350_v62  ;;  %v365_v20 = vsel %vm357_vm15, %v356_v63, %v348_v55  ;;  %v361_v29 = vsel %vm357_vm15, %v348_v55, %v356_v63 }
  0xa6   :  { %v366_v18 = vsel %vm295_vm0, %v362_v12, 0.0  ;;  %v372_v30 = vsel %vm295_vm0, %v365_v20, 0.0  ;;  %v397_v33 = vrot.slane %v390_v5, %v1006_v19 }
  0xa7   :  { %v382_v28 = vcombine.low %v366_v18, %v358_v17  ;;  %v406_v45 = vcombine.low %v372_v30, %v361_v29 }
  0xa8   :  { %v354_v0 = vpop.permute.xlu0 %353  ;;  %v435_v1 = vpop.permute.xlu1 %434 }
  0xa9   :  { %v446_v22 = vsel %vm440_vm1, %v435_v1, %v427_v57  ;;  %v364_v27 = vsel %vm357_vm15, %v354_v0, %v346_v53  ;;  %v442_v34 = vsel %vm440_vm1, %v427_v57, %v435_v1  ;;  %v360_v36 = vsel %vm357_vm15, %v346_v53, %v354_v0 }
  0xaa   :  { %v452_v35 = vsel %vm423_vm3, %v446_v22, 0.0  ;;  %v370_v37 = vsel %vm295_vm0, %v364_v27, 0.0  ;;  %v389_v50 = vrot.slane %v382_v28, %v1006_v19  ;;  %v419_v53 = vadd.f32 %v397_v33, %v1046_v47 }
  0xab   :  { %v473_v51 = vcombine.low %v442_v34, %v452_v35  ;;  %v398_v54 = vcombine.low %v370_v37, %v360_v36  ;;  %v413_v1 = vrot.slane %v406_v45, %v1006_v19 }
  0xac   :  { %v433_v2 = vpop.permute.xlu0 %432  ;;  %v439_v3 = vpop.permute.xlu1 %438 }
  0xad   :  { %v445_v38 = vsel %vm440_vm1, %v433_v2, %v425_v58  ;;  %v448_v46 = vsel %vm440_vm1, %v439_v3, %v431_v59  ;;  %v441_v55 = vsel %vm440_vm1, %v425_v58, %v433_v2  ;;  %v444_v57 = vsel %vm440_vm1, %v431_v59, %v439_v3 }
  0xae   :  { %v450_v56 = vsel %vm423_vm3, %v445_v38, 0.0  ;;  %v456_v61 = vsel %vm423_vm3, %v448_v46, 0.0  ;;  %v418_v3 = vadd.f32 %v389_v50, %v1032_v25  ;;  %v405_v21 = vrot.slane %v398_v54, %v1006_v19 }
  0xaf   :  { %v465_v10 = vcombine.low %v441_v55, %v450_v56  ;;  %v489_v12 = vcombine.low %v444_v57, %v456_v61  ;;  %v421_v30 = vadd.f32 %v413_v1, %v1036_v13 }
  0xb0   :  { %v1055_v6 = vpop.permute.xlu0 %436  ;;  %v510_v7 = vpop.permute.xlu1 %509 }
  0xb1   :  { %v447_v58 = vsel %vm440_vm1, %v1055_v6, %v1050_v60  ;;  %v443_v25 = vsel %vm440_vm1, %v1050_v60, %v1055_v6  ;;  %v472_v27 = vrot.slane %v465_v10, %v1006_v19  ;;  %v496_v34 = vrot.slane %v489_v12, %v1006_v19 }
  0xb2   :  { %v454_v5 = vsel %vm423_vm3, %v447_v58, 0.0 }
  0xb3   :  { %v501_v46 = vadd.f32 %v472_v27, %v418_v3  ;;  %v504_v55 = vadd.f32 %v496_v34, %v421_v30 }
  0xb4   :  { %v508_v8 = vpop.permute.xlu0 %507  ;;  %v1058_v9 = vpop.permute.xlu1 %513 }
  0xb8   :  { %v1072_v15 = vpop.permute.xlu0 %511  ;;  %v518_v16 = vpop.permute.xlu1 %517 }
  0xb9   :  { %v529_v32 = vsel %vm523_vm2, %v518_v16, %v510_v7  ;;  %v525_v48 = vsel %vm523_vm2, %v510_v7, %v518_v16  ;;  %v480_v7 = vrot.slane %v473_v51, %v1006_v19 }
  0xba   :  { %v534_v49 = vsel %vm505_vm4, %v529_v32, 0.0  ;;  %v481_v32 = vcombine.low %v443_v25, %v454_v5 }
  0xbb   :  { %v556_v62 = vcombine.low %v534_v49, %v525_v48  ;;  %v502_v6 = vadd.f32 %v480_v7, %v419_v53 }
  0xbc   :  { %v516_v23 = vpop.permute.xlu0 %515  ;;  %v522_v26 = vpop.permute.xlu1 %521  ;;  %v488_v51 = vrot.slane %v481_v32, %v1006_v19 }
  0xbd   :  { %v528_v52 = vsel %vm523_vm2, %v516_v23, %v508_v8  ;;  %v531_v63 = vsel %vm523_vm2, %v522_v26, %v1058_v9  ;;  %v524_v59 = vsel %vm523_vm2, %v508_v8, %v516_v23  ;;  %v527_v16 = vsel %vm523_vm2, %v1058_v9, %v522_v26 }
  0xbe   :  { %v532_v2 = vsel %vm505_vm4, %v528_v52, 0.0  ;;  %v538_v8 = vsel %vm505_vm4, %v531_v63, 0.0  ;;  %v563_v17 = vrot.slane %v556_v62, %v1006_v19 }
  0xbf   :  { %v548_v18 = vcombine.low %v532_v2, %v524_v59  ;;  %v572_v28 = vcombine.low %v538_v8, %v527_v16 }
  0xc0   :  { %v520_v39 = vpop.permute.xlu0 %519  ;;  %v593_v44 = vpop.permute.xlu1 %592  ;;  %v585_v35 = vadd.f32 %v563_v17, %v502_v6 }
  0xc1   :  { %v530_v11 = vsel %vm523_vm2, %v520_v39, %v1072_v15  ;;  %v526_v9 = vsel %vm523_vm2, %v1072_v15, %v520_v39  ;;  %v420_v15 = vadd.f32 %v405_v21, %v1019_v31  ;;  %v555_v36 = vrot.slane %v548_v18, %v1006_v19 }
  0xc2   :  { %v536_v23 = vsel %vm505_vm4, %v530_v11, 0.0  ;;  %v579_v48 = vrot.slane %v572_v28, %v1006_v19 }
  0xc3   :  { %v564_v37 = vcombine.low %v536_v23, %v526_v9  ;;  %v584_v56 = vadd.f32 %v555_v36, %v501_v46  ;;  %v503_v3 = vadd.f32 %v488_v51, %v420_v15  ;;  %v890_v36 = vmov 1966171168  }
  0xc4   :  { %v591_v0 = vpop.permute.xlu0 %590  ;;  %v597_v47 = vpop.permute.xlu1 %596  ;;  %v587_v58 = vadd.f32 %v579_v48, %v504_v55 }
  0xc5   :  { %v571_v57 = vrot.slane %v564_v37, %v1006_v19  ;;  %v765_v37 = vunpack.c.l.s4 %v890_v36 }
  0xc7   :  { %v586_v12 = vadd.f32 %v571_v57, %v503_v3 }
  0xc8   :  { %v595_v20 = vpop.permute.xlu0 %594  ;;  %v601_v22 = vpop.permute.xlu1 %600 }
  0xc9   :  { %v608_v26 = vsel %vm606_vm6, %v593_v44, %v601_v22  ;;  %v612_v60 = vsel %vm606_vm6, %v601_v22, %v593_v44 }
  0xca   :  { %v618_v29 = vsel %vm589_vm5, %v612_v60, 0.0 }
  0xcb   :  { %v639_v33 = vcombine.low %v608_v26, %v618_v29 }
  0xcc   :  { %v599_v38 = vpop.permute.xlu0 %598  ;;  %v605_v39 = vpop.permute.xlu1 %604 }
  0xcd   :  { %v646_v44 = vrot.slane %v639_v33, %v1006_v19  ;;  %v607_v45 = vsel %vm606_vm6, %v591_v0, %v599_v38  ;;  %v611_v13 = vsel %vm606_vm6, %v599_v38, %v591_v0  ;;  %v610_v31 = vsel %vm606_vm6, %v597_v47, %v605_v39 }
  0xce   :  { %v616_v49 = vsel %vm589_vm5, %v611_v13, 0.0  ;;  %v614_v50 = vsel %vm606_vm6, %v605_v39, %v597_v47  ;;  %v766_v39 = vunpack.c.0.s8 %v765_v37 }
  0xcf   :  { %v668_v52 = vadd.f32 %v646_v44, %v585_v35  ;;  %v631_v53 = vcombine.low %v607_v45, %v616_v49  ;;  %v622_v54 = vsel %vm589_vm5, %v614_v50, 0.0 }
  0xd0   :  { %v655_v61 = vcombine.low %v610_v31, %v622_v54  ;;  %v603_v62 = vpop.permute.xlu0 %602  ;;  %v769_v46 = vsub.s32 %v766_v39, %v971_v42 }
  0xd1   :  { %v672_v63 = vmul.f32 2e-05, %v668_v52  ;;  %v638_v0 = vrot.slane %v631_v53, %v1006_v19  ;;  %v609_v1 = vsel %vm606_vm6, %v595_v20, %v603_v62  ;;  %v613_v47 = vsel %vm606_vm6, %v603_v62, %v595_v20 }
  0xd2   :  { %v662_v59 = vrot.slane %v655_v61, %v1006_v19  ;;  %v620_v2 = vsel %vm589_vm5, %v613_v47, 0.0 }
  0xd3   :  { %v676_v7 = vadd.f32 1.0, %v672_v63  ;;  %v667_v10 = vadd.f32 %v638_v0, %v584_v56  ;;  %v647_v11 = vcombine.low %v609_v1, %v620_v2 }
  0xd4   :  { %v670_v21 = vadd.f32 %v662_v59, %v587_v58 }
  0xd5   :  { %869 = vlog2.f32 %v676_v7  ;;  %v671_v16 = vmul.f32 2e-05, %v667_v10  ;;  %v654_v8 = vrot.slane %v647_v11, %v1006_v19 }
  0xd6   :  { %v674_v25 = vmul.f32 2e-05, %v670_v21 }
  0xd7   :  { %v675_v5 = vadd.f32 1.0, %v671_v16  ;;  %v669_v4 = vadd.f32 %v654_v8, %v586_v12 }
  0xd8   :  { %v678_v17 = vadd.f32 1.0, %v674_v25 }
  0xd9   :  { %871 = vlog2.f32 %v675_v5  ;;  %v673_v18 = vmul.f32 2e-05, %v669_v4 }
  0xda   :  { %873 = vlog2.f32 %v678_v17 }
  0xdb   :  { %v677_v20 = vadd.f32 1.0, %v673_v18 }
  0xdd   :  { %875 = vlog2.f32 %v677_v20 }
  0xdf   :  { %v870_v14 = vpop.eup %869 }
  0xe0   :  { %v682_v22 = vmul.f32 0.6931472, %v870_v14 }
  0xe2   :  { %v688_v9 = vmul.f32 -0.75, %v682_v22 }
  0xe3   :  { %v872_v23 = vpop.eup %871 }
  0xe4   :  { %v874_v26 = vpop.eup %873  ;;  %v693_v60 = vmul.f32 1.442695, %v688_v9  ;;  %v680_v6 = vmul.f32 0.6931472, %v872_v23 }
  0xe5   :  { %v686_v27 = vmul.f32 0.6931472, %v874_v26 }
  0xe6   :  { %877 = vpow2.f32 %v693_v60  ;;  %v687_v28 = vmul.f32 -0.75, %v680_v6 }
  0xe7   :  { %v876_v29 = vpop.eup %875  ;;  %v690_v30 = vmul.f32 -0.75, %v686_v27 }
  0xe8   :  { %v691_v15 = vmul.f32 1.442695, %v687_v28  ;;  %v684_v32 = vmul.f32 0.6931472, %v876_v29 }
  0xe9   :  { %v697_v33 = vmul.f32 1.442695, %v690_v30 }
  0xea   :  { %879 = vpow2.f32 %v691_v15  ;;  %v689_v34 = vmul.f32 -0.75, %v684_v32 }
  0xeb   :  { %881 = vpow2.f32 %v697_v33 }
  0xec   :  { %v695_v35 = vmul.f32 1.442695, %v689_v34 }
  0xee   :  { %883 = vpow2.f32 %v695_v35 }
  0xf0   :  { %v878_v38 = vpop.eup %877 }
  0xf1   :  { %v700_v44 = vmul.f32 %v878_v38, %v1038_v43 }
  0xf3   :  { %v721_v45 = vrot.slane %v700_v44, %v1006_v19 }
  0xf4   :  { %v880_v13 = vpop.eup %879 }
  0xf5   :  { %v882_v31 = vpop.eup %881  ;;  %v722_v48 = vcombine.high %v721_v45, %v721_v45  ;;  %v699_v49 = vmul.f32 %v880_v13, %v1026_v40 }
  0xf6   :  { %v702_v50 = vmul.f32 %v882_v31, %v1028_v41 }
  0xf7   :  { %v856_v51 = vpack.c.bf16 %v722_v48, %v721_v45  ;;  %v713_v52 = vrot.slane %v699_v49, %v1006_v19 }
  0xf8   :  { %v884_v53 = vpop.eup %883  ;;  %v737_v54 = vrot.slane %v702_v50, %v1006_v19 }
  0xf9   :  { %v785_v55 = vrot.slane %v856_v51, %v769_v46  ;;  %v714_v56 = vcombine.high %v713_v52, %v713_v52  ;;  %v701_v43 = vmul.f32 %v884_v53, %v1011_v24 }
  0xfa   :  { %v738_v57 = vcombine.high %v737_v54, %v737_v54 }
  0xfb   :  { %860 = vst.sshfl [vmem:[%s1221_s4 + $0x2] sm:$0x5 pattern:$0x73625140] %v785_v55  ;;  %v855_v42 = vpack.c.bf16 %v714_v56, %v713_v52  ;;  %v729_v40 = vrot.slane %v701_v43, %v1006_v19 }
  0xfc   :  { %v858_v61 = vpack.c.bf16 %v738_v57, %v737_v54 }
  0xfd   :  { %v770_v41 = vrot.slane %v855_v42, %v769_v46  ;;  %v730_v62 = vcombine.high %v729_v40, %v729_v40 }
  0xfe   :  { %v815_v63 = vrot.slane %v858_v61, %v769_v46 }
  0xff   :  { %859 = vst.sshfl [vmem:[%s1221_s4] sm:$0x5 pattern:$0x73625140] %v770_v41  ;;  %v857_v0 = vpack.c.bf16 %v730_v62, %v729_v40 }
 0x100   :  { %862 = vst.sshfl [vmem:[%s1221_s4 + $0x6] sm:$0x5 pattern:$0x73625140] %v815_v63 }
 0x101   :  { %v800_v24 = vrot.slane %v857_v0, %v769_v46 }
 0x103   :  { %861 = vst.sshfl [vmem:[%s1221_s4 + $0x4] sm:$0x5 pattern:$0x73625140] %v800_v24 }

// kernel: itracker_image_forward.9
= control target key start
LH: loop header
LB: loop body
LE: loop exit
PB: predicated region body
PF: predicated region fallthrough
CT: control target
= control target key end

     0   :  { %vm5388_vm0 = vmmov 0   ;;  %s6944_s1 = inlined_call_operand.vmem [shape: bf16[2304,384], index: 1, kind: input, shape index: {}]   ;;  %s6945_s0 = inlined_call_operand.vmem [shape: bf16[8,2304], index: 0, kind: input, shape index: {}]   ;;  %s6946_s2 = inlined_call_operand.vmem [shape: f32[1,384], index: 2, kind: input, shape index: {}]   ;;  %s6947_s3 = inlined_call_operand.vmem [shape: bf16[384,128], index: 3, kind: input, shape index: {}]   ;;  %s6948_s4 = inlined_call_operand.vmem [shape: f32[1,128], index: 4, kind: input, shape index: {}]   ;;  %s6949_s5 = inlined_call_operand.vmem [shape: bf16[8,128], index: 5, kind: output, shape index: {}]  }
   0x1   :  { %v4769_v0 = vld [vmem:[%s6944_s1 + $0x4] ss:$12 sps:$4 sm:$0xff]   ;;  %v4773_v2 = vld [vmem:[%s6944_s1] ss:$12 sps:$4 sm:$0xff]   ;;  %v4775_v4 = vld [vmem:[%s6944_s1 + $0x1c] ss:$12 sps:$4 sm:$0xff]  }
   0x2   :  { %v4771_v1 = vld [vmem:[%s6944_s1 + $0x304] ss:$12 sps:$4 sm:$0xff]   ;;  %2990 = vmatprep.subr.bf16.mxu1 %v4769_v0  ;;  %v4774_v3 = vld [vmem:[%s6944_s1 + $0x300] ss:$12 sps:$4 sm:$0xff]   ;;  %v4777_v5 = vld [vmem:[%s6944_s1 + $0x31c] ss:$12 sps:$4 sm:$0xff]  }
   0x3   :  { %3072 = vmatprep.subr.bf16.mxu0 %v4771_v1  ;;  %2991 = vmatpush1.bf16.msra.mxu1 %v4773_v2  ;;  %v4779_v6 = vld [vmem:[%s6944_s1 + $0x18] ss:$12 sps:$4 sm:$0xff]   ;;  %v4781_v8 = vld [vmem:[%s6944_s1 + $0x34] ss:$12 sps:$4 sm:$0xff]   ;;  %v4785_v10 = vld [vmem:[%s6944_s1 + $0x30] ss:$12 sps:$4 sm:$0xff]  }
   0x4   :  { %3073 = vmatpush1.bf16.msra.mxu0 %v4774_v3  ;;  %2992 = vmatprep.subr.bf16.mxu1 %v4775_v4  ;;  %v4780_v7 = vld [vmem:[%s6944_s1 + $0x318] ss:$12 sps:$4 sm:$0xff]   ;;  %v4783_v9 = vld [vmem:[%s6944_s1 + $0x334] ss:$12 sps:$4 sm:$0xff]   ;;  %v4786_v11 = vld [vmem:[%s6944_s1 + $0x330] ss:$12 sps:$4 sm:$0xff]  }
   0x5   :  { %3074 = vmatprep.subr.bf16.mxu0 %v4777_v5  ;;  %v4787_v12 = vld [vmem:[%s6944_s1 + $0x4c] ss:$12 sps:$4 sm:$0xff]   ;;  %v4791_v14 = vld [vmem:[%s6944_s1 + $0x48] ss:$12 sps:$4 sm:$0xff]   ;;  %v4793_v16 = vld [vmem:[%s6944_s1 + $0x64] ss:$12 sps:$4 sm:$0xff]  }
   0x6   :  { %v4789_v13 = vld [vmem:[%s6944_s1 + $0x34c] ss:$12 sps:$4 sm:$0xff]   ;;  %v4792_v15 = vld [vmem:[%s6944_s1 + $0x348] ss:$12 sps:$4 sm:$0xff]   ;;  %v4795_v17 = vld [vmem:[%s6944_s1 + $0x364] ss:$12 sps:$4 sm:$0xff]  }
   0x7   :  { %2993 = vmatpush1.bf16.msra.mxu1 %v4779_v6  ;;  %v4797_v18 = vld [vmem:[%s6944_s1 + $0x60] ss:$12 sps:$4 sm:$0xff]   ;;  %v4799_v20 = vld [vmem:[%s6944_s1 + $0x7c] ss:$12 sps:$4 sm:$0xff]   ;;  %v4803_v22 = vld [vmem:[%s6944_s1 + $0x78] ss:$12 sps:$4 sm:$0xff]  }
   0x8   :  { %3075 = vmatpush1.bf16.msra.mxu0 %v4780_v7  ;;  %2994 = vmatprep.subr.bf16.mxu1 %v4781_v8  ;;  %v4798_v19 = vld [vmem:[%s6944_s1 + $0x360] ss:$12 sps:$4 sm:$0xff]   ;;  %v4801_v21 = vld [vmem:[%s6944_s1 + $0x37c] ss:$12 sps:$4 sm:$0xff]   ;;  %v4804_v23 = vld [vmem:[%s6944_s1 + $0x378] ss:$12 sps:$4 sm:$0xff]  }
   0x9   :  { %3076 = vmatprep.subr.bf16.mxu0 %v4783_v9  ;;  %v4805_v24 = vld [vmem:[%s6944_s1 + $0x94] ss:$12 sps:$4 sm:$0xff]   ;;  %v4809_v26 = vld [vmem:[%s6944_s1 + $0x90] ss:$12 sps:$4 sm:$0xff]   ;;  %v4811_v28 = vld [vmem:[%s6944_s1 + $0xac] ss:$12 sps:$4 sm:$0xff]  }
   0xa   :  { %v4807_v25 = vld [vmem:[%s6944_s1 + $0x394] ss:$12 sps:$4 sm:$0xff]   ;;  %v4810_v27 = vld [vmem:[%s6944_s1 + $0x390] ss:$12 sps:$4 sm:$0xff]   ;;  %v4813_v29 = vld [vmem:[%s6944_s1 + $0x3ac] ss:$12 sps:$4 sm:$0xff]  }
   0xb   :  { %2995 = vmatpush1.bf16.msra.mxu1 %v4785_v10  ;;  %v4815_v30 = vld [vmem:[%s6944_s1 + $0xa8] ss:$12 sps:$4 sm:$0xff]   ;;  %v4817_v32 = vld [vmem:[%s6944_s1 + $0xc4] ss:$12 sps:$4 sm:$0xff]   ;;  %v4821_v34 = vld [vmem:[%s6944_s1 + $0xc0] ss:$12 sps:$4 sm:$0xff]  }
   0xc   :  { %3077 = vmatpush1.bf16.msra.mxu0 %v4786_v11  ;;  %2996 = vmatprep.subr.bf16.mxu1 %v4787_v12  ;;  %v4816_v31 = vld [vmem:[%s6944_s1 + $0x3a8] ss:$12 sps:$4 sm:$0xff]   ;;  %v4819_v33 = vld [vmem:[%s6944_s1 + $0x3c4] ss:$12 sps:$4 sm:$0xff]   ;;  %v4822_v35 = vld [vmem:[%s6944_s1 + $0x3c0] ss:$12 sps:$4 sm:$0xff]  }
   0xd   :  { %3078 = vmatprep.subr.bf16.mxu0 %v4789_v13  ;;  %v4823_v36 = vld [vmem:[%s6944_s1 + $0xdc] ss:$12 sps:$4 sm:$0xff]   ;;  %v4827_v38 = vld [vmem:[%s6944_s1 + $0xd8] ss:$12 sps:$4 sm:$0xff]   ;;  %v4829_v40 = vld [vmem:[%s6944_s1 + $0xf4] ss:$12 sps:$4 sm:$0xff]  }
   0xe   :  { %v4825_v37 = vld [vmem:[%s6944_s1 + $0x3dc] ss:$12 sps:$4 sm:$0xff]   ;;  %v4828_v39 = vld [vmem:[%s6944_s1 + $0x3d8] ss:$12 sps:$4 sm:$0xff]   ;;  %v4831_v41 = vld [vmem:[%s6944_s1 + $0x3f4] ss:$12 sps:$4 sm:$0xff]  }
   0xf   :  { %2997 = vmatpush1.bf16.msra.mxu1 %v4791_v14  ;;  %v4833_v42 = vld [vmem:[%s6944_s1 + $0xf0] ss:$12 sps:$4 sm:$0xff]   ;;  %v4835_v44 = vld [vmem:[%s6944_s1 + $0x10c] ss:$12 sps:$4 sm:$0xff]   ;;  %v21_v46 = vld [vmem:[%s6945_s0] sm:$0xff] }
  0x10   :  { %3079 = vmatpush1.bf16.msra.mxu0 %v4792_v15  ;;  %2998 = vmatprep.subr.bf16.mxu1 %v4793_v16  ;;  %v4834_v43 = vld [vmem:[%s6944_s1 + $0x3f0] ss:$12 sps:$4 sm:$0xff]   ;;  %v4837_v45 = vld [vmem:[%s6944_s1 + $0x40c] ss:$12 sps:$4 sm:$0xff]   ;;  %v4839_v47 = vld [vmem:[%s6944_s1 + $0x108] ss:$12 sps:$4 sm:$0xff]   ;;  %v5563_v48 = vcombine.high %v21_v46, %v21_v46  ;;  %v5629_v6 = vcombine.low %v21_v46, %v21_v46 }
  0x11   :  { %3080 = vmatprep.subr.bf16.mxu0 %v4795_v17  ;;  %v4840_v49 = vld [vmem:[%s6944_s1 + $0x408] ss:$12 sps:$4 sm:$0xff]   ;;  %v4841_v51 = vld [vmem:[%s6944_s1 + $0x124] ss:$12 sps:$4 sm:$0xff]   ;;  %v4845_v54 = vld [vmem:[%s6944_s1 + $0x120] ss:$12 sps:$4 sm:$0xff]  }
  0x12   :  { %v23_v50 = vld [vmem:[%s6945_s0 + $0x10] sm:$0xff]  ;;  %3022 = vmatprep.mubr.bf16.mxu1 %v5563_v48  ;;  %v4846_v55 = vld [vmem:[%s6944_s1 + $0x420] ss:$12 sps:$4 sm:$0xff]   ;;  %v4847_v56 = vld [vmem:[%s6944_s1 + $0x13c] ss:$12 sps:$4 sm:$0xff]  }
  0x13   :  { %2999 = vmatpush1.bf16.msra.mxu1 %v4797_v18  ;;  %v4843_v52 = vld [vmem:[%s6944_s1 + $0x424] ss:$12 sps:$4 sm:$0xff]   ;;  %v5577_v53 = vcombine.high %v23_v50, %v23_v50  ;;  %v4849_v57 = vld [vmem:[%s6944_s1 + $0x43c] ss:$12 sps:$4 sm:$0xff]   ;;  %v4853_v60 = vld [vmem:[%s6944_s1 + $0x154] ss:$12 sps:$4 sm:$0xff]   ;;  %v5631_v7 = vcombine.low %v23_v50, %v23_v50 }
  0x14   :  { %3081 = vmatpush1.bf16.msra.mxu0 %v4798_v19  ;;  %3000 = vmatprep.subr.bf16.mxu1 %v4799_v20  ;;  %v4851_v58 = vld [vmem:[%s6944_s1 + $0x138] ss:$12 sps:$4 sm:$0xff]   ;;  %v4855_v61 = vld [vmem:[%s6944_s1 + $0x454] ss:$12 sps:$4 sm:$0xff]   ;;  %v4857_v62 = vld [vmem:[%s6944_s1 + $0x150] ss:$12 sps:$4 sm:$0xff]  }
  0x15   :  { %3082 = vmatprep.subr.bf16.mxu0 %v4801_v21  ;;  %3104 = vmatprep.mubr.bf16.mxu0 %v5577_v53  ;;  %v4852_v59 = vld [vmem:[%s6944_s1 + $0x438] ss:$12 sps:$4 sm:$0xff]   ;;  %v4858_v63 = vld [vmem:[%s6944_s1 + $0x450] ss:$12 sps:$4 sm:$0xff]   ;;  %v4863_v2 = vld [vmem:[%s6944_s1 + $0x168] ss:$12 sps:$4 sm:$0xff]  }
  0x16   :  { %v4859_v0 = vld [vmem:[%s6944_s1 + $0x16c] ss:$12 sps:$4 sm:$0xff]   ;;  %v4864_v3 = vld [vmem:[%s6944_s1 + $0x468] ss:$12 sps:$4 sm:$0xff]   ;;  %v4869_v4 = vld [vmem:[%s6944_s1 + $0x184] ss:$12 sps:$4 sm:$0xff]  }
  0x17   :  { %3001 = vmatpush1.bf16.msra.mxu1 %v4803_v22  ;;  %v4861_v1 = vld [vmem:[%s6944_s1 + $0x46c] ss:$12 sps:$4 sm:$0xff]   ;;  %v4874_v5 = vld [vmem:[%s6944_s1 + $0x484] ss:$12 sps:$4 sm:$0xff]   ;;  %v4877_v10 = vld [vmem:[%s6944_s1 + $0x19c] ss:$12 sps:$4 sm:$0xff]  }
  0x18   :  { %3083 = vmatpush1.bf16.msra.mxu0 %v4804_v23  ;;  %3002 = vmatprep.subr.bf16.mxu1 %v4805_v24  ;;  %v4867_v8 = vld [vmem:[%s6944_s1 + $0x180] ss:$12 sps:$4 sm:$0xff]   ;;  %v4880_v11 = vld [vmem:[%s6944_s1 + $0x49c] ss:$12 sps:$4 sm:$0xff]   ;;  %v4875_v12 = vld [vmem:[%s6944_s1 + $0x198] ss:$12 sps:$4 sm:$0xff]  }
  0x19   :  { %3084 = vmatprep.subr.bf16.mxu0 %v4807_v25  ;;  %v4872_v9 = vld [vmem:[%s6944_s1 + $0x480] ss:$12 sps:$4 sm:$0xff]   ;;  %v4878_v13 = vld [vmem:[%s6944_s1 + $0x498] ss:$12 sps:$4 sm:$0xff]   ;;  %v4881_v16 = vld [vmem:[%s6944_s1 + $0x1b0] ss:$12 sps:$4 sm:$0xff]  }
  0x1a   :  { %v4883_v14 = vld [vmem:[%s6944_s1 + $0x1b4] ss:$12 sps:$4 sm:$0xff]   ;;  %v4884_v17 = vld [vmem:[%s6944_s1 + $0x4b0] ss:$12 sps:$4 sm:$0xff]   ;;  %v4889_v18 = vld [vmem:[%s6944_s1 + $0x1cc] ss:$12 sps:$4 sm:$0xff]  }
  0x1b   :  { %3003 = vmatpush1.bf16.msra.mxu1 %v4809_v26  ;;  %v4886_v15 = vld [vmem:[%s6944_s1 + $0x4b4] ss:$12 sps:$4 sm:$0xff]   ;;  %v4892_v19 = vld [vmem:[%s6944_s1 + $0x4cc] ss:$12 sps:$4 sm:$0xff]   ;;  %v4895_v22 = vld [vmem:[%s6944_s1 + $0x1e4] ss:$12 sps:$4 sm:$0xff]  }
  0x1c   :  { %3085 = vmatpush1.bf16.msra.mxu0 %v4810_v27  ;;  %3004 = vmatprep.subr.bf16.mxu1 %v4811_v28  ;;  %v4887_v20 = vld [vmem:[%s6944_s1 + $0x1c8] ss:$12 sps:$4 sm:$0xff]   ;;  %v4898_v23 = vld [vmem:[%s6944_s1 + $0x4e4] ss:$12 sps:$4 sm:$0xff]   ;;  %v4893_v24 = vld [vmem:[%s6944_s1 + $0x1e0] ss:$12 sps:$4 sm:$0xff]  }
  0x1d   :  { %3086 = vmatprep.subr.bf16.mxu0 %v4813_v29  ;;  %v4890_v21 = vld [vmem:[%s6944_s1 + $0x4c8] ss:$12 sps:$4 sm:$0xff]   ;;  %v4896_v25 = vld [vmem:[%s6944_s1 + $0x4e0] ss:$12 sps:$4 sm:$0xff]   ;;  %v4899_v28 = vld [vmem:[%s6944_s1 + $0x1f8] ss:$12 sps:$4 sm:$0xff]  }
  0x1e   :  { %v4901_v26 = vld [vmem:[%s6944_s1 + $0x1fc] ss:$12 sps:$4 sm:$0xff]   ;;  %v4902_v29 = vld [vmem:[%s6944_s1 + $0x4f8] ss:$12 sps:$4 sm:$0xff]  }
  0x1f   :  { %3005 = vmatpush1.bf16.msra.mxu1 %v4815_v30  ;;  %v4904_v27 = vld [vmem:[%s6944_s1 + $0x4fc] ss:$12 sps:$4 sm:$0xff]   ;;  %v4907_v30 = vld [vmem:[%s6944_s1 + $0x214] ss:$12 sps:$4 sm:$0xff]   ;;  %v4926_v50 = vld [vmem:[%s6944_s1 + $0x558] ss:$12 sps:$4 sm:$0xff]  }
  0x20   :  { %3087 = vmatpush1.bf16.msra.mxu0 %v4816_v31  ;;  %3006 = vmatprep.subr.bf16.mxu1 %v4817_v32  ;;  %v4910_v31 = vld [vmem:[%s6944_s1 + $0x514] ss:$12 sps:$4 sm:$0xff]   ;;  %v5710_v32 = vld [vmem:[%s6945_s0 + $0x8] sm:$0xff] }
  0x21   :  { %3088 = vmatprep.subr.bf16.mxu0 %v4819_v33  ;;  %v5715_v33 = vld [vmem:[%s6945_s0 + $0x18] sm:$0xff] }
  0x22   :  { %v4925_v46 = vld [vmem:[%s6944_s1 + $0x25c] ss:$12 sps:$4 sm:$0xff]  }
  0x23   :  { %3007 = vmatpush1.bf16.msra.mxu1 %v4821_v34  ;;  %v4905_v34 = vld [vmem:[%s6944_s1 + $0x210] ss:$12 sps:$4 sm:$0xff]  }
  0x24   :  { %3089 = vmatpush1.bf16.msra.mxu0 %v4822_v35  ;;  %3008 = vmatprep.subr.bf16.mxu1 %v4823_v36  ;;  %v4908_v35 = vld [vmem:[%s6944_s1 + $0x510] ss:$12 sps:$4 sm:$0xff]   ;;  %v5725_v36 = vcombine.high %v5710_v32, %v5710_v32 }
  0x25   :  { %3090 = vmatprep.subr.bf16.mxu0 %v4825_v37  ;;  %v5729_v37 = vcombine.high %v5715_v33, %v5715_v33 }
  0x27   :  { %3009 = vmatpush1.bf16.msra.mxu1 %v4827_v38  ;;  %v4913_v38 = vld [vmem:[%s6944_s1 + $0x22c] ss:$12 sps:$4 sm:$0xff]  }
  0x28   :  { %3091 = vmatpush1.bf16.msra.mxu0 %v4828_v39  ;;  %3010 = vmatprep.subr.bf16.mxu1 %v4829_v40  ;;  %v4916_v39 = vld [vmem:[%s6944_s1 + $0x52c] ss:$12 sps:$4 sm:$0xff]   ;;  %v4911_v40 = vld [vmem:[%s6944_s1 + $0x228] ss:$12 sps:$4 sm:$0xff]  }
  0x29   :  { %3092 = vmatprep.subr.bf16.mxu0 %v4831_v41  ;;  %v4914_v41 = vld [vmem:[%s6944_s1 + $0x528] ss:$12 sps:$4 sm:$0xff]  }
  0x2b   :  { %3011 = vmatpush1.bf16.msra.mxu1 %v4833_v42  ;;  %v4919_v42 = vld [vmem:[%s6944_s1 + $0x244] ss:$12 sps:$4 sm:$0xff]  }
  0x2c   :  { %3093 = vmatpush1.bf16.msra.mxu0 %v4834_v43  ;;  %3012 = vmatprep.subr.bf16.mxu1 %v4835_v44  ;;  %v4922_v43 = vld [vmem:[%s6944_s1 + $0x544] ss:$12 sps:$4 sm:$0xff]   ;;  %v4917_v44 = vld [vmem:[%s6944_s1 + $0x240] ss:$12 sps:$4 sm:$0xff]  }
  0x2d   :  { %3094 = vmatprep.subr.bf16.mxu0 %v4837_v45  ;;  %v4920_v45 = vld [vmem:[%s6944_s1 + $0x540] ss:$12 sps:$4 sm:$0xff]  }
  0x2f   :  { %3013 = vmatpush1.bf16.msra.mxu1 %v4839_v47  ;;  %v4928_v47 = vld [vmem:[%s6944_s1 + $0x55c] ss:$12 sps:$4 sm:$0xff]  }
  0x30   :  { %3095 = vmatpush1.bf16.msra.mxu0 %v4840_v49  ;;  %3014 = vmatprep.subr.bf16.mxu1 %v4841_v51  ;;  %v4923_v49 = vld [vmem:[%s6944_s1 + $0x258] ss:$12 sps:$4 sm:$0xff]   ;;  %v4931_v51 = vld [vmem:[%s6944_s1 + $0x274] ss:$12 sps:$4 sm:$0xff]  }
  0x31   :  { %3096 = vmatprep.subr.bf16.mxu0 %v4843_v52  ;;  %v4934_v52 = vld [vmem:[%s6944_s1 + $0x574] ss:$12 sps:$4 sm:$0xff]  }
  0x33   :  { %3015 = vmatpush1.bf16.msra.mxu1 %v4845_v54  ;;  %v4929_v54 = vld [vmem:[%s6944_s1 + $0x270] ss:$12 sps:$4 sm:$0xff]  }
  0x34   :  { %3097 = vmatpush1.bf16.msra.mxu0 %v4846_v55  ;;  %3016 = vmatprep.subr.bf16.mxu1 %v4847_v56  ;;  %v4932_v55 = vld [vmem:[%s6944_s1 + $0x570] ss:$12 sps:$4 sm:$0xff]   ;;  %v4937_v56 = vld [vmem:[%s6944_s1 + $0x28c] ss:$12 sps:$4 sm:$0xff]  }
  0x35   :  { %3098 = vmatprep.subr.bf16.mxu0 %v4849_v57  ;;  %v4940_v57 = vld [vmem:[%s6944_s1 + $0x58c] ss:$12 sps:$4 sm:$0xff]  }
  0x37   :  { %3017 = vmatpush1.bf16.msra.mxu1 %v4851_v58  ;;  %v4935_v58 = vld [vmem:[%s6944_s1 + $0x288] ss:$12 sps:$4 sm:$0xff]  }
  0x38   :  { %3099 = vmatpush1.bf16.msra.mxu0 %v4852_v59  ;;  %3018 = vmatprep.subr.bf16.mxu1 %v4853_v60  ;;  %v4938_v59 = vld [vmem:[%s6944_s1 + $0x588] ss:$12 sps:$4 sm:$0xff]   ;;  %v4943_v60 = vld [vmem:[%s6944_s1 + $0x2a4] ss:$12 sps:$4 sm:$0xff]  }
  0x39   :  { %3100 = vmatprep.subr.bf16.mxu0 %v4855_v61  ;;  %v4946_v61 = vld [vmem:[%s6944_s1 + $0x5a4] ss:$12 sps:$4 sm:$0xff]  }
  0x3b   :  { %3019 = vmatpush1.bf16.msra.mxu1 %v4857_v62  ;;  %v4941_v62 = vld [vmem:[%s6944_s1 + $0x2a0] ss:$12 sps:$4 sm:$0xff]  }
  0x3c   :  { %3101 = vmatpush1.bf16.msra.mxu0 %v4858_v63  ;;  %3020 = vmatprep.subr.bf16.mxu1 %v4859_v0  ;;  %v4944_v63 = vld [vmem:[%s6944_s1 + $0x5a0] ss:$12 sps:$4 sm:$0xff]   ;;  %v4949_v0 = vld [vmem:[%s6944_s1 + $0x2bc] ss:$12 sps:$4 sm:$0xff]  }
  0x3d   :  { %3102 = vmatprep.subr.bf16.mxu0 %v4861_v1  ;;  %v4952_v1 = vld [vmem:[%s6944_s1 + $0x5bc] ss:$12 sps:$4 sm:$0xff]  }
  0x3f   :  { %3021 = vmatpush1.bf16.msra.mxu1 %v4863_v2  ;;  %v4947_v2 = vld [vmem:[%s6944_s1 + $0x2b8] ss:$12 sps:$4 sm:$0xff]  }
  0x40   :  { %3103 = vmatpush1.bf16.msra.mxu0 %v4864_v3  ;;  %3031 = vmatprep.subr.bf16.mxu1 %v4869_v4  ;;  %v4950_v3 = vld [vmem:[%s6944_s1 + $0x5b8] ss:$12 sps:$4 sm:$0xff]   ;;  %v4955_v4 = vld [vmem:[%s6944_s1 + $0x2d4] ss:$12 sps:$4 sm:$0xff]  }
  0x41   :  { %3113 = vmatprep.subr.bf16.mxu0 %v4874_v5  ;;  %v4958_v5 = vld [vmem:[%s6944_s1 + $0x5d4] ss:$12 sps:$4 sm:$0xff]  }
  0x42   :  { %3023 = vmatmul.mubr.bf16.vlgmr.msra.gmra.mrb[0].mxu1 %v5629_v6 }
  0x43   :  { %3105 = vmatmul.mubr.bf16.vlgmr.msra.gmra.mrb[0].mxu0 %v5631_v7  ;;  %3032 = vmatpush1.bf16.msra.mxu1 %v4867_v8  ;;  %v4953_v8 = vld [vmem:[%s6944_s1 + $0x2d0] ss:$12 sps:$4 sm:$0xff]  }
  0x44   :  { %3114 = vmatpush1.bf16.msra.mxu0 %v4872_v9  ;;  %3033 = vmatprep.subr.bf16.mxu1 %v4877_v10  ;;  %v4956_v9 = vld [vmem:[%s6944_s1 + $0x5d0] ss:$12 sps:$4 sm:$0xff]   ;;  %v4961_v10 = vld [vmem:[%s6944_s1 + $0x2ec] ss:$12 sps:$4 sm:$0xff]  }
  0x45   :  { %3115 = vmatprep.subr.bf16.mxu0 %v4880_v11  ;;  %3063 = vmatprep.mubr.bf16.mxu1 %v5725_v36  ;;  %v4964_v11 = vld [vmem:[%s6944_s1 + $0x5ec] ss:$12 sps:$4 sm:$0xff]  }
  0x46   :  { %3145 = vmatprep.mubr.bf16.mxu0 %v5729_v37 }
  0x47   :  { %3034 = vmatpush1.bf16.msra.mxu1 %v4875_v12  ;;  %v4959_v12 = vld [vmem:[%s6944_s1 + $0x2e8] ss:$12 sps:$4 sm:$0xff]  }
  0x48   :  { %3116 = vmatpush1.bf16.msra.mxu0 %v4878_v13  ;;  %3035 = vmatprep.subr.bf16.mxu1 %v4883_v14  ;;  %v4962_v13 = vld [vmem:[%s6944_s1 + $0x5e8] ss:$12 sps:$4 sm:$0xff]   ;;  %v4971_v14 = vld [vmem:[%s6944_s1 + $0x604] ss:$12 sps:$4 sm:$0xff]  }
  0x49   :  { %3117 = vmatprep.subr.bf16.mxu0 %v4886_v15  ;;  %v4972_v15 = vld [vmem:[%s6944_s1 + $0xc8] ss:$12 sps:$4 sm:$0xff]  }
  0x4b   :  { %3036 = vmatpush1.bf16.msra.mxu1 %v4881_v16  ;;  %v5849_v16 = vcombine.low %v5710_v32, %v5710_v32  ;;  %v4991_v32 = vld [vmem:[%s6944_s1 + $0x664] ss:$12 sps:$4 sm:$0xff]  }
  0x4c   :  { %3118 = vmatpush1.bf16.msra.mxu0 %v4884_v17  ;;  %3037 = vmatprep.subr.bf16.mxu1 %v4889_v18  ;;  %v5853_v17 = vcombine.low %v5715_v33, %v5715_v33  ;;  %v4969_v18 = vld [vmem:[%s6944_s1 + $0x600] ss:$12 sps:$4 sm:$0xff]   ;;  %v4992_v33 = vld [vmem:[%s6944_s1 + $0x128] ss:$12 sps:$4 sm:$0xff]  }
  0x4d   :  { %3119 = vmatprep.subr.bf16.mxu0 %v4892_v19  ;;  %v4973_v19 = vld [vmem:[%s6944_s1 + $0x8] ss:$12 sps:$4 sm:$0xff]  }
  0x4f   :  { %3038 = vmatpush1.bf16.msra.mxu1 %v4887_v20  ;;  %v4976_v20 = vld [vmem:[%s6944_s1 + $0x61c] ss:$12 sps:$4 sm:$0xff]  }
  0x50   :  { %3120 = vmatpush1.bf16.msra.mxu0 %v4890_v21  ;;  %3039 = vmatprep.subr.bf16.mxu1 %v4895_v22  ;;  %v4977_v21 = vld [vmem:[%s6944_s1 + $0xe0] ss:$12 sps:$4 sm:$0xff]   ;;  %v4974_v22 = vld [vmem:[%s6944_s1 + $0x618] ss:$12 sps:$4 sm:$0xff]  }
  0x51   :  { %3121 = vmatprep.subr.bf16.mxu0 %v4898_v23  ;;  %v4978_v23 = vld [vmem:[%s6944_s1 + $0x20] ss:$12 sps:$4 sm:$0xff]  }
  0x53   :  { %3040 = vmatpush1.bf16.msra.mxu1 %v4893_v24  ;;  %v4981_v24 = vld [vmem:[%s6944_s1 + $0x634] ss:$12 sps:$4 sm:$0xff]  }
  0x54   :  { %3122 = vmatpush1.bf16.msra.mxu0 %v4896_v25  ;;  %3041 = vmatprep.subr.bf16.mxu1 %v4901_v26  ;;  %v4982_v25 = vld [vmem:[%s6944_s1 + $0xf8] ss:$12 sps:$4 sm:$0xff]   ;;  %v4979_v26 = vld [vmem:[%s6944_s1 + $0x630] ss:$12 sps:$4 sm:$0xff]  }
  0x55   :  { %3123 = vmatprep.subr.bf16.mxu0 %v4904_v27  ;;  %v4983_v27 = vld [vmem:[%s6944_s1 + $0x38] ss:$12 sps:$4 sm:$0xff]  }
  0x57   :  { %3042 = vmatpush1.bf16.msra.mxu1 %v4899_v28  ;;  %v4986_v28 = vld [vmem:[%s6944_s1 + $0x64c] ss:$12 sps:$4 sm:$0xff]  }
  0x58   :  { %3124 = vmatpush1.bf16.msra.mxu0 %v4902_v29  ;;  %3043 = vmatprep.subr.bf16.mxu1 %v4907_v30  ;;  %v4984_v29 = vld [vmem:[%s6944_s1 + $0x648] ss:$12 sps:$4 sm:$0xff]   ;;  %v4988_v30 = vld [vmem:[%s6944_s1 + $0x50] ss:$12 sps:$4 sm:$0xff]  }
  0x59   :  { %3125 = vmatprep.subr.bf16.mxu0 %v4910_v31  ;;  %v5903_v31 = vld [vmem:[%s6945_s0 + $0x20] sm:$0xff] }
  0x5b   :  { %3044 = vmatpush1.bf16.msra.mxu1 %v4905_v34  ;;  %v5913_v34 = vcombine.high %v5903_v31, %v5903_v31 }
  0x5c   :  { %3126 = vmatpush1.bf16.msra.mxu0 %v4908_v35  ;;  %3045 = vmatprep.subr.bf16.mxu1 %v4913_v38  ;;  %v4989_v35 = vld [vmem:[%s6944_s1 + $0x660] ss:$12 sps:$4 sm:$0xff]   ;;  %v4993_v38 = vld [vmem:[%s6944_s1 + $0x68] ss:$12 sps:$4 sm:$0xff]  }
  0x5d   :  { %3127 = vmatprep.subr.bf16.mxu0 %v4916_v39  ;;  %v4996_v39 = vld [vmem:[%s6944_s1 + $0x67c] ss:$12 sps:$4 sm:$0xff]  }
  0x5f   :  { %3046 = vmatpush1.bf16.msra.mxu1 %v4911_v40  ;;  %v4997_v40 = vld [vmem:[%s6944_s1 + $0x140] ss:$12 sps:$4 sm:$0xff]  }
  0x60   :  { %3128 = vmatpush1.bf16.msra.mxu0 %v4914_v41  ;;  %3047 = vmatprep.subr.bf16.mxu1 %v4919_v42  ;;  %v4994_v41 = vld [vmem:[%s6944_s1 + $0x678] ss:$12 sps:$4 sm:$0xff]   ;;  %v4998_v42 = vld [vmem:[%s6944_s1 + $0x80] ss:$12 sps:$4 sm:$0xff]  }
  0x61   :  { %3129 = vmatprep.subr.bf16.mxu0 %v4922_v43  ;;  %v5001_v43 = vld [vmem:[%s6944_s1 + $0x694] ss:$12 sps:$4 sm:$0xff]  }
  0x63   :  { %3048 = vmatpush1.bf16.msra.mxu1 %v4917_v44  ;;  %v5002_v44 = vld [vmem:[%s6944_s1 + $0x158] ss:$12 sps:$4 sm:$0xff]  }
  0x64   :  { %3130 = vmatpush1.bf16.msra.mxu0 %v4920_v45  ;;  %3049 = vmatprep.subr.bf16.mxu1 %v4925_v46  ;;  %v4999_v45 = vld [vmem:[%s6944_s1 + $0x690] ss:$12 sps:$4 sm:$0xff]   ;;  %v5003_v46 = vld [vmem:[%s6944_s1 + $0x98] ss:$12 sps:$4 sm:$0xff]  }
  0x65   :  { %3131 = vmatprep.subr.bf16.mxu0 %v4928_v47  ;;  %v5006_v47 = vld [vmem:[%s6944_s1 + $0x6ac] ss:$12 sps:$4 sm:$0xff]  }
  0x67   :  { %3050 = vmatpush1.bf16.msra.mxu1 %v4923_v49  ;;  %v5007_v49 = vld [vmem:[%s6944_s1 + $0x170] ss:$12 sps:$4 sm:$0xff]  }
  0x68   :  { %3132 = vmatpush1.bf16.msra.mxu0 %v4926_v50  ;;  %3051 = vmatprep.subr.bf16.mxu1 %v4931_v51  ;;  %v5004_v50 = vld [vmem:[%s6944_s1 + $0x6a8] ss:$12 sps:$4 sm:$0xff]   ;;  %v5008_v51 = vld [vmem:[%s6944_s1 + $0xb0] ss:$12 sps:$4 sm:$0xff]  }
  0x69   :  { %3133 = vmatprep.subr.bf16.mxu0 %v4934_v52  ;;  %v5011_v52 = vld [vmem:[%s6944_s1 + $0x6c4] ss:$12 sps:$4 sm:$0xff]  }
  0x6b   :  { %3052 = vmatpush1.bf16.msra.mxu1 %v4929_v54  ;;  %v5012_v54 = vld [vmem:[%s6944_s1 + $0x248] ss:$12 sps:$4 sm:$0xff]  }
  0x6c   :  { %3134 = vmatpush1.bf16.msra.mxu0 %v4932_v55  ;;  %3053 = vmatprep.subr.bf16.mxu1 %v4937_v56  ;;  %v5009_v55 = vld [vmem:[%s6944_s1 + $0x6c0] ss:$12 sps:$4 sm:$0xff]   ;;  %v5013_v56 = vld [vmem:[%s6944_s1 + $0x188] ss:$12 sps:$4 sm:$0xff]  }
  0x6d   :  { %3135 = vmatprep.subr.bf16.mxu0 %v4940_v57  ;;  %v5016_v57 = vld [vmem:[%s6944_s1 + $0x6dc] ss:$12 sps:$4 sm:$0xff]  }
  0x6f   :  { %3054 = vmatpush1.bf16.msra.mxu1 %v4935_v58  ;;  %v5017_v58 = vld [vmem:[%s6944_s1 + $0x260] ss:$12 sps:$4 sm:$0xff]  }
  0x70   :  { %3136 = vmatpush1.bf16.msra.mxu0 %v4938_v59  ;;  %3055 = vmatprep.subr.bf16.mxu1 %v4943_v60  ;;  %v5014_v59 = vld [vmem:[%s6944_s1 + $0x6d8] ss:$12 sps:$4 sm:$0xff]   ;;  %v5018_v60 = vld [vmem:[%s6944_s1 + $0x1a0] ss:$12 sps:$4 sm:$0xff]  }
  0x71   :  { %3137 = vmatprep.subr.bf16.mxu0 %v4946_v61  ;;  %v5021_v61 = vld [vmem:[%s6944_s1 + $0x6f4] ss:$12 sps:$4 sm:$0xff]  }
  0x73   :  { %3056 = vmatpush1.bf16.msra.mxu1 %v4941_v62  ;;  %v5019_v62 = vld [vmem:[%s6944_s1 + $0x6f0] ss:$12 sps:$4 sm:$0xff]  }
  0x74   :  { %3138 = vmatpush1.bf16.msra.mxu0 %v4944_v63  ;;  %3057 = vmatprep.subr.bf16.mxu1 %v4949_v0  ;;  %v5023_v63 = vld [vmem:[%s6944_s1 + $0x1b8] ss:$12 sps:$4 sm:$0xff]  }
  0x75   :  { %3139 = vmatprep.subr.bf16.mxu0 %v4952_v1  ;;  %v5026_v0 = vld [vmem:[%s6944_s1 + $0x70c] ss:$12 sps:$4 sm:$0xff]   ;;  %v5027_v1 = vld [vmem:[%s6944_s1 + $0x290] ss:$12 sps:$4 sm:$0xff]  }
  0x77   :  { %3058 = vmatpush1.bf16.msra.mxu1 %v4947_v2  ;;  %v5028_v2 = vld [vmem:[%s6944_s1 + $0x1d0] ss:$12 sps:$4 sm:$0xff]  }
  0x78   :  { %3140 = vmatpush1.bf16.msra.mxu0 %v4950_v3  ;;  %3059 = vmatprep.subr.bf16.mxu1 %v4955_v4  ;;  %v5031_v3 = vld [vmem:[%s6944_s1 + $0x724] ss:$12 sps:$4 sm:$0xff]   ;;  %v5032_v4 = vld [vmem:[%s6944_s1 + $0x2a8] ss:$12 sps:$4 sm:$0xff]  }
  0x79   :  { %3141 = vmatprep.subr.bf16.mxu0 %v4958_v5  ;;  %v5029_v5 = vld [vmem:[%s6944_s1 + $0x720] ss:$12 sps:$4 sm:$0xff]  }
  0x7b   :  { %3060 = vmatpush1.bf16.msra.mxu1 %v4953_v8  ;;  %v5033_v8 = vld [vmem:[%s6944_s1 + $0x1e8] ss:$12 sps:$4 sm:$0xff]  }
  0x7c   :  { %3142 = vmatpush1.bf16.msra.mxu0 %v4956_v9  ;;  %3061 = vmatprep.subr.bf16.mxu1 %v4961_v10  ;;  %v5036_v9 = vld [vmem:[%s6944_s1 + $0x73c] ss:$12 sps:$4 sm:$0xff]   ;;  %v5037_v10 = vld [vmem:[%s6944_s1 + $0x2c0] ss:$12 sps:$4 sm:$0xff]  }
  0x7d   :  { %3143 = vmatprep.subr.bf16.mxu0 %v4964_v11  ;;  %v5034_v11 = vld [vmem:[%s6944_s1 + $0x738] ss:$12 sps:$4 sm:$0xff]  }
  0x7f   :  { %3062 = vmatpush1.bf16.msra.mxu1 %v4959_v12  ;;  %v5038_v12 = vld [vmem:[%s6944_s1 + $0x200] ss:$12 sps:$4 sm:$0xff]  }
  0x80   :  { %3144 = vmatpush1.bf16.msra.mxu0 %v4962_v13  ;;  %4486 = vmatprep.subr.bf16.mxu1 %v4972_v15  ;;  %v5041_v13 = vld [vmem:[%s6944_s1 + $0x754] ss:$12 sps:$4 sm:$0xff]   ;;  %v5039_v15 = vld [vmem:[%s6944_s1 + $0x750] ss:$12 sps:$4 sm:$0xff]  }
  0x81   :  { %3154 = vmatprep.subr.bf16.mxu0 %v4971_v14  ;;  %v5042_v14 = vld [vmem:[%s6944_s1 + $0x2d8] ss:$12 sps:$4 sm:$0xff]  }
  0x82   :  { %3064 = vmatmul.mubr.bf16.vlgmr.msra.gmra.mrb[0].mxu1 %v5849_v16 }
  0x83   :  { %3146 = vmatmul.mubr.bf16.vlgmr.msra.gmra.mrb[0].mxu0 %v5853_v17  ;;  %4487 = vmatpush3.bf16.msra.mxu1 %v4973_v19  ;;  %v5046_v19 = vld [vmem:[%s6944_s1 + $0x76c] ss:$12 sps:$4 sm:$0xff]  }
  0x84   :  { %3155 = vmatpush1.bf16.msra.mxu0 %v4969_v18  ;;  %4488 = vmatprep.subr.bf16.mxu1 %v4977_v21  ;;  %v5043_v18 = vld [vmem:[%s6944_s1 + $0x218] ss:$12 sps:$4 sm:$0xff]   ;;  %v5044_v21 = vld [vmem:[%s6944_s1 + $0x768] ss:$12 sps:$4 sm:$0xff]  }
  0x85   :  { %3156 = vmatprep.subr.bf16.mxu0 %v4976_v20  ;;  %3391 = vmatprep.mubr.bf16.mxu1 %v5563_v48  ;;  %v4987_v48 = vld [vmem:[%s6944_s1 + $0x110] ss:$12 sps:$4 sm:$0xff]  }
  0x86   :  { %3186 = vmatprep.mubr.bf16.mxu0 %v5913_v34  ;;  %v5047_v20 = vld [vmem:[%s6944_s1 + $0x2f0] ss:$12 sps:$4 sm:$0xff]  }
  0x87   :  { %4489 = vmatpush3.bf16.msra.mxu1 %v4978_v23  ;;  %v5053_v23 = vld [vmem:[%s6944_s1 + $0x784] ss:$12 sps:$4 sm:$0xff]  }
  0x88   :  { %3157 = vmatpush1.bf16.msra.mxu0 %v4974_v22  ;;  %4490 = vmatprep.subr.bf16.mxu1 %v4982_v25  ;;  %v5048_v22 = vld [vmem:[%s6944_s1 + $0x230] ss:$12 sps:$4 sm:$0xff]   ;;  %v6064_v25 = vcombine.low %v5903_v31, %v5903_v31 }
  0x89   :  { %3158 = vmatprep.subr.bf16.mxu0 %v4981_v24  ;;  %v5054_v24 = vld [vmem:[%s6944_s1 + $0x3c8] ss:$12 sps:$4 sm:$0xff]  }
  0x8b   :  { %4491 = vmatpush3.bf16.msra.mxu1 %v4983_v27  ;;  %v5055_v27 = vld [vmem:[%s6944_s1 + $0x308] ss:$12 sps:$4 sm:$0xff]  }
  0x8c   :  { %3159 = vmatpush1.bf16.msra.mxu0 %v4979_v26  ;;  %4492 = vmatprep.subr.bf16.mxu1 %v4987_v48  ;;  %v5051_v26 = vld [vmem:[%s6944_s1 + $0x780] ss:$12 sps:$4 sm:$0xff]  }
  0x8d   :  { %3160 = vmatprep.subr.bf16.mxu0 %v4986_v28  ;;  %v5058_v28 = vld [vmem:[%s6944_s1 + $0x79c] ss:$12 sps:$4 sm:$0xff]   ;;  %v5059_v48 = vld [vmem:[%s6944_s1 + $0x3e0] ss:$12 sps:$4 sm:$0xff]  }
  0x8f   :  { %4493 = vmatpush3.bf16.msra.mxu1 %v4988_v30  ;;  %v5056_v30 = vld [vmem:[%s6944_s1 + $0x798] ss:$12 sps:$4 sm:$0xff]  }
  0x90   :  { %3161 = vmatpush1.bf16.msra.mxu0 %v4984_v29  ;;  %4494 = vmatprep.subr.bf16.mxu1 %v4992_v33  ;;  %v6081_v29 = vld [vmem:[%s6945_s0 + $0x28] sm:$0xff]  ;;  %v5063_v33 = vld [vmem:[%s6944_s1 + $0x7b4] ss:$12 sps:$4 sm:$0xff]  }
  0x91   :  { %3162 = vmatprep.subr.bf16.mxu0 %v4991_v32  ;;  %v6088_v31 = vcombine.high %v6081_v29, %v6081_v29  ;;  %v5060_v32 = vld [vmem:[%s6944_s1 + $0x320] ss:$12 sps:$4 sm:$0xff]  }
  0x93   :  { %4495 = vmatpush3.bf16.msra.mxu1 %v4993_v38  ;;  %v5065_v38 = vld [vmem:[%s6944_s1 + $0x338] ss:$12 sps:$4 sm:$0xff]  }
  0x94   :  { %3163 = vmatpush1.bf16.msra.mxu0 %v4989_v35  ;;  %4496 = vmatprep.subr.bf16.mxu1 %v4997_v40  ;;  %v5064_v35 = vld [vmem:[%s6944_s1 + $0x3f8] ss:$12 sps:$4 sm:$0xff]   ;;  %v5066_v40 = vld [vmem:[%s6944_s1 + $0x7c8] ss:$12 sps:$4 sm:$0xff]  }
  0x95   :  { %3164 = vmatprep.subr.bf16.mxu0 %v4996_v39  ;;  %v5068_v39 = vld [vmem:[%s6944_s1 + $0x7cc] ss:$12 sps:$4 sm:$0xff]  }
  0x97   :  { %4497 = vmatpush3.bf16.msra.mxu1 %v4998_v42  ;;  %v5073_v42 = vld [vmem:[%s6944_s1 + $0x7e4] ss:$12 sps:$4 sm:$0xff]  }
  0x98   :  { %3165 = vmatpush1.bf16.msra.mxu0 %v4994_v41  ;;  %4498 = vmatprep.subr.bf16.mxu1 %v5002_v44  ;;  %v5070_v41 = vld [vmem:[%s6944_s1 + $0x350] ss:$12 sps:$4 sm:$0xff]   ;;  %v5071_v44 = vld [vmem:[%s6944_s1 + $0x7e0] ss:$12 sps:$4 sm:$0xff]  }
  0x99   :  { %3166 = vmatprep.subr.bf16.mxu0 %v5001_v43  ;;  %v5074_v43 = vld [vmem:[%s6944_s1 + $0x428] ss:$12 sps:$4 sm:$0xff]  }
  0x9b   :  { %4499 = vmatpush3.bf16.msra.mxu1 %v5003_v46  ;;  %v5078_v46 = vld [vmem:[%s6944_s1 + $0x7fc] ss:$12 sps:$4 sm:$0xff]  }
  0x9c   :  { %3167 = vmatpush1.bf16.msra.mxu0 %v4999_v45  ;;  %4500 = vmatprep.subr.bf16.mxu1 %v5007_v49  ;;  %v5075_v45 = vld [vmem:[%s6944_s1 + $0x368] ss:$12 sps:$4 sm:$0xff]   ;;  %v5076_v49 = vld [vmem:[%s6944_s1 + $0x7f8] ss:$12 sps:$4 sm:$0xff]  }
  0x9d   :  { %3168 = vmatprep.subr.bf16.mxu0 %v5006_v47  ;;  %v5079_v47 = vld [vmem:[%s6944_s1 + $0x440] ss:$12 sps:$4 sm:$0xff]  }
  0x9f   :  { %4501 = vmatpush3.bf16.msra.mxu1 %v5008_v51  ;;  %v5083_v51 = vld [vmem:[%s6944_s1 + $0x814] ss:$12 sps:$4 sm:$0xff]  }
  0xa0   :  { %3169 = vmatpush1.bf16.msra.mxu0 %v5004_v50  ;;  %4508 = vmatprep.subr.bf16.mxu1 %v5012_v54  ;;  %v5080_v50 = vld [vmem:[%s6944_s1 + $0x380] ss:$12 sps:$4 sm:$0xff]   ;;  %v5081_v54 = vld [vmem:[%s6944_s1 + $0x810] ss:$12 sps:$4 sm:$0xff]  }
  0xa1   :  { %3170 = vmatprep.subr.bf16.mxu0 %v5011_v52  ;;  %v5084_v52 = vld [vmem:[%s6944_s1 + $0x458] ss:$12 sps:$4 sm:$0xff]  }
  0xa2   :  { %3392 = vmatmul.mubr.bf16.vlgmr.msra.gmra.mrb[4].mxu1 %v5629_v6  ;;  %v5022_v6 = vld [vmem:[%s6944_s1 + $0x278] ss:$12 sps:$4 sm:$0xff]  }
  0xa3   :  { %4509 = vmatpush3.bf16.msra.mxu1 %v5013_v56  ;;  %3431 = vmatprep.mubr.bf16.mxu1 %v5725_v36  ;;  %v5024_v36 = vld [vmem:[%s6944_s1 + $0x708] ss:$12 sps:$4 sm:$0xff]   ;;  %v5088_v56 = vld [vmem:[%s6944_s1 + $0x82c] ss:$12 sps:$4 sm:$0xff]  }
  0xa4   :  { %3171 = vmatpush1.bf16.msra.mxu0 %v5009_v55  ;;  %4510 = vmatprep.subr.bf16.mxu1 %v5017_v58  ;;  %v5085_v55 = vld [vmem:[%s6944_s1 + $0x398] ss:$12 sps:$4 sm:$0xff]   ;;  %v5086_v58 = vld [vmem:[%s6944_s1 + $0x828] ss:$12 sps:$4 sm:$0xff]  }
  0xa5   :  { %3172 = vmatprep.subr.bf16.mxu0 %v5016_v57  ;;  %v5089_v57 = vld [vmem:[%s6944_s1 + $0x470] ss:$12 sps:$4 sm:$0xff]  }
  0xa7   :  { %4511 = vmatpush3.bf16.msra.mxu1 %v5018_v60  ;;  %v5093_v60 = vld [vmem:[%s6944_s1 + $0x844] ss:$12 sps:$4 sm:$0xff]  }
  0xa8   :  { %3173 = vmatpush1.bf16.msra.mxu0 %v5014_v59  ;;  %4512 = vmatprep.subr.bf16.mxu1 %v5022_v6  ;;  %v5090_v59 = vld [vmem:[%s6944_s1 + $0x3b0] ss:$12 sps:$4 sm:$0xff]   ;;  %v5091_v6 = vld [vmem:[%s6944_s1 + $0x840] ss:$12 sps:$4 sm:$0xff]  }
  0xa9   :  { %3174 = vmatprep.subr.bf16.mxu0 %v5021_v61  ;;  %v5094_v61 = vld [vmem:[%s6944_s1 + $0x548] ss:$12 sps:$4 sm:$0xff]  }
  0xab   :  { %4513 = vmatpush3.bf16.msra.mxu1 %v5023_v63  ;;  %v5098_v63 = vld [vmem:[%s6944_s1 + $0x85c] ss:$12 sps:$4 sm:$0xff]  }
  0xac   :  { %3175 = vmatpush1.bf16.msra.mxu0 %v5019_v62  ;;  %4514 = vmatprep.subr.bf16.mxu1 %v5027_v1  ;;  %v5095_v62 = vld [vmem:[%s6944_s1 + $0x488] ss:$12 sps:$4 sm:$0xff]   ;;  %v5096_v1 = vld [vmem:[%s6944_s1 + $0x858] ss:$12 sps:$4 sm:$0xff]  }
  0xad   :  { %3176 = vmatprep.subr.bf16.mxu0 %v5026_v0  ;;  %v5099_v0 = vld [vmem:[%s6944_s1 + $0x560] ss:$12 sps:$4 sm:$0xff]  }
  0xaf   :  { %4515 = vmatpush3.bf16.msra.mxu1 %v5028_v2  ;;  %v5103_v2 = vld [vmem:[%s6944_s1 + $0x874] ss:$12 sps:$4 sm:$0xff]  }
  0xb0   :  { %3177 = vmatpush1.bf16.msra.mxu0 %v5024_v36  ;;  %4516 = vmatprep.subr.bf16.mxu1 %v5032_v4  ;;  %v5100_v36 = vld [vmem:[%s6944_s1 + $0x4a0] ss:$12 sps:$4 sm:$0xff]   ;;  %v5105_v4 = vld [vmem:[%s6944_s1 + $0x4b8] ss:$12 sps:$4 sm:$0xff]  }
  0xb1   :  { %3178 = vmatprep.subr.bf16.mxu0 %v5031_v3  ;;  %v5101_v3 = vld [vmem:[%s6944_s1 + $0x870] ss:$12 sps:$4 sm:$0xff]  }
  0xb3   :  { %4517 = vmatpush3.bf16.msra.mxu1 %v5033_v8  ;;  %v5106_v8 = vld [vmem:[%s6944_s1 + $0x888] ss:$12 sps:$4 sm:$0xff]  }
  0xb4   :  { %3179 = vmatpush1.bf16.msra.mxu0 %v5029_v5  ;;  %4518 = vmatprep.subr.bf16.mxu1 %v5037_v10  ;;  %v5108_v5 = vld [vmem:[%s6944_s1 + $0x88c] ss:$12 sps:$4 sm:$0xff]   ;;  %v5113_v10 = vld [vmem:[%s6944_s1 + $0x8a4] ss:$12 sps:$4 sm:$0xff]  }
  0xb5   :  { %3180 = vmatprep.subr.bf16.mxu0 %v5036_v9  ;;  %v5110_v9 = vld [vmem:[%s6944_s1 + $0x4d0] ss:$12 sps:$4 sm:$0xff]  }
  0xb7   :  { %4519 = vmatpush3.bf16.msra.mxu1 %v5038_v12  ;;  %v5111_v12 = vld [vmem:[%s6944_s1 + $0x8a0] ss:$12 sps:$4 sm:$0xff]  }
  0xb8   :  { %3181 = vmatpush1.bf16.msra.mxu0 %v5034_v11  ;;  %4520 = vmatprep.subr.bf16.mxu1 %v5042_v14  ;;  %v5114_v11 = vld [vmem:[%s6944_s1 + $0x5a8] ss:$12 sps:$4 sm:$0xff]  }
  0xb9   :  { %3182 = vmatprep.subr.bf16.mxu0 %v5041_v13  ;;  %v5115_v13 = vld [vmem:[%s6944_s1 + $0x4e8] ss:$12 sps:$4 sm:$0xff]  }
  0xba   :  { %v5118_v14 = vld [vmem:[%s6944_s1 + $0x8bc] ss:$12 sps:$4 sm:$0xff]  }
  0xbb   :  { %4521 = vmatpush3.bf16.msra.mxu1 %v5043_v18  ;;  %v5116_v18 = vld [vmem:[%s6944_s1 + $0x8b8] ss:$12 sps:$4 sm:$0xff]  }
  0xbc   :  { %3183 = vmatpush1.bf16.msra.mxu0 %v5039_v15  ;;  %4522 = vmatprep.subr.bf16.mxu1 %v5047_v20  ;;  %v5119_v15 = vld [vmem:[%s6944_s1 + $0x5c0] ss:$12 sps:$4 sm:$0xff]  }
  0xbd   :  { %3184 = vmatprep.subr.bf16.mxu0 %v5046_v19  ;;  %v5120_v19 = vld [vmem:[%s6944_s1 + $0x500] ss:$12 sps:$4 sm:$0xff]  }
  0xbe   :  { %v5123_v20 = vld [vmem:[%s6944_s1 + $0x8d4] ss:$12 sps:$4 sm:$0xff]  }
  0xbf   :  { %4523 = vmatpush3.bf16.msra.mxu1 %v5048_v22  ;;  %v5121_v22 = vld [vmem:[%s6944_s1 + $0x8d0] ss:$12 sps:$4 sm:$0xff]  }
  0xc0   :  { %3185 = vmatpush1.bf16.msra.mxu0 %v5044_v21  ;;  %4530 = vmatprep.subr.bf16.mxu1 %v5054_v24  ;;  %v5124_v21 = vld [vmem:[%s6944_s1 + $0x5d8] ss:$12 sps:$4 sm:$0xff]  }
  0xc1   :  { %3195 = vmatprep.subr.bf16.mxu0 %v5053_v23  ;;  %v5125_v23 = vld [vmem:[%s6944_s1 + $0x518] ss:$12 sps:$4 sm:$0xff]  }
  0xc2   :  { %3432 = vmatmul.mubr.bf16.vlgmr.msra.gmra.mrb[8].mxu1 %v5849_v16  ;;  %v5061_v16 = vld [vmem:[%s6944_s1 + $0x7b0] ss:$12 sps:$4 sm:$0xff]   ;;  %v5128_v24 = vld [vmem:[%s6944_s1 + $0x8ec] ss:$12 sps:$4 sm:$0xff]  }
  0xc3   :  { %3187 = vmatmul.mubr.bf16.vlgmr.msra.gmra.mrb[0].mxu0 %v6064_v25  ;;  %4531 = vmatpush3.bf16.msra.mxu1 %v5055_v27  ;;  %v5126_v27 = vld [vmem:[%s6944_s1 + $0x8e8] ss:$12 sps:$4 sm:$0xff]  }
  0xc4   :  { %3196 = vmatpush1.bf16.msra.mxu0 %v5051_v26  ;;  %4532 = vmatprep.subr.bf16.mxu1 %v5059_v48  ;;  %v5129_v26 = vld [vmem:[%s6944_s1 + $0x5f0] ss:$12 sps:$4 sm:$0xff]  }
  0xc5   :  { %3197 = vmatprep.subr.bf16.mxu0 %v5058_v28  ;;  %3471 = vmatprep.mubr.bf16.mxu1 %v5577_v53  ;;  %v5069_v53 = vld [vmem:[%s6944_s1 + $0x410] ss:$12 sps:$4 sm:$0xff]  }
  0xc6   :  { %3227 = vmatprep.mubr.bf16.mxu0 %v6088_v31  ;;  %v5130_v28 = vld [vmem:[%s6944_s1 + $0x530] ss:$12 sps:$4 sm:$0xff]  }
  0xc7   :  { %4533 = vmatpush3.bf16.msra.mxu1 %v5060_v32  ;;  %v5135_v48 = vld [vmem:[%s6944_s1 + $0x904] ss:$12 sps:$4 sm:$0xff]   ;;  %v5133_v32 = vld [vmem:[%s6944_s1 + $0x900] ss:$12 sps:$4 sm:$0xff]  }
  0xc8   :  { %3198 = vmatpush1.bf16.msra.mxu0 %v5056_v30  ;;  %4534 = vmatprep.subr.bf16.mxu1 %v5064_v35  ;;  %v5136_v30 = vld [vmem:[%s6944_s1 + $0x6c8] ss:$12 sps:$4 sm:$0xff]  }
  0xc9   :  { %3199 = vmatprep.subr.bf16.mxu0 %v5063_v33  ;;  %v6278_v33 = vcombine.low %v6081_v29, %v6081_v29  ;;  %v5137_v35 = vld [vmem:[%s6944_s1 + $0x608] ss:$12 sps:$4 sm:$0xff]   ;;  %v5141_v29 = vld [vmem:[%s6944_s1 + $0x6e0] ss:$12 sps:$4 sm:$0xff]  }
  0xcb   :  { %4535 = vmatpush3.bf16.msra.mxu1 %v5065_v38  ;;  %v5140_v38 = vld [vmem:[%s6944_s1 + $0x91c] ss:$12 sps:$4 sm:$0xff]  }
  0xcc   :  { %3200 = vmatpush1.bf16.msra.mxu0 %v5061_v16  ;;  %4536 = vmatprep.subr.bf16.mxu1 %v5069_v53  ;;  %v6286_v16 = vld [vmem:[%s6945_s0 + $0x30] sm:$0xff] }
  0xcd   :  { %3201 = vmatprep.subr.bf16.mxu0 %v5068_v39  ;;  %v5138_v39 = vld [vmem:[%s6944_s1 + $0x918] ss:$12 sps:$4 sm:$0xff]   ;;  %v6299_v53 = vcombine.high %v6286_v16, %v6286_v16 }
  0xcf   :  { %4537 = vmatpush3.bf16.msra.mxu1 %v5070_v41  ;;  %v5145_v41 = vld [vmem:[%s6944_s1 + $0x934] ss:$12 sps:$4 sm:$0xff]  }
  0xd0   :  { %3202 = vmatpush1.bf16.msra.mxu0 %v5066_v40  ;;  %4538 = vmatprep.subr.bf16.mxu1 %v5074_v43  ;;  %v5142_v40 = vld [vmem:[%s6944_s1 + $0x620] ss:$12 sps:$4 sm:$0xff]   ;;  %v5147_v43 = vld [vmem:[%s6944_s1 + $0x638] ss:$12 sps:$4 sm:$0xff]  }
  0xd1   :  { %3203 = vmatprep.subr.bf16.mxu0 %v5073_v42  ;;  %v5146_v42 = vld [vmem:[%s6944_s1 + $0x6f8] ss:$12 sps:$4 sm:$0xff]  }
  0xd3   :  { %4539 = vmatpush3.bf16.msra.mxu1 %v5075_v45  ;;  %v5148_v45 = vld [vmem:[%s6944_s1 + $0x948] ss:$12 sps:$4 sm:$0xff]  }
  0xd4   :  { %3204 = vmatpush1.bf16.msra.mxu0 %v5071_v44  ;;  %4540 = vmatprep.subr.bf16.mxu1 %v5079_v47  ;;  %v5150_v44 = vld [vmem:[%s6944_s1 + $0x94c] ss:$12 sps:$4 sm:$0xff]   ;;  %v5155_v47 = vld [vmem:[%s6944_s1 + $0x964] ss:$12 sps:$4 sm:$0xff]  }
  0xd5   :  { %3205 = vmatprep.subr.bf16.mxu0 %v5078_v46  ;;  %v5152_v46 = vld [vmem:[%s6944_s1 + $0x650] ss:$12 sps:$4 sm:$0xff]  }
  0xd7   :  { %4541 = vmatpush3.bf16.msra.mxu1 %v5080_v50  ;;  %v5153_v50 = vld [vmem:[%s6944_s1 + $0x960] ss:$12 sps:$4 sm:$0xff]  }
  0xd8   :  { %3206 = vmatpush1.bf16.msra.mxu0 %v5076_v49  ;;  %4542 = vmatprep.subr.bf16.mxu1 %v5084_v52  ;;  %v5156_v49 = vld [vmem:[%s6944_s1 + $0x728] ss:$12 sps:$4 sm:$0xff]  }
  0xd9   :  { %3207 = vmatprep.subr.bf16.mxu0 %v5083_v51  ;;  %v5157_v51 = vld [vmem:[%s6944_s1 + $0x668] ss:$12 sps:$4 sm:$0xff]  }
  0xda   :  { %v5160_v52 = vld [vmem:[%s6944_s1 + $0x97c] ss:$12 sps:$4 sm:$0xff]  }
  0xdb   :  { %4543 = vmatpush3.bf16.msra.mxu1 %v5085_v55  ;;  %v5158_v55 = vld [vmem:[%s6944_s1 + $0x978] ss:$12 sps:$4 sm:$0xff]  }
  0xdc   :  { %3208 = vmatpush1.bf16.msra.mxu0 %v5081_v54  ;;  %4544 = vmatprep.subr.bf16.mxu1 %v5089_v57  ;;  %v5161_v54 = vld [vmem:[%s6944_s1 + $0x740] ss:$12 sps:$4 sm:$0xff]  }
  0xdd   :  { %3209 = vmatprep.subr.bf16.mxu0 %v5088_v56  ;;  %v5162_v56 = vld [vmem:[%s6944_s1 + $0x680] ss:$12 sps:$4 sm:$0xff]  }
  0xde   :  { %v5165_v57 = vld [vmem:[%s6944_s1 + $0x994] ss:$12 sps:$4 sm:$0xff]  }
  0xdf   :  { %4545 = vmatpush3.bf16.msra.mxu1 %v5090_v59  ;;  %v5163_v59 = vld [vmem:[%s6944_s1 + $0x990] ss:$12 sps:$4 sm:$0xff]  }
  0xe0   :  { %3210 = vmatpush1.bf16.msra.mxu0 %v5086_v58  ;;  %4552 = vmatprep.subr.bf16.mxu1 %v5094_v61  ;;  %v5166_v58 = vld [vmem:[%s6944_s1 + $0x758] ss:$12 sps:$4 sm:$0xff]  }
  0xe1   :  { %3211 = vmatprep.subr.bf16.mxu0 %v5093_v60  ;;  %v5167_v60 = vld [vmem:[%s6944_s1 + $0x698] ss:$12 sps:$4 sm:$0xff]  }
  0xe2   :  { %3472 = vmatmul.mubr.bf16.vlgmr.msra.gmra.mrb[12].mxu1 %v5631_v7  ;;  %v5104_v7 = vld [vmem:[%s6944_s1 + $0x578] ss:$12 sps:$4 sm:$0xff]  }
  0xe3   :  { %4553 = vmatpush3.bf16.msra.mxu1 %v5095_v62  ;;  %3511 = vmatprep.mubr.bf16.mxu1 %v5729_v37  ;;  %v5109_v37 = vld [vmem:[%s6944_s1 + $0x590] ss:$12 sps:$4 sm:$0xff]   ;;  %v5170_v61 = vld [vmem:[%s6944_s1 + $0x9ac] ss:$12 sps:$4 sm:$0xff]   ;;  %v5168_v62 = vld [vmem:[%s6944_s1 + $0x9a8] ss:$12 sps:$4 sm:$0xff]  }
  0xe4   :  { %3212 = vmatpush1.bf16.msra.mxu0 %v5091_v6  ;;  %4554 = vmatprep.subr.bf16.mxu1 %v5099_v0  ;;  %v5171_v6 = vld [vmem:[%s6944_s1 + $0x770] ss:$12 sps:$4 sm:$0xff]  }
  0xe5   :  { %3213 = vmatprep.subr.bf16.mxu0 %v5098_v63  ;;  %v5172_v63 = vld [vmem:[%s6944_s1 + $0x6b0] ss:$12 sps:$4 sm:$0xff]  }
  0xe6   :  { %v5175_v0 = vld [vmem:[%s6944_s1 + $0x9c4] ss:$12 sps:$4 sm:$0xff]  }
  0xe7   :  { %4555 = vmatpush3.bf16.msra.mxu1 %v5100_v36  ;;  %v5173_v36 = vld [vmem:[%s6944_s1 + $0x9c0] ss:$12 sps:$4 sm:$0xff]  }
  0xe8   :  { %3214 = vmatpush1.bf16.msra.mxu0 %v5096_v1  ;;  %4556 = vmatprep.subr.bf16.mxu1 %v5104_v7  ;;  %v5176_v1 = vld [vmem:[%s6944_s1 + $0x848] ss:$12 sps:$4 sm:$0xff]  }
  0xe9   :  { %3215 = vmatprep.subr.bf16.mxu0 %v5103_v2  ;;  %v5177_v2 = vld [vmem:[%s6944_s1 + $0x788] ss:$12 sps:$4 sm:$0xff]  }
  0xea   :  { %v5180_v7 = vld [vmem:[%s6944_s1 + $0x9dc] ss:$12 sps:$4 sm:$0xff]  }
  0xeb   :  { %4557 = vmatpush3.bf16.msra.mxu1 %v5105_v4  ;;  %v5178_v4 = vld [vmem:[%s6944_s1 + $0x9d8] ss:$12 sps:$4 sm:$0xff]  }
  0xec   :  { %3216 = vmatpush1.bf16.msra.mxu0 %v5101_v3  ;;  %4558 = vmatprep.subr.bf16.mxu1 %v5109_v37  ;;  %v5181_v3 = vld [vmem:[%s6944_s1 + $0x860] ss:$12 sps:$4 sm:$0xff]  }
  0xed   :  { %3217 = vmatprep.subr.bf16.mxu0 %v5108_v5  ;;  %v5182_v5 = vld [vmem:[%s6944_s1 + $0x7a0] ss:$12 sps:$4 sm:$0xff]  }
  0xee   :  { %v5185_v37 = vld [vmem:[%s6944_s1 + $0x9f4] ss:$12 sps:$4 sm:$0xff]  }
  0xef   :  { %4559 = vmatpush3.bf16.msra.mxu1 %v5110_v9  ;;  %v5187_v9 = vld [vmem:[%s6944_s1 + $0x7b8] ss:$12 sps:$4 sm:$0xff]  }
  0xf0   :  { %3218 = vmatpush1.bf16.msra.mxu0 %v5106_v8  ;;  %4560 = vmatprep.subr.bf16.mxu1 %v5114_v11  ;;  %v5183_v8 = vld [vmem:[%s6944_s1 + $0x9f0] ss:$12 sps:$4 sm:$0xff]   ;;  %v5188_v11 = vld [vmem:[%s6944_s1 + $0xa08] ss:$12 sps:$4 sm:$0xff]  }
  0xf1   :  { %3219 = vmatprep.subr.bf16.mxu0 %v5113_v10  ;;  %v5190_v10 = vld [vmem:[%s6944_s1 + $0xa0c] ss:$12 sps:$4 sm:$0xff]  }
  0xf3   :  { %4561 = vmatpush3.bf16.msra.mxu1 %v5115_v13  ;;  %v5195_v13 = vld [vmem:[%s6944_s1 + $0xa24] ss:$12 sps:$4 sm:$0xff]  }
  0xf4   :  { %3220 = vmatpush1.bf16.msra.mxu0 %v5111_v12  ;;  %4562 = vmatprep.subr.bf16.mxu1 %v5119_v15  ;;  %v5192_v12 = vld [vmem:[%s6944_s1 + $0x7d0] ss:$12 sps:$4 sm:$0xff]   ;;  %v5193_v15 = vld [vmem:[%s6944_s1 + $0xa20] ss:$12 sps:$4 sm:$0xff]  }
  0xf5   :  { %3221 = vmatprep.subr.bf16.mxu0 %v5118_v14  ;;  %v5196_v14 = vld [vmem:[%s6944_s1 + $0x8a8] ss:$12 sps:$4 sm:$0xff]  }
  0xf7   :  { %4563 = vmatpush3.bf16.msra.mxu1 %v5120_v19  ;;  %v5200_v19 = vld [vmem:[%s6944_s1 + $0xa3c] ss:$12 sps:$4 sm:$0xff]  }
  0xf8   :  { %3222 = vmatpush1.bf16.msra.mxu0 %v5116_v18  ;;  %4564 = vmatprep.subr.bf16.mxu1 %v5124_v21  ;;  %v5197_v18 = vld [vmem:[%s6944_s1 + $0x7e8] ss:$12 sps:$4 sm:$0xff]   ;;  %v5198_v21 = vld [vmem:[%s6944_s1 + $0xa38] ss:$12 sps:$4 sm:$0xff]  }
  0xf9   :  { %3223 = vmatprep.subr.bf16.mxu0 %v5123_v20  ;;  %v5201_v20 = vld [vmem:[%s6944_s1 + $0x8c0] ss:$12 sps:$4 sm:$0xff]  }
  0xfb   :  { %4565 = vmatpush3.bf16.msra.mxu1 %v5125_v23  ;;  %v5205_v23 = vld [vmem:[%s6944_s1 + $0xa54] ss:$12 sps:$4 sm:$0xff]  }
  0xfc   :  { %3224 = vmatpush1.bf16.msra.mxu0 %v5121_v22  ;;  %4566 = vmatprep.subr.bf16.mxu1 %v5129_v26  ;;  %v5202_v22 = vld [vmem:[%s6944_s1 + $0x800] ss:$12 sps:$4 sm:$0xff]   ;;  %v5203_v26 = vld [vmem:[%s6944_s1 + $0xa50] ss:$12 sps:$4 sm:$0xff]  }
  0xfd   :  { %3225 = vmatprep.subr.bf16.mxu0 %v5128_v24  ;;  %v5206_v24 = vld [vmem:[%s6944_s1 + $0x8d8] ss:$12 sps:$4 sm:$0xff]  }
  0xff   :  { %4567 = vmatpush3.bf16.msra.mxu1 %v5130_v28  ;;  %v5210_v28 = vld [vmem:[%s6944_s1 + $0xa6c] ss:$12 sps:$4 sm:$0xff]  }
 0x100   :  { %3226 = vmatpush1.bf16.msra.mxu0 %v5126_v27  ;;  %4574 = vmatprep.subr.bf16.mxu1 %v5136_v30  ;;  %v5207_v27 = vld [vmem:[%s6944_s1 + $0x818] ss:$12 sps:$4 sm:$0xff]   ;;  %v5208_v30 = vld [vmem:[%s6944_s1 + $0xa68] ss:$12 sps:$4 sm:$0xff]  }
 0x101   :  { %3236 = vmatprep.subr.bf16.mxu0 %v5135_v48  ;;  %v5211_v48 = vld [vmem:[%s6944_s1 + $0x8f0] ss:$12 sps:$4 sm:$0xff]  }
 0x102   :  { %3512 = vmatmul.mubr.bf16.vlgmr.msra.gmra.mrb[16].mxu1 %v5853_v17  ;;  %v5143_v17 = vld [vmem:[%s6944_s1 + $0x930] ss:$12 sps:$4 sm:$0xff]  }
 0x103   :  { %3228 = vmatmul.mubr.bf16.vlgmr.msra.gmra.mrb[0].mxu0 %v6278_v33  ;;  %4575 = vmatpush3.bf16.msra.mxu1 %v5137_v35  ;;  %v5217_v35 = vld [vmem:[%s6944_s1 + $0xa84] ss:$12 sps:$4 sm:$0xff]  }
 0x104   :  { %3237 = vmatpush1.bf16.msra.mxu0 %v5133_v32  ;;  %4576 = vmatprep.subr.bf16.mxu1 %v5141_v29  ;;  %v5212_v32 = vld [vmem:[%s6944_s1 + $0x830] ss:$12 sps:$4 sm:$0xff]   ;;  %v5215_v29 = vld [vmem:[%s6944_s1 + $0xa80] ss:$12 sps:$4 sm:$0xff]  }
 0x105   :  { %3238 = vmatprep.subr.bf16.mxu0 %v5140_v38  ;;  %3551 = vmatprep.mubr.bf16.mxu1 %v5913_v34  ;;  %v5151_v34 = vld [vmem:[%s6944_s1 + $0x710] ss:$12 sps:$4 sm:$0xff]   ;;  %v5218_v38 = vld [vmem:[%s6944_s1 + $0x9c8] ss:$12 sps:$4 sm:$0xff]  }
 0x106   :  { %3268 = vmatprep.mubr.bf16.mxu0 %v6299_v53 }
 0x107   :  { %4577 = vmatpush3.bf16.msra.mxu1 %v5142_v40  ;;  %v5219_v40 = vld [vmem:[%s6944_s1 + $0x908] ss:$12 sps:$4 sm:$0xff]  }
 0x108   :  { %3239 = vmatpush1.bf16.msra.mxu0 %v5138_v39  ;;  %4578 = vmatprep.subr.bf16.mxu1 %v5146_v42  ;;  %v6489_v39 = vcombine.low %v6286_v16, %v6286_v16  ;;  %v5222_v42 = vld [vmem:[%s6944_s1 + $0xa9c] ss:$12 sps:$4 sm:$0xff]   ;;  %v5223_v16 = vld [vmem:[%s6944_s1 + $0x9e0] ss:$12 sps:$4 sm:$0xff]  }
 0x109   :  { %3240 = vmatprep.subr.bf16.mxu0 %v5145_v41  ;;  %v6497_v41 = vld [vmem:[%s6945_s0 + $0x38] sm:$0xff] }
 0x10b   :  { %4579 = vmatpush3.bf16.msra.mxu1 %v5147_v43  ;;  %v6510_v43 = vcombine.high %v6497_v41, %v6497_v41 }
 0x10c   :  { %3241 = vmatpush1.bf16.msra.mxu0 %v5143_v17  ;;  %4580 = vmatprep.subr.bf16.mxu1 %v5151_v34  ;;  %v5220_v17 = vld [vmem:[%s6944_s1 + $0xa98] ss:$12 sps:$4 sm:$0xff]   ;;  %v5227_v34 = vld [vmem:[%s6944_s1 + $0xab4] ss:$12 sps:$4 sm:$0xff]  }
 0x10d   :  { %3242 = vmatprep.subr.bf16.mxu0 %v5150_v44  ;;  %v5224_v44 = vld [vmem:[%s6944_s1 + $0x920] ss:$12 sps:$4 sm:$0xff]  }
 0x10f   :  { %4581 = vmatpush3.bf16.msra.mxu1 %v5152_v46  ;;  %v5229_v46 = vld [vmem:[%s6944_s1 + $0x938] ss:$12 sps:$4 sm:$0xff]  }
 0x110   :  { %3243 = vmatpush1.bf16.msra.mxu0 %v5148_v45  ;;  %4582 = vmatprep.subr.bf16.mxu1 %v5156_v49  ;;  %v5228_v45 = vld [vmem:[%s6944_s1 + $0x9f8] ss:$12 sps:$4 sm:$0xff]   ;;  %v5230_v49 = vld [vmem:[%s6944_s1 + $0xac8] ss:$12 sps:$4 sm:$0xff]  }
 0x111   :  { %3244 = vmatprep.subr.bf16.mxu0 %v5155_v47  ;;  %v5232_v47 = vld [vmem:[%s6944_s1 + $0xacc] ss:$12 sps:$4 sm:$0xff]  }
 0x113   :  { %4583 = vmatpush3.bf16.msra.mxu1 %v5157_v51  ;;  %v5237_v51 = vld [vmem:[%s6944_s1 + $0xae4] ss:$12 sps:$4 sm:$0xff]  }
 0x114   :  { %3245 = vmatpush1.bf16.msra.mxu0 %v5153_v50  ;;  %4584 = vmatprep.subr.bf16.mxu1 %v5161_v54  ;;  %v5234_v50 = vld [vmem:[%s6944_s1 + $0x950] ss:$12 sps:$4 sm:$0xff]   ;;  %v5235_v54 = vld [vmem:[%s6944_s1 + $0xae0] ss:$12 sps:$4 sm:$0xff]  }
 0x115   :  { %3246 = vmatprep.subr.bf16.mxu0 %v5160_v52  ;;  %v5238_v52 = vld [vmem:[%s6944_s1 + $0xa28] ss:$12 sps:$4 sm:$0xff]  }
 0x117   :  { %4585 = vmatpush3.bf16.msra.mxu1 %v5162_v56  ;;  %v5242_v56 = vld [vmem:[%s6944_s1 + $0xafc] ss:$12 sps:$4 sm:$0xff]  }
 0x118   :  { %3247 = vmatpush1.bf16.msra.mxu0 %v5158_v55  ;;  %4586 = vmatprep.subr.bf16.mxu1 %v5166_v58  ;;  %v5239_v55 = vld [vmem:[%s6944_s1 + $0x968] ss:$12 sps:$4 sm:$0xff]   ;;  %v5240_v58 = vld [vmem:[%s6944_s1 + $0xaf8] ss:$12 sps:$4 sm:$0xff]  }
 0x119   :  { %3248 = vmatprep.subr.bf16.mxu0 %v5165_v57  ;;  %v5243_v57 = vld [vmem:[%s6944_s1 + $0xa40] ss:$12 sps:$4 sm:$0xff]  }
 0x11b   :  { %4587 = vmatpush3.bf16.msra.mxu1 %v5167_v60  ;;  %v5247_v60 = vld [vmem:[%s6944_s1 + $0xb14] ss:$12 sps:$4 sm:$0xff]  }
 0x11c   :  { %3249 = vmatpush1.bf16.msra.mxu0 %v5163_v59  ;;  %4588 = vmatprep.subr.bf16.mxu1 %v5171_v6  ;;  %v5244_v59 = vld [vmem:[%s6944_s1 + $0x980] ss:$12 sps:$4 sm:$0xff]  }
 0x11d   :  { %3250 = vmatprep.subr.bf16.mxu0 %v5170_v61  ;;  %v5248_v61 = vld [vmem:[%s6944_s1 + $0xa58] ss:$12 sps:$4 sm:$0xff]  }
 0x11f   :  { %4589 = vmatpush3.bf16.msra.mxu1 %v5172_v63 }
 0x120   :  { %3251 = vmatpush1.bf16.msra.mxu0 %v5168_v62  ;;  %4596 = vmatprep.subr.bf16.mxu1 %v5176_v1  ;;  %v5249_v1 = vld [vmem:[%s6944_s1 + $0x998] ss:$12 sps:$4 sm:$0xff]  }
 0x121   :  { %3252 = vmatprep.subr.bf16.mxu0 %v5175_v0  ;;  %v5245_v0 = vld [vmem:[%s6944_s1 + $0xb10] ss:$12 sps:$4 sm:$0xff]  }
 0x122   :  { %3552 = vmatmul.mubr.bf16.vlgmr.msra.gmra.mrb[20].mxu1 %v6064_v25  ;;  %v5186_v25 = vld [vmem:[%s6944_s1 + $0x878] ss:$12 sps:$4 sm:$0xff]  }
 0x123   :  { %4597 = vmatpush3.bf16.msra.mxu1 %v5177_v2  ;;  %3591 = vmatprep.mubr.bf16.mxu1 %v6088_v31  ;;  %v5191_v31 = vld [vmem:[%s6944_s1 + $0x890] ss:$12 sps:$4 sm:$0xff]   ;;  %v5252_v2 = vld [vmem:[%s6944_s1 + $0xb2c] ss:$12 sps:$4 sm:$0xff]  }
 0x124   :  { %3253 = vmatpush1.bf16.msra.mxu0 %v5173_v36  ;;  %4598 = vmatprep.subr.bf16.mxu1 %v5181_v3  ;;  %v5250_v3 = vld [vmem:[%s6944_s1 + $0xb28] ss:$12 sps:$4 sm:$0xff]  }
 0x125   :  { %3254 = vmatprep.subr.bf16.mxu0 %v5180_v7  ;;  %v5253_v7 = vld [vmem:[%s6944_s1 + $0xa70] ss:$12 sps:$4 sm:$0xff]  }
 0x127   :  { %4599 = vmatpush3.bf16.msra.mxu1 %v5182_v5  ;;  %v5257_v5 = vld [vmem:[%s6944_s1 + $0xb44] ss:$12 sps:$4 sm:$0xff]  }
 0x128   :  { %3255 = vmatpush1.bf16.msra.mxu0 %v5178_v4  ;;  %4600 = vmatprep.subr.bf16.mxu1 %v5186_v25  ;;  %v5254_v4 = vld [vmem:[%s6944_s1 + $0x9b0] ss:$12 sps:$4 sm:$0xff]   ;;  %v5255_v25 = vld [vmem:[%s6944_s1 + $0xb40] ss:$12 sps:$4 sm:$0xff]  }
 0x129   :  { %3256 = vmatprep.subr.bf16.mxu0 %v5185_v37  ;;  %v5258_v37 = vld [vmem:[%s6944_s1 + $0xb48] ss:$12 sps:$4 sm:$0xff]  }
 0x12b   :  { %4601 = vmatpush3.bf16.msra.mxu1 %v5187_v9  ;;  %v5262_v9 = vld [vmem:[%s6944_s1 + $0xb5c] ss:$12 sps:$4 sm:$0xff]  }
 0x12c   :  { %3257 = vmatpush1.bf16.msra.mxu0 %v5183_v8  ;;  %4602 = vmatprep.subr.bf16.mxu1 %v5191_v31  ;;  %v5259_v8 = vld [vmem:[%s6944_s1 + $0xa88] ss:$12 sps:$4 sm:$0xff]   ;;  %v5260_v31 = vld [vmem:[%s6944_s1 + $0xb58] ss:$12 sps:$4 sm:$0xff]  }
 0x12d   :  { %3258 = vmatprep.subr.bf16.mxu0 %v5190_v10  ;;  %v5263_v10 = vld [vmem:[%s6944_s1 + $0xb60] ss:$12 sps:$4 sm:$0xff]  }
 0x12f   :  { %4603 = vmatpush3.bf16.msra.mxu1 %v5192_v12  ;;  %v5267_v12 = vld [vmem:[%s6944_s1 + $0xb74] ss:$12 sps:$4 sm:$0xff]  }
 0x130   :  { %3259 = vmatpush1.bf16.msra.mxu0 %v5188_v11  ;;  %4604 = vmatprep.subr.bf16.mxu1 %v5196_v14  ;;  %v5264_v11 = vld [vmem:[%s6944_s1 + $0xaa0] ss:$12 sps:$4 sm:$0xff]   ;;  %v5265_v14 = vld [vmem:[%s6944_s1 + $0xb70] ss:$12 sps:$4 sm:$0xff]  }
 0x131   :  { %3260 = vmatprep.subr.bf16.mxu0 %v5195_v13  ;;  %v5268_v13 = vld [vmem:[%s6944_s1 + $0xb78] ss:$12 sps:$4 sm:$0xff]  }
 0x133   :  { %4605 = vmatpush3.bf16.msra.mxu1 %v5197_v18  ;;  %v5272_v18 = vld [vmem:[%s6944_s1 + $0xb8c] ss:$12 sps:$4 sm:$0xff]  }
 0x134   :  { %3261 = vmatpush1.bf16.msra.mxu0 %v5193_v15  ;;  %4606 = vmatprep.subr.bf16.mxu1 %v5201_v20  ;;  %v5269_v15 = vld [vmem:[%s6944_s1 + $0xab8] ss:$12 sps:$4 sm:$0xff]   ;;  %v5270_v20 = vld [vmem:[%s6944_s1 + $0xb88] ss:$12 sps:$4 sm:$0xff]  }
 0x135   :  { %3262 = vmatprep.subr.bf16.mxu0 %v5200_v19  ;;  %v5273_v19 = vld [vmem:[%s6944_s1 + $0xb90] ss:$12 sps:$4 sm:$0xff]  }
 0x137   :  { %4607 = vmatpush3.bf16.msra.mxu1 %v5202_v22  ;;  %v5277_v22 = vld [vmem:[%s6944_s1 + $0xba4] ss:$12 sps:$4 sm:$0xff]  }
 0x138   :  { %3263 = vmatpush1.bf16.msra.mxu0 %v5198_v21  ;;  %4608 = vmatprep.subr.bf16.mxu1 %v5206_v24  ;;  %v5274_v21 = vld [vmem:[%s6944_s1 + $0xad0] ss:$12 sps:$4 sm:$0xff]   ;;  %v5275_v24 = vld [vmem:[%s6944_s1 + $0xba0] ss:$12 sps:$4 sm:$0xff]  }
 0x139   :  { %3264 = vmatprep.subr.bf16.mxu0 %v5205_v23  ;;  %v5278_v23 = vld [vmem:[%s6944_s1 + $0xba8] ss:$12 sps:$4 sm:$0xff]  }
 0x13b   :  { %4609 = vmatpush3.bf16.msra.mxu1 %v5207_v27  ;;  %v5282_v27 = vld [vmem:[%s6944_s1 + $0xbbc] ss:$12 sps:$4 sm:$0xff]  }
 0x13c   :  { %3265 = vmatpush1.bf16.msra.mxu0 %v5203_v26  ;;  %4610 = vmatprep.subr.bf16.mxu1 %v5211_v48  ;;  %v5279_v26 = vld [vmem:[%s6944_s1 + $0xae8] ss:$12 sps:$4 sm:$0xff]   ;;  %v5280_v48 = vld [vmem:[%s6944_s1 + $0xbb8] ss:$12 sps:$4 sm:$0xff]  }
 0x13d   :  { %3266 = vmatprep.subr.bf16.mxu0 %v5210_v28  ;;  %v5283_v28 = vld [vmem:[%s6944_s1 + $0xbc0] ss:$12 sps:$4 sm:$0xff]  }
 0x13f   :  { %4611 = vmatpush3.bf16.msra.mxu1 %v5212_v32  ;;  %v5287_v32 = vld [vmem:[%s6944_s1 + $0xbd4] ss:$12 sps:$4 sm:$0xff]  }
 0x140   :  { %3267 = vmatpush1.bf16.msra.mxu0 %v5208_v30  ;;  %4618 = vmatprep.subr.bf16.mxu1 %v5218_v38  ;;  %v5284_v30 = vld [vmem:[%s6944_s1 + $0xb00] ss:$12 sps:$4 sm:$0xff]  }
 0x141   :  { %3277 = vmatprep.subr.bf16.mxu0 %v5217_v35  ;;  %v5288_v35 = vld [vmem:[%s6944_s1 + $0xbd8] ss:$12 sps:$4 sm:$0xff]  }
 0x142   :  { %3592 = vmatmul.mubr.bf16.vlgmr.msra.gmra.mrb[24].mxu1 %v6278_v33  ;;  %v5225_v33 = vld [vmem:[%s6944_s1 + $0xab0] ss:$12 sps:$4 sm:$0xff]  }
 0x143   :  { %3269 = vmatmul.mubr.bf16.vlgmr.msra.gmra.mrb[0].mxu0 %v6489_v39  ;;  %4619 = vmatpush3.bf16.msra.mxu1 %v5219_v40  ;;  %v5289_v40 = vld [vmem:[%s6944_s1 + $0xb18] ss:$12 sps:$4 sm:$0xff]  }
 0x144   :  { %3278 = vmatpush1.bf16.msra.mxu0 %v5215_v29  ;;  %4620 = vmatprep.subr.bf16.mxu1 %v5223_v16 }
 0x145   :  { %3279 = vmatprep.subr.bf16.mxu0 %v5222_v42  ;;  %3631 = vmatprep.mubr.bf16.mxu1 %v6299_v53  ;;  %v5233_v53 = vld [vmem:[%s6944_s1 + $0xa10] ss:$12 sps:$4 sm:$0xff]  }
 0x146   :  { %3309 = vmatprep.mubr.bf16.mxu0 %v6510_v43 }
 0x147   :  { %4621 = vmatpush3.bf16.msra.mxu1 %v5224_v44 }
 0x148   :  { %3280 = vmatpush1.bf16.msra.mxu0 %v5220_v17  ;;  %4622 = vmatprep.subr.bf16.mxu1 %v5228_v45  ;;  %v5292_v17 = vld [vmem:[%s6944_s1 + $0xbec] ss:$12 sps:$4 sm:$0xff]   ;;  %v5294_v45 = vld [vmem:[%s6944_s1 + $0xb30] ss:$12 sps:$4 sm:$0xff]  }
 0x149   :  { %3281 = vmatprep.subr.bf16.mxu0 %v5227_v34  ;;  %v5290_v34 = vld [vmem:[%s6944_s1 + $0xbe8] ss:$12 sps:$4 sm:$0xff]  }
 0x14b   :  { %4623 = vmatpush3.bf16.msra.mxu1 %v5229_v46  ;;  %v5300_v46 = vld [vmem:[%s6944_s1 + $0xcc8] ss:$12 sps:$4 sm:$0xff]  }
 0x14c   :  { %3282 = vmatpush1.bf16.msra.mxu0 %v5225_v33  ;;  %4624 = vmatprep.subr.bf16.mxu1 %v5233_v53  ;;  %v5299_v33 = vld [vmem:[%s6944_s1 + $0xc04] ss:$12 sps:$4 sm:$0xff]  }
 0x14d   :  { %3283 = vmatprep.subr.bf16.mxu0 %v5232_v47  ;;  %v4025_v47 = vcombine.low %v6497_v41, %v6497_v41  ;;  %v6706_v53 = vld [vmem:[%s6945_s0 + $0x40] sm:$0xff]  ;;  %v5304_v41 = vld [vmem:[%s6944_s1 + $0xc1c] ss:$12 sps:$4 sm:$0xff]  }
 0x14f   :  { %4625 = vmatpush3.bf16.msra.mxu1 %v5234_v50  ;;  %v5301_v50 = vld [vmem:[%s6944_s1 + $0xc08] ss:$12 sps:$4 sm:$0xff]  }
 0x150   :  { %3284 = vmatpush1.bf16.msra.mxu0 %v5230_v49  ;;  %4626 = vmatprep.subr.bf16.mxu1 %v5238_v52  ;;  %v5297_v49 = vld [vmem:[%s6944_s1 + $0xc00] ss:$12 sps:$4 sm:$0xff]   ;;  %v4028_v52 = vcombine.high %v6706_v53, %v6706_v53 }
 0x151   :  { %3285 = vmatprep.subr.bf16.mxu0 %v5237_v51  ;;  %v5305_v51 = vld [vmem:[%s6944_s1 + $0xce0] ss:$12 sps:$4 sm:$0xff]  }
 0x153   :  { %4627 = vmatpush3.bf16.msra.mxu1 %v5239_v55  ;;  %v5306_v55 = vld [vmem:[%s6944_s1 + $0xc20] ss:$12 sps:$4 sm:$0xff]  }
 0x154   :  { %3286 = vmatpush1.bf16.msra.mxu0 %v5235_v54  ;;  %4628 = vmatprep.subr.bf16.mxu1 %v5243_v57  ;;  %v5302_v54 = vld [vmem:[%s6944_s1 + $0xc18] ss:$12 sps:$4 sm:$0xff]  }
 0x155   :  { %3287 = vmatprep.subr.bf16.mxu0 %v5242_v56  ;;  %v6573_v6 = vpop.f32.mrb[0].mxu1  ;;  %v5309_v56 = vld [vmem:[%s6944_s1 + $0xc34] ss:$12 sps:$4 sm:$0xff]   ;;  %v5310_v57 = vld [vmem:[%s6944_s1 + $0xcf8] ss:$12 sps:$4 sm:$0xff]  }
 0x156   :  { %v6575_v62 = vpop.f32.mrb[1].mxu1 }
 0x157   :  { %v3069_v63 = vpop.f32.mrb[2].mxu1  ;;  %4629 = vmatpush3.bf16.msra.mxu1 %v5244_v59  ;;  %v5307_v59 = vld [vmem:[%s6944_s1 + $0xc30] ss:$12 sps:$4 sm:$0xff]  }
 0x158   :  { %3288 = vmatpush1.bf16.msra.mxu0 %v5240_v58  ;;  %v3070_v36 = vpop.f32.mrb[3].mxu1  ;;  %4630 = vmatprep.subr.bf16.mxu1 %v5248_v61  ;;  %v608_v58 = vlaneseq  ;;  %v5314_v61 = vld [vmem:[%s6944_s1 + $0xc4c] ss:$12 sps:$4 sm:$0xff]   ;;  %v5315_v63 = vld [vmem:[%s6944_s1 + $0xd10] ss:$12 sps:$4 sm:$0xff]  }
 0x159   :  { %3289 = vmatprep.subr.bf16.mxu0 %v5247_v60  ;;  %v5311_v60 = vld [vmem:[%s6944_s1 + $0xc38] ss:$12 sps:$4 sm:$0xff]   ;;  %v5316_v36 = vld [vmem:[%s6944_s1 + $0xc50] ss:$12 sps:$4 sm:$0xff]  }
 0x15b   :  { %4631 = vmatpush3.bf16.msra.mxu1 %v5249_v1  ;;  %v5312_v1 = vld [vmem:[%s6944_s1 + $0xc48] ss:$12 sps:$4 sm:$0xff]  }
 0x15c   :  { %3290 = vmatpush1.bf16.msra.mxu0 %v5245_v0  ;;  %4632 = vmatprep.subr.bf16.mxu1 %v5253_v7  ;;  %v6746_v0 = vshrl.u32 %v608_v58, 7  ;;  %v5320_v7 = vld [vmem:[%s6944_s1 + $0xd28] ss:$12 sps:$4 sm:$0xff]  }
 0x15d   :  { %3291 = vmatprep.subr.bf16.mxu0 %v5252_v2  ;;  %v5319_v2 = vld [vmem:[%s6944_s1 + $0xc64] ss:$12 sps:$4 sm:$0xff]  }
 0x15f   :  { %4633 = vmatpush3.bf16.msra.mxu1 %v5254_v4  ;;  %v5317_v4 = vld [vmem:[%s6944_s1 + $0xc60] ss:$12 sps:$4 sm:$0xff]  }
 0x160   :  { %3292 = vmatpush1.bf16.msra.mxu0 %v5250_v3  ;;  %4640 = vmatprep.subr.bf16.mxu1 %v5258_v37  ;;  %v618_v3 = vsub.s32 2, %v6746_v0  ;;  %v6770_v37 = vld [vmem:[%s6946_s2] sm:$0x7] }
 0x161   :  { %3293 = vmatprep.subr.bf16.mxu0 %v5257_v5  ;;  %v5321_v5 = vld [vmem:[%s6944_s1 + $0xc68] ss:$12 sps:$4 sm:$0xff]  }
 0x162   :  { %3632 = vmatmul.mubr.bf16.vlgmr.msra.gmra.mrb[28].mxu1 %v6489_v39  ;;  %v5285_v39 = vld [vmem:[%s6944_s1 + $0xbd0] ss:$12 sps:$4 sm:$0xff]  }
 0x163   :  { %4641 = vmatpush3.bf16.msra.mxu1 %v5259_v8  ;;  %3671 = vmatprep.mubr.bf16.mxu1 %v6510_v43  ;;  %v5293_v43 = vld [vmem:[%s6944_s1 + $0xbf0] ss:$12 sps:$4 sm:$0xff]   ;;  %v5325_v8 = vld [vmem:[%s6944_s1 + $0xd40] ss:$12 sps:$4 sm:$0xff]  }
 0x164   :  { %3294 = vmatpush1.bf16.msra.mxu0 %v5255_v25  ;;  %4642 = vmatprep.subr.bf16.mxu1 %v5263_v10  ;;  %v5324_v25 = vld [vmem:[%s6944_s1 + $0xc7c] ss:$12 sps:$4 sm:$0xff]   ;;  %v5322_v10 = vld [vmem:[%s6944_s1 + $0xc78] ss:$12 sps:$4 sm:$0xff]  }
 0x165   :  { %3295 = vmatprep.subr.bf16.mxu0 %v5262_v9  ;;  %v619_v9 = vrot.slane %v6770_v37, %v618_v3  ;;  %v5365_v3 = vld [vmem:[%s6947_s3 + $0x48] sm:$0xff]  }
 0x167   :  { %4643 = vmatpush3.bf16.msra.mxu1 %v5264_v11  ;;  %v5329_v11 = vld [vmem:[%s6944_s1 + $0xc94] ss:$12 sps:$4 sm:$0xff]  }
 0x168   :  { %3296 = vmatpush1.bf16.msra.mxu0 %v5260_v31  ;;  %4644 = vmatprep.subr.bf16.mxu1 %v5268_v13  ;;  %v5326_v31 = vld [vmem:[%s6944_s1 + $0xc80] ss:$12 sps:$4 sm:$0xff]  }
 0x169   :  { %3297 = vmatprep.subr.bf16.mxu0 %v5267_v12  ;;  %v5330_v12 = vld [vmem:[%s6944_s1 + $0xd58] ss:$12 sps:$4 sm:$0xff]  }
 0x16b   :  { %4645 = vmatpush3.bf16.msra.mxu1 %v5269_v15 }
 0x16c   :  { %3298 = vmatpush1.bf16.msra.mxu0 %v5265_v14  ;;  %4646 = vmatprep.subr.bf16.mxu1 %v5273_v19  ;;  %v5331_v19 = vld [vmem:[%s6944_s1 + $0xc98] ss:$12 sps:$4 sm:$0xff]  }
 0x16d   :  { %3299 = vmatprep.subr.bf16.mxu0 %v5272_v18  ;;  %v5327_v18 = vld [vmem:[%s6944_s1 + $0xc90] ss:$12 sps:$4 sm:$0xff]  }
 0x16f   :  { %4647 = vmatpush3.bf16.msra.mxu1 %v5274_v21 }
 0x170   :  { %3300 = vmatpush1.bf16.msra.mxu0 %v5270_v20  ;;  %4648 = vmatprep.subr.bf16.mxu1 %v5278_v23  ;;  %v5335_v23 = vld [vmem:[%s6944_s1 + $0xd70] ss:$12 sps:$4 sm:$0xff]  }
 0x171   :  { %3301 = vmatprep.subr.bf16.mxu0 %v5277_v22  ;;  %v5334_v22 = vld [vmem:[%s6944_s1 + $0xcac] ss:$12 sps:$4 sm:$0xff]  }
 0x173   :  { %4649 = vmatpush3.bf16.msra.mxu1 %v5279_v26 }
 0x174   :  { %3302 = vmatpush1.bf16.msra.mxu0 %v5275_v24  ;;  %4650 = vmatprep.subr.bf16.mxu1 %v5283_v28  ;;  %v5336_v28 = vld [vmem:[%s6944_s1 + $0xcb0] ss:$12 sps:$4 sm:$0xff]  }
 0x175   :  { %3303 = vmatprep.subr.bf16.mxu0 %v5282_v27  ;;  %v4502_v38 = vpop.f32.mrb[4].mxu1  ;;  %v5332_v27 = vld [vmem:[%s6944_s1 + $0xca8] ss:$12 sps:$4 sm:$0xff]  }
 0x176   :  { %v4503_v29 = vpop.f32.mrb[5].mxu1 }
 0x177   :  { %4651 = vmatpush3.bf16.msra.mxu1 %v5284_v30  ;;  %v6681_v42 = vadd.f32 %v4503_v29, %v4502_v38  ;;  %v4505_v16 = vpop.f32.mrb[6].mxu1  ;;  %v4027_v30 = vcombine.low %v6706_v53, %v6706_v53  ;;  %v5342_v38 = vld [vmem:[%s6944_s1 + $0xcd8] ss:$12 sps:$4 sm:$0xff]   ;;  %v5347_v29 = vld [vmem:[%s6944_s1 + $0xcf4] ss:$12 sps:$4 sm:$0xff]  }
 0x178   :  { %3304 = vmatpush1.bf16.msra.mxu0 %v5280_v48  ;;  %4652 = vmatprep.subr.bf16.mxu1 %v5288_v35  ;;  %v4506_v44 = vpop.f32.mrb[7].mxu1  ;;  %v5341_v48 = vld [vmem:[%s6944_s1 + $0xcc4] ss:$12 sps:$4 sm:$0xff]   ;;  %v5344_v35 = vld [vmem:[%s6944_s1 + $0xcdc] ss:$12 sps:$4 sm:$0xff]  }
 0x179   :  { %3305 = vmatprep.subr.bf16.mxu0 %v5287_v32  ;;  %v3394_v13 = vadd.f32 %v6681_v42, %v619_v9  ;;  %v5339_v32 = vld [vmem:[%s6944_s1 + $0xcc0] ss:$12 sps:$4 sm:$0xff]   ;;  %v5348_v42 = vld [vmem:[%s6944_s1 + $0xd08] ss:$12 sps:$4 sm:$0xff]   ;;  %v5353_v16 = vld [vmem:[%s6944_s1 + $0xd24] ss:$12 sps:$4 sm:$0xff]  }
 0x17a   :  { %v5354_v44 = vld [vmem:[%s6944_s1 + $0xd38] ss:$12 sps:$4 sm:$0xff]  }
 0x17b   :  { %4653 = vmatpush3.bf16.msra.mxu1 %v5289_v40  ;;  %v5350_v40 = vld [vmem:[%s6944_s1 + $0xd0c] ss:$12 sps:$4 sm:$0xff]  }
 0x17c   :  { %3306 = vmatpush1.bf16.msra.mxu0 %v5285_v39  ;;  %4654 = vmatprep.subr.bf16.mxu1 %v5293_v43  ;;  %v5345_v39 = vld [vmem:[%s6944_s1 + $0xcf0] ss:$12 sps:$4 sm:$0xff]  }
 0x17d   :  { %3307 = vmatprep.subr.bf16.mxu0 %v5292_v17  ;;  %v5351_v17 = vld [vmem:[%s6944_s1 + $0xd20] ss:$12 sps:$4 sm:$0xff]   ;;  %v5356_v43 = vld [vmem:[%s6944_s1 + $0xd3c] ss:$12 sps:$4 sm:$0xff]  }
 0x17e   :  { %v5370_v9 = vld [vmem:[%s6947_s3 + $0x18] sm:$0xff]  }
 0x17f   :  { %4655 = vmatpush3.bf16.msra.mxu1 %v5294_v45 }
 0x180   :  { %3308 = vmatpush1.bf16.msra.mxu0 %v5290_v34  ;;  %4662 = vmatprep.subr.bf16.mxu1 %v5300_v46  ;;  %v5359_v34 = vld [vmem:[%s6944_s1 + $0xd54] ss:$12 sps:$4 sm:$0xff]  }
 0x181   :  { %3318 = vmatprep.subr.bf16.mxu0 %v5299_v33 }
 0x182   :  { %3672 = vmatmul.mubr.bf16.vlgmr.msra.gmra.mrb[32].mxu1 %v4025_v47 }
 0x183   :  { %3310 = vmatmul.mubr.bf16.vlgmr.msra.gmra.mrb[0].mxu0 %v4025_v47  ;;  %4663 = vmatpush3.bf16.msra.mxu1 %v5301_v50  ;;  %v5357_v47 = vld [vmem:[%s6944_s1 + $0xd50] ss:$12 sps:$4 sm:$0xff]  }
 0x184   :  { %3319 = vmatpush1.bf16.msra.mxu0 %v5297_v49  ;;  %4664 = vmatprep.subr.bf16.mxu1 %v5305_v51  ;;  %v5362_v49 = vld [vmem:[%s6944_s1 + $0xd6c] ss:$12 sps:$4 sm:$0xff]   ;;  %v5360_v51 = vld [vmem:[%s6944_s1 + $0xd68] ss:$12 sps:$4 sm:$0xff]  }
 0x185   :  { %3320 = vmatprep.subr.bf16.mxu0 %v5304_v41  ;;  %3711 = vmatprep.mubr.bf16.mxu1 %v4028_v52 }
 0x186   :  { %3350 = vmatprep.mubr.bf16.mxu0 %v4028_v52 }
 0x187   :  { %4665 = vmatpush3.bf16.msra.mxu1 %v5306_v55 }
 0x188   :  { %3321 = vmatpush1.bf16.msra.mxu0 %v5302_v54  ;;  %4666 = vmatprep.subr.bf16.mxu1 %v5310_v57 }
 0x189   :  { %3322 = vmatprep.subr.bf16.mxu0 %v5309_v56 }
 0x18b   :  { %4667 = vmatpush3.bf16.msra.mxu1 %v5311_v60 }
 0x18c   :  { %3323 = vmatpush1.bf16.msra.mxu0 %v5307_v59  ;;  %4668 = vmatprep.subr.bf16.mxu1 %v5315_v63 }
 0x18d   :  { %3324 = vmatprep.subr.bf16.mxu0 %v5314_v61 }
 0x18f   :  { %4669 = vmatpush3.bf16.msra.mxu1 %v5316_v36 }
 0x190   :  { %3325 = vmatpush1.bf16.msra.mxu0 %v5312_v1  ;;  %4670 = vmatprep.subr.bf16.mxu1 %v5320_v7  ;;  %v5364_v7 = vld [vmem:[%s6947_s3] sm:$0xff]  }
 0x191   :  { %3326 = vmatprep.subr.bf16.mxu0 %v5319_v2  ;;  %v5363_v2 = vld [vmem:[%s6947_s3 + $0x40] sm:$0xff]  }
 0x193   :  { %4671 = vmatpush3.bf16.msra.mxu1 %v5321_v5  ;;  %v5367_v5 = vld [vmem:[%s6947_s3 + $0x50] sm:$0xff]  }
 0x194   :  { %3327 = vmatpush1.bf16.msra.mxu0 %v5317_v4  ;;  %4672 = vmatprep.subr.bf16.mxu1 %v5325_v8  ;;  %v5366_v4 = vld [vmem:[%s6947_s3 + $0x8] sm:$0xff]   ;;  %v5369_v8 = vld [vmem:[%s6947_s3 + $0x58] sm:$0xff]  }
 0x195   :  { %3328 = vmatprep.subr.bf16.mxu0 %v5324_v25  ;;  %v4524_v14 = vpop.f32.mrb[8].mxu1  ;;  %v5368_v25 = vld [vmem:[%s6947_s3 + $0x10] sm:$0xff]  }
 0x196   :  { %v4525_v15 = vpop.f32.mrb[9].mxu1 }
 0x197   :  { %4673 = vmatpush3.bf16.msra.mxu1 %v5326_v31  ;;  %v4526_v20 = vadd.f32 %v4525_v15, %v4524_v14  ;;  %v4527_v21 = vpop.f32.mrb[10].mxu1  ;;  %v5372_v31 = vld [vmem:[%s6947_s3 + $0x20] sm:$0xff]   ;;  %v5376_v14 = vld [vmem:[%s6947_s3 + $0x30] sm:$0xff]  }
 0x198   :  { %3329 = vmatpush1.bf16.msra.mxu0 %v5322_v10  ;;  %4674 = vmatprep.subr.bf16.mxu1 %v5330_v12  ;;  %v4528_v24 = vpop.f32.mrb[11].mxu1  ;;  %v5371_v10 = vld [vmem:[%s6947_s3 + $0x60] sm:$0xff]   ;;  %v5374_v12 = vld [vmem:[%s6947_s3 + $0x28] sm:$0xff]   ;;  %v5377_v21 = vld [vmem:[%s6947_s3 + $0x78] sm:$0xff]  }
 0x199   :  { %3330 = vmatprep.subr.bf16.mxu0 %v5329_v11  ;;  %v3434_v26 = vadd.f32 %v4526_v20, %v3394_v13  ;;  %v5373_v11 = vld [vmem:[%s6947_s3 + $0x68] sm:$0xff]   ;;  %v5375_v13 = vld [vmem:[%s6947_s3 + $0x70] sm:$0xff]  }
 0x19b   :  { %4675 = vmatpush3.bf16.msra.mxu1 %v5331_v19 }
 0x19c   :  { %3331 = vmatpush1.bf16.msra.mxu0 %v5327_v18  ;;  %4676 = vmatprep.subr.bf16.mxu1 %v5335_v23  ;;  %v5378_v23 = vld [vmem:[%s6947_s3 + $0x38] sm:$0xff]  }
 0x19d   :  { %3332 = vmatprep.subr.bf16.mxu0 %v5334_v22 }
 0x19f   :  { %4677 = vmatpush3.bf16.msra.mxu1 %v5336_v28 }
 0x1a0   :  { %3333 = vmatpush1.bf16.msra.mxu0 %v5332_v27  ;;  %4684 = vmatprep.subr.bf16.mxu1 %v5363_v2  ;;  %v5386_v2 = vld [vmem:[%s6947_s3 + $0xb8] sm:$0xff]  }
 0x1a1   :  { %3334 = vmatprep.subr.bf16.mxu0 %v5341_v48 }
 0x1a2   :  { %3712 = vmatmul.mubr.bf16.vlgmr.msra.gmra.mrb[36].mxu1 %v4027_v30 }
 0x1a3   :  { %4685 = vmatpush3.bf16.msra.mxu1 %v5364_v7 }
 0x1a4   :  { %3335 = vmatpush1.bf16.msra.mxu0 %v5339_v32  ;;  %4686 = vmatprep.subr.bf16.mxu1 %v5365_v3 }
 0x1a5   :  { %3336 = vmatprep.subr.bf16.mxu0 %v5344_v35 }
 0x1a7   :  { %4687 = vmatpush3.bf16.msra.mxu1 %v5366_v4 }
 0x1a8   :  { %3337 = vmatpush1.bf16.msra.mxu0 %v5342_v38  ;;  %4688 = vmatprep.subr.bf16.mxu1 %v5367_v5 }
 0x1a9   :  { %3338 = vmatprep.subr.bf16.mxu0 %v5347_v29 }
 0x1ab   :  { %4689 = vmatpush3.bf16.msra.mxu1 %v5368_v25 }
 0x1ac   :  { %3339 = vmatpush1.bf16.msra.mxu0 %v5345_v39  ;;  %4690 = vmatprep.subr.bf16.mxu1 %v5369_v8 }
 0x1ad   :  { %3340 = vmatprep.subr.bf16.mxu0 %v5350_v40 }
 0x1af   :  { %4691 = vmatpush3.bf16.msra.mxu1 %v5370_v9 }
 0x1b0   :  { %3341 = vmatpush1.bf16.msra.mxu0 %v5348_v42  ;;  %4692 = vmatprep.subr.bf16.mxu1 %v5371_v10  ;;  %v4461_v10 = vld [vmem:[%s6948_s4] ss:$0 sm:$0xff] }
 0x1b1   :  { %3342 = vmatprep.subr.bf16.mxu0 %v5353_v16 }
 0x1b3   :  { %4693 = vmatpush3.bf16.msra.mxu1 %v5372_v31 }
 0x1b4   :  { %3343 = vmatpush1.bf16.msra.mxu0 %v5351_v17  ;;  %4694 = vmatprep.subr.bf16.mxu1 %v5373_v11 }
 0x1b5   :  { %3344 = vmatprep.subr.bf16.mxu0 %v5356_v43  ;;  %v4546_v45 = vpop.f32.mrb[12].mxu1 }
 0x1b6   :  { %v4547_v33 = vpop.f32.mrb[13].mxu1 }
 0x1b7   :  { %v4548_v46 = vadd.f32 %v4547_v33, %v4546_v45  ;;  %v4549_v53 = vpop.f32.mrb[14].mxu1  ;;  %4695 = vmatpush3.bf16.msra.mxu1 %v5374_v12 }
 0x1b8   :  { %3345 = vmatpush1.bf16.msra.mxu0 %v5354_v44  ;;  %v4550_v50 = vpop.f32.mrb[15].mxu1  ;;  %4696 = vmatprep.subr.bf16.mxu1 %v5375_v13 }
 0x1b9   :  { %3346 = vmatprep.subr.bf16.mxu0 %v5359_v34  ;;  %v3474_v41 = vadd.f32 %v4548_v46, %v3434_v26  ;;  %v5387_v26 = vmov 0.0   ;;  %v610_v46 = vsub.s32 0, %v6746_v0 }
 0x1bb   :  { %4697 = vmatpush3.bf16.msra.mxu1 %v5376_v14  ;;  %v611_v53 = vrot.slane %v6770_v37, %v610_v46 }
 0x1bc   :  { %3347 = vmatpush1.bf16.msra.mxu0 %v5357_v47  ;;  %4698 = vmatprep.subr.bf16.mxu1 %v5377_v21  ;;  %v614_v47 = vsub.s32 1, %v6746_v0  ;;  %v5379_v0 = vld [vmem:[%s6947_s3 + $0x80] sm:$0xff]  }
 0x1bd   :  { %3348 = vmatprep.subr.bf16.mxu0 %v5362_v49  ;;  %v4735_v50 = vadd.f32 %v6573_v6, %v611_v53  ;;  %v5380_v6 = vld [vmem:[%s6947_s3 + $0x88] sm:$0xff]  }
 0x1be   :  { %v615_v49 = vrot.slane %v6770_v37, %v614_v47  ;;  %v5382_v37 = vld [vmem:[%s6947_s3 + $0x98] sm:$0xff]  }
 0x1bf   :  { %4699 = vmatpush3.bf16.msra.mxu1 %v5378_v23 }
 0x1c0   :  { %3349 = vmatpush1.bf16.msra.mxu0 %v5360_v51  ;;  %4715 = vmatprep.subr.bf16.mxu1 %v5387_v26 }
 0x1c3   :  { %3351 = vmatmul.mubr.bf16.vlgmr.msra.gmra.mrb[0].mxu0 %v4027_v30 }
 0x1d5   :  { %v4568_v52 = vpop.f32.mrb[16].mxu1 }
 0x1d6   :  { %v4569_v54 = vpop.f32.mrb[17].mxu1 }
 0x1d7   :  { %v4570_v55 = vadd.f32 %v4569_v54, %v4568_v52  ;;  %v4571_v56 = vpop.f32.mrb[18].mxu1 }
 0x1d8   :  { %v4572_v57 = vpop.f32.mrb[19].mxu1 }
 0x1d9   :  { %v3514_v58 = vadd.f32 %v4570_v55, %v3474_v41  ;;  %v4737_v41 = vadd.f32 %v6575_v62, %v615_v49  ;;  %v5381_v62 = vld [vmem:[%s6947_s3 + $0x90] sm:$0xff]  }
 0x1f5   :  { %v4590_v59 = vpop.f32.mrb[20].mxu1 }
 0x1f6   :  { %v4591_v60 = vpop.f32.mrb[21].mxu1 }
 0x1f7   :  { %v4592_v61 = vadd.f32 %v4591_v60, %v4590_v59  ;;  %v4593_v63 = vpop.f32.mrb[22].mxu1 }
 0x1f8   :  { %v4594_v1 = vpop.f32.mrb[23].mxu1  ;;  %v5383_v63 = vld [vmem:[%s6947_s3 + $0xa0] sm:$0xff]  }
 0x1f9   :  { %v3554_v36 = vadd.f32 %v4592_v61, %v3514_v58  ;;  %v5384_v1 = vld [vmem:[%s6947_s3 + $0xa8] sm:$0xff]  }
 0x215   :  { %v4612_v15 = vpop.f32.mrb[24].mxu1 }
 0x216   :  { %v4613_v18 = vpop.f32.mrb[25].mxu1 }
 0x217   :  { %v4614_v19 = vadd.f32 %v4613_v18, %v4612_v15  ;;  %v4615_v20 = vpop.f32.mrb[26].mxu1 }
 0x218   :  { %v4616_v22 = vpop.f32.mrb[27].mxu1 }
 0x219   :  { %v3594_v24 = vadd.f32 %v4614_v19, %v3554_v36  ;;  %v5385_v36 = vld [vmem:[%s6947_s3 + $0xb0] sm:$0xff]  }
 0x235   :  { %v4634_v27 = vpop.f32.mrb[28].mxu1 }
 0x236   :  { %v4635_v28 = vpop.f32.mrb[29].mxu1 }
 0x237   :  { %v4636_v48 = vadd.f32 %v4635_v28, %v4634_v27  ;;  %v4637_v30 = vpop.f32.mrb[30].mxu1 }
 0x238   :  { %v4638_v32 = vpop.f32.mrb[31].mxu1 }
 0x239   :  { %v3634_v35 = vadd.f32 %v4636_v48, %v3594_v24 }
 0x255   :  { %v4656_v38 = vpop.f32.mrb[32].mxu1 }
 0x256   :  { %v4657_v29 = vpop.f32.mrb[33].mxu1 }
 0x257   :  { %v4658_v39 = vadd.f32 %v4657_v29, %v4656_v38  ;;  %v4659_v40 = vpop.f32.mrb[34].mxu1 }
 0x258   :  { %v4660_v42 = vpop.f32.mrb[35].mxu1 }
 0x259   :  { %v3674_v16 = vadd.f32 %v4658_v39, %v3634_v35 }
 0x275   :  { %v4678_v17 = vpop.f32.mrb[36].mxu1 }
 0x276   :  { %v4679_v43 = vpop.f32.mrb[37].mxu1 }
 0x277   :  { %v4680_v44 = vadd.f32 %v4679_v43, %v4678_v17  ;;  %v4681_v34 = vpop.f32.mrb[38].mxu1 }
 0x278   :  { %v4682_v45 = vpop.f32.mrb[39].mxu1 }
 0x279   :  { %v3714_v33 = vadd.f32 %v4680_v44, %v3674_v16 }
 0x27b   :  { %v3721_v7 = vmax.f32 %v3714_v33, 0.0 }
 0x27d   :  { %v3724_v3 = vpack.c.bf16 %v3721_v7, %v3721_v7 }
 0x296   :  { %v3352_v51 = vpop.f32.mrb[0].mxu0 }
 0x297   :  { %v4736_v52 = vadd.f32 %v4735_v50, %v3352_v51  ;;  %v3354_v54 = vpop.f32.mrb[1].mxu0 }
 0x298   :  { %v4738_v55 = vadd.f32 %v4737_v41, %v3354_v54  ;;  %v3356_v56 = vpop.f32.mrb[2].mxu0 }
 0x299   :  { %v3719_v57 = vmax.f32 %v4736_v52, 0.0  ;;  %v3357_v58 = vpop.f32.mrb[3].mxu0 }
 0x29a   :  { %v3720_v59 = vmax.f32 %v4738_v55, 0.0 }
 0x29b   :  { %v3722_v61 = vpack.c.bf16 %v3719_v57, %v3719_v57 }
 0x29c   :  { %v3723_v60 = vpack.c.bf16 %v3720_v59, %v3720_v59 }
 0x29e   :  { %3956 = vmatprep.mubr.bf16.mxu1 %v3723_v60 }
 0x29f   :  { %3957 = vmatmul.mubr.bf16.vlgmr.msra.gmra.mrb[40].mxu1 %v3722_v61 }
 0x2a0   :  { %4716 = vmatpush3.bf16.msra.mxu1 %v5379_v0  ;;  %4731 = vmatprep.mubr.msk.bf16.mxu1 %vm5388_vm0, %v5387_v26 }
 0x2a1   :  { %4717 = vmatprep.subr.bf16.mxu1 %v5387_v26 }
 0x2a4   :  { %4718 = vmatpush3.bf16.msra.mxu1 %v5380_v6 }
 0x2a5   :  { %4719 = vmatprep.subr.bf16.mxu1 %v5387_v26 }
 0x2a8   :  { %4720 = vmatpush3.bf16.msra.mxu1 %v5381_v62 }
 0x2a9   :  { %4721 = vmatprep.subr.bf16.mxu1 %v5387_v26 }
 0x2ac   :  { %4722 = vmatpush3.bf16.msra.mxu1 %v5382_v37 }
 0x2ad   :  { %4723 = vmatprep.subr.bf16.mxu1 %v5387_v26 }
 0x2b0   :  { %4724 = vmatpush3.bf16.msra.mxu1 %v5383_v63 }
 0x2b1   :  { %4725 = vmatprep.subr.bf16.mxu1 %v5387_v26 }
 0x2b4   :  { %4726 = vmatpush3.bf16.msra.mxu1 %v5384_v1 }
 0x2b5   :  { %4727 = vmatprep.subr.bf16.mxu1 %v5387_v26 }
 0x2b8   :  { %4728 = vmatpush3.bf16.msra.mxu1 %v5385_v36 }
 0x2b9   :  { %4729 = vmatprep.subr.bf16.mxu1 %v5387_v26 }
 0x2bc   :  { %4730 = vmatpush3.bf16.msra.mxu1 %v5386_v2 }
 0x2bf   :  { %4732 = vmatmul.mubr.bf16.vlgmr.msra.gmra.mrb[44].mxu1 %v3724_v3 }
 0x372   :  { %v4700_v4 = vpop.f32.mrb[40].mxu1 }
 0x373   :  { %v4701_v5 = vpop.f32.mrb[41].mxu1 }
 0x374   :  { %v4702_v25 = vadd.f32 %v4701_v5, %v4700_v4  ;;  %v4703_v8 = vpop.f32.mrb[42].mxu1 }
 0x375   :  { %v4704_v9 = vpop.f32.mrb[43].mxu1 }
 0x376   :  { %v3959_v31 = vadd.f32 %v4702_v25, %v4461_v10 }
 0x392   :  { %v3998_v11 = vpop.f32.mrb[44].mxu1 }
 0x393   :  { %v3999_v12 = vadd.f32 %v3998_v11, %v3959_v31  ;;  %v4733_v13 = vpop.f32.mrb[45].mxu1 }
 0x394   :  { %v4001_v14 = vpop.f32.mrb[46].mxu1 }
 0x395   :  { %v4004_v15 = vmax.f32 %v3999_v12, 0.0  ;;  %v4734_v18 = vpop.f32.mrb[47].mxu1 }
 0x397   :  { %v4005_v19 = vpack.c.bf16 %v4004_v15, %v4004_v15 }
 0x399   :  { %4006 = vst [vmem:[%s6949_s5] sm:$0xf] %v4005_v19 }

</bundles_post_ra>
